<compile_context>
chip_gen: v7x
topology: tpu7x:2x2x1
jax: 0.10.0
libtpu: 0.0.40
codegen_flags: <defaults>
</compile_context>

<pallas_src>
import functools

import jax
import jax.numpy as jnp
from jax.experimental import pallas as pl
from jax.experimental.pallas import tpu as pltpu


# --------------------------------------------------------------------------- param init
def init_params(key, num_obj):
    """Deterministic synthetic weights. Conv1d(k=1)/Linear stored as (Cin, Cout)."""
    shapes = [
        ("w_c1", (3, 64)), ("b_c1", (1, 64)),
        ("w_ec1", (32, 64)), ("b_ec1", (1, 64)),
        ("w_c2", (64, 128)), ("b_c2", (1, 128)),
        ("w_ec2", (64, 128)), ("b_ec2", (1, 128)),
        ("w_c5", (384, 512)), ("b_c5", (1, 512)),
        ("w_c6", (512, 1024)), ("b_c6", (1, 1024)),
        ("w_r1", (1024, 512)), ("b_r1", (1, 512)),
        ("w_t1", (1024, 512)), ("b_t1", (1, 512)),
        ("w_r2", (512, 128)), ("b_r2", (1, 128)),
        ("w_t2", (512, 128)), ("b_t2", (1, 128)),
        ("w_r3", (128, num_obj * 4)), ("b_r3", (1, num_obj * 4)),
        ("w_t3", (128, num_obj * 3)), ("b_t3", (1, num_obj * 3)),
    ]
    keys = jax.random.split(key, len(shapes))
    params = []
    for (name, shape), k in zip(shapes, keys):
        fan_in = shape[0] if name.startswith("w") else shape[1]
        bound = 1.0 / jnp.sqrt(jnp.float32(fan_in))
        params.append(jax.random.uniform(k, shape, jnp.float32, -bound, bound))
    return params


# --------------------------------------------------------------------------- weight prep
def _block_diag(a, b):
    r1, c1 = a.shape
    r2, c2 = b.shape
    top = jnp.concatenate([a, jnp.zeros((r1, c2), a.dtype)], axis=1)
    bot = jnp.concatenate([jnp.zeros((r2, c1), b.dtype), b], axis=1)
    return jnp.concatenate([top, bot], axis=0)


def _quantize_int8(w):
    """Per-output-channel symmetric int8: w ~= w_q * scale (w_q int8, scale f32 row)."""
    scale = jnp.max(jnp.abs(w), axis=0, keepdims=True) / 127.0
    scale = jnp.maximum(scale, 1e-12)
    w_q = jnp.clip(jnp.round(w / scale), -127.0, 127.0).astype(jnp.int8)
    return w_q, scale.astype(jnp.float32)


def prepare_weights(params, num_obj, wdtype=jnp.bfloat16):
    """Fuse/quantize/pack the 24 PyTorch tensors ONCE. Returns (weights dict, bias layout, padded out width)."""
    (w_c1, b_c1, w_ec1, b_ec1, w_c2, b_c2, w_ec2, b_ec2,
     w_c5, b_c5, w_c6, b_c6,
     w_r1, b_r1, w_t1, b_t1, w_r2, b_r2, w_t2, b_t2,
     w_r3, b_r3, w_t3, b_t3) = params

    # Stem 1 split along K: x and emb are fed separately (no lane concat anywhere).
    w1x = jnp.concatenate([w_c1, jnp.zeros((3, 64), jnp.float32)], axis=1)     # (3, 128)
    w1e = jnp.concatenate([jnp.zeros((32, 64), jnp.float32), w_ec1], axis=1)   # (32, 128)
    b1 = jnp.concatenate([b_c1, b_ec1], axis=1)                                # (1, 128)
    w2 = _block_diag(w_c2, w_ec2)                                              # (128, 256)
    b2 = jnp.concatenate([b_c2, b_ec2], axis=1)                                # (1, 256)
    w5a, w5b, b5 = w_c5[:128], w_c5[128:], b_c5                                # (128/256, 512)
    w6q, s6 = _quantize_int8(w_c6)                                             # int8 (512, 1024)
    wh1q, sh1 = _quantize_int8(jnp.concatenate([w_r1, w_t1], axis=1))          # int8 (1024, 1024)
    bh1 = jnp.concatenate([b_r1, b_t1], axis=1)                                # (1, 1024)
    wh2 = _block_diag(w_r2, w_t2)                                              # (1024, 256)
    bh2 = jnp.concatenate([b_r2, b_t2], axis=1)                                # (1, 256)

    out_w = num_obj * 7
    out_pad = ((out_w + 127) // 128) * 128                                     # lane-dense output
    wh3 = jnp.pad(_block_diag(w_r3, w_t3), ((0, 0), (0, out_pad - out_w)))     # (256, out_pad)
    bh3 = jnp.pad(jnp.concatenate([b_r3, b_t3], axis=1),
                  ((0, 0), (0, out_pad - out_w)))                              # (1, out_pad)

    # Pack every bias / dequant-scale row into ONE f32 vector (single DMA, 128-aligned slices).
    segs = [("b1", b1), ("b2", b2), ("b5", b5), ("b6", b_c6), ("s6", s6),
            ("bh1", bh1), ("sh1", sh1), ("bh2", bh2), ("bh3", bh3)]
    layout, off = {}, 0
    for name, a in segs:
        layout[name] = (off, a.shape[1])
        off += a.shape[1]
    packed = jnp.concatenate([a for _, a in segs], axis=1).astype(jnp.float32)

    weights = dict(
        w1x=w1x.astype(wdtype), w1e=w1e.astype(wdtype), w2=w2.astype(wdtype),
        w5a=w5a.astype(wdtype), w5b=w5b.astype(wdtype),
        w6q=w6q, wh1q=wh1q,
        wh2=wh2.astype(wdtype), wh3=wh3.astype(wdtype),
        bias=packed,
    )
    return weights, layout, out_pad


# --------------------------------------------------------------------------- kernel
def _make_kernel(bs, num_points, layout):
    f32, bf16 = jnp.float32, jnp.bfloat16
    inv_n = float(1.0 / num_points)   # exact f32 scale for the avg-pool

    def seg(bias_ref, name):
        lo, width = layout[name]
        return bias_ref[:, lo:lo + width]          # static, 128-aligned lane slice

    def relu(v):
        return jnp.maximum(v, 0.0)

    def kernel(x_ref, emb_ref, w1x, w1e, w2, w5a, w5b, w6q, wh1q, wh2, wh3,
               bias_ref, out_ref):
        x = x_ref[...]                              # (M, 3)  bf16
        e = emb_ref[...]                            # (M, 32) bf16

        # conv1 / e_conv1 fused via K-split: cols [0:64] = x branch, [64:128] = emb branch.
        pf1 = relu(jnp.dot(x, w1x[...], preferred_element_type=f32)
                   + jnp.dot(e, w1e[...], preferred_element_type=f32)
                   + seg(bias_ref, "b1"))                                   # (M, 128) == pointfeat_1
        pf1_b = pf1.astype(bf16)

        # conv2 / e_conv2 via block-diagonal weight.
        pf2 = relu(jnp.dot(pf1_b, w2[...], preferred_element_type=f32)
                   + seg(bias_ref, "b2"))                                   # (M, 256) == pointfeat_2
        pf2_b = pf2.astype(bf16)

        # conv5 over pointfeat_3 = [pf1 | pf2] without building the concat (MXU K-chunk accumulate).
        h5 = relu(jnp.dot(pf1_b, w5a[...], preferred_element_type=f32)
                  + jnp.dot(pf2_b, w5b[...], preferred_element_type=f32)
                  + seg(bias_ref, "b5"))                                    # (M, 512)

        # conv6: int8 weight, dequant folded into the bias add (per-output-channel scale).
        w6_b = w6q[...].astype(bf16)                # int8 values are exact in bf16
        h6 = relu(jnp.dot(h5.astype(bf16), w6_b, preferred_element_type=f32)
                  * seg(bias_ref, "s6") + seg(bias_ref, "b6"))              # (M, 1024)

        # AvgPool1d(num_points): sublane-regroup reshape + XLU sum, 1/N kept in f32.
        ap = jnp.sum(h6.reshape(bs, num_points, 1024), axis=1) * inv_n      # (bs, 1024)

        # Fused r/t heads: cols [0:512] = r branch, [512:1024] = t branch (kept separate
        # by the block-diagonal weights downstream).  wh1 is int8, dequant like conv6.
        wh1_b = wh1q[...].astype(bf16)
        h1 = relu(jnp.dot(ap.astype(bf16), wh1_b, preferred_element_type=f32)
                  * seg(bias_ref, "sh1") + seg(bias_ref, "bh1"))            # (bs, 1024)
        h2 = relu(jnp.dot(h1.astype(bf16), wh2[...], preferred_element_type=f32)
                  + seg(bias_ref, "bh2"))                                   # (bs, 256)
        out = (jnp.dot(h2.astype(bf16), wh3[...], preferred_element_type=f32)
               + seg(bias_ref, "bh3"))                                      # (bs, out_pad) lane-dense
        out_ref[...] = out

    return kernel


# --------------------------------------------------------------------------- wrapper
def pose_refine_net(x, emb, obj, weights, *, layout, out_pad, num_points, num_obj):
    """x: (bs, N, 3) f32 ; emb: (bs, 32, N) f32 ; obj: (bs, 1) int32 ; weights from prepare_weights()."""
    bs = x.shape[0]
    assert x.shape == (bs, num_points, 3)
    assert emb.shape == (bs, 32, num_points)
    m = bs * num_points

    # Minimal per-call prep: fold batch into the points axis, cast activations to bf16.
    x_flat = x.reshape(m, 3).astype(jnp.bfloat16)                              # (M, 3)
    emb_flat = jnp.transpose(emb, (0, 2, 1)).reshape(m, 32).astype(jnp.bfloat16)  # (M, 32)

    kernel = _make_kernel(bs, num_points, layout)
    order = ("w1x", "w1e", "w2", "w5a", "w5b", "w6q", "wh1q", "wh2", "wh3", "bias")
    w_args = [weights[k] for k in order]

    # Single step: no grid, no pipelining -> every operand is a whole-array VMEM resident
    # (one DMA each, no double-buffering).  ~5 MiB total VMEM, fits every generation.
    vmem = pl.BlockSpec(memory_space=pltpu.MemorySpace.VMEM)
    out = pl.pallas_call(
        kernel,
        out_shape=jax.ShapeDtypeStruct((bs, out_pad), jnp.float32),
        in_specs=[vmem] * (2 + len(w_args)),
        out_specs=vmem,
        compiler_params=pltpu.CompilerParams(vmem_limit_bytes=32 * 1024 * 1024),
    )(x_flat, emb_flat, *w_args)

    out = out[:, : num_obj * 7]
    rx = out[:, : num_obj * 4].reshape(bs, num_obj, 4)
    tx = out[:, num_obj * 4:].reshape(bs, num_obj, 3)
    b = 0  # matches the PyTorch module: only batch element 0 is returned.
    out_rx = jnp.take(rx[b], obj[b], axis=0)   # (1, 4)
    out_tx = jnp.take(tx[b], obj[b], axis=0)   # (1, 3)
    return out_rx, out_tx


# --------------------------------------------------------------------------- reference
def _reference(x, emb, obj, params, num_points, num_obj):
    """Pure-JAX f32 reference mirroring the PyTorch forward."""
    (w_c1, b_c1, w_ec1, b_ec1, w_c2, b_c2, w_ec2, b_ec2,
     w_c5, b_c5, w_c6, b_c6,
     w_r1, b_r1, w_t1, b_t1, w_r2, b_r2, w_t2, b_t2,
     w_r3, b_r3, w_t3, b_t3) = params
    e = jnp.transpose(emb, (0, 2, 1))
    hx = jax.nn.relu(x @ w_c1 + b_c1)
    he = jax.nn.relu(e @ w_ec1 + b_ec1)
    pf1 = jnp.concatenate([hx, he], axis=-1)
    hx2 = jax.nn.relu(hx @ w_c2 + b_c2)
    he2 = jax.nn.relu(he @ w_ec2 + b_ec2)
    pf2 = jnp.concatenate([hx2, he2], axis=-1)
    pf3 = jnp.concatenate([pf1, pf2], axis=-1)
    h5 = jax.nn.relu(pf3 @ w_c5 + b_c5)
    h6 = jax.nn.relu(h5 @ w_c6 + b_c6)
    ap = jnp.mean(h6, axis=1)
    rx = jax.nn.relu(ap @ w_r1 + b_r1)
    tx = jax.nn.relu(ap @ w_t1 + b_t1)
    rx = jax.nn.relu(rx @ w_r2 + b_r2)
    tx = jax.nn.relu(tx @ w_t2 + b_t2)
    rx = (rx @ w_r3 + b_r3).reshape(-1, num_obj, 4)
    tx = (tx @ w_t3 + b_t3).reshape(-1, num_obj, 3)
    return jnp.take(rx[0], obj[0], axis=0), jnp.take(tx[0], obj[0], axis=0)


# --------------------------------------------------------------------------- main
if __name__ == "__main__":
    num_points = 64
    num_obj = 5
    bs = 2

    key = jax.random.PRNGKey(0)
    k_x, k_emb, k_params = jax.random.split(key, 3)

    x = jax.random.normal(k_x, (bs, num_points, 3), jnp.float32)
    emb = jax.random.normal(k_emb, (bs, 32, num_points), jnp.float32)
    obj = jnp.array([[2], [0]], dtype=jnp.int32)
    params = init_params(k_params, num_obj)

    # Weight fusion / quantization / packing runs ONCE, outside the per-call path.
    weights, layout, out_pad = prepare_weights(params, num_obj)
    weights = jax.device_put(weights)

    fwd = jax.jit(functools.partial(pose_refine_net, layout=layout, out_pad=out_pad,
                                    num_points=num_points, num_obj=num_obj))

    out_rx, out_tx = fwd(x, emb, obj, weights)
    jax.block_until_ready((out_rx, out_tx))

    ref_rx, ref_tx = _reference(x, emb, obj, params, num_points, num_obj)
    assert out_rx.shape == (1, 4) and out_tx.shape == (1, 3)
    # bf16 activations + int8 (per-channel) conv6/head-1 weights, f32 accumulation:
    # a few % vs the full-f32 reference.
    assert jnp.allclose(out_rx, ref_rx, atol=3e-2, rtol=3e-2), (out_rx, ref_rx)
    assert jnp.allclose(out_tx, ref_tx, atol=3e-2, rtol=3e-2), (out_tx, ref_tx)

    print("KERNEL_OK")
</pallas_src>

<mosaic_0001>
module attributes {stable_mosaic.version = 11 : i64} {
  func.func @kernel(%arg0: memref<128x3xbf16, #tpu.memory_space<vmem>>, %arg1: memref<128x32xbf16, #tpu.memory_space<vmem>>, %arg2: memref<3x128xbf16, #tpu.memory_space<vmem>>, %arg3: memref<32x128xbf16, #tpu.memory_space<vmem>>, %arg4: memref<128x256xbf16, #tpu.memory_space<vmem>>, %arg5: memref<128x512xbf16, #tpu.memory_space<vmem>>, %arg6: memref<256x512xbf16, #tpu.memory_space<vmem>>, %arg7: memref<512x1024xi8, #tpu.memory_space<vmem>>, %arg8: memref<1024x1024xi8, #tpu.memory_space<vmem>>, %arg9: memref<1024x256xbf16, #tpu.memory_space<vmem>>, %arg10: memref<256x128xbf16, #tpu.memory_space<vmem>>, %arg11: memref<1x5376xf32, #tpu.memory_space<vmem>>, %arg12: memref<2x128xf32, #tpu.memory_space<vmem>>) attributes {dimension_semantics = [], scalar_prefetch = 0 : i64, scratch_operands = 0 : i64, tpu.core_type = #tpu.core_type<tc>} {
    %c0 = arith.constant 0 : index
    %c0_0 = arith.constant 0 : index
    %0 = vector.load %arg0[%c0, %c0_0] : memref<128x3xbf16, #tpu.memory_space<vmem>>, vector<128x3xbf16>
    %c0_1 = arith.constant 0 : index
    %c0_2 = arith.constant 0 : index
    %1 = vector.load %arg1[%c0_1, %c0_2] : memref<128x32xbf16, #tpu.memory_space<vmem>>, vector<128x32xbf16>
    %c0_3 = arith.constant 0 : index
    %c0_4 = arith.constant 0 : index
    %2 = vector.load %arg2[%c0_3, %c0_4] : memref<3x128xbf16, #tpu.memory_space<vmem>>, vector<3x128xbf16>
    %cst = arith.constant dense<0.000000e+00> : vector<128x128xf32>
    %3 = tpu.matmul %0, %2, %cst {dimension_numbers = #tpu.dot_dimension_numbers<[1], [0], [0], [1], [0, 0, 1, 1], [], []>} : vector<128x3xbf16>, vector<3x128xbf16>, vector<128x128xf32> -> vector<128x128xf32>
    %c0_5 = arith.constant 0 : index
    %c0_6 = arith.constant 0 : index
    %4 = vector.load %arg3[%c0_5, %c0_6] : memref<32x128xbf16, #tpu.memory_space<vmem>>, vector<32x128xbf16>
    %cst_7 = arith.constant dense<0.000000e+00> : vector<128x128xf32>
    %5 = tpu.matmul %1, %4, %cst_7 {dimension_numbers = #tpu.dot_dimension_numbers<[1], [0], [0], [1], [0, 0, 1, 1], [], []>} : vector<128x32xbf16>, vector<32x128xbf16>, vector<128x128xf32> -> vector<128x128xf32>
    %6 = arith.addf %3, %5 : vector<128x128xf32>
    %c0_8 = arith.constant 0 : index
    %c0_9 = arith.constant 0 : index
    %7 = vector.load %arg11[%c0_8, %c0_9] : memref<1x5376xf32, #tpu.memory_space<vmem>>, vector<1x128xf32>
    %8 = vector.broadcast %7 : vector<1x128xf32> to vector<128x128xf32>
    %9 = arith.addf %6, %8 : vector<128x128xf32>
    %cst_10 = arith.constant 0.000000e+00 : f32
    %10 = vector.broadcast %cst_10 : f32 to vector<128x128xf32>
    %11 = arith.maximumf %9, %10 : vector<128x128xf32>
    %12 = arith.truncf %11 : vector<128x128xf32> to vector<128x128xbf16>
    %c0_11 = arith.constant 0 : index
    %c0_12 = arith.constant 0 : index
    %13 = vector.load %arg4[%c0_11, %c0_12] : memref<128x256xbf16, #tpu.memory_space<vmem>>, vector<128x256xbf16>
    %cst_13 = arith.constant dense<0.000000e+00> : vector<128x256xf32>
    %14 = tpu.matmul %12, %13, %cst_13 {dimension_numbers = #tpu.dot_dimension_numbers<[1], [0], [0], [1], [0, 0, 1, 1], [], []>} : vector<128x128xbf16>, vector<128x256xbf16>, vector<128x256xf32> -> vector<128x256xf32>
    %c0_14 = arith.constant 0 : index
    %c128 = arith.constant 128 : index
    %15 = vector.load %arg11[%c0_14, %c128] : memref<1x5376xf32, #tpu.memory_space<vmem>>, vector<1x256xf32>
    %16 = vector.broadcast %15 : vector<1x256xf32> to vector<128x256xf32>
    %17 = arith.addf %14, %16 : vector<128x256xf32>
    %cst_15 = arith.constant 0.000000e+00 : f32
    %18 = vector.broadcast %cst_15 : f32 to vector<128x256xf32>
    %19 = arith.maximumf %17, %18 : vector<128x256xf32>
    %20 = arith.truncf %19 : vector<128x256xf32> to vector<128x256xbf16>
    %c0_16 = arith.constant 0 : index
    %c0_17 = arith.constant 0 : index
    %21 = vector.load %arg5[%c0_16, %c0_17] : memref<128x512xbf16, #tpu.memory_space<vmem>>, vector<128x512xbf16>
    %cst_18 = arith.constant dense<0.000000e+00> : vector<128x512xf32>
    %22 = tpu.matmul %12, %21, %cst_18 {dimension_numbers = #tpu.dot_dimension_numbers<[1], [0], [0], [1], [0, 0, 1, 1], [], []>} : vector<128x128xbf16>, vector<128x512xbf16>, vector<128x512xf32> -> vector<128x512xf32>
    %c0_19 = arith.constant 0 : index
    %c0_20 = arith.constant 0 : index
    %23 = vector.load %arg6[%c0_19, %c0_20] : memref<256x512xbf16, #tpu.memory_space<vmem>>, vector<256x512xbf16>
    %cst_21 = arith.constant dense<0.000000e+00> : vector<128x512xf32>
    %24 = tpu.matmul %20, %23, %cst_21 {dimension_numbers = #tpu.dot_dimension_numbers<[1], [0], [0], [1], [0, 0, 1, 1], [], []>} : vector<128x256xbf16>, vector<256x512xbf16>, vector<128x512xf32> -> vector<128x512xf32>
    %25 = arith.addf %22, %24 : vector<128x512xf32>
    %c0_22 = arith.constant 0 : index
    %c384 = arith.constant 384 : index
    %26 = vector.load %arg11[%c0_22, %c384] : memref<1x5376xf32, #tpu.memory_space<vmem>>, vector<1x512xf32>
    %27 = vector.broadcast %26 : vector<1x512xf32> to vector<128x512xf32>
    %28 = arith.addf %25, %27 : vector<128x512xf32>
    %cst_23 = arith.constant 0.000000e+00 : f32
    %29 = vector.broadcast %cst_23 : f32 to vector<128x512xf32>
    %30 = arith.maximumf %28, %29 : vector<128x512xf32>
    %c0_24 = arith.constant 0 : index
    %c0_25 = arith.constant 0 : index
    %31 = vector.load %arg7[%c0_24, %c0_25] : memref<512x1024xi8, #tpu.memory_space<vmem>>, vector<512x1024xi8>
    %32 = arith.sitofp %31 : vector<512x1024xi8> to vector<512x1024xbf16>
    %33 = arith.truncf %30 : vector<128x512xf32> to vector<128x512xbf16>
    %cst_26 = arith.constant dense<0.000000e+00> : vector<128x1024xf32>
    %34 = tpu.matmul %33, %32, %cst_26 {dimension_numbers = #tpu.dot_dimension_numbers<[1], [0], [0], [1], [0, 0, 1, 1], [], []>} : vector<128x512xbf16>, vector<512x1024xbf16>, vector<128x1024xf32> -> vector<128x1024xf32>
    %c0_27 = arith.constant 0 : index
    %c1920 = arith.constant 1920 : index
    %35 = vector.load %arg11[%c0_27, %c1920] : memref<1x5376xf32, #tpu.memory_space<vmem>>, vector<1x1024xf32>
    %36 = vector.broadcast %35 : vector<1x1024xf32> to vector<128x1024xf32>
    %37 = arith.mulf %34, %36 : vector<128x1024xf32>
    %c0_28 = arith.constant 0 : index
    %c896 = arith.constant 896 : index
    %38 = vector.load %arg11[%c0_28, %c896] : memref<1x5376xf32, #tpu.memory_space<vmem>>, vector<1x1024xf32>
    %39 = vector.broadcast %38 : vector<1x1024xf32> to vector<128x1024xf32>
    %40 = arith.addf %37, %39 : vector<128x1024xf32>
    %cst_29 = arith.constant 0.000000e+00 : f32
    %41 = vector.broadcast %cst_29 : f32 to vector<128x1024xf32>
    %42 = arith.maximumf %40, %41 : vector<128x1024xf32>
    %43 = vector.shape_cast %42 : vector<128x1024xf32> to vector<2x64x1024xf32>
    %cst_30 = arith.constant dense<0.000000e+00> : vector<2x1024xf32>
    %44 = vector.multi_reduction <add>, %43, %cst_30 [1] : vector<2x64x1024xf32> to vector<2x1024xf32>
    %cst_31 = arith.constant 1.562500e-02 : f32
    %45 = vector.broadcast %cst_31 : f32 to vector<2x1024xf32>
    %46 = arith.mulf %44, %45 : vector<2x1024xf32>
    %c0_32 = arith.constant 0 : index
    %c0_33 = arith.constant 0 : index
    %47 = vector.load %arg8[%c0_32, %c0_33] : memref<1024x1024xi8, #tpu.memory_space<vmem>>, vector<1024x1024xi8>
    %48 = arith.sitofp %47 : vector<1024x1024xi8> to vector<1024x1024xbf16>
    %49 = arith.truncf %46 : vector<2x1024xf32> to vector<2x1024xbf16>
    %cst_34 = arith.constant dense<0.000000e+00> : vector<2x1024xf32>
    %50 = tpu.matmul %49, %48, %cst_34 {dimension_numbers = #tpu.dot_dimension_numbers<[1], [0], [0], [1], [0, 0, 1, 1], [], []>} : vector<2x1024xbf16>, vector<1024x1024xbf16>, vector<2x1024xf32> -> vector<2x1024xf32>
    %c0_35 = arith.constant 0 : index
    %c3968 = arith.constant 3968 : index
    %51 = vector.load %arg11[%c0_35, %c3968] : memref<1x5376xf32, #tpu.memory_space<vmem>>, vector<1x1024xf32>
    %52 = vector.broadcast %51 : vector<1x1024xf32> to vector<2x1024xf32>
    %53 = arith.mulf %50, %52 : vector<2x1024xf32>
    %c0_36 = arith.constant 0 : index
    %c2944 = arith.constant 2944 : index
    %54 = vector.load %arg11[%c0_36, %c2944] : memref<1x5376xf32, #tpu.memory_space<vmem>>, vector<1x1024xf32>
    %55 = vector.broadcast %54 : vector<1x1024xf32> to vector<2x1024xf32>
    %56 = arith.addf %53, %55 : vector<2x1024xf32>
    %cst_37 = arith.constant 0.000000e+00 : f32
    %57 = vector.broadcast %cst_37 : f32 to vector<2x1024xf32>
    %58 = arith.maximumf %56, %57 : vector<2x1024xf32>
    %59 = arith.truncf %58 : vector<2x1024xf32> to vector<2x1024xbf16>
    %c0_38 = arith.constant 0 : index
    %c0_39 = arith.constant 0 : index
    %60 = vector.load %arg9[%c0_38, %c0_39] : memref<1024x256xbf16, #tpu.memory_space<vmem>>, vector<1024x256xbf16>
    %cst_40 = arith.constant dense<0.000000e+00> : vector<2x256xf32>
    %61 = tpu.matmul %59, %60, %cst_40 {dimension_numbers = #tpu.dot_dimension_numbers<[1], [0], [0], [1], [0, 0, 1, 1], [], []>} : vector<2x1024xbf16>, vector<1024x256xbf16>, vector<2x256xf32> -> vector<2x256xf32>
    %c0_41 = arith.constant 0 : index
    %c4992 = arith.constant 4992 : index
    %62 = vector.load %arg11[%c0_41, %c4992] : memref<1x5376xf32, #tpu.memory_space<vmem>>, vector<1x256xf32>
    %63 = vector.broadcast %62 : vector<1x256xf32> to vector<2x256xf32>
    %64 = arith.addf %61, %63 : vector<2x256xf32>
    %cst_42 = arith.constant 0.000000e+00 : f32
    %65 = vector.broadcast %cst_42 : f32 to vector<2x256xf32>
    %66 = arith.maximumf %64, %65 : vector<2x256xf32>
    %67 = arith.truncf %66 : vector<2x256xf32> to vector<2x256xbf16>
    %c0_43 = arith.constant 0 : index
    %c0_44 = arith.constant 0 : index
    %68 = vector.load %arg10[%c0_43, %c0_44] : memref<256x128xbf16, #tpu.memory_space<vmem>>, vector<256x128xbf16>
    %cst_45 = arith.constant dense<0.000000e+00> : vector<2x128xf32>
    %69 = tpu.matmul %67, %68, %cst_45 {dimension_numbers = #tpu.dot_dimension_numbers<[1], [0], [0], [1], [0, 0, 1, 1], [], []>} : vector<2x256xbf16>, vector<256x128xbf16>, vector<2x128xf32> -> vector<2x128xf32>
    %c0_46 = arith.constant 0 : index
    %c5248 = arith.constant 5248 : index
    %70 = vector.load %arg11[%c0_46, %c5248] : memref<1x5376xf32, #tpu.memory_space<vmem>>, vector<1x128xf32>
    %71 = vector.broadcast %70 : vector<1x128xf32> to vector<2x128xf32>
    %72 = arith.addf %69, %71 : vector<2x128xf32>
    %c0_47 = arith.constant 0 : index
    %c0_48 = arith.constant 0 : index
    %73 = vector.load %arg12[%c0_47, %c0_48] : memref<2x128xf32, #tpu.memory_space<vmem>>, vector<2x128xf32>
    tpu.vector_store %arg12[%c0_47, %c0_48], %72 {strides = array<i32>} : memref<2x128xf32, #tpu.memory_space<vmem>>, vector<2x128xf32>,
    return
  }
}

</mosaic_0001>

<bundles_post_ra>
// kernel: squeeze.6
= control target key start
LH: loop header
LB: loop body
LE: loop exit
PB: predicated region body
PF: predicated region fallthrough
CT: control target
= control target key end

     0   :  { %s42_s8 = smov 125   ;;  %vm7_vm0 = vcmask 23552   ;;  %s43_s11 = smov 116   ;;  %s78_s0 = inlined_call_operand.vmem [shape: f32[15], index: 0, kind: input, shape index: {}]   ;;  %s79_s1 = inlined_call_operand.vmem [shape: f32[5,3], index: 1, kind: output, shape index: {}]  }
   0x1   :  { %v4_v0 = vld [vmem:[%s78_s0] sm:$0x1]  ;;  %s41_s0 = smov 119   ;;  %s44_s12 = smov 122  }
   0x2   :  { %5 = vst [vmem:[#allocation0] sm:$0x1] %v4_v0 }
   0x9   :  { %v21_v1 = vld [vmem:[#allocation0] sm:$0x1]  }
   0xa   :  { %v9_v2 = vld [vmem:[#allocation0] sm:$0x1]   ;;  %22 = vrot.lane.b32.xlu1 %v21_v1, %s41_s0 }
   0xb   :  { %10 = vrot.lane.b32.xlu0 %v9_v2, %s42_s8  ;;  %v6_v3 = vld [vmem:[#allocation0] sm:$0x1]  }
   0xc   :  { %v27_v4 = vld [vmem:[#allocation0] sm:$0x1]   ;;  %8 = vst.msk [vmem:[%s79_s1] sm:$0x1] %vm7_vm0, %v6_v3  }
   0xd   :  { %v15_v5 = vld [vmem:[#allocation0] sm:$0x1]  }
   0xe   :  { %28 = vrot.lane.b32.xlu1 %v27_v4, %s43_s11 }
   0xf   :  { %16 = vrot.lane.b32.xlu0 %v15_v5, %s44_s12 }
  0x7c   :  { %v23_v6 = vpop.permute.xlu1 %22  }
  0x7d   :  { %v11_v7 = vpop.permute.xlu0 %10   ;;  %35 = vst.msk [vmem:[%s79_s1 + $0x3] sm:$0x1] %vm7_vm0, %v23_v6  }
  0x7e   :  { %33 = vst.msk [vmem:[%s79_s1 + $0x1] sm:$0x1] %vm7_vm0, %v11_v7  }
  0x80   :  { %v29_v8 = vpop.permute.xlu1 %28  }
  0x81   :  { %v17_v9 = vpop.permute.xlu0 %16   ;;  %36 = vst.msk [vmem:[%s79_s1 + $0x4] sm:$0x1] %vm7_vm0, %v29_v8  }
  0x82   :  { %34 = vst.msk [vmem:[%s79_s1 + $0x2] sm:$0x1] %vm7_vm0, %v17_v9  }

// kernel: squeeze.4
= control target key start
LH: loop header
LB: loop body
LE: loop exit
PB: predicated region body
PF: predicated region fallthrough
CT: control target
= control target key end

     0   :  { %s42_s8 = smov 124   ;;  %vm7_vm0 = vcmask 31744   ;;  %s43_s11 = smov 112   ;;  %s78_s0 = inlined_call_operand.vmem [shape: f32[20], index: 0, kind: input, shape index: {}]   ;;  %s79_s1 = inlined_call_operand.vmem [shape: f32[5,4], index: 1, kind: output, shape index: {}]  }
   0x1   :  { %v4_v0 = vld [vmem:[%s78_s0] sm:$0x1]  ;;  %s41_s0 = smov 116   ;;  %s44_s12 = smov 120  }
   0x2   :  { %5 = vst [vmem:[#allocation0] sm:$0x1] %v4_v0 }
   0x9   :  { %v21_v1 = vld [vmem:[#allocation0] sm:$0x1]  }
   0xa   :  { %v9_v2 = vld [vmem:[#allocation0] sm:$0x1]   ;;  %22 = vrot.lane.b32.xlu1 %v21_v1, %s41_s0 }
   0xb   :  { %10 = vrot.lane.b32.xlu0 %v9_v2, %s42_s8  ;;  %v6_v3 = vld [vmem:[#allocation0] sm:$0x1]  }
   0xc   :  { %v27_v4 = vld [vmem:[#allocation0] sm:$0x1]   ;;  %8 = vst.msk [vmem:[%s79_s1] sm:$0x1] %vm7_vm0, %v6_v3  }
   0xd   :  { %v15_v5 = vld [vmem:[#allocation0] sm:$0x1]  }
   0xe   :  { %28 = vrot.lane.b32.xlu1 %v27_v4, %s43_s11 }
   0xf   :  { %16 = vrot.lane.b32.xlu0 %v15_v5, %s44_s12 }
  0x7c   :  { %v23_v6 = vpop.permute.xlu1 %22  }
  0x7d   :  { %v11_v7 = vpop.permute.xlu0 %10   ;;  %35 = vst.msk [vmem:[%s79_s1 + $0x3] sm:$0x1] %vm7_vm0, %v23_v6  }
  0x7e   :  { %33 = vst.msk [vmem:[%s79_s1 + $0x1] sm:$0x1] %vm7_vm0, %v11_v7  }
  0x80   :  { %v29_v8 = vpop.permute.xlu1 %28  }
  0x81   :  { %v17_v9 = vpop.permute.xlu0 %16   ;;  %36 = vst.msk [vmem:[%s79_s1 + $0x4] sm:$0x1] %vm7_vm0, %v29_v8  }
  0x82   :  { %34 = vst.msk [vmem:[%s79_s1 + $0x2] sm:$0x1] %vm7_vm0, %v17_v9  }

// kernel: pose_refine_net.1
= control target key start
LH: loop header
LB: loop body
LE: loop exit
PB: predicated region body
PF: predicated region fallthrough
CT: control target
= control target key end

     0   :  { %17 = vsyncpa [#allocation3], 0  ;;  %s9776_s0 = inlined_call_operand.vmem [shape: bf16[128,3], index: 0, kind: input, shape index: {}]   ;;  %s9777_s1 = inlined_call_operand.vmem [shape: bf16[128,32], index: 1, kind: input, shape index: {}]   ;;  %s9778_s2 = inlined_call_operand.vmem [shape: bf16[3,128], index: 2, kind: input, shape index: {}]   ;;  %s9779_s3 = inlined_call_operand.vmem [shape: bf16[32,128], index: 3, kind: input, shape index: {}]   ;;  %s9780_s4 = inlined_call_operand.hbm [shape: bf16[128,256], index: 4, kind: input, shape index: {}]   ;;  %s9781_s5 = inlined_call_operand.vmem [shape: bf16[128,512], index: 5, kind: input, shape index: {}]   ;;  %s9782_s6 = inlined_call_operand.hbm [shape: bf16[256,512], index: 6, kind: input, shape index: {}]   ;;  %s9783_s7 = inlined_call_operand.hbm [shape: s8[512,1024], index: 7, kind: input, shape index: {}]   ;;  %s9784_s8 = inlined_call_operand.hbm [shape: s8[1024,1024], index: 8, kind: input, shape index: {}]   ;;  %s9785_s9 = inlined_call_operand.hbm [shape: bf16[1024,256], index: 9, kind: input, shape index: {}]   ;;  %s9786_s10 = inlined_call_operand.hbm [shape: bf16[256,128], index: 10, kind: input, shape index: {}]   ;;  %s9787_s11 = inlined_call_operand.vmem [shape: f32[1,5376], index: 11, kind: input, shape index: {}]   ;;  %s9788_s12 = inlined_call_operand.vmem [shape: f32[2,128], index: 12, kind: output, shape index: {}]  }
   0x1   :  { %18 = vsyncpa [#allocation5], 0 }
   0x2   :  { %19 = vsyncpa [#allocation8], 0 }
   0x3   :  { %20 = vsyncpa [#allocation11], 0  ;;  %s7945_s21 = smov [#allocation4]   ;;  %s7805_s25 = scalar_lea.hbm %s9782_s6, 8192 }
   0x4   :  { %s48_s22 = sshll.u32 %s7945_s21, 4  ;;  %p7806_p0 = scmp.ne.s32.totalorder %s9782_s6, %s7805_s25  ;;  %s49_s22 = int_to_ptr.vmem [resolvable:$true] %s48_s22 }
   0x5   :  { %p7809_p1 = scmp.lt.u32.totalorder %s7805_s25, %s9782_s6 }
   0x7   :  { %p7811_p2 = pnand %p7809_p1, %p7806_p0 }
   0x9   :  { %7814 = shalt.err (!%p7811_p2)
}
   0xa   :  { %s7815_s30 = scalar_lea.vmem %s49_s22, 8192  ;;  %p7820_p4 = scmp.lt.s32.totalorder %s49_s22, %s49_s22 }
   0xb   :  { %p7816_p3 = scmp.ne.s32.totalorder %s49_s22, %s7815_s30  ;;  %p7821_p5 = scmp.lt.s32.totalorder %s7815_s30, %s7815_s30 }
   0xd   :  { %p7822_p6 = por %p7821_p5, %p7820_p4 }
   0xf   :  { %p7823_p7 = pnand %p7822_p6, %p7816_p3 }
  0x11   :  { %7826 = shalt.err (!%p7823_p7)
}
  0x12   :  { %s7946_s13 = smov 256   ;;  %s7947_s14 = smov 16  }
  0x13   :  { %54 = dma.hbm_to_vmem [thread:$0]  %s9782_s6, 8192, %s49_s22, [#allocation5], %s7946_s13, %s7946_s13, %s7947_s14  }
  0x14   :  { %s7948_s17 = smov [#allocation7]   ;;  %s7949_s19 = smov [#allocation2]  }
  0x15   :  { %s72_s18 = sshll.u32 %s7948_s17, 4  ;;  %s34_s20 = sshll.u32 %s7949_s19, 4  ;;  %s73_s18 = int_to_ptr.vmem [resolvable:$true] %s72_s18  ;;  %s35_s20 = int_to_ptr.vmem [resolvable:$true] %s34_s20 }
  0x16   :  { %s7827_s24 = scalar_lea.hbm %s9784_s8, 32768 }
  0x17   :  { %p7828_p8 = scmp.ne.s32.totalorder %s9784_s8, %s7827_s24  ;;  %p7831_p9 = scmp.lt.u32.totalorder %s7827_s24, %s9784_s8 }
  0x19   :  { %p7833_p10 = pnand %p7831_p9, %p7828_p8 }
  0x1b   :  { %7836 = shalt.err (!%p7833_p10)
}
  0x1c   :  { %s7837_s6 = scalar_lea.vmem %s73_s18, 32768  ;;  %p7842_p12 = scmp.lt.s32.totalorder %s73_s18, %s73_s18 }
  0x1d   :  { %p7838_p11 = scmp.ne.s32.totalorder %s73_s18, %s7837_s6  ;;  %p7843_p13 = scmp.lt.s32.totalorder %s7837_s6, %s7837_s6 }
  0x1f   :  { %p7844_p0 = por %p7843_p13, %p7842_p12 }
  0x21   :  { %p7845_p1 = pnand %p7844_p0, %p7838_p11 }
  0x23   :  { %7848 = shalt.err (!%p7845_p1)
}
  0x24   :  { %s7950_s22 = smov 1024   ;;  %s7951_s29 = smov 64  }
  0x25   :  { %78 = dma.hbm_to_vmem [thread:$0]  %s9784_s8, 32768, %s73_s18, [#allocation8], %s7950_s22, %s7950_s22, %s7951_s29  }
  0x26   :  { %s7849_s16 = scalar_lea.hbm %s9780_s4, 2048 }
  0x27   :  { %p7850_p2 = scmp.ne.s32.totalorder %s9780_s4, %s7849_s16  ;;  %p7853_p3 = scmp.lt.u32.totalorder %s7849_s16, %s9780_s4 }
  0x29   :  { %p7855_p4 = pnand %p7853_p3, %p7850_p2 }
  0x2b   :  { %7858 = shalt.err (!%p7855_p4)
}
  0x2c   :  { %s7859_s24 = scalar_lea.vmem %s35_s20, 2048  ;;  %p7864_p6 = scmp.lt.s32.totalorder %s35_s20, %s35_s20 }
  0x2d   :  { %p7860_p5 = scmp.ne.s32.totalorder %s35_s20, %s7859_s24  ;;  %p7865_p7 = scmp.lt.s32.totalorder %s7859_s24, %s7859_s24 }
  0x2f   :  { %p7866_p8 = por %p7865_p7, %p7864_p6 }
  0x31   :  { %p7867_p9 = pnand %p7866_p8, %p7860_p5 }
  0x33   :  { %7870 = shalt.err (!%p7867_p9)
}
  0x34   :  { %s7952_s8 = smov 128   ;;  %s7953_s18 = smov 8  }
  0x35   :  { %40 = dma.hbm_to_vmem [thread:$0]  %s9780_s4, 2048, %s35_s20, [#allocation3], %s7952_s8, %s7952_s8, %s7953_s18  }
  0x36   :  { %s7954_s27 = smov [#allocation6]   ;;  %s7955_s6 = smov [#allocation9]  }
  0x37   :  { %s60_s28 = sshll.u32 %s7954_s27, 4  ;;  %s84_s30 = sshll.u32 %s7955_s6, 4  ;;  %s61_s28 = int_to_ptr.vmem [resolvable:$true] %s60_s28  ;;  %s85_s30 = int_to_ptr.vmem [resolvable:$true] %s84_s30 }
  0x38   :  { %s7871_s15 = scalar_lea.hbm %s9783_s7, 16384 }
  0x39   :  { %p7872_p10 = scmp.ne.s32.totalorder %s9783_s7, %s7871_s15  ;;  %p7875_p11 = scmp.lt.u32.totalorder %s7871_s15, %s9783_s7 }
  0x3b   :  { %p7877_p12 = pnand %p7875_p11, %p7872_p10 }
  0x3d   :  { %7880 = shalt.err (!%p7877_p12)
}
  0x3e   :  { %s7881_s4 = scalar_lea.vmem %s61_s28, 16384  ;;  %p7886_p0 = scmp.lt.s32.totalorder %s61_s28, %s61_s28 }
  0x3f   :  { %p7882_p13 = scmp.ne.s32.totalorder %s61_s28, %s7881_s4  ;;  %p7887_p1 = scmp.lt.s32.totalorder %s7881_s4, %s7881_s4 }
  0x41   :  { %p7888_p2 = por %p7887_p1, %p7886_p0 }
  0x43   :  { %p7889_p3 = pnand %p7888_p2, %p7882_p13 }
  0x45   :  { %7892 = shalt.err (!%p7889_p3)
}
  0x46   :  { %66 = dma.hbm_to_vmem [thread:$0]  %s9783_s7, 16384, %s61_s28, [#allocation5], %s7950_s22, %s7950_s22, %s7951_s29  }
  0x47   :  { %s7893_s26 = scalar_lea.hbm %s9785_s9, 16384 }
  0x48   :  { %p7894_p4 = scmp.ne.s32.totalorder %s9785_s9, %s7893_s26  ;;  %p7897_p5 = scmp.lt.u32.totalorder %s7893_s26, %s9785_s9 }
  0x4a   :  { %p7899_p6 = pnand %p7897_p5, %p7894_p4 }
  0x4c   :  { %7902 = shalt.err (!%p7899_p6)
}
  0x4d   :  { %s7903_s15 = scalar_lea.vmem %s85_s30, 16384  ;;  %p7908_p8 = scmp.lt.s32.totalorder %s85_s30, %s85_s30 }
  0x4e   :  { %p7904_p7 = scmp.ne.s32.totalorder %s85_s30, %s7903_s15  ;;  %p7909_p9 = scmp.lt.s32.totalorder %s7903_s15, %s7903_s15 }
  0x50   :  { %p7910_p10 = por %p7909_p9, %p7908_p8 }
  0x52   :  { %p7911_p11 = pnand %p7910_p10, %p7904_p7 }
  0x54   :  { %7914 = shalt.err (!%p7911_p11)
}
  0x55   :  { %90 = dma.hbm_to_vmem [thread:$0]  %s9785_s9, 16384, %s85_s30, [#allocation8], %s7952_s8, %s7952_s8, %s7953_s18  }
  0x56   :  { %s7956_s28 = smov [#allocation10]   ;;  %s7915_s21 = scalar_lea.hbm %s9786_s10, 2048 }
  0x57   :  { %s96_s16 = sshll.u32 %s7956_s28, 4  ;;  %p7916_p12 = scmp.ne.s32.totalorder %s9786_s10, %s7915_s21  ;;  %s97_s16 = int_to_ptr.vmem [resolvable:$true] %s96_s16 }
  0x58   :  { %p7919_p13 = scmp.lt.u32.totalorder %s7915_s21, %s9786_s10 }
  0x5a   :  { %p7921_p0 = pnand %p7919_p13, %p7916_p12 }
  0x5c   :  { %7924 = shalt.err (!%p7921_p0)
}
  0x5d   :  { %s7925_s25 = scalar_lea.vmem %s97_s16, 2048  ;;  %p7930_p2 = scmp.lt.s32.totalorder %s97_s16, %s97_s16 }
  0x5e   :  { %p7926_p1 = scmp.ne.s32.totalorder %s97_s16, %s7925_s25  ;;  %p7931_p3 = scmp.lt.s32.totalorder %s7925_s25, %s7925_s25 }
  0x60   :  { %p7932_p4 = por %p7931_p3, %p7930_p2 }
  0x62   :  { %p7933_p5 = pnand %p7932_p4, %p7926_p1 }
  0x64   :  { %7936 = shalt.err (!%p7933_p5)
}
  0x65   :  { %s7957_s9 = smov 4  }
  0x66   :  { %102 = dma.hbm_to_vmem [thread:$0]  %s9786_s10, 2048, %s97_s16, [#allocation11], %s7951_s29, %s7951_s29, %s7957_s9  }
  0x67   :  { %7937 = dma.done.wait [#allocation3], 2048  }
  0x68   :  { %7938 = vsyncadd [#allocation3], 4294965248 }
  0x69   :  { %7939 = dma.done.wait [#allocation5], 24576  }
  0x6a   :  { %7940 = vsyncadd [#allocation5], 4294942720 }
  0x6b   :  { %7941 = dma.done.wait [#allocation8], 49152  }
  0x6c   :  { %7942 = vsyncadd [#allocation8], 4294918144 }
  0x6d   :  { %7943 = dma.done.wait [#allocation11], 2048  }
  0x6e   :  { %7944 = vsyncadd [#allocation11], 4294965248  ;;  %vm400_vm0 = vcmask 1040384   ;;  %vm401_vm1 = vcmask 1041408   ;;  %v7958_v0 = vmov 65535   ;;  %v7411_v3 = vld [vmem:[%s9779_s3] sm:$0xff]  }
  0x6f   :  { %v402_v1 = vsel %vm400_vm0, 4294967295, %v7958_v0  ;;  %v156_v4 = vld [vmem:[%s9778_s2] sm:$0x3]  ;;  %7088 = vmatprep.subr.bf16.mxu0 %v7411_v3  ;;  %v7412_v6 = vld [vmem:[%s9779_s3 + $0x8] sm:$0xff]   ;;  %vm375_vm2 = vcmask 23552   ;;  %vm213_vm3 = vcmask 261120  }
  0x70   :  { %v403_v2 = vsel %vm401_vm1, %v402_v1, 0  ;;  %7089 = vmatpush3.bf16.msra.mxu0 %v7411_v3  ;;  %v7413_v7 = vld [vmem:[%s9776_s0] sm:$0xff]   ;;  %v7414_v8 = vld [vmem:[%s9776_s0 + $0x8] sm:$0xff]   ;;  %v7417_v11 = vld [vmem:[%s9777_s1 + $0x10] sm:$0xff]   ;;  %v9789_v55 = vmov 0   ;;  %vm4826_vm4 = vcmask 1041409  }
  0x71   :  { %v405_v5 = vand.u32 %v403_v2, %v156_v4  ;;  %7090 = vmatprep.subr.bf16.mxu0 %v7412_v6  ;;  %7110 = vmatprep.mubr.msk.bf16.mxu1 %vm375_vm2, %v7413_v7  ;;  %v7415_v9 = vld [vmem:[%s9777_s1] sm:$0xff]   ;;  %v7416_v10 = vld [vmem:[%s9777_s1 + $0x8] sm:$0xff]   ;;  %v7418_v12 = vld [vmem:[%s9776_s0 + $0x10] sm:$0xff]  }
  0x72   :  { %7092 = vmatprep.mubr.msk.bf16.mxu0 %vm213_vm3, %v7415_v9  ;;  %v7420_v13 = vld [vmem:[%s9776_s0 + $0x18] sm:$0xff]   ;;  %v7422_v14 = vld [vmem:[%s9776_s0 + $0x20] sm:$0xff]   ;;  %v7424_v17 = vld [vmem:[%s9776_s0 + $0x28] sm:$0xff]  }
  0x73   :  { %7108 = vmatprep.subr.bf16.mxu1 %v405_v5  ;;  %v7419_v15 = vld [vmem:[%s9777_s1 + $0x18] sm:$0xff]   ;;  %v7421_v16 = vld [vmem:[%s9777_s1 + $0x20] sm:$0xff]   ;;  %v7423_v20 = vld [vmem:[%s9777_s1 + $0x28] sm:$0xff]  }
  0x74   :  { %7109 = vmatpush3.bf16.msra.mxu1 %v405_v5  ;;  %7091 = vmatpush3.bf16.msra.mxu0 %v7412_v6  ;;  %v7429_v18 = vld [vmem:[#allocation2] ss:$8 sps:$4 sm:$0xff]   ;;  %v7431_v19 = vld [vmem:[#allocation2 + $0x4] ss:$8 sps:$4 sm:$0xff]   ;;  %v7425_v23 = vld [vmem:[%s9777_s1 + $0x30] sm:$0xff]  }
  0x75   :  { %v7432_v21 = vld [vmem:[%s9781_s5] ss:$16 sps:$4 sm:$0xff]   ;;  %v7434_v22 = vld [vmem:[%s9781_s5 + $0x4] ss:$16 sps:$4 sm:$0xff]   ;;  %659 = vmatprep.subr.bf16.mxu0 %v7431_v19  ;;  %v7428_v31 = vld [vmem:[%s9776_s0 + $0x38] sm:$0xff]  }
  0x76   :  { %v7426_v24 = vld [vmem:[%s9776_s0 + $0x30] sm:$0xff]   ;;  %1622 = vmatprep.subr.bf16.mxu1 %v7434_v22  ;;  %v7443_v29 = vld [vmem:[#allocation2 + $0x24] ss:$8 sps:$4 sm:$0xff]   ;;  %v7441_v32 = vld [vmem:[#allocation2 + $0x20] ss:$8 sps:$4 sm:$0xff]  }
  0x77   :  { %7111 = vmatmul.mubr.msk.bf16.vlgmr.msra.gmra.mrb[0].mxu1 %vm375_vm2, %v7414_v8  ;;  %7093 = vmatmul.mubr.msk.bf16.vlgmr.msra.gmra.mrb[0].mxu0 %vm213_vm3, %v7416_v10  ;;  %v7437_v25 = vld [vmem:[#allocation2 + $0x14] ss:$8 sps:$4 sm:$0xff]   ;;  %v7435_v26 = vld [vmem:[#allocation2 + $0x10] ss:$8 sps:$4 sm:$0xff]   ;;  %v7455_v39 = vld [vmem:[#allocation2 + $0x44] ss:$8 sps:$4 sm:$0xff]  }
  0x78   :  { %7114 = vmatprep.mubr.msk.bf16.mxu1 %vm375_vm2, %v7418_v12  ;;  %7096 = vmatprep.mubr.msk.bf16.mxu0 %vm213_vm3, %v7417_v11  ;;  %v7440_v27 = vld [vmem:[%s9781_s5 + $0x24] ss:$16 sps:$4 sm:$0xff]   ;;  %v7438_v28 = vld [vmem:[%s9781_s5 + $0x20] ss:$16 sps:$4 sm:$0xff]   ;;  %v7427_v33 = vld [vmem:[%s9777_s1 + $0x38] sm:$0xff]  }
  0x79   :  { %660 = vmatpush1.bf16.msra.mxu0 %v7429_v18  ;;  %1623 = vmatpush1.bf16.msra.mxu1 %v7432_v21  ;;  %v7446_v30 = vld [vmem:[%s9781_s5 + $0x44] ss:$16 sps:$4 sm:$0xff]   ;;  %v7444_v34 = vld [vmem:[%s9781_s5 + $0x40] ss:$16 sps:$4 sm:$0xff]  }
  0x7a   :  { %661 = vmatprep.subr.bf16.mxu0 %v7437_v25  ;;  %1624 = vmatprep.subr.bf16.mxu1 %v7440_v27  ;;  %v7449_v35 = vld [vmem:[#allocation2 + $0x34] ss:$8 sps:$4 sm:$0xff]   ;;  %v7447_v36 = vld [vmem:[#allocation2 + $0x30] ss:$8 sps:$4 sm:$0xff]   ;;  %v7453_v41 = vld [vmem:[#allocation2 + $0x40] ss:$8 sps:$4 sm:$0xff]  }
  0x7b   :  { %v7452_v37 = vld [vmem:[%s9781_s5 + $0x64] ss:$16 sps:$4 sm:$0xff]   ;;  %v7450_v38 = vld [vmem:[%s9781_s5 + $0x60] ss:$16 sps:$4 sm:$0xff]  }
  0x7c   :  { %v7458_v40 = vld [vmem:[%s9781_s5 + $0x84] ss:$16 sps:$4 sm:$0xff]   ;;  %v7456_v42 = vld [vmem:[%s9781_s5 + $0x80] ss:$16 sps:$4 sm:$0xff]  }
  0x7d   :  { %662 = vmatpush1.bf16.msra.mxu0 %v7435_v26  ;;  %1625 = vmatpush1.bf16.msra.mxu1 %v7438_v28  ;;  %v7461_v43 = vld [vmem:[#allocation2 + $0x54] ss:$8 sps:$4 sm:$0xff]   ;;  %v7459_v45 = vld [vmem:[#allocation2 + $0x50] ss:$8 sps:$4 sm:$0xff]   ;;  %v7467_v47 = vld [vmem:[#allocation2 + $0x64] ss:$8 sps:$4 sm:$0xff]  }
  0x7e   :  { %663 = vmatprep.subr.bf16.mxu0 %v7443_v29  ;;  %1626 = vmatprep.subr.bf16.mxu1 %v7446_v30  ;;  %v7464_v44 = vld [vmem:[%s9781_s5 + $0xa4] ss:$16 sps:$4 sm:$0xff]   ;;  %v7462_v46 = vld [vmem:[%s9781_s5 + $0xa0] ss:$16 sps:$4 sm:$0xff]  }
  0x7f   :  { %7115 = vmatmul.mubr.msk.bf16.gmra.mrb[4].mxu1 %vm375_vm2, %v7420_v13  ;;  %7097 = vmatmul.mubr.msk.bf16.gmra.mrb[4].mxu0 %vm213_vm3, %v7419_v15  ;;  %v7470_v48 = vld [vmem:[%s9781_s5 + $0xc4] ss:$16 sps:$4 sm:$0xff]   ;;  %v7465_v49 = vld [vmem:[#allocation2 + $0x60] ss:$8 sps:$4 sm:$0xff]   ;;  %v7471_v53 = vld [vmem:[#allocation2 + $0x70] ss:$8 sps:$4 sm:$0xff]  }
  0x80   :  { %7118 = vmatprep.mubr.msk.bf16.mxu1 %vm375_vm2, %v7422_v14  ;;  %7100 = vmatprep.mubr.msk.bf16.mxu0 %vm213_vm3, %v7421_v16  ;;  %v7468_v50 = vld [vmem:[%s9781_s5 + $0xc0] ss:$16 sps:$4 sm:$0xff]   ;;  %v7473_v51 = vld [vmem:[#allocation2 + $0x74] ss:$8 sps:$4 sm:$0xff]  }
  0x81   :  { %664 = vmatpush1.bf16.msra.mxu0 %v7441_v32  ;;  %1627 = vmatpush1.bf16.msra.mxu1 %v7444_v34  ;;  %v7476_v52 = vld [vmem:[%s9781_s5 + $0xe4] ss:$16 sps:$4 sm:$0xff]   ;;  %v7474_v54 = vld [vmem:[%s9781_s5 + $0xe0] ss:$16 sps:$4 sm:$0xff]  }
  0x82   :  { %665 = vmatprep.subr.bf16.mxu0 %v7449_v35  ;;  %1628 = vmatprep.subr.bf16.mxu1 %v7452_v37  ;;  %v7479_v56 = vld [vmem:[#allocation4 + $0x4] ss:$16 sps:$4 sm:$0xff]   ;;  %v8237_v61 = vld [vmem:[%s9787_s11] ss:$0 sm:$0xff] }
  0x83   :  { %v7477_v25 = vld [vmem:[#allocation4] ss:$16 sps:$4 sm:$0xff]   ;;  %v7482_v29 = vld [vmem:[#allocation4 + $0x24] ss:$16 sps:$4 sm:$0xff]  }
  0x84   :  { %v7480_v37 = vld [vmem:[#allocation4 + $0x20] ss:$16 sps:$4 sm:$0xff]  }
  0x85   :  { %666 = vmatpush1.bf16.msra.mxu0 %v7447_v36  ;;  %1629 = vmatpush1.bf16.msra.mxu1 %v7450_v38 }
  0x86   :  { %667 = vmatprep.subr.bf16.mxu0 %v7455_v39  ;;  %1630 = vmatprep.subr.bf16.mxu1 %v7458_v40  ;;  %v7485_v40 = vld [vmem:[#allocation4 + $0x44] ss:$16 sps:$4 sm:$0xff]  }
  0x87   :  { %7119 = vmatmul.mubr.msk.bf16.gmra.mrb[8].mxu1 %vm375_vm2, %v7424_v17  ;;  %7101 = vmatmul.mubr.msk.bf16.gmra.mrb[8].mxu0 %vm213_vm3, %v7423_v20 }
  0x88   :  { %7122 = vmatprep.mubr.msk.bf16.mxu1 %vm375_vm2, %v7426_v24  ;;  %7104 = vmatprep.mubr.msk.bf16.mxu0 %vm213_vm3, %v7425_v23 }
  0x89   :  { %668 = vmatpush1.bf16.msra.mxu0 %v7453_v41  ;;  %1631 = vmatpush1.bf16.msra.mxu1 %v7456_v42 }
  0x8a   :  { %669 = vmatprep.subr.bf16.mxu0 %v7461_v43  ;;  %1632 = vmatprep.subr.bf16.mxu1 %v7464_v44 }
  0x8d   :  { %670 = vmatpush1.bf16.msra.mxu0 %v7459_v45  ;;  %1633 = vmatpush1.bf16.msra.mxu1 %v7462_v46 }
  0x8e   :  { %671 = vmatprep.subr.bf16.mxu0 %v7467_v47  ;;  %1634 = vmatprep.subr.bf16.mxu1 %v7470_v48 }
  0x8f   :  { %7123 = vmatmul.mubr.msk.bf16.gmra.mrb[12].mxu1 %vm375_vm2, %v7428_v31  ;;  %7105 = vmatmul.mubr.msk.bf16.gmra.mrb[12].mxu0 %vm213_vm3, %v7427_v33 }
  0x90   :  { %691 = vmatprep.mubr.bf16.mxu0 %v9789_v55  ;;  %1654 = vmatprep.mubr.bf16.mxu1 %v9789_v55 }
  0x91   :  { %672 = vmatpush1.bf16.msra.mxu0 %v7465_v49  ;;  %1635 = vmatpush1.bf16.msra.mxu1 %v7468_v50 }
  0x92   :  { %673 = vmatprep.subr.bf16.mxu0 %v7473_v51  ;;  %1636 = vmatprep.subr.bf16.mxu1 %v7476_v52  ;;  %v7483_v51 = vld [vmem:[#allocation4 + $0x40] ss:$16 sps:$4 sm:$0xff]  }
  0x95   :  { %674 = vmatpush1.bf16.msra.mxu0 %v7471_v53  ;;  %1637 = vmatpush1.bf16.msra.mxu1 %v7474_v54 }
  0x96   :  { %1236 = vmatprep.subr.bf16.mxu0 %v7479_v56  ;;  %v7488_v56 = vld [vmem:[#allocation4 + $0x64] ss:$16 sps:$4 sm:$0xff]  }
 0x14a   :  { %v7112_v57 = vpop.f32.mrb[0].mxu1  ;;  %v7094_v60 = vpop.f32.mrb[0].mxu0 }
 0x14b   :  { %v441_v58 = vpop.f32.mrb[1].mxu1  ;;  %v450_v62 = vadd.f32 %v7112_v57, %v7094_v60  ;;  %v272_v0 = vpop.f32.mrb[1].mxu0 }
 0x14c   :  { %v7113_v59 = vpop.f32.mrb[2].mxu1  ;;  %v442_v1 = vadd.f32 %v441_v58, %v272_v0  ;;  %v7095_v2 = vpop.f32.mrb[2].mxu0 }
 0x14d   :  { %v444_v63 = vpop.f32.mrb[3].mxu1  ;;  %v513_v3 = vadd.f32 %v8237_v61, %v450_v62  ;;  %v453_v4 = vadd.f32 %v7113_v59, %v7095_v2  ;;  %v275_v5 = vpop.f32.mrb[3].mxu0 }
 0x14e   :  { %v511_v6 = vadd.f32 %v8237_v61, %v442_v1  ;;  %v445_v7 = vadd.f32 %v444_v63, %v275_v5  ;;  %v7486_v1 = vld [vmem:[#allocation4 + $0x60] ss:$16 sps:$4 sm:$0xff]  }
 0x14f   :  { %v514_v8 = vadd.f32 %v8237_v61, %v453_v4  ;;  %v529_v11 = vmax.f32 %v513_v3, 0.0  ;;  %v7491_v4 = vld [vmem:[#allocation4 + $0x84] ss:$16 sps:$4 sm:$0xff]  }
 0x150   :  { %v512_v9 = vadd.f32 %v8237_v61, %v445_v7  ;;  %v527_v14 = vmax.f32 %v511_v6, 0.0 }
 0x151   :  { %v530_v12 = vmax.f32 %v514_v8, 0.0 }
 0x152   :  { %v7116_v10 = vpop.f32.mrb[4].mxu1  ;;  %v528_v15 = vmax.f32 %v512_v9, 0.0  ;;  %v7098_v16 = vpop.f32.mrb[4].mxu0 }
 0x153   :  { %v457_v13 = vpop.f32.mrb[5].mxu1  ;;  %v466_v18 = vadd.f32 %v7116_v10, %v7098_v16  ;;  %v288_v19 = vpop.f32.mrb[5].mxu0  ;;  %v8243_v21 = vpack.c.bf16 %v530_v12, %v529_v11 }
 0x154   :  { %v7117_v17 = vpop.f32.mrb[6].mxu1  ;;  %v8245_v22 = vpack.c.bf16 %v528_v15, %v527_v14  ;;  %v458_v23 = vadd.f32 %v457_v13, %v288_v19  ;;  %v7099_v24 = vpop.f32.mrb[6].mxu0  ;;  %v7489_v15 = vld [vmem:[#allocation4 + $0x80] ss:$16 sps:$4 sm:$0xff]   ;;  %v7494_v19 = vld [vmem:[#allocation4 + $0xa4] ss:$16 sps:$4 sm:$0xff]  }
 0x155   :  { %v460_v20 = vpop.f32.mrb[7].mxu1  ;;  %v517_v26 = vadd.f32 %v8237_v61, %v466_v18  ;;  %v469_v27 = vadd.f32 %v7117_v17, %v7099_v24  ;;  %v291_v28 = vpop.f32.mrb[7].mxu0 }
 0x156   :  { %692 = vmatmul.mubr.bf16.vlgmr.msra.gmra.mrb[16].mxu0 %v8245_v22  ;;  %1655 = vmatmul.mubr.bf16.vlgmr.msra.gmra.mrb[16].mxu1 %v8245_v22  ;;  %v515_v30 = vadd.f32 %v8237_v61, %v458_v23  ;;  %v461_v31 = vadd.f32 %v460_v20, %v291_v28  ;;  %v7492_v28 = vld [vmem:[#allocation4 + $0xa0] ss:$16 sps:$4 sm:$0xff]  }
 0x157   :  { %v533_v32 = vmax.f32 %v517_v26, 0.0  ;;  %v518_v33 = vadd.f32 %v8237_v61, %v469_v27  ;;  %701 = vmatprep.mubr.bf16.mxu0 %v9789_v55  ;;  %1664 = vmatprep.mubr.bf16.mxu1 %v9789_v55 }
 0x158   :  { %v531_v34 = vmax.f32 %v515_v30, 0.0  ;;  %v516_v35 = vadd.f32 %v8237_v61, %v461_v31  ;;  %1237 = vmatpush1.bf16.msra.mxu0 %v7477_v25  ;;  %v7497_v30 = vld [vmem:[#allocation4 + $0xc4] ss:$16 sps:$4 sm:$0xff]  }
 0x159   :  { %v534_v38 = vmax.f32 %v518_v33, 0.0  ;;  %1238 = vmatprep.subr.bf16.mxu0 %v7482_v29 }
 0x15a   :  { %v7120_v36 = vpop.f32.mrb[8].mxu1  ;;  %v532_v41 = vmax.f32 %v516_v35, 0.0  ;;  %v7102_v42 = vpop.f32.mrb[8].mxu0  ;;  %v7500_v35 = vld [vmem:[#allocation4 + $0xe4] ss:$16 sps:$4 sm:$0xff]  }
 0x15b   :  { %v473_v39 = vpop.f32.mrb[9].mxu1  ;;  %v482_v44 = vadd.f32 %v7120_v36, %v7102_v42  ;;  %v304_v45 = vpop.f32.mrb[9].mxu0  ;;  %v8255_v47 = vpack.c.bf16 %v534_v38, %v533_v32  ;;  %v7503_v36 = vld [vmem:[#allocation4 + $0x104] ss:$16 sps:$4 sm:$0xff]  }
 0x15c   :  { %v7121_v43 = vpop.f32.mrb[10].mxu1  ;;  %v8257_v48 = vpack.c.bf16 %v532_v41, %v531_v34  ;;  %v474_v49 = vadd.f32 %v473_v39, %v304_v45  ;;  %v7103_v50 = vpop.f32.mrb[10].mxu0  ;;  %1239 = vmatpush1.bf16.msra.mxu0 %v7480_v37  ;;  %v7495_v34 = vld [vmem:[#allocation4 + $0xc0] ss:$16 sps:$4 sm:$0xff]   ;;  %v7506_v38 = vld [vmem:[#allocation4 + $0x124] ss:$16 sps:$4 sm:$0xff]  }
 0x15d   :  { %v476_v46 = vpop.f32.mrb[11].mxu1  ;;  %v521_v52 = vadd.f32 %v8237_v61, %v482_v44  ;;  %v485_v53 = vadd.f32 %v7121_v43, %v7103_v50  ;;  %v307_v54 = vpop.f32.mrb[11].mxu0  ;;  %1240 = vmatprep.subr.bf16.mxu0 %v7485_v40  ;;  %v7501_v37 = vld [vmem:[#allocation4 + $0x100] ss:$16 sps:$4 sm:$0xff]   ;;  %v7509_v40 = vld [vmem:[#allocation4 + $0x144] ss:$16 sps:$4 sm:$0xff]  }
 0x15e   :  { %702 = vmatmul.mubr.bf16.gmra.mrb[20].mxu0 %v8243_v21  ;;  %1665 = vmatmul.mubr.bf16.gmra.mrb[20].mxu1 %v8243_v21  ;;  %v519_v57 = vadd.f32 %v8237_v61, %v474_v49  ;;  %v477_v58 = vadd.f32 %v476_v46, %v307_v54  ;;  %v7504_v39 = vld [vmem:[#allocation4 + $0x120] ss:$16 sps:$4 sm:$0xff]   ;;  %v7512_v42 = vld [vmem:[#allocation4 + $0x164] ss:$16 sps:$4 sm:$0xff]   ;;  %v7527_v54 = vld [vmem:[#allocation4 + $0xc] ss:$16 sps:$4 sm:$0xff]  }
 0x15f   :  { %711 = vmatprep.mubr.bf16.mxu0 %v9789_v55  ;;  %1674 = vmatprep.mubr.bf16.mxu1 %v9789_v55  ;;  %v537_v59 = vmax.f32 %v521_v52, 0.0  ;;  %v522_v60 = vadd.f32 %v8237_v61, %v485_v53  ;;  %v7507_v41 = vld [vmem:[#allocation4 + $0x140] ss:$16 sps:$4 sm:$0xff]   ;;  %v7515_v44 = vld [vmem:[#allocation4 + $0x184] ss:$16 sps:$4 sm:$0xff]  }
 0x160   :  { %v535_v62 = vmax.f32 %v519_v57, 0.0  ;;  %v520_v63 = vadd.f32 %v8237_v61, %v477_v58  ;;  %1241 = vmatpush1.bf16.msra.mxu0 %v7483_v51  ;;  %v7510_v43 = vld [vmem:[#allocation4 + $0x160] ss:$16 sps:$4 sm:$0xff]   ;;  %v7518_v46 = vld [vmem:[#allocation4 + $0x1a4] ss:$16 sps:$4 sm:$0xff]  }
 0x161   :  { %v538_v2 = vmax.f32 %v522_v60, 0.0  ;;  %1242 = vmatprep.subr.bf16.mxu0 %v7488_v56  ;;  %v7513_v45 = vld [vmem:[#allocation4 + $0x180] ss:$16 sps:$4 sm:$0xff]   ;;  %v7521_v50 = vld [vmem:[#allocation4 + $0x1c4] ss:$16 sps:$4 sm:$0xff]   ;;  %v569_v56 = vlaneseq }
 0x162   :  { %v7124_v0 = vpop.f32.mrb[12].mxu1  ;;  %v536_v5 = vmax.f32 %v520_v63, 0.0  ;;  %v7106_v6 = vpop.f32.mrb[12].mxu0  ;;  %v7516_v49 = vld [vmem:[#allocation4 + $0x1a0] ss:$16 sps:$4 sm:$0xff]  }
 0x163   :  { %v489_v3 = vpop.f32.mrb[13].mxu1  ;;  %v498_v8 = vadd.f32 %v7124_v0, %v7106_v6  ;;  %v320_v9 = vpop.f32.mrb[13].mxu0  ;;  %v8267_v11 = vpack.c.bf16 %v538_v2, %v537_v59  ;;  %v7519_v51 = vld [vmem:[#allocation4 + $0x1c0] ss:$16 sps:$4 sm:$0xff]   ;;  %v7524_v52 = vld [vmem:[#allocation4 + $0x1e4] ss:$16 sps:$4 sm:$0xff]  }
 0x164   :  { %v7125_v7 = vpop.f32.mrb[14].mxu1  ;;  %v8269_v12 = vpack.c.bf16 %v536_v5, %v535_v62  ;;  %v490_v13 = vadd.f32 %v489_v3, %v320_v9  ;;  %v7107_v14 = vpop.f32.mrb[14].mxu0  ;;  %1243 = vmatpush1.bf16.msra.mxu0 %v7486_v1  ;;  %v7522_v53 = vld [vmem:[#allocation4 + $0x1e0] ss:$16 sps:$4 sm:$0xff]   ;;  %v8301_v57 = vshrl.u32 %v569_v56, 7 }
 0x165   :  { %v492_v10 = vpop.f32.mrb[15].mxu1  ;;  %v525_v16 = vadd.f32 %v8237_v61, %v498_v8  ;;  %v501_v17 = vadd.f32 %v7125_v7, %v7107_v14  ;;  %v323_v18 = vpop.f32.mrb[15].mxu0  ;;  %1244 = vmatprep.subr.bf16.mxu0 %v7491_v4  ;;  %v567_v59 = vld [vmem:[%s9787_s11 + $0x1] sm:$0x3] }
 0x166   :  { %712 = vmatmul.mubr.bf16.gmra.mrb[24].mxu0 %v8257_v48  ;;  %1675 = vmatmul.mubr.bf16.gmra.mrb[24].mxu1 %v8257_v48  ;;  %v523_v20 = vadd.f32 %v8237_v61, %v490_v13  ;;  %v493_v23 = vadd.f32 %v492_v10, %v323_v18  ;;  %9809 = vst [vmem:[#allocation16_spill] sm:$0xff] %v8301_v57  ;;  %v8304_v58 = vsub.s32 0, %v8301_v57  ;;  %v8310_v60 = vsub.s32 1, %v8301_v57 }
 0x167   :  { %721 = vmatprep.mubr.bf16.mxu0 %v9789_v55  ;;  %1684 = vmatprep.mubr.bf16.mxu1 %v9789_v55  ;;  %v541_v24 = vmax.f32 %v525_v16, 0.0  ;;  %v526_v25 = vadd.f32 %v8237_v61, %v501_v17 }
 0x168   :  { %v539_v26 = vmax.f32 %v523_v20, 0.0  ;;  %v524_v27 = vadd.f32 %v8237_v61, %v493_v23  ;;  %1245 = vmatpush1.bf16.msra.mxu0 %v7489_v15  ;;  %v7498_v61 = vld [vmem:[#allocation4 + $0xe0] ss:$16 sps:$4 sm:$0xff]   ;;  %9810 = vst [vmem:[#allocation17_spill] sm:$0xff] %v8304_v58  ;;  %9811 = vst [vmem:[#allocation18_spill] sm:$0xff] %v8310_v60  ;;  %v8313_v62 = vrot.slane %v567_v59, %v8304_v58 }
 0x169   :  { %v542_v29 = vmax.f32 %v526_v25, 0.0  ;;  %1246 = vmatprep.subr.bf16.mxu0 %v7494_v19  ;;  %v8316_v63 = vrot.slane %v567_v59, %v8310_v60 }
 0x16a   :  { %v540_v31 = vmax.f32 %v524_v27, 0.0 }
 0x16b   :  { %v8279_v32 = vpack.c.bf16 %v542_v29, %v541_v24  ;;  %v7525_v24 = vld [vmem:[#allocation4 + $0x8] ss:$16 sps:$4 sm:$0xff]  }
 0x16c   :  { %v8281_v33 = vpack.c.bf16 %v540_v31, %v539_v26  ;;  %1247 = vmatpush1.bf16.msra.mxu0 %v7492_v28  ;;  %v7530_v28 = vld [vmem:[#allocation4 + $0x2c] ss:$16 sps:$4 sm:$0xff]  }
 0x16d   :  { %1248 = vmatprep.subr.bf16.mxu0 %v7497_v30 }
 0x16e   :  { %722 = vmatmul.mubr.bf16.gmra.mrb[28].mxu0 %v8255_v47  ;;  %1685 = vmatmul.mubr.bf16.gmra.mrb[28].mxu1 %v8255_v47 }
 0x16f   :  { %731 = vmatprep.mubr.bf16.mxu0 %v9789_v55  ;;  %1694 = vmatprep.mubr.bf16.mxu1 %v9789_v55 }
 0x170   :  { %1249 = vmatpush1.bf16.msra.mxu0 %v7495_v34 }
 0x171   :  { %1250 = vmatprep.subr.bf16.mxu0 %v7500_v35 }
 0x174   :  { %1251 = vmatpush1.bf16.msra.mxu0 %v7498_v61 }
 0x175   :  { %1252 = vmatprep.subr.bf16.mxu0 %v7503_v36 }
 0x176   :  { %732 = vmatmul.mubr.bf16.gmra.mrb[32].mxu0 %v8269_v12  ;;  %1695 = vmatmul.mubr.bf16.gmra.mrb[32].mxu1 %v8269_v12 }
 0x177   :  { %741 = vmatprep.mubr.bf16.mxu0 %v9789_v55  ;;  %1704 = vmatprep.mubr.bf16.mxu1 %v9789_v55 }
 0x178   :  { %1253 = vmatpush1.bf16.msra.mxu0 %v7501_v37  ;;  %v7528_v37 = vld [vmem:[#allocation4 + $0x28] ss:$16 sps:$4 sm:$0xff]  }
 0x179   :  { %1254 = vmatprep.subr.bf16.mxu0 %v7506_v38 }
 0x17c   :  { %1255 = vmatpush1.bf16.msra.mxu0 %v7504_v39 }
 0x17d   :  { %1256 = vmatprep.subr.bf16.mxu0 %v7509_v40  ;;  %v7533_v40 = vld [vmem:[#allocation4 + $0x4c] ss:$16 sps:$4 sm:$0xff]  }
 0x17e   :  { %742 = vmatmul.mubr.bf16.gmra.mrb[36].mxu0 %v8267_v11  ;;  %1705 = vmatmul.mubr.bf16.gmra.mrb[36].mxu1 %v8267_v11 }
 0x17f   :  { %751 = vmatprep.mubr.bf16.mxu0 %v9789_v55  ;;  %1714 = vmatprep.mubr.bf16.mxu1 %v9789_v55 }
 0x180   :  { %1257 = vmatpush1.bf16.msra.mxu0 %v7507_v41 }
 0x181   :  { %1258 = vmatprep.subr.bf16.mxu0 %v7512_v42 }
 0x184   :  { %1259 = vmatpush1.bf16.msra.mxu0 %v7510_v43 }
 0x185   :  { %1260 = vmatprep.subr.bf16.mxu0 %v7515_v44 }
 0x186   :  { %752 = vmatmul.mubr.bf16.gmra.mrb[40].mxu0 %v8281_v33  ;;  %1715 = vmatmul.mubr.bf16.gmra.mrb[40].mxu1 %v8281_v33 }
 0x187   :  { %761 = vmatprep.mubr.bf16.mxu0 %v9789_v55  ;;  %1724 = vmatprep.mubr.bf16.mxu1 %v9789_v55  ;;  %v7557_v55 = vld [vmem:[#allocation4 + $0x14c] ss:$16 sps:$4 sm:$0xff]  }
 0x188   :  { %1261 = vmatpush1.bf16.msra.mxu0 %v7513_v45 }
 0x189   :  { %1262 = vmatprep.subr.bf16.mxu0 %v7518_v46 }
 0x18c   :  { %1263 = vmatpush1.bf16.msra.mxu0 %v7516_v49  ;;  %v7531_v49 = vld [vmem:[#allocation4 + $0x48] ss:$16 sps:$4 sm:$0xff]  }
 0x18d   :  { %1264 = vmatprep.subr.bf16.mxu0 %v7521_v50 }
 0x18e   :  { %762 = vmatmul.mubr.bf16.gmra.mrb[44].mxu0 %v8279_v32  ;;  %1725 = vmatmul.mubr.bf16.gmra.mrb[44].mxu1 %v8279_v32 }
 0x190   :  { %1265 = vmatpush1.bf16.msra.mxu0 %v7519_v51 }
 0x191   :  { %1266 = vmatprep.subr.bf16.mxu0 %v7524_v52 }
 0x194   :  { %1267 = vmatpush1.bf16.msra.mxu0 %v7522_v53  ;;  %v7536_v53 = vld [vmem:[#allocation4 + $0x6c] ss:$16 sps:$4 sm:$0xff]  }
 0x195   :  { %1349 = vmatprep.subr.bf16.mxu0 %v7527_v54 }
 0x229   :  { %v693_v0 = vpop.f32.mrb[16].mxu0  ;;  %v8318_v1 = vpop.f32.mrb[16].mxu1 }
 0x22a   :  { %v694_v2 = vadd.f32 %v693_v0, %v8313_v62  ;;  %v695_v3 = vpop.f32.mrb[17].mxu0  ;;  %v8321_v4 = vpop.f32.mrb[17].mxu1 }
 0x22b   :  { %v696_v5 = vadd.f32 %v695_v3, %v8316_v63  ;;  %v697_v6 = vpop.f32.mrb[18].mxu0  ;;  %v8324_v7 = vpop.f32.mrb[18].mxu1 }
 0x22c   :  { %v698_v8 = vadd.f32 %v697_v6, %v8313_v62  ;;  %v699_v9 = vpop.f32.mrb[19].mxu0  ;;  %v8327_v10 = vpop.f32.mrb[19].mxu1  ;;  %v772_v14 = vmax.f32 %v694_v2, 0.0  ;;  %v7534_v6 = vld [vmem:[#allocation4 + $0x68] ss:$16 sps:$4 sm:$0xff]  }
 0x22d   :  { %v700_v13 = vadd.f32 %v699_v9, %v8316_v63  ;;  %v773_v16 = vmax.f32 %v696_v5, 0.0 }
 0x22e   :  { %v774_v15 = vmax.f32 %v698_v8, 0.0 }
 0x22f   :  { %v775_v17 = vmax.f32 %v700_v13, 0.0  ;;  %v7539_v13 = vld [vmem:[#allocation4 + $0x8c] ss:$16 sps:$4 sm:$0xff]  }
 0x230   :  { %v8330_v18 = vpack.c.bf16 %v774_v15, %v772_v14 }
 0x231   :  { %v8332_v19 = vpack.c.bf16 %v775_v17, %v773_v16  ;;  %v703_v20 = vpop.f32.mrb[20].mxu0  ;;  %v8334_v23 = vpop.f32.mrb[20].mxu1 }
 0x232   :  { %v704_v25 = vadd.f32 %v703_v20, %v8313_v62  ;;  %v705_v26 = vpop.f32.mrb[21].mxu0  ;;  %v8337_v27 = vpop.f32.mrb[21].mxu1 }
 0x233   :  { %v706_v29 = vadd.f32 %v705_v26, %v8316_v63  ;;  %v707_v30 = vpop.f32.mrb[22].mxu0  ;;  %1268 = vmatprep.mubr.bf16.mxu0 %v8332_v19  ;;  %v8341_v31 = vpop.f32.mrb[22].mxu1 }
 0x234   :  { %v708_v34 = vadd.f32 %v707_v30, %v8313_v62  ;;  %v709_v35 = vpop.f32.mrb[23].mxu0  ;;  %1269 = vmatmul.mubr.bf16.vlgmr.msra.gmra.mrb[48].mxu0 %v8330_v18  ;;  %v8345_v61 = vpop.f32.mrb[23].mxu1  ;;  %v776_v38 = vmax.f32 %v704_v25, 0.0  ;;  %v7537_v25 = vld [vmem:[#allocation4 + $0x88] ss:$16 sps:$4 sm:$0xff]  }
 0x235   :  { %v710_v36 = vadd.f32 %v709_v35, %v8316_v63  ;;  %1350 = vmatpush1.bf16.msra.mxu0 %v7525_v24  ;;  %v777_v41 = vmax.f32 %v706_v29, 0.0  ;;  %v7542_v30 = vld [vmem:[#allocation4 + $0xac] ss:$16 sps:$4 sm:$0xff]  }
 0x236   :  { %v778_v39 = vmax.f32 %v708_v34, 0.0  ;;  %1351 = vmatprep.subr.bf16.mxu0 %v7530_v28 }
 0x237   :  { %v779_v42 = vmax.f32 %v710_v36, 0.0 }
 0x238   :  { %v8348_v43 = vpack.c.bf16 %v778_v39, %v776_v38 }
 0x239   :  { %v8350_v44 = vpack.c.bf16 %v779_v42, %v777_v41  ;;  %1352 = vmatpush1.bf16.msra.mxu0 %v7528_v37  ;;  %v713_v45 = vpop.f32.mrb[24].mxu0  ;;  %v8352_v46 = vpop.f32.mrb[24].mxu1  ;;  %v7540_v41 = vld [vmem:[#allocation4 + $0xa8] ss:$16 sps:$4 sm:$0xff]  }
 0x23a   :  { %v714_v50 = vadd.f32 %v713_v45, %v8313_v62  ;;  %v715_v51 = vpop.f32.mrb[25].mxu0  ;;  %v8355_v52 = vpop.f32.mrb[25].mxu1  ;;  %1353 = vmatprep.subr.bf16.mxu0 %v7533_v40 }
 0x23b   :  { %v716_v54 = vadd.f32 %v715_v51, %v8316_v63  ;;  %v717_v56 = vpop.f32.mrb[26].mxu0  ;;  %1278 = vmatprep.mubr.bf16.mxu0 %v8350_v44  ;;  %v8359_v59 = vpop.f32.mrb[26].mxu1 }
 0x23c   :  { %v718_v0 = vadd.f32 %v717_v56, %v8313_v62  ;;  %v719_v2 = vpop.f32.mrb[27].mxu0  ;;  %1279 = vmatmul.mubr.bf16.gmra.mrb[52].mxu0 %v8348_v43  ;;  %v8363_v3 = vpop.f32.mrb[27].mxu1  ;;  %v780_v8 = vmax.f32 %v714_v50, 0.0 }
 0x23d   :  { %v720_v5 = vadd.f32 %v719_v2, %v8316_v63  ;;  %1354 = vmatpush1.bf16.msra.mxu0 %v7531_v49  ;;  %v781_v14 = vmax.f32 %v716_v54, 0.0  ;;  %v7545_v49 = vld [vmem:[#allocation4 + $0xcc] ss:$16 sps:$4 sm:$0xff]   ;;  %v7543_v2 = vld [vmem:[#allocation4 + $0xc8] ss:$16 sps:$4 sm:$0xff]  }
 0x23e   :  { %v782_v9 = vmax.f32 %v718_v0, 0.0  ;;  %1355 = vmatprep.subr.bf16.mxu0 %v7536_v53 }
 0x23f   :  { %v783_v15 = vmax.f32 %v720_v5, 0.0 }
 0x240   :  { %v8366_v16 = vpack.c.bf16 %v782_v9, %v780_v8  ;;  %v7548_v9 = vld [vmem:[#allocation4 + $0xec] ss:$16 sps:$4 sm:$0xff]  }
 0x241   :  { %v8368_v17 = vpack.c.bf16 %v783_v15, %v781_v14  ;;  %1356 = vmatpush1.bf16.msra.mxu0 %v7534_v6  ;;  %v723_v20 = vpop.f32.mrb[28].mxu0  ;;  %v8370_v24 = vpop.f32.mrb[28].mxu1 }
 0x242   :  { %v724_v26 = vadd.f32 %v723_v20, %v8313_v62  ;;  %v725_v28 = vpop.f32.mrb[29].mxu0  ;;  %v8373_v29 = vpop.f32.mrb[29].mxu1  ;;  %1357 = vmatprep.subr.bf16.mxu0 %v7539_v13 }
 0x243   :  { %v726_v34 = vadd.f32 %v725_v28, %v8316_v63  ;;  %v727_v35 = vpop.f32.mrb[30].mxu0  ;;  %1288 = vmatprep.mubr.bf16.mxu0 %v8368_v17  ;;  %v8377_v36 = vpop.f32.mrb[30].mxu1 }
 0x244   :  { %v728_v37 = vadd.f32 %v727_v35, %v8313_v62  ;;  %v729_v38 = vpop.f32.mrb[31].mxu0  ;;  %1289 = vmatmul.mubr.bf16.gmra.mrb[56].mxu0 %v8366_v16  ;;  %v8381_v39 = vpop.f32.mrb[31].mxu1  ;;  %v784_v42 = vmax.f32 %v724_v26, 0.0 }
 0x245   :  { %v730_v40 = vadd.f32 %v729_v38, %v8316_v63  ;;  %1358 = vmatpush1.bf16.msra.mxu0 %v7537_v25  ;;  %v785_v50 = vmax.f32 %v726_v34, 0.0 }
 0x246   :  { %v786_v45 = vmax.f32 %v728_v37, 0.0  ;;  %1359 = vmatprep.subr.bf16.mxu0 %v7542_v30  ;;  %v7546_v30 = vld [vmem:[#allocation4 + $0xe8] ss:$16 sps:$4 sm:$0xff]   ;;  %v7551_v37 = vld [vmem:[#allocation4 + $0x10c] ss:$16 sps:$4 sm:$0xff]  }
 0x247   :  { %v787_v51 = vmax.f32 %v730_v40, 0.0 }
 0x248   :  { %v8384_v53 = vpack.c.bf16 %v786_v45, %v784_v42 }
 0x249   :  { %v8386_v54 = vpack.c.bf16 %v787_v51, %v785_v50  ;;  %1360 = vmatpush1.bf16.msra.mxu0 %v7540_v41  ;;  %v733_v56 = vpop.f32.mrb[32].mxu0  ;;  %v8388_v0 = vpop.f32.mrb[32].mxu1  ;;  %v7549_v50 = vld [vmem:[#allocation4 + $0x108] ss:$16 sps:$4 sm:$0xff]  }
 0x24a   :  { %v734_v5 = vadd.f32 %v733_v56, %v8313_v62  ;;  %v735_v6 = vpop.f32.mrb[33].mxu0  ;;  %v8391_v8 = vpop.f32.mrb[33].mxu1  ;;  %1361 = vmatprep.subr.bf16.mxu0 %v7545_v49 }
 0x24b   :  { %9812 = vst [vmem:[#allocation19_spill] sm:$0xff] %v8391_v8  ;;  %v736_v13 = vadd.f32 %v735_v6, %v8316_v63  ;;  %v737_v14 = vpop.f32.mrb[34].mxu0  ;;  %1298 = vmatprep.mubr.bf16.mxu0 %v8386_v54  ;;  %v8395_v15 = vpop.f32.mrb[34].mxu1  ;;  %v1999_v6 = vld [vmem:[#allocation6 + $0x8] sm:$0xff] }
 0x24c   :  { %9813 = vst [vmem:[#allocation20_spill] sm:$0xff] %v8395_v15  ;;  %v738_v20 = vadd.f32 %v737_v14, %v8313_v62  ;;  %v739_v25 = vpop.f32.mrb[35].mxu0  ;;  %1299 = vmatmul.mubr.bf16.gmra.mrb[60].mxu0 %v8384_v53  ;;  %v8399_v26 = vpop.f32.mrb[35].mxu1  ;;  %v788_v34 = vmax.f32 %v734_v5, 0.0  ;;  %v7554_v5 = vld [vmem:[#allocation4 + $0x12c] ss:$16 sps:$4 sm:$0xff]  }
 0x24d   :  { %9814 = vst [vmem:[#allocation21_spill] sm:$0xff] %v8399_v26  ;;  %v740_v28 = vadd.f32 %v739_v25, %v8316_v63  ;;  %1362 = vmatpush1.bf16.msra.mxu0 %v7543_v2  ;;  %v789_v38 = vmax.f32 %v736_v13, 0.0  ;;  %v1998_v25 = vld [vmem:[#allocation6] sm:$0xff] }
 0x24e   :  { %v790_v35 = vmax.f32 %v738_v20, 0.0  ;;  %1363 = vmatprep.subr.bf16.mxu0 %v7548_v9  ;;  %v2127_v20 = vunpack.c.l.s8.bf16 %v1999_v6  ;;  %v2134_v57 = vunpack.c.h.s8.bf16 %v1998_v25 }
 0x24f   :  { %v791_v40 = vmax.f32 %v740_v28, 0.0 }
 0x250   :  { %v8402_v41 = vpack.c.bf16 %v790_v35, %v788_v34  ;;  %v2126_v35 = vunpack.c.l.s8.bf16 %v1998_v25  ;;  %2414 = vmatprep.subr.bf16.mxu1 %v2127_v20 }
 0x251   :  { %v8404_v42 = vpack.c.bf16 %v791_v40, %v789_v38  ;;  %1364 = vmatpush1.bf16.msra.mxu0 %v7546_v30  ;;  %v743_v45 = vpop.f32.mrb[36].mxu0  ;;  %v8406_v49 = vpop.f32.mrb[36].mxu1  ;;  %v7552_v38 = vld [vmem:[#allocation4 + $0x128] ss:$16 sps:$4 sm:$0xff]   ;;  %v2135_v40 = vunpack.c.h.s8.bf16 %v1999_v6 }
 0x252   :  { %9815 = vst [vmem:[#allocation22_spill] sm:$0xff] %v8406_v49  ;;  %v744_v51 = vadd.f32 %v743_v45, %v8313_v62  ;;  %v745_v56 = vpop.f32.mrb[37].mxu0  ;;  %v8409_v2 = vpop.f32.mrb[37].mxu1  ;;  %1365 = vmatprep.subr.bf16.mxu0 %v7551_v37  ;;  %2415 = vmatpush1.bf16.msra.mxu1 %v2126_v35 }
 0x253   :  { %9816 = vst [vmem:[#allocation23_spill] sm:$0xff] %v8409_v2  ;;  %v746_v9 = vadd.f32 %v745_v56, %v8316_v63  ;;  %v747_v13 = vpop.f32.mrb[38].mxu0  ;;  %1308 = vmatprep.mubr.bf16.mxu0 %v8404_v42  ;;  %v8413_v14 = vpop.f32.mrb[38].mxu1  ;;  %2416 = vmatprep.subr.bf16.mxu1 %v2135_v40 }
 0x254   :  { %9817 = vst [vmem:[#allocation24_spill] sm:$0xff] %v8413_v14  ;;  %v748_v28 = vadd.f32 %v747_v13, %v8313_v62  ;;  %v749_v30 = vpop.f32.mrb[39].mxu0  ;;  %1309 = vmatmul.mubr.bf16.gmra.mrb[64].mxu0 %v8402_v41  ;;  %v8417_v34 = vpop.f32.mrb[39].mxu1  ;;  %v792_v45 = vmax.f32 %v744_v51, 0.0 }
 0x255   :  { %9818 = vst [vmem:[#allocation25_spill] sm:$0xff] %v8417_v34  ;;  %v750_v37 = vadd.f32 %v749_v30, %v8316_v63  ;;  %1366 = vmatpush1.bf16.msra.mxu0 %v7549_v50  ;;  %v793_v14 = vmax.f32 %v746_v9, 0.0  ;;  %v7555_v50 = vld [vmem:[#allocation4 + $0x148] ss:$16 sps:$4 sm:$0xff]  }
 0x256   :  { %v794_v56 = vmax.f32 %v748_v28, 0.0  ;;  %1367 = vmatprep.subr.bf16.mxu0 %v7554_v5  ;;  %v7560_v5 = vld [vmem:[#allocation4 + $0x16c] ss:$16 sps:$4 sm:$0xff]   ;;  %2417 = vmatpush1.bf16.msra.mxu1 %v2134_v57 }
 0x257   :  { %v795_v13 = vmax.f32 %v750_v37, 0.0  ;;  %v2007_v9 = vld [vmem:[#allocation6 + $0x48] sm:$0xff]  ;;  %v2006_v37 = vld [vmem:[#allocation6 + $0x40] sm:$0xff] }
 0x258   :  { %v8420_v2 = vpack.c.bf16 %v794_v56, %v792_v45  ;;  %v2143_v35 = vunpack.c.l.s8.bf16 %v2007_v9  ;;  %v7558_v45 = vld [vmem:[#allocation4 + $0x168] ss:$16 sps:$4 sm:$0xff]   ;;  %v2151_v56 = vunpack.c.h.s8.bf16 %v2007_v9 }
 0x259   :  { %v8422_v49 = vpack.c.bf16 %v795_v13, %v793_v14  ;;  %1368 = vmatpush1.bf16.msra.mxu0 %v7552_v38  ;;  %v753_v34 = vpop.f32.mrb[40].mxu0  ;;  %v8424_v30 = vpop.f32.mrb[40].mxu1 }
 0x25a   :  { %9819 = vst [vmem:[#allocation26_spill] sm:$0xff] %v8424_v30  ;;  %v754_v6 = vadd.f32 %v753_v34, %v8313_v62  ;;  %v755_v51 = vpop.f32.mrb[41].mxu0  ;;  %v8427_v20 = vpop.f32.mrb[41].mxu1  ;;  %1369 = vmatprep.subr.bf16.mxu0 %v7557_v55  ;;  %v2142_v55 = vunpack.c.l.s8.bf16 %v2006_v37  ;;  %2418 = vmatprep.subr.bf16.mxu1 %v2143_v35 }
 0x25b   :  { %9820 = vst [vmem:[#allocation27_spill] sm:$0xff] %v8427_v20  ;;  %v756_v25 = vadd.f32 %v755_v51, %v8316_v63  ;;  %v757_v28 = vpop.f32.mrb[42].mxu0  ;;  %1318 = vmatprep.mubr.bf16.mxu0 %v8422_v49  ;;  %v8431_v14 = vpop.f32.mrb[42].mxu1  ;;  %v2150_v20 = vunpack.c.h.s8.bf16 %v2006_v37 }
 0x25c   :  { %9821 = vst [vmem:[#allocation28_spill] sm:$0xff] %v8431_v14  ;;  %v758_v38 = vadd.f32 %v757_v28, %v8313_v62  ;;  %v759_v40 = vpop.f32.mrb[43].mxu0  ;;  %1319 = vmatmul.mubr.bf16.gmra.mrb[68].mxu0 %v8420_v2  ;;  %v8435_v34 = vpop.f32.mrb[43].mxu1  ;;  %v796_v13 = vmax.f32 %v754_v6, 0.0  ;;  %v7563_v14 = vld [vmem:[#allocation4 + $0x18c] ss:$16 sps:$4 sm:$0xff]   ;;  %2419 = vmatpush1.bf16.msra.mxu1 %v2142_v55 }
 0x25d   :  { %9822 = vst [vmem:[#allocation29_spill] sm:$0xff] %v8435_v34  ;;  %v760_v57 = vadd.f32 %v759_v40, %v8316_v63  ;;  %1370 = vmatpush1.bf16.msra.mxu0 %v7555_v50  ;;  %v797_v30 = vmax.f32 %v756_v25, 0.0  ;;  %2420 = vmatprep.subr.bf16.mxu1 %v2151_v56  ;;  %v7561_v50 = vld [vmem:[#allocation4 + $0x188] ss:$16 sps:$4 sm:$0xff]  }
 0x25e   :  { %v798_v51 = vmax.f32 %v758_v38, 0.0  ;;  %1371 = vmatprep.subr.bf16.mxu0 %v7560_v5  ;;  %v7566_v5 = vld [vmem:[#allocation4 + $0x1ac] ss:$16 sps:$4 sm:$0xff]  }
 0x25f   :  { %v799_v28 = vmax.f32 %v760_v57, 0.0  ;;  %v2015_v25 = vld [vmem:[#allocation6 + $0x88] sm:$0xff]  ;;  %v2014_v57 = vld [vmem:[#allocation6 + $0x80] sm:$0xff] }
 0x260   :  { %v8438_v26 = vpack.c.bf16 %v798_v51, %v796_v13  ;;  %2421 = vmatpush1.bf16.msra.mxu1 %v2150_v20  ;;  %v2159_v55 = vunpack.c.l.s8.bf16 %v2015_v25  ;;  %v7564_v13 = vld [vmem:[#allocation4 + $0x1a8] ss:$16 sps:$4 sm:$0xff]   ;;  %v2167_v51 = vunpack.c.h.s8.bf16 %v2015_v25 }
 0x261   :  { %v8440_v15 = vpack.c.bf16 %v799_v28, %v797_v30  ;;  %1372 = vmatpush1.bf16.msra.mxu0 %v7558_v45  ;;  %v763_v34 = vpop.f32.mrb[44].mxu0  ;;  %v8442_v40 = vpop.f32.mrb[44].mxu1 }
 0x262   :  { %9823 = vst [vmem:[#allocation30_spill] sm:$0xff] %v8442_v40  ;;  %v764_v9 = vadd.f32 %v763_v34, %v8313_v62  ;;  %v765_v6 = vpop.f32.mrb[45].mxu0  ;;  %v8445_v35 = vpop.f32.mrb[45].mxu1  ;;  %1373 = vmatprep.subr.bf16.mxu0 %v7563_v14  ;;  %v2158_v14 = vunpack.c.l.s8.bf16 %v2014_v57  ;;  %2422 = vmatprep.subr.bf16.mxu1 %v2159_v55  ;;  %v7570_v55 = vld [vmem:[#allocation4 + $0x1e8] ss:$16 sps:$4 sm:$0xff]  }
 0x263   :  { %9824 = vst [vmem:[#allocation31_spill] sm:$0xff] %v8445_v35  ;;  %v766_v37 = vadd.f32 %v765_v6, %v8316_v63  ;;  %v767_v38 = vpop.f32.mrb[46].mxu0  ;;  %1328 = vmatprep.mubr.bf16.mxu0 %v8440_v15  ;;  %v8449_v30 = vpop.f32.mrb[46].mxu1  ;;  %v2166_v35 = vunpack.c.h.s8.bf16 %v2014_v57 }
 0x264   :  { %9825 = vst [vmem:[#allocation32_spill] sm:$0xff] %v8449_v30  ;;  %v768_v45 = vadd.f32 %v767_v38, %v8313_v62  ;;  %v769_v56 = vpop.f32.mrb[47].mxu0  ;;  %1329 = vmatmul.mubr.bf16.gmra.mrb[72].mxu0 %v8438_v26  ;;  %v8453_v34 = vpop.f32.mrb[47].mxu1  ;;  %v800_v28 = vmax.f32 %v764_v9, 0.0  ;;  %v7569_v30 = vld [vmem:[#allocation4 + $0x1cc] ss:$16 sps:$4 sm:$0xff]   ;;  %2423 = vmatpush1.bf16.msra.mxu1 %v2158_v14 }
 0x265   :  { %9826 = vst [vmem:[#allocation33_spill] sm:$0xff] %v8453_v34  ;;  %v770_v20 = vadd.f32 %v769_v56, %v8316_v63  ;;  %1374 = vmatpush1.bf16.msra.mxu0 %v7561_v50  ;;  %v801_v40 = vmax.f32 %v766_v37, 0.0  ;;  %2424 = vmatprep.subr.bf16.mxu1 %v2167_v51  ;;  %v7567_v34 = vld [vmem:[#allocation4 + $0x1c8] ss:$16 sps:$4 sm:$0xff]   ;;  %v7572_v63 = vld [vmem:[#allocation4 + $0x1ec] ss:$16 sps:$4 sm:$0xff]  }
 0x266   :  { %v802_v6 = vmax.f32 %v768_v45, 0.0  ;;  %1375 = vmatprep.subr.bf16.mxu0 %v7566_v5  ;;  %v2023_v50 = vld [vmem:[#allocation6 + $0xc8] sm:$0xff]  ;;  %v2022_v5 = vld [vmem:[#allocation6 + $0xc0] sm:$0xff] }
 0x267   :  { %v803_v62 = vmax.f32 %v770_v20, 0.0  ;;  %v2175_v9 = vunpack.c.l.s8.bf16 %v2023_v50  ;;  %v2174_v25 = vunpack.c.l.s8.bf16 %v2022_v5  ;;  %v2183_v37 = vunpack.c.h.s8.bf16 %v2023_v50  ;;  %v2030_v45 = vld [vmem:[#allocation6 + $0x100] sm:$0xff]  ;;  %v7573_v56 = vld [vmem:[%s9781_s5 + $0x8] ss:$16 sps:$4 sm:$0xff]   ;;  %v7581_v51 = vld [vmem:[%s9781_s5 + $0x4c] ss:$16 sps:$4 sm:$0xff]  }
 0x268   :  { %v8456_v38 = vpack.c.bf16 %v802_v6, %v800_v28  ;;  %2425 = vmatpush1.bf16.msra.mxu1 %v2166_v35  ;;  %v2182_v35 = vunpack.c.h.s8.bf16 %v2022_v5  ;;  %v7576_v20 = vld [vmem:[%s9781_s5 + $0x28] ss:$16 sps:$4 sm:$0xff]   ;;  %v2198_v28 = vunpack.c.h.s8.bf16 %v2030_v45 }
 0x269   :  { %v8458_v8 = vpack.c.bf16 %v803_v62, %v801_v40  ;;  %1376 = vmatpush1.bf16.msra.mxu0 %v7564_v13  ;;  %v2031_v40 = vld [vmem:[#allocation6 + $0x108] sm:$0xff]  ;;  %2426 = vmatprep.subr.bf16.mxu1 %v2175_v9 }
 0x26a   :  { %1377 = vmatprep.subr.bf16.mxu0 %v7569_v30  ;;  %v7575_v30 = vld [vmem:[%s9781_s5 + $0xc] ss:$16 sps:$4 sm:$0xff]   ;;  %v2191_v57 = vunpack.c.l.s8.bf16 %v2031_v40  ;;  %v2199_v14 = vunpack.c.h.s8.bf16 %v2031_v40  ;;  %v7582_v9 = vld [vmem:[%s9781_s5 + $0x68] ss:$16 sps:$4 sm:$0xff]  }
 0x26b   :  { %1338 = vmatprep.mubr.bf16.mxu0 %v8458_v8  ;;  %v2039_v13 = vld [vmem:[#allocation6 + $0x148] sm:$0xff] }
 0x26c   :  { %1339 = vmatmul.mubr.bf16.gmra.mrb[76].mxu0 %v8456_v38  ;;  %2427 = vmatpush1.bf16.msra.mxu1 %v2174_v25  ;;  %v2207_v6 = vunpack.c.l.s8.bf16 %v2039_v13  ;;  %v7584_v62 = vld [vmem:[%s9781_s5 + $0x6c] ss:$16 sps:$4 sm:$0xff]   ;;  %v2215_v50 = vunpack.c.h.s8.bf16 %v2039_v13 }
 0x26d   :  { %1378 = vmatpush1.bf16.msra.mxu0 %v7567_v34  ;;  %1381 = vmatprep.mubr.bf16.mxu0 %v8332_v19  ;;  %v7578_v19 = vld [vmem:[%s9781_s5 + $0x2c] ss:$16 sps:$4 sm:$0xff]   ;;  %v2190_v34 = vunpack.c.l.s8.bf16 %v2030_v45 }
 0x26e   :  { %1379 = vmatprep.subr.bf16.mxu0 %v7572_v63  ;;  %2428 = vmatprep.subr.bf16.mxu1 %v2183_v37  ;;  %v2047_v5 = vld [vmem:[#allocation6 + $0x188] sm:$0xff] }
 0x26f   :  { %v7587_v25 = vld [vmem:[%s9781_s5 + $0x8c] ss:$16 sps:$4 sm:$0xff]   ;;  %v2231_v45 = vunpack.c.h.s8.bf16 %v2047_v5 }
 0x270   :  { %2429 = vmatpush1.bf16.msra.mxu1 %v2182_v35  ;;  %v7590_v40 = vld [vmem:[%s9781_s5 + $0xac] ss:$16 sps:$4 sm:$0xff]   ;;  %v7588_v35 = vld [vmem:[%s9781_s5 + $0xa8] ss:$16 sps:$4 sm:$0xff]  }
 0x271   :  { %1380 = vmatpush1.bf16.msra.mxu0 %v7570_v55  ;;  %2430 = vmatprep.subr.bf16.mxu1 %v2191_v57  ;;  %v2223_v55 = vunpack.c.l.s8.bf16 %v2047_v5  ;;  %v7593_v57 = vld [vmem:[%s9781_s5 + $0xcc] ss:$16 sps:$4 sm:$0xff]  }
 0x272   :  { %1735 = vmatprep.subr.bf16.mxu0 %v7575_v30 }
 0x274   :  { %1382 = vmatmul.mubr.bf16.vlgmr.msra.gmra.mrb[80].mxu0 %v8330_v18  ;;  %2431 = vmatpush1.bf16.msra.mxu1 %v2190_v34  ;;  %v2038_v18 = vld [vmem:[#allocation6 + $0x140] sm:$0xff]  ;;  %v2001_v34 = vld [vmem:[#allocation6 + $0x18] sm:$0xff] }
 0x275   :  { %1736 = vmatpush1.bf16.msra.mxu0 %v7573_v56  ;;  %1391 = vmatprep.mubr.bf16.mxu0 %v8350_v44  ;;  %v7579_v44 = vld [vmem:[%s9781_s5 + $0x48] ss:$16 sps:$4 sm:$0xff]   ;;  %v2206_v63 = vunpack.c.l.s8.bf16 %v2038_v18  ;;  %v2214_v37 = vunpack.c.h.s8.bf16 %v2038_v18 }
 0x276   :  { %1737 = vmatprep.subr.bf16.mxu0 %v7578_v19  ;;  %2432 = vmatprep.subr.bf16.mxu1 %v2199_v14  ;;  %v2055_v19 = vld [vmem:[#allocation6 + $0x1c8] sm:$0xff] }
 0x277   :  { %v2239_v14 = vunpack.c.l.s8.bf16 %v2055_v19 }
 0x278   :  { %2433 = vmatpush1.bf16.msra.mxu1 %v2198_v28  ;;  %v2129_v28 = vunpack.c.l.s8.bf16 %v2001_v34 }
 0x279   :  { %1738 = vmatpush1.bf16.msra.mxu0 %v7576_v20  ;;  %2434 = vmatprep.subr.bf16.mxu1 %v2207_v6  ;;  %v2054_v20 = vld [vmem:[#allocation6 + $0x1c0] sm:$0xff]  ;;  %v2247_v6 = vunpack.c.h.s8.bf16 %v2055_v19 }
 0x27a   :  { %1739 = vmatprep.subr.bf16.mxu0 %v7581_v51  ;;  %v2238_v13 = vunpack.c.l.s8.bf16 %v2054_v20  ;;  %v7594_v51 = vld [vmem:[%s9781_s5 + $0xe8] ss:$16 sps:$4 sm:$0xff]   ;;  %v2246_v18 = vunpack.c.h.s8.bf16 %v2054_v20 }
 0x27c   :  { %1392 = vmatmul.mubr.bf16.gmra.mrb[84].mxu0 %v8348_v43  ;;  %2435 = vmatpush1.bf16.msra.mxu1 %v2206_v63  ;;  %v2046_v43 = vld [vmem:[#allocation6 + $0x180] sm:$0xff]  ;;  %v2009_v63 = vld [vmem:[#allocation6 + $0x58] sm:$0xff] }
 0x27d   :  { %1401 = vmatprep.mubr.bf16.mxu0 %v8368_v17  ;;  %1740 = vmatpush1.bf16.msra.mxu0 %v7579_v44  ;;  %v7585_v17 = vld [vmem:[%s9781_s5 + $0x88] ss:$16 sps:$4 sm:$0xff]   ;;  %v2222_v30 = vunpack.c.l.s8.bf16 %v2046_v43  ;;  %v2230_v56 = vunpack.c.h.s8.bf16 %v2046_v43 }
 0x27e   :  { %1741 = vmatprep.subr.bf16.mxu0 %v7584_v62  ;;  %2436 = vmatprep.subr.bf16.mxu1 %v2215_v50  ;;  %v2137_v62 = vunpack.c.h.s8.bf16 %v2001_v34  ;;  %v2016_v50 = vld [vmem:[#allocation6 + $0x90] sm:$0xff] }
 0x27f   :  { %v2040_v34 = vld [vmem:[#allocation6 + $0x150] sm:$0xff] }
 0x280   :  { %2437 = vmatpush1.bf16.msra.mxu1 %v2214_v37  ;;  %v2168_v37 = vunpack.c.h.s8.bf16 %v2016_v50 }
 0x281   :  { %1742 = vmatpush1.bf16.msra.mxu0 %v7582_v9  ;;  %2438 = vmatprep.subr.bf16.mxu1 %v2223_v55  ;;  %v2160_v9 = vunpack.c.l.s8.bf16 %v2016_v50  ;;  %v2024_v55 = vld [vmem:[#allocation6 + $0xd0] sm:$0xff] }
 0x282   :  { %1743 = vmatprep.subr.bf16.mxu0 %v7587_v25  ;;  %v2025_v25 = vld [vmem:[#allocation6 + $0xd8] sm:$0xff]  ;;  %v2176_v43 = vunpack.c.l.s8.bf16 %v2024_v55 }
 0x284   :  { %1402 = vmatmul.mubr.bf16.gmra.mrb[88].mxu0 %v8366_v16  ;;  %2439 = vmatpush1.bf16.msra.mxu1 %v2222_v30  ;;  %v7591_v16 = vld [vmem:[%s9781_s5 + $0xc8] ss:$16 sps:$4 sm:$0xff]  }
 0x285   :  { %1411 = vmatprep.mubr.bf16.mxu0 %v8386_v54  ;;  %1744 = vmatpush1.bf16.msra.mxu0 %v7585_v17  ;;  %v7596_v54 = vld [vmem:[%s9781_s5 + $0xec] ss:$16 sps:$4 sm:$0xff]   ;;  %v2185_v17 = vunpack.c.h.s8.bf16 %v2025_v25 }
 0x286   :  { %1745 = vmatprep.subr.bf16.mxu0 %v7590_v40  ;;  %2440 = vmatprep.subr.bf16.mxu1 %v2231_v45  ;;  %v2033_v40 = vld [vmem:[#allocation6 + $0x118] sm:$0xff]  ;;  %v8534_v30 = vld [vmem:[#allocation6 + $0x208] sm:$0xff]  ;;  %v2032_v45 = vld [vmem:[#allocation6 + $0x110] sm:$0xff] }
 0x288   :  { %2441 = vmatpush1.bf16.msra.mxu1 %v2230_v56  ;;  %v2192_v56 = vunpack.c.l.s8.bf16 %v2032_v45 }
 0x289   :  { %1746 = vmatpush1.bf16.msra.mxu0 %v7588_v35  ;;  %2442 = vmatprep.subr.bf16.mxu1 %v2239_v14  ;;  %v2255_v35 = vunpack.c.l.s8.bf16 %v8534_v30  ;;  %v2208_v14 = vunpack.c.l.s8.bf16 %v2040_v34 }
 0x28a   :  { %1747 = vmatprep.subr.bf16.mxu0 %v7593_v57  ;;  %v2193_v57 = vunpack.c.l.s8.bf16 %v2033_v40 }
 0x28c   :  { %1412 = vmatmul.mubr.bf16.gmra.mrb[92].mxu0 %v8384_v53  ;;  %2443 = vmatpush1.bf16.msra.mxu1 %v2238_v13  ;;  %v9827_v53 = vmov 0   ;;  %v2049_v13 = vld [vmem:[#allocation6 + $0x198] sm:$0xff] }
 0x28d   :  { %1421 = vmatprep.mubr.bf16.mxu0 %v8404_v42  ;;  %1748 = vmatpush1.bf16.msra.mxu0 %v7591_v16  ;;  %v2000_v42 = vld [vmem:[#allocation6 + $0x10] sm:$0xff]  ;;  %v2201_v16 = vunpack.c.h.s8.bf16 %v2033_v40 }
 0x28e   :  { %1749 = vmatprep.subr.bf16.mxu0 %v7596_v54  ;;  %2444 = vmatprep.subr.bf16.mxu1 %v2247_v6  ;;  %v2128_v44 = vunpack.c.l.s8.bf16 %v2000_v42  ;;  %v2041_v54 = vld [vmem:[#allocation6 + $0x158] sm:$0xff] }
 0x28f   :  { %v2209_v19 = vunpack.c.l.s8.bf16 %v2041_v54  ;;  %v2217_v20 = vunpack.c.h.s8.bf16 %v2041_v54 }
 0x290   :  { %2445 = vmatpush1.bf16.msra.mxu1 %v2246_v18  ;;  %v2233_v18 = vunpack.c.h.s8.bf16 %v2049_v13 }
 0x291   :  { %1750 = vmatpush1.bf16.msra.mxu0 %v7594_v51  ;;  %2527 = vmatprep.subr.bf16.mxu1 %v2255_v35  ;;  %v2216_v51 = vunpack.c.h.s8.bf16 %v2040_v34 }
 0x292   :  { %2640 = vmatprep.subr.bf16.mxu0 %v2129_v28  ;;  %v2048_v28 = vld [vmem:[#allocation6 + $0x190] sm:$0xff] }
 0x293   :  { %v2224_v6 = vunpack.c.l.s8.bf16 %v2048_v28 }
 0x294   :  { %1422 = vmatmul.mubr.bf16.gmra.mrb[96].mxu0 %v8402_v41  ;;  %v2136_v41 = vunpack.c.h.s8.bf16 %v2000_v42  ;;  %v2057_v42 = vld [vmem:[#allocation6 + $0x1d8] sm:$0xff] }
 0x295   :  { %1431 = vmatprep.mubr.bf16.mxu0 %v8422_v49  ;;  %v2008_v49 = vld [vmem:[#allocation6 + $0x50] sm:$0xff] }
 0x29c   :  { %1432 = vmatmul.mubr.bf16.gmra.mrb[100].mxu0 %v8420_v2  ;;  %v2017_v2 = vld [vmem:[#allocation6 + $0x98] sm:$0xff] }
 0x29d   :  { %1441 = vmatprep.mubr.bf16.mxu0 %v8440_v15  ;;  %v2145_v15 = vunpack.c.l.s8.bf16 %v2009_v63  ;;  %v2169_v5 = vunpack.c.h.s8.bf16 %v2017_v2 }
 0x2a4   :  { %1442 = vmatmul.mubr.bf16.gmra.mrb[104].mxu0 %v8438_v26  ;;  %v2144_v26 = vunpack.c.l.s8.bf16 %v2008_v49 }
 0x2a5   :  { %1451 = vmatprep.mubr.bf16.mxu0 %v8458_v8  ;;  %v2153_v8 = vunpack.c.h.s8.bf16 %v2009_v63 }
 0x2ac   :  { %1452 = vmatmul.mubr.bf16.gmra.mrb[108].mxu0 %v8456_v38  ;;  %v2152_v38 = vunpack.c.h.s8.bf16 %v2008_v49 }
 0x2ad   :  { %1767 = vmatprep.mubr.bf16.mxu0 %v9827_v53 }
 0x2b4   :  { %1768 = vmatmul.mubr.bf16.vlgmr.msra.gmra.mrb[80].mxu0 %v8245_v22  ;;  %v2161_v22 = vunpack.c.l.s8.bf16 %v2017_v2 }
 0x2b5   :  { %1777 = vmatprep.mubr.bf16.mxu0 %v9827_v53  ;;  %2641 = vmatpush1.bf16.msra.mxu0 %v2128_v44  ;;  %v2232_v44 = vunpack.c.h.s8.bf16 %v2048_v28  ;;  %v2073_v28 = vld [vmem:[#allocation6 + $0x258] sm:$0xff] }
 0x2b6   :  { %2642 = vmatprep.subr.bf16.mxu0 %v2137_v62  ;;  %v2056_v62 = vld [vmem:[#allocation6 + $0x1d0] sm:$0xff] }
 0x2b7   :  { %v2240_v63 = vunpack.c.l.s8.bf16 %v2056_v62  ;;  %v2248_v49 = vunpack.c.h.s8.bf16 %v2056_v62  ;;  %v2273_v62 = vunpack.c.l.s8.bf16 %v2073_v28 }
 0x2b9   :  { %2643 = vmatpush1.bf16.msra.mxu0 %v2136_v41  ;;  %v2249_v41 = vunpack.c.h.s8.bf16 %v2057_v42 }
 0x2ba   :  { %2644 = vmatprep.subr.bf16.mxu0 %v2145_v15  ;;  %v2065_v15 = vld [vmem:[#allocation6 + $0x218] sm:$0xff] }
 0x2bc   :  { %1778 = vmatmul.mubr.bf16.gmra.mrb[84].mxu0 %v8243_v21  ;;  %v2177_v21 = vunpack.c.l.s8.bf16 %v2025_v25 }
 0x2bd   :  { %1787 = vmatprep.mubr.bf16.mxu0 %v9827_v53  ;;  %2645 = vmatpush1.bf16.msra.mxu0 %v2144_v26  ;;  %v2257_v26 = vunpack.c.l.s8.bf16 %v2065_v15 }
 0x2be   :  { %2646 = vmatprep.subr.bf16.mxu0 %v2153_v8 }
 0x2c1   :  { %2647 = vmatpush1.bf16.msra.mxu0 %v2152_v38 }
 0x2c2   :  { %2648 = vmatprep.subr.bf16.mxu0 %v2161_v22 }
 0x2c4   :  { %1788 = vmatmul.mubr.bf16.gmra.mrb[88].mxu0 %v8257_v48  ;;  %v2184_v48 = vunpack.c.h.s8.bf16 %v2024_v55 }
 0x2c5   :  { %1797 = vmatprep.mubr.bf16.mxu0 %v9827_v53  ;;  %2649 = vmatpush1.bf16.msra.mxu0 %v2160_v9 }
 0x2c6   :  { %2650 = vmatprep.subr.bf16.mxu0 %v2169_v5 }
 0x2c9   :  { %2651 = vmatpush1.bf16.msra.mxu0 %v2168_v37 }
 0x2ca   :  { %2652 = vmatprep.subr.bf16.mxu0 %v2177_v21 }
 0x2cc   :  { %1798 = vmatmul.mubr.bf16.gmra.mrb[92].mxu0 %v8255_v47  ;;  %v2200_v47 = vunpack.c.h.s8.bf16 %v2032_v45 }
 0x2cd   :  { %1807 = vmatprep.mubr.bf16.mxu0 %v9827_v53  ;;  %2653 = vmatpush1.bf16.msra.mxu0 %v2176_v43 }
 0x2ce   :  { %2654 = vmatprep.subr.bf16.mxu0 %v2185_v17 }
 0x2d1   :  { %2655 = vmatpush1.bf16.msra.mxu0 %v2184_v48  ;;  %v2064_v48 = vld [vmem:[#allocation6 + $0x210] sm:$0xff] }
 0x2d2   :  { %2656 = vmatprep.subr.bf16.mxu0 %v2193_v57 }
 0x2d4   :  { %1808 = vmatmul.mubr.bf16.gmra.mrb[96].mxu0 %v8269_v12  ;;  %v2225_v12 = vunpack.c.l.s8.bf16 %v2049_v13  ;;  %v2263_v13 = vunpack.c.h.s8.bf16 %v8534_v30 }
 0x2d5   :  { %1817 = vmatprep.mubr.bf16.mxu0 %v9827_v53  ;;  %2657 = vmatpush1.bf16.msra.mxu0 %v2192_v56 }
 0x2d6   :  { %2658 = vmatprep.subr.bf16.mxu0 %v2201_v16 }
 0x2d9   :  { %2659 = vmatpush1.bf16.msra.mxu0 %v2200_v47 }
 0x2da   :  { %2660 = vmatprep.subr.bf16.mxu0 %v2209_v19  ;;  %v2256_v19 = vunpack.c.l.s8.bf16 %v2064_v48 }
 0x2dc   :  { %1818 = vmatmul.mubr.bf16.gmra.mrb[100].mxu0 %v8267_v11  ;;  %v2241_v11 = vunpack.c.l.s8.bf16 %v2057_v42 }
 0x2dd   :  { %1827 = vmatprep.mubr.bf16.mxu0 %v9827_v53  ;;  %2661 = vmatpush1.bf16.msra.mxu0 %v2208_v14 }
 0x2de   :  { %2662 = vmatprep.subr.bf16.mxu0 %v2217_v20 }
 0x2e1   :  { %2663 = vmatpush1.bf16.msra.mxu0 %v2216_v51  ;;  %v2265_v51 = vunpack.c.h.s8.bf16 %v2065_v15 }
 0x2e2   :  { %2664 = vmatprep.subr.bf16.mxu0 %v2225_v12 }
 0x2e4   :  { %1828 = vmatmul.mubr.bf16.gmra.mrb[104].mxu0 %v8281_v33  ;;  %v8548_v33 = vld [vmem:[%s9787_s11 + $0x3] sm:$0xf] }
 0x2e5   :  { %1837 = vmatprep.mubr.bf16.mxu0 %v9827_v53  ;;  %2665 = vmatpush1.bf16.msra.mxu0 %v2224_v6  ;;  %v8552_v53 = vrot.slane %v8548_v33, %v8304_v58  ;;  %v8556_v2 = vrot.slane %v8548_v33, %v8310_v60 }
 0x2e6   :  { %2666 = vmatprep.subr.bf16.mxu0 %v2233_v18  ;;  %v2264_v18 = vunpack.c.h.s8.bf16 %v2064_v48 }
 0x2e9   :  { %2667 = vmatpush1.bf16.msra.mxu0 %v2232_v44 }
 0x2ea   :  { %2668 = vmatprep.subr.bf16.mxu0 %v2241_v11  ;;  %v2070_v11 = vld [vmem:[#allocation6 + $0x240] sm:$0xff] }
 0x2eb   :  { %v2278_v48 = vunpack.c.h.s8.bf16 %v2070_v11 }
 0x2ec   :  { %1838 = vmatmul.mubr.bf16.gmra.mrb[108].mxu0 %v8279_v32 }
 0x2ed   :  { %2669 = vmatpush1.bf16.msra.mxu0 %v2240_v63  ;;  %v2072_v63 = vld [vmem:[#allocation6 + $0x250] sm:$0xff] }
 0x2ee   :  { %2670 = vmatprep.subr.bf16.mxu0 %v2249_v41 }
 0x2f1   :  { %2671 = vmatpush1.bf16.msra.mxu0 %v2248_v49 }
 0x2f2   :  { %2753 = vmatprep.subr.bf16.mxu0 %v2257_v26 }
 0x307   :  { %v1270_v8 = vpop.f32.mrb[48].mxu0 }
 0x308   :  { %v1657_v32 = vadd.f32 %v8318_v1, %v1270_v8  ;;  %v1272_v38 = vpop.f32.mrb[49].mxu0  ;;  %v2062_v1 = vld [vmem:[#allocation6 + $0x200] sm:$0xff] }
 0x309   :  { %v1659_v22 = vadd.f32 %v8321_v4, %v1272_v38  ;;  %v1274_v50 = vpop.f32.mrb[50].mxu0  ;;  %v2254_v47 = vunpack.c.l.s8.bf16 %v2062_v1  ;;  %v2262_v30 = vunpack.c.h.s8.bf16 %v2062_v1 }
 0x30a   :  { %v1870_v9 = vadd.f32 %v8552_v53, %v1657_v32  ;;  %v1661_v5 = vadd.f32 %v8324_v7, %v1274_v50  ;;  %v1276_v25 = vpop.f32.mrb[51].mxu0 }
 0x30b   :  { %v1871_v37 = vadd.f32 %v8556_v2, %v1659_v22  ;;  %v1663_v21 = vadd.f32 %v8327_v10, %v1276_v25 }
 0x30c   :  { %v1874_v55 = vadd.f32 %v8552_v53, %v1661_v5  ;;  %v1934_v17 = vmax.f32 %v1870_v9, 0.0  ;;  %v2270_v9 = vunpack.c.l.s8.bf16 %v2070_v11  ;;  %v2272_v5 = vunpack.c.l.s8.bf16 %v2072_v63 }
 0x30d   :  { %v1875_v43 = vadd.f32 %v8556_v2, %v1663_v21  ;;  %v1935_v35 = vmax.f32 %v1871_v37, 0.0 }
 0x30e   :  { %v1938_v40 = vmax.f32 %v1874_v55, 0.0 }
 0x30f   :  { %v1939_v4 = vmax.f32 %v1875_v43, 0.0  ;;  %v1280_v57 = vpop.f32.mrb[52].mxu0  ;;  %v2281_v43 = vunpack.c.h.s8.bf16 %v2073_v28 }
 0x310   :  { %v8566_v45 = vpack.c.bf16 %v1938_v40, %v1934_v17  ;;  %v1667_v7 = vadd.f32 %v8334_v23, %v1280_v57  ;;  %v1282_v56 = vpop.f32.mrb[53].mxu0  ;;  %v2081_v40 = vld [vmem:[#allocation6 + $0x298] sm:$0xff] }
 0x311   :  { %v8569_v16 = vpack.c.bf16 %v1939_v4, %v1935_v35  ;;  %v1669_v10 = vadd.f32 %v8337_v27, %v1282_v56  ;;  %v1284_v54 = vpop.f32.mrb[54].mxu0  ;;  %v2071_v27 = vld [vmem:[#allocation6 + $0x248] sm:$0xff]  ;;  %v2280_v35 = vunpack.c.h.s8.bf16 %v2072_v63  ;;  %v2289_v56 = vunpack.c.l.s8.bf16 %v2081_v40 }
 0x312   :  { %v1878_v34 = vadd.f32 %v8552_v53, %v1667_v7  ;;  %v1671_v14 = vadd.f32 %v8341_v31, %v1284_v54  ;;  %v1286_v20 = vpop.f32.mrb[55].mxu0  ;;  %v2271_v44 = vunpack.c.l.s8.bf16 %v2071_v27  ;;  %v2279_v55 = vunpack.c.h.s8.bf16 %v2071_v27  ;;  %v2078_v7 = vld [vmem:[#allocation6 + $0x280] sm:$0xff] }
 0x313   :  { %v1879_v12 = vadd.f32 %v8556_v2, %v1669_v10  ;;  %v1673_v23 = vadd.f32 %v8345_v61, %v1286_v20  ;;  %2446 = vmatprep.mubr.bf16.mxu1 %v8569_v16  ;;  %2672 = vmatprep.mubr.bf16.mxu0 %v8569_v16  ;;  %v2080_v10 = vld [vmem:[#allocation6 + $0x290] sm:$0xff]  ;;  %v2294_v11 = vunpack.c.h.s8.bf16 %v2078_v7 }
 0x314   :  { %v1882_v6 = vadd.f32 %v8552_v53, %v1671_v14  ;;  %2447 = vmatmul.mubr.bf16.vlgmr.msra.gmra.mrb[48].mxu1 %v8566_v45  ;;  %2673 = vmatmul.mubr.bf16.vlgmr.msra.gmra.mrb[112].mxu0 %v8566_v45  ;;  %v1942_v42 = vmax.f32 %v1878_v34, 0.0  ;;  %v2288_v27 = vunpack.c.l.s8.bf16 %v2080_v10 }
 0x315   :  { %v1883_v31 = vadd.f32 %v8556_v2, %v1673_v23  ;;  %2528 = vmatpush1.bf16.msra.mxu1 %v2254_v47  ;;  %2754 = vmatpush1.bf16.msra.mxu0 %v2256_v19  ;;  %v1943_v41 = vmax.f32 %v1879_v12, 0.0  ;;  %v2286_v23 = vunpack.c.l.s8.bf16 %v2078_v7  ;;  %v2097_v7 = vld [vmem:[#allocation6 + $0x318] sm:$0xff] }
 0x316   :  { %v1946_v61 = vmax.f32 %v1882_v6, 0.0  ;;  %2529 = vmatprep.subr.bf16.mxu1 %v2263_v13  ;;  %2755 = vmatprep.subr.bf16.mxu0 %v2265_v51 }
 0x317   :  { %v1947_v15 = vmax.f32 %v1883_v31, 0.0  ;;  %v1290_v49 = vpop.f32.mrb[56].mxu0 }
 0x318   :  { %v8583_v26 = vpack.c.bf16 %v1946_v61, %v1942_v42  ;;  %v1677_v8 = vadd.f32 %v8352_v46, %v1290_v49  ;;  %v1292_v32 = vpop.f32.mrb[57].mxu0  ;;  %v2089_v61 = vld [vmem:[#allocation6 + $0x2d8] sm:$0xff] }
 0x319   :  { %v8586_v38 = vpack.c.bf16 %v1947_v15, %v1943_v41  ;;  %v1679_v22 = vadd.f32 %v8355_v52, %v1292_v32  ;;  %v1294_v50 = vpop.f32.mrb[58].mxu0  ;;  %2530 = vmatpush1.bf16.msra.mxu1 %v2262_v30  ;;  %2756 = vmatpush1.bf16.msra.mxu0 %v2264_v18  ;;  %v2079_v52 = vld [vmem:[#allocation6 + $0x288] sm:$0xff]  ;;  %v2297_v18 = vunpack.c.h.s8.bf16 %v2081_v40  ;;  %v2086_v15 = vld [vmem:[#allocation6 + $0x2c0] sm:$0xff]  ;;  %v2305_v49 = vunpack.c.l.s8.bf16 %v2089_v61 }
 0x31a   :  { %v1886_v25 = vadd.f32 %v8552_v53, %v1677_v8  ;;  %v1681_v37 = vadd.f32 %v8359_v59, %v1294_v50  ;;  %v1296_v21 = vpop.f32.mrb[59].mxu0  ;;  %2531 = vmatprep.subr.bf16.mxu1 %v2271_v44  ;;  %2757 = vmatprep.subr.bf16.mxu0 %v2273_v62  ;;  %v2287_v57 = vunpack.c.l.s8.bf16 %v2079_v52  ;;  %v2295_v30 = vunpack.c.h.s8.bf16 %v2079_v52  ;;  %v2088_v8 = vld [vmem:[#allocation6 + $0x2d0] sm:$0xff]  ;;  %v9829_v40 = vld [vmem:[#allocation20_spill] sm:$0xff] }
 0x31b   :  { %v1887_v46 = vadd.f32 %v8556_v2, %v1679_v22  ;;  %v1683_v17 = vadd.f32 %v8363_v3, %v1296_v21  ;;  %2456 = vmatprep.mubr.bf16.mxu1 %v8586_v38  ;;  %2682 = vmatprep.mubr.bf16.mxu0 %v8586_v38  ;;  %v2296_v62 = vunpack.c.h.s8.bf16 %v2080_v10  ;;  %v9828_v21 = vld [vmem:[#allocation19_spill] sm:$0xff] }
 0x31c   :  { %v1890_v1 = vadd.f32 %v8552_v53, %v1681_v37  ;;  %2457 = vmatmul.mubr.bf16.gmra.mrb[52].mxu1 %v8583_v26  ;;  %2683 = vmatmul.mubr.bf16.gmra.mrb[116].mxu0 %v8583_v26  ;;  %v1950_v4 = vmax.f32 %v1886_v25, 0.0 }
 0x31d   :  { %v1891_v59 = vadd.f32 %v8556_v2, %v1683_v17  ;;  %2532 = vmatpush1.bf16.msra.mxu1 %v2270_v9  ;;  %2758 = vmatpush1.bf16.msra.mxu0 %v2272_v5  ;;  %v1951_v54 = vmax.f32 %v1887_v46, 0.0  ;;  %v2302_v46 = vunpack.c.l.s8.bf16 %v2086_v15  ;;  %v2304_v17 = vunpack.c.l.s8.bf16 %v2088_v8 }
 0x31e   :  { %v1954_v3 = vmax.f32 %v1890_v1, 0.0  ;;  %2533 = vmatprep.subr.bf16.mxu1 %v2279_v55  ;;  %2759 = vmatprep.subr.bf16.mxu0 %v2281_v43 }
 0x31f   :  { %v1955_v47 = vmax.f32 %v1891_v59, 0.0  ;;  %v1300_v19 = vpop.f32.mrb[60].mxu0 }
 0x320   :  { %v8599_v34 = vpack.c.bf16 %v1954_v3, %v1950_v4  ;;  %v1687_v14 = vadd.f32 %v8370_v24, %v1300_v19  ;;  %v1302_v20 = vpop.f32.mrb[61].mxu0  ;;  %v9830_v4 = vld [vmem:[#allocation21_spill] sm:$0xff] }
 0x321   :  { %v8602_v13 = vpack.c.bf16 %v1955_v47, %v1951_v54  ;;  %v1689_v51 = vadd.f32 %v8373_v29, %v1302_v20  ;;  %v1304_v12 = vpop.f32.mrb[62].mxu0  ;;  %2534 = vmatpush1.bf16.msra.mxu1 %v2278_v48  ;;  %2760 = vmatpush1.bf16.msra.mxu0 %v2280_v35  ;;  %v2087_v29 = vld [vmem:[#allocation6 + $0x2c8] sm:$0xff]  ;;  %v2313_v35 = vunpack.c.h.s8.bf16 %v2089_v61  ;;  %v2310_v54 = vunpack.c.h.s8.bf16 %v2086_v15 }
 0x322   :  { %v1894_v28 = vadd.f32 %v8552_v53, %v1687_v14  ;;  %v1691_v6 = vadd.f32 %v8377_v36, %v1304_v12  ;;  %v1306_v31 = vpop.f32.mrb[63].mxu0  ;;  %2535 = vmatprep.subr.bf16.mxu1 %v2287_v57  ;;  %2761 = vmatprep.subr.bf16.mxu0 %v2289_v56  ;;  %v2303_v41 = vunpack.c.l.s8.bf16 %v2087_v29  ;;  %v2311_v48 = vunpack.c.h.s8.bf16 %v2087_v29  ;;  %v2095_v57 = vld [vmem:[#allocation6 + $0x308] sm:$0xff]  ;;  %v9832_v29 = vld [vmem:[#allocation23_spill] sm:$0xff] }
 0x323   :  { %v1895_v24 = vadd.f32 %v8556_v2, %v1689_v51  ;;  %v1693_v42 = vadd.f32 %v8381_v39, %v1306_v31  ;;  %2466 = vmatprep.mubr.bf16.mxu1 %v8602_v13  ;;  %2692 = vmatprep.mubr.bf16.mxu0 %v8602_v13  ;;  %v2312_v47 = vunpack.c.h.s8.bf16 %v2088_v8  ;;  %v2319_v20 = vunpack.c.l.s8.bf16 %v2095_v57  ;;  %v2094_v51 = vld [vmem:[#allocation6 + $0x300] sm:$0xff] }
 0x324   :  { %v1898_v44 = vadd.f32 %v8552_v53, %v1691_v6  ;;  %2467 = vmatmul.mubr.bf16.gmra.mrb[56].mxu1 %v8599_v34  ;;  %2693 = vmatmul.mubr.bf16.gmra.mrb[120].mxu0 %v8599_v34  ;;  %v1958_v63 = vmax.f32 %v1894_v28, 0.0  ;;  %v2321_v12 = vunpack.c.l.s8.bf16 %v2097_v7  ;;  %v2327_v15 = vunpack.c.h.s8.bf16 %v2095_v57 }
 0x325   :  { %v1899_v36 = vadd.f32 %v8556_v2, %v1693_v42  ;;  %2536 = vmatpush1.bf16.msra.mxu1 %v2286_v23  ;;  %2762 = vmatpush1.bf16.msra.mxu0 %v2288_v27  ;;  %v1959_v32 = vmax.f32 %v1895_v24, 0.0  ;;  %v2096_v23 = vld [vmem:[#allocation6 + $0x310] sm:$0xff] }
 0x326   :  { %v1962_v39 = vmax.f32 %v1898_v44, 0.0  ;;  %2537 = vmatprep.subr.bf16.mxu1 %v2295_v30  ;;  %2763 = vmatprep.subr.bf16.mxu0 %v2297_v18  ;;  %v9831_v30 = vld [vmem:[#allocation22_spill] sm:$0xff] }
 0x327   :  { %v1963_v22 = vmax.f32 %v1899_v36, 0.0  ;;  %v1310_v50 = vpop.f32.mrb[64].mxu0  ;;  %v2318_v36 = vunpack.c.l.s8.bf16 %v2094_v51 }
 0x328   :  { %v8615_v9 = vpack.c.bf16 %v1962_v39, %v1958_v63  ;;  %v1697_v5 = vadd.f32 %v8388_v0, %v1310_v50  ;;  %v1312_v25 = vpop.f32.mrb[65].mxu0  ;;  %v9833_v63 = vld [vmem:[#allocation24_spill] sm:$0xff]  ;;  %v2103_v50 = vld [vmem:[#allocation6 + $0x348] sm:$0xff] }
 0x329   :  { %v8618_v37 = vpack.c.bf16 %v1963_v22, %v1959_v32  ;;  %v1699_v55 = vadd.f32 %v9828_v21, %v1312_v25  ;;  %v1314_v43 = vpop.f32.mrb[66].mxu0  ;;  %2538 = vmatpush1.bf16.msra.mxu1 %v2294_v11  ;;  %2764 = vmatpush1.bf16.msra.mxu0 %v2296_v62  ;;  %v2320_v11 = vunpack.c.l.s8.bf16 %v2096_v23  ;;  %v9834_v32 = vld [vmem:[#allocation25_spill] sm:$0xff] }
 0x32a   :  { %v1902_v52 = vadd.f32 %v8552_v53, %v1697_v5  ;;  %v1701_v1 = vadd.f32 %v9829_v40, %v1314_v43  ;;  %v1316_v59 = vpop.f32.mrb[67].mxu0  ;;  %2539 = vmatprep.subr.bf16.mxu1 %v2303_v41  ;;  %2765 = vmatprep.subr.bf16.mxu0 %v2305_v49  ;;  %v2329_v49 = vunpack.c.h.s8.bf16 %v2097_v7  ;;  %v2105_v5 = vld [vmem:[#allocation6 + $0x358] sm:$0xff]  ;;  %v2328_v43 = vunpack.c.h.s8.bf16 %v2096_v23  ;;  %v2102_v40 = vld [vmem:[#allocation6 + $0x340] sm:$0xff] }
 0x32b   :  { %v1903_v0 = vadd.f32 %v8556_v2, %v1699_v55  ;;  %v1703_v3 = vadd.f32 %v9830_v4, %v1316_v59  ;;  %2476 = vmatprep.mubr.bf16.mxu1 %v8618_v37  ;;  %2702 = vmatprep.mubr.bf16.mxu0 %v8618_v37  ;;  %v2326_v55 = vunpack.c.h.s8.bf16 %v2094_v51  ;;  %v2104_v59 = vld [vmem:[#allocation6 + $0x350] sm:$0xff]  ;;  %v9837_v51 = vld [vmem:[#allocation28_spill] sm:$0xff] }
 0x32c   :  { %v1906_v56 = vadd.f32 %v8552_v53, %v1701_v1  ;;  %2477 = vmatmul.mubr.bf16.gmra.mrb[60].mxu1 %v8615_v9  ;;  %2703 = vmatmul.mubr.bf16.gmra.mrb[124].mxu0 %v8615_v9  ;;  %v1966_v19 = vmax.f32 %v1902_v52, 0.0  ;;  %v2335_v52 = vunpack.c.l.s8.bf16 %v2103_v50  ;;  %v2337_v1 = vunpack.c.l.s8.bf16 %v2105_v5 }
 0x32d   :  { %v1907_v10 = vadd.f32 %v8556_v2, %v1703_v3  ;;  %2540 = vmatpush1.bf16.msra.mxu1 %v2302_v46  ;;  %2766 = vmatpush1.bf16.msra.mxu0 %v2304_v17  ;;  %v1967_v27 = vmax.f32 %v1903_v0, 0.0  ;;  %v9835_v3 = vld [vmem:[#allocation26_spill] sm:$0xff] }
 0x32e   :  { %v1970_v14 = vmax.f32 %v1906_v56, 0.0  ;;  %2541 = vmatprep.subr.bf16.mxu1 %v2311_v48  ;;  %2767 = vmatprep.subr.bf16.mxu0 %v2313_v35 }
 0x32f   :  { %v1971_v28 = vmax.f32 %v1907_v10, 0.0  ;;  %v1320_v6 = vpop.f32.mrb[68].mxu0  ;;  %v9836_v10 = vld [vmem:[#allocation27_spill] sm:$0xff] }
 0x330   :  { %v8631_v31 = vpack.c.bf16 %v1970_v14, %v1966_v19  ;;  %v1707_v18 = vadd.f32 %v9831_v30, %v1320_v6  ;;  %v1322_v24 = vpop.f32.mrb[69].mxu0  ;;  %v2334_v19 = vunpack.c.l.s8.bf16 %v2102_v40  ;;  %v2336_v14 = vunpack.c.l.s8.bf16 %v2104_v59  ;;  %v9838_v30 = vld [vmem:[#allocation29_spill] sm:$0xff] }
 0x331   :  { %v8634_v42 = vpack.c.bf16 %v1971_v28, %v1967_v27  ;;  %v1709_v61 = vadd.f32 %v9832_v29, %v1322_v24  ;;  %v1324_v44 = vpop.f32.mrb[70].mxu0  ;;  %2542 = vmatpush1.bf16.msra.mxu1 %v2310_v54  ;;  %2768 = vmatpush1.bf16.msra.mxu0 %v2312_v47  ;;  %v2343_v27 = vunpack.c.h.s8.bf16 %v2103_v50  ;;  %v2345_v28 = vunpack.c.h.s8.bf16 %v2105_v5  ;;  %v2111_v24 = vld [vmem:[#allocation6 + $0x388] sm:$0xff]  ;;  %v2113_v29 = vld [vmem:[#allocation6 + $0x398] sm:$0xff]  ;;  %v9839_v5 = vld [vmem:[#allocation30_spill] sm:$0xff] }
 0x332   :  { %v1910_v62 = vadd.f32 %v8552_v53, %v1707_v18  ;;  %v1711_v39 = vadd.f32 %v9833_v63, %v1324_v44  ;;  %v1326_v41 = vpop.f32.mrb[71].mxu0  ;;  %2543 = vmatprep.subr.bf16.mxu1 %v2319_v20  ;;  %2769 = vmatprep.subr.bf16.mxu0 %v2321_v12 }
 0x333   :  { %v1911_v8 = vadd.f32 %v8556_v2, %v1709_v61  ;;  %v1713_v22 = vadd.f32 %v9834_v32, %v1326_v41  ;;  %2486 = vmatprep.mubr.bf16.mxu1 %v8634_v42  ;;  %2712 = vmatprep.mubr.bf16.mxu0 %v8634_v42  ;;  %v2110_v41 = vld [vmem:[#allocation6 + $0x380] sm:$0xff] }
 0x334   :  { %v1914_v25 = vadd.f32 %v8552_v53, %v1711_v39  ;;  %2487 = vmatmul.mubr.bf16.gmra.mrb[64].mxu1 %v8631_v31  ;;  %2713 = vmatmul.mubr.bf16.gmra.mrb[128].mxu0 %v8631_v31  ;;  %v1974_v46 = vmax.f32 %v1910_v62, 0.0  ;;  %v2351_v39 = vunpack.c.l.s8.bf16 %v2111_v24 }
 0x335   :  { %v1915_v21 = vadd.f32 %v8556_v2, %v1713_v22  ;;  %2544 = vmatpush1.bf16.msra.mxu1 %v2318_v36  ;;  %2770 = vmatpush1.bf16.msra.mxu0 %v2320_v11  ;;  %v1975_v48 = vmax.f32 %v1911_v8, 0.0  ;;  %v2342_v36 = vunpack.c.h.s8.bf16 %v2102_v40  ;;  %v2344_v11 = vunpack.c.h.s8.bf16 %v2104_v59  ;;  %v9841_v59 = vld [vmem:[#allocation32_spill] sm:$0xff] }
 0x336   :  { %v1978_v17 = vmax.f32 %v1914_v25, 0.0  ;;  %2545 = vmatprep.subr.bf16.mxu1 %v2327_v15  ;;  %2771 = vmatprep.subr.bf16.mxu0 %v2329_v49  ;;  %v2353_v15 = vunpack.c.l.s8.bf16 %v2113_v29  ;;  %v2112_v49 = vld [vmem:[#allocation6 + $0x390] sm:$0xff] }
 0x337   :  { %v1979_v35 = vmax.f32 %v1915_v21, 0.0  ;;  %v1330_v0 = vpop.f32.mrb[72].mxu0  ;;  %v2352_v40 = vunpack.c.l.s8.bf16 %v2112_v49 }
 0x338   :  { %v8647_v4 = vpack.c.bf16 %v1978_v17, %v1974_v46  ;;  %v1717_v57 = vadd.f32 %v9835_v3, %v1330_v0  ;;  %v1332_v7 = vpop.f32.mrb[73].mxu0  ;;  %v2359_v0 = vunpack.c.h.s8.bf16 %v2111_v24  ;;  %v2361_v3 = vunpack.c.h.s8.bf16 %v2113_v29 }
 0x339   :  { %v8650_v56 = vpack.c.bf16 %v1979_v35, %v1975_v48  ;;  %v1719_v54 = vadd.f32 %v9836_v10, %v1332_v7  ;;  %v1334_v47 = vpop.f32.mrb[74].mxu0  ;;  %2546 = vmatpush1.bf16.msra.mxu1 %v2326_v55  ;;  %2772 = vmatpush1.bf16.msra.mxu0 %v2328_v43  ;;  %v9840_v43 = vld [vmem:[#allocation31_spill] sm:$0xff]  ;;  %v9842_v7 = vld [vmem:[#allocation33_spill] sm:$0xff] }
 0x33a   :  { %v1918_v20 = vadd.f32 %v8552_v53, %v1717_v57  ;;  %v1721_v12 = vadd.f32 %v9837_v51, %v1334_v47  ;;  %v1336_v23 = vpop.f32.mrb[75].mxu0  ;;  %2547 = vmatprep.subr.bf16.mxu1 %v2335_v52  ;;  %2773 = vmatprep.subr.bf16.mxu0 %v2337_v1  ;;  %v2350_v52 = vunpack.c.l.s8.bf16 %v2110_v41  ;;  %v2121_v47 = vld [vmem:[#allocation6 + $0x3d8] sm:$0xff]  ;;  %v2360_v51 = vunpack.c.h.s8.bf16 %v2112_v49  ;;  %v9843_v49 = vld [vmem:[#allocation16_spill] sm:$0xff] }
 0x33b   :  { %v1919_v6 = vadd.f32 %v8556_v2, %v1719_v54  ;;  %v1723_v18 = vadd.f32 %v9838_v30, %v1336_v23  ;;  %2496 = vmatprep.mubr.bf16.mxu1 %v8650_v56  ;;  %2722 = vmatprep.mubr.bf16.mxu0 %v8650_v56  ;;  %v2119_v54 = vld [vmem:[#allocation6 + $0x3c8] sm:$0xff]  ;;  %v2120_v30 = vld [vmem:[#allocation6 + $0x3d0] sm:$0xff] }
 0x33c   :  { %v1922_v61 = vadd.f32 %v8552_v53, %v1721_v12  ;;  %2497 = vmatmul.mubr.bf16.gmra.mrb[68].mxu1 %v8647_v4  ;;  %2723 = vmatmul.mubr.bf16.gmra.mrb[132].mxu0 %v8647_v4  ;;  %v1982_v62 = vmax.f32 %v1918_v20, 0.0  ;;  %v2358_v20 = vunpack.c.h.s8.bf16 %v2110_v41 }
 0x33d   :  { %v1923_v44 = vadd.f32 %v8556_v2, %v1723_v18  ;;  %2548 = vmatpush1.bf16.msra.mxu1 %v2334_v19  ;;  %2774 = vmatpush1.bf16.msra.mxu0 %v2336_v14  ;;  %v1983_v8 = vmax.f32 %v1919_v6, 0.0  ;;  %v2369_v6 = vunpack.c.l.s8.bf16 %v2121_v47 }
 0x33e   :  { %v1986_v63 = vmax.f32 %v1922_v61, 0.0  ;;  %2549 = vmatprep.subr.bf16.mxu1 %v2343_v27  ;;  %2775 = vmatprep.subr.bf16.mxu0 %v2345_v28  ;;  %v2367_v27 = vunpack.c.l.s8.bf16 %v2119_v54  ;;  %v2118_v28 = vld [vmem:[#allocation6 + $0x3c0] sm:$0xff]  ;;  %v2368_v61 = vunpack.c.l.s8.bf16 %v2120_v30 }
 0x33f   :  { %v1987_v32 = vmax.f32 %v1923_v44, 0.0  ;;  %v1340_v22 = vpop.f32.mrb[76].mxu0  ;;  %v2375_v44 = vunpack.c.h.s8.bf16 %v2119_v54 }
 0x340   :  { %v8663_v50 = vpack.c.bf16 %v1986_v63, %v1982_v62  ;;  %v1727_v25 = vadd.f32 %v9839_v5, %v1340_v22  ;;  %v1342_v21 = vpop.f32.mrb[77].mxu0  ;;  %v2005_v62 = vld [vmem:[#allocation6 + $0x38] sm:$0xff]  ;;  %v2374_v63 = vunpack.c.h.s8.bf16 %v2118_v28 }
 0x341   :  { %v8666_v55 = vpack.c.bf16 %v1987_v32, %v1983_v8  ;;  %v1729_v46 = vadd.f32 %v9840_v43, %v1342_v21  ;;  %v1344_v17 = vpop.f32.mrb[78].mxu0  ;;  %2550 = vmatpush1.bf16.msra.mxu1 %v2342_v36  ;;  %2776 = vmatpush1.bf16.msra.mxu0 %v2344_v11  ;;  %v2377_v36 = vunpack.c.h.s8.bf16 %v2121_v47  ;;  %v2003_v11 = vld [vmem:[#allocation6 + $0x28] sm:$0xff]  ;;  %v8688_v8 = vsub.s32 2, %v9843_v49 }
 0x342   :  { %v1926_v1 = vadd.f32 %v8552_v53, %v1727_v25  ;;  %v1731_v48 = vadd.f32 %v9841_v59, %v1344_v17  ;;  %v1346_v35 = vpop.f32.mrb[79].mxu0  ;;  %2551 = vmatprep.subr.bf16.mxu1 %v2351_v39  ;;  %2777 = vmatprep.subr.bf16.mxu0 %v2353_v15  ;;  %v2376_v39 = vunpack.c.h.s8.bf16 %v2120_v30  ;;  %v2131_v41 = vunpack.c.l.s8.bf16 %v2003_v11 }
 0x343   :  { %v1927_v57 = vadd.f32 %v8556_v2, %v1729_v46  ;;  %v1733_v10 = vadd.f32 %v9842_v7, %v1346_v35  ;;  %2506 = vmatprep.mubr.bf16.mxu1 %v8666_v55  ;;  %2732 = vmatprep.mubr.bf16.mxu0 %v8666_v55  ;;  %v2133_v15 = vunpack.c.l.s8.bf16 %v2005_v62  ;;  %9844 = vst [vmem:[#allocation19_spill] sm:$0xff] %v8688_v8  ;;  %v8691_v32 = vsub.s32 3, %v9843_v49  ;;  %v2002_v35 = vld [vmem:[#allocation6 + $0x20] sm:$0xff] }
 0x344   :  { %v1930_v19 = vadd.f32 %v8552_v53, %v1731_v48  ;;  %2507 = vmatmul.mubr.bf16.gmra.mrb[72].mxu1 %v8663_v50  ;;  %2733 = vmatmul.mubr.bf16.gmra.mrb[136].mxu0 %v8663_v50  ;;  %v1990_v12 = vmax.f32 %v1926_v1, 0.0  ;;  %v8695_v22 = vrot.slane %v8548_v33, %v8688_v8  ;;  %v2130_v54 = vunpack.c.l.s8.bf16 %v2002_v35 }
 0x345   :  { %v1931_v14 = vadd.f32 %v8556_v2, %v1733_v10  ;;  %2552 = vmatpush1.bf16.msra.mxu1 %v2350_v52  ;;  %2778 = vmatpush1.bf16.msra.mxu0 %v2352_v40  ;;  %v1991_v18 = vmax.f32 %v1927_v57, 0.0  ;;  %v2366_v2 = vunpack.c.l.s8.bf16 %v2118_v28  ;;  %9845 = vst [vmem:[#allocation20_spill] sm:$0xff] %v8691_v32  ;;  %v8699_v5 = vrot.slane %v8548_v33, %v8691_v32  ;;  %v2013_v28 = vld [vmem:[#allocation6 + $0x78] sm:$0xff] }
 0x346   :  { %v1994_v23 = vmax.f32 %v1930_v19, 0.0  ;;  %2553 = vmatprep.subr.bf16.mxu1 %v2359_v0  ;;  %2779 = vmatprep.subr.bf16.mxu0 %v2361_v3  ;;  %v2004_v0 = vld [vmem:[#allocation6 + $0x30] sm:$0xff] }
 0x347   :  { %v1995_v53 = vmax.f32 %v1931_v14, 0.0  ;;  %v2132_v47 = vunpack.c.l.s8.bf16 %v2004_v0 }
 0x348   :  { %v8679_v24 = vpack.c.bf16 %v1994_v23, %v1990_v12 }
 0x349   :  { %v8681_v29 = vpack.c.bf16 %v1995_v53, %v1991_v18  ;;  %2554 = vmatpush1.bf16.msra.mxu1 %v2358_v20  ;;  %2780 = vmatpush1.bf16.msra.mxu0 %v2360_v51  ;;  %v2139_v20 = vunpack.c.h.s8.bf16 %v2003_v11  ;;  %v2141_v51 = vunpack.c.h.s8.bf16 %v2005_v62  ;;  %v2138_v53 = vunpack.c.h.s8.bf16 %v2002_v35  ;;  %v2010_v11 = vld [vmem:[#allocation6 + $0x60] sm:$0xff]  ;;  %v2019_v35 = vld [vmem:[#allocation6 + $0xa8] sm:$0xff] }
 0x34a   :  { %2555 = vmatprep.subr.bf16.mxu1 %v2367_v27  ;;  %2781 = vmatprep.subr.bf16.mxu0 %v2369_v6  ;;  %v2011_v27 = vld [vmem:[#allocation6 + $0x68] sm:$0xff]  ;;  %v2149_v62 = vunpack.c.l.s8.bf16 %v2013_v28 }
 0x34b   :  { %2516 = vmatprep.mubr.bf16.mxu1 %v8681_v29  ;;  %2742 = vmatprep.mubr.bf16.mxu0 %v8681_v29 }
 0x34c   :  { %2517 = vmatmul.mubr.bf16.gmra.mrb[76].mxu1 %v8679_v24  ;;  %2743 = vmatmul.mubr.bf16.gmra.mrb[140].mxu0 %v8679_v24 }
 0x34d   :  { %2556 = vmatpush1.bf16.msra.mxu1 %v2366_v2  ;;  %2782 = vmatpush1.bf16.msra.mxu0 %v2368_v61  ;;  %v2140_v2 = vunpack.c.h.s8.bf16 %v2004_v0  ;;  %v2021_v0 = vld [vmem:[#allocation6 + $0xb8] sm:$0xff] }
 0x34e   :  { %2557 = vmatprep.subr.bf16.mxu1 %v2375_v44  ;;  %2783 = vmatprep.subr.bf16.mxu0 %v2377_v36  ;;  %v2147_v36 = vunpack.c.l.s8.bf16 %v2011_v27 }
 0x351   :  { %2558 = vmatpush1.bf16.msra.mxu1 %v2374_v63  ;;  %2784 = vmatpush1.bf16.msra.mxu0 %v2376_v39  ;;  %v2012_v63 = vld [vmem:[#allocation6 + $0x70] sm:$0xff] }
 0x352   :  { %2866 = vmatprep.subr.bf16.mxu1 %v2131_v41  ;;  %3092 = vmatprep.subr.bf16.mxu0 %v2133_v15 }
 0x387   :  { %v1769_v25 = vpop.f32.mrb[80].mxu0 }
 0x388   :  { %v1872_v21 = vadd.f32 %v8695_v22, %v1769_v25  ;;  %v1771_v43 = vpop.f32.mrb[81].mxu0 }
 0x389   :  { %v1873_v46 = vadd.f32 %v8699_v5, %v1771_v43  ;;  %v1773_v17 = vpop.f32.mrb[82].mxu0  ;;  %v2146_v43 = vunpack.c.l.s8.bf16 %v2010_v11 }
 0x38a   :  { %v1876_v52 = vadd.f32 %v8695_v22, %v1773_v17  ;;  %v1775_v40 = vpop.f32.mrb[83].mxu0  ;;  %v1936_v59 = vmax.f32 %v1872_v21, 0.0 }
 0x38b   :  { %v1877_v1 = vadd.f32 %v8699_v5, %v1775_v40  ;;  %v1937_v3 = vmax.f32 %v1873_v46, 0.0  ;;  %v2148_v46 = vunpack.c.l.s8.bf16 %v2012_v63  ;;  %v2155_v40 = vunpack.c.h.s8.bf16 %v2011_v27 }
 0x38c   :  { %v1940_v48 = vmax.f32 %v1876_v52, 0.0 }
 0x38d   :  { %v1941_v57 = vmax.f32 %v1877_v1, 0.0  ;;  %v2157_v1 = vunpack.c.h.s8.bf16 %v2013_v28 }
 0x38e   :  { %v8705_v33 = vpack.c.bf16 %v1940_v48, %v1936_v59 }
 0x38f   :  { %v8707_v7 = vpack.c.bf16 %v1941_v57, %v1937_v3  ;;  %v1779_v10 = vpop.f32.mrb[84].mxu0 }
 0x390   :  { %v1880_v19 = vadd.f32 %v8695_v22, %v1779_v10  ;;  %v1781_v14 = vpop.f32.mrb[85].mxu0 }
 0x391   :  { %v1881_v12 = vadd.f32 %v8699_v5, %v1781_v14  ;;  %v1783_v23 = vpop.f32.mrb[86].mxu0  ;;  %2559 = vmatprep.mubr.bf16.mxu1 %v8707_v7  ;;  %2785 = vmatprep.mubr.bf16.mxu0 %v8707_v7 }
 0x392   :  { %v1884_v6 = vadd.f32 %v8695_v22, %v1783_v23  ;;  %v1785_v30 = vpop.f32.mrb[87].mxu0  ;;  %2560 = vmatmul.mubr.bf16.vlgmr.msra.gmra.mrb[48].mxu1 %v8705_v33  ;;  %2786 = vmatmul.mubr.bf16.vlgmr.msra.gmra.mrb[112].mxu0 %v8705_v33  ;;  %v1944_v61 = vmax.f32 %v1880_v19, 0.0  ;;  %v2020_v23 = vld [vmem:[#allocation6 + $0xb0] sm:$0xff] }
 0x393   :  { %v1885_v18 = vadd.f32 %v8699_v5, %v1785_v30  ;;  %2867 = vmatpush1.bf16.msra.mxu1 %v2130_v54  ;;  %3093 = vmatpush1.bf16.msra.mxu0 %v2132_v47  ;;  %v1945_v39 = vmax.f32 %v1881_v12, 0.0  ;;  %v2154_v54 = vunpack.c.h.s8.bf16 %v2010_v11  ;;  %v2156_v47 = vunpack.c.h.s8.bf16 %v2012_v63 }
 0x394   :  { %v1948_v44 = vmax.f32 %v1884_v6, 0.0  ;;  %2868 = vmatprep.subr.bf16.mxu1 %v2139_v20  ;;  %3094 = vmatprep.subr.bf16.mxu0 %v2141_v51  ;;  %v2163_v20 = vunpack.c.l.s8.bf16 %v2019_v35  ;;  %v2018_v51 = vld [vmem:[#allocation6 + $0xa0] sm:$0xff]  ;;  %v2165_v12 = vunpack.c.l.s8.bf16 %v2021_v0  ;;  %v2173_v11 = vunpack.c.h.s8.bf16 %v2021_v0  ;;  %v2028_v0 = vld [vmem:[#allocation6 + $0xf0] sm:$0xff] }
 0x395   :  { %v1949_v41 = vmax.f32 %v1885_v18, 0.0 }
 0x396   :  { %v8717_v15 = vpack.c.bf16 %v1948_v44, %v1944_v61 }
 0x397   :  { %v8719_v25 = vpack.c.bf16 %v1949_v41, %v1945_v39  ;;  %2869 = vmatpush1.bf16.msra.mxu1 %v2138_v53  ;;  %v1789_v21 = vpop.f32.mrb[88].mxu0  ;;  %3095 = vmatpush1.bf16.msra.mxu0 %v2140_v2  ;;  %v2162_v53 = vunpack.c.l.s8.bf16 %v2018_v51  ;;  %v2164_v2 = vunpack.c.l.s8.bf16 %v2020_v23  ;;  %v2027_v39 = vld [vmem:[#allocation6 + $0xe8] sm:$0xff]  ;;  %v2029_v41 = vld [vmem:[#allocation6 + $0xf8] sm:$0xff] }
 0x398   :  { %v1888_v17 = vadd.f32 %v8695_v22, %v1789_v21  ;;  %v1791_v52 = vpop.f32.mrb[89].mxu0  ;;  %2870 = vmatprep.subr.bf16.mxu1 %v2147_v36  ;;  %3096 = vmatprep.subr.bf16.mxu0 %v2149_v62  ;;  %v2171_v36 = vunpack.c.h.s8.bf16 %v2019_v35  ;;  %v2181_v35 = vunpack.c.l.s8.bf16 %v2029_v41 }
 0x399   :  { %v1889_v59 = vadd.f32 %v8699_v5, %v1791_v52  ;;  %v1793_v48 = vpop.f32.mrb[90].mxu0  ;;  %2569 = vmatprep.mubr.bf16.mxu1 %v8719_v25  ;;  %2795 = vmatprep.mubr.bf16.mxu0 %v8719_v25  ;;  %v2172_v52 = vunpack.c.h.s8.bf16 %v2020_v23  ;;  %v2189_v23 = vunpack.c.h.s8.bf16 %v2029_v41  ;;  %v2034_v41 = vld [vmem:[#allocation6 + $0x120] sm:$0xff] }
 0x39a   :  { %v1892_v3 = vadd.f32 %v8695_v22, %v1793_v48  ;;  %v1795_v57 = vpop.f32.mrb[91].mxu0  ;;  %2570 = vmatmul.mubr.bf16.gmra.mrb[52].mxu1 %v8717_v15  ;;  %2796 = vmatmul.mubr.bf16.gmra.mrb[116].mxu0 %v8717_v15  ;;  %v1952_v19 = vmax.f32 %v1888_v17, 0.0  ;;  %v2170_v17 = vunpack.c.h.s8.bf16 %v2018_v51  ;;  %v2026_v48 = vld [vmem:[#allocation6 + $0xe0] sm:$0xff] }
 0x39b   :  { %v1893_v10 = vadd.f32 %v8699_v5, %v1795_v57  ;;  %2871 = vmatpush1.bf16.msra.mxu1 %v2146_v43  ;;  %3097 = vmatpush1.bf16.msra.mxu0 %v2148_v46  ;;  %v1953_v27 = vmax.f32 %v1889_v59, 0.0  ;;  %v2179_v59 = vunpack.c.l.s8.bf16 %v2027_v39 }
 0x39c   :  { %v1956_v14 = vmax.f32 %v1892_v3, 0.0  ;;  %2872 = vmatprep.subr.bf16.mxu1 %v2155_v40  ;;  %3098 = vmatprep.subr.bf16.mxu0 %v2157_v1 }
 0x39d   :  { %v1957_v28 = vmax.f32 %v1893_v10, 0.0 }
 0x39e   :  { %v8729_v6 = vpack.c.bf16 %v1956_v14, %v1952_v19  ;;  %v2178_v19 = vunpack.c.l.s8.bf16 %v2026_v48  ;;  %v2180_v14 = vunpack.c.l.s8.bf16 %v2028_v0 }
 0x39f   :  { %v8731_v30 = vpack.c.bf16 %v1957_v28, %v1953_v27  ;;  %2873 = vmatpush1.bf16.msra.mxu1 %v2154_v54  ;;  %v1799_v18 = vpop.f32.mrb[92].mxu0  ;;  %3099 = vmatpush1.bf16.msra.mxu0 %v2156_v47 }
 0x3a0   :  { %v1896_v61 = vadd.f32 %v8695_v22, %v1799_v18  ;;  %v1801_v44 = vpop.f32.mrb[93].mxu0  ;;  %2874 = vmatprep.subr.bf16.mxu1 %v2163_v20  ;;  %3100 = vmatprep.subr.bf16.mxu0 %v2165_v12  ;;  %v2187_v12 = vunpack.c.h.s8.bf16 %v2027_v39  ;;  %v2035_v18 = vld [vmem:[#allocation6 + $0x128] sm:$0xff] }
 0x3a1   :  { %v1897_v62 = vadd.f32 %v8699_v5, %v1801_v44  ;;  %v1803_v63 = vpop.f32.mrb[94].mxu0  ;;  %2579 = vmatprep.mubr.bf16.mxu1 %v8731_v30  ;;  %2805 = vmatprep.mubr.bf16.mxu0 %v8731_v30  ;;  %v2195_v39 = vunpack.c.l.s8.bf16 %v2035_v18 }
 0x3a2   :  { %v1900_v21 = vadd.f32 %v8695_v22, %v1803_v63  ;;  %v1805_v43 = vpop.f32.mrb[95].mxu0  ;;  %2580 = vmatmul.mubr.bf16.gmra.mrb[56].mxu1 %v8729_v6  ;;  %2806 = vmatmul.mubr.bf16.gmra.mrb[120].mxu0 %v8729_v6  ;;  %v1960_v40 = vmax.f32 %v1896_v61, 0.0 }
 0x3a3   :  { %v1901_v46 = vadd.f32 %v8699_v5, %v1805_v43  ;;  %2875 = vmatpush1.bf16.msra.mxu1 %v2162_v53  ;;  %3101 = vmatpush1.bf16.msra.mxu0 %v2164_v2  ;;  %v1961_v3 = vmax.f32 %v1897_v62, 0.0  ;;  %v2037_v53 = vld [vmem:[#allocation6 + $0x138] sm:$0xff]  ;;  %v2036_v43 = vld [vmem:[#allocation6 + $0x130] sm:$0xff] }
 0x3a4   :  { %v1964_v1 = vmax.f32 %v1900_v21, 0.0  ;;  %2876 = vmatprep.subr.bf16.mxu1 %v2171_v36  ;;  %3102 = vmatprep.subr.bf16.mxu0 %v2173_v11  ;;  %v2186_v36 = vunpack.c.h.s8.bf16 %v2026_v48  ;;  %v2188_v11 = vunpack.c.h.s8.bf16 %v2028_v0  ;;  %v2197_v21 = vunpack.c.l.s8.bf16 %v2037_v53 }
 0x3a5   :  { %v1965_v57 = vmax.f32 %v1901_v46, 0.0  ;;  %v2196_v48 = vunpack.c.l.s8.bf16 %v2036_v43 }
 0x3a6   :  { %v8741_v10 = vpack.c.bf16 %v1964_v1, %v1960_v40 }
 0x3a7   :  { %v8743_v54 = vpack.c.bf16 %v1965_v57, %v1961_v3  ;;  %2877 = vmatpush1.bf16.msra.mxu1 %v2170_v17  ;;  %v1809_v47 = vpop.f32.mrb[96].mxu0  ;;  %3103 = vmatpush1.bf16.msra.mxu0 %v2172_v52  ;;  %v2203_v3 = vunpack.c.h.s8.bf16 %v2035_v18  ;;  %v2205_v57 = vunpack.c.h.s8.bf16 %v2037_v53 }
 0x3a8   :  { %v1904_v20 = vadd.f32 %v8695_v22, %v1809_v47  ;;  %v1811_v51 = vpop.f32.mrb[97].mxu0  ;;  %2878 = vmatprep.subr.bf16.mxu1 %v2179_v59  ;;  %3104 = vmatprep.subr.bf16.mxu0 %v2181_v35  ;;  %v2194_v59 = vunpack.c.l.s8.bf16 %v2034_v41 }
 0x3a9   :  { %v1905_v27 = vadd.f32 %v8699_v5, %v1811_v51  ;;  %v1813_v28 = vpop.f32.mrb[98].mxu0  ;;  %2589 = vmatprep.mubr.bf16.mxu1 %v8743_v54  ;;  %2815 = vmatprep.mubr.bf16.mxu0 %v8743_v54 }
 0x3aa   :  { %v1908_v2 = vadd.f32 %v8695_v22, %v1813_v28  ;;  %v1815_v61 = vpop.f32.mrb[99].mxu0  ;;  %2590 = vmatmul.mubr.bf16.gmra.mrb[60].mxu1 %v8741_v10  ;;  %2816 = vmatmul.mubr.bf16.gmra.mrb[124].mxu0 %v8741_v10  ;;  %v1968_v62 = vmax.f32 %v1904_v20, 0.0  ;;  %v2045_v20 = vld [vmem:[#allocation6 + $0x178] sm:$0xff]  ;;  %v2204_v28 = vunpack.c.h.s8.bf16 %v2036_v43 }
 0x3ab   :  { %v1909_v44 = vadd.f32 %v8699_v5, %v1815_v61  ;;  %2879 = vmatpush1.bf16.msra.mxu1 %v2178_v19  ;;  %3105 = vmatpush1.bf16.msra.mxu0 %v2180_v14  ;;  %v1969_v46 = vmax.f32 %v1905_v27, 0.0  ;;  %v2043_v14 = vld [vmem:[#allocation6 + $0x168] sm:$0xff]  ;;  %v2202_v27 = vunpack.c.h.s8.bf16 %v2034_v41  ;;  %v2042_v61 = vld [vmem:[#allocation6 + $0x160] sm:$0xff] }
 0x3ac   :  { %v1972_v63 = vmax.f32 %v1908_v2, 0.0  ;;  %2880 = vmatprep.subr.bf16.mxu1 %v2187_v12  ;;  %3106 = vmatprep.subr.bf16.mxu0 %v2189_v23  ;;  %v2211_v2 = vunpack.c.l.s8.bf16 %v2043_v14 }
 0x3ad   :  { %v1973_v17 = vmax.f32 %v1909_v44, 0.0  ;;  %v2213_v44 = vunpack.c.l.s8.bf16 %v2045_v20 }
 0x3ae   :  { %v8753_v52 = vpack.c.bf16 %v1972_v63, %v1968_v62 }
 0x3af   :  { %v8755_v40 = vpack.c.bf16 %v1973_v17, %v1969_v46  ;;  %2881 = vmatpush1.bf16.msra.mxu1 %v2186_v36  ;;  %v1819_v1 = vpop.f32.mrb[100].mxu0  ;;  %3107 = vmatpush1.bf16.msra.mxu0 %v2188_v11  ;;  %v2044_v36 = vld [vmem:[#allocation6 + $0x170] sm:$0xff]  ;;  %v2210_v46 = vunpack.c.l.s8.bf16 %v2042_v61 }
 0x3b0   :  { %v1912_v35 = vadd.f32 %v8695_v22, %v1819_v1  ;;  %v1821_v0 = vpop.f32.mrb[101].mxu0  ;;  %2882 = vmatprep.subr.bf16.mxu1 %v2195_v39  ;;  %3108 = vmatprep.subr.bf16.mxu0 %v2197_v21  ;;  %v2212_v41 = vunpack.c.l.s8.bf16 %v2044_v36  ;;  %v2219_v1 = vunpack.c.h.s8.bf16 %v2043_v14  ;;  %v2218_v14 = vunpack.c.h.s8.bf16 %v2042_v61 }
 0x3b1   :  { %v1913_v47 = vadd.f32 %v8699_v5, %v1821_v0  ;;  %v1823_v19 = vpop.f32.mrb[102].mxu0  ;;  %2599 = vmatprep.mubr.bf16.mxu1 %v8755_v40  ;;  %2825 = vmatprep.mubr.bf16.mxu0 %v8755_v40  ;;  %v2051_v0 = vld [vmem:[#allocation6 + $0x1a8] sm:$0xff] }
 0x3b2   :  { %v1916_v51 = vadd.f32 %v8695_v22, %v1823_v19  ;;  %v1825_v12 = vpop.f32.mrb[103].mxu0  ;;  %2600 = vmatmul.mubr.bf16.gmra.mrb[64].mxu1 %v8753_v52  ;;  %2826 = vmatmul.mubr.bf16.gmra.mrb[128].mxu0 %v8753_v52  ;;  %v1976_v18 = vmax.f32 %v1912_v35, 0.0 }
 0x3b3   :  { %v1917_v23 = vadd.f32 %v8699_v5, %v1825_v12  ;;  %2883 = vmatpush1.bf16.msra.mxu1 %v2194_v59  ;;  %3109 = vmatpush1.bf16.msra.mxu0 %v2196_v48  ;;  %v1977_v11 = vmax.f32 %v1913_v47, 0.0  ;;  %v2221_v59 = vunpack.c.h.s8.bf16 %v2045_v20  ;;  %v2220_v20 = vunpack.c.h.s8.bf16 %v2044_v36 }
 0x3b4   :  { %v1980_v53 = vmax.f32 %v1916_v51, 0.0  ;;  %2884 = vmatprep.subr.bf16.mxu1 %v2203_v3  ;;  %3110 = vmatprep.subr.bf16.mxu0 %v2205_v57  ;;  %v2053_v3 = vld [vmem:[#allocation6 + $0x1b8] sm:$0xff] }
 0x3b5   :  { %v1981_v62 = vmax.f32 %v1917_v23, 0.0  ;;  %v2227_v23 = vunpack.c.l.s8.bf16 %v2051_v0 }
 0x3b6   :  { %v8765_v63 = vpack.c.bf16 %v1980_v53, %v1976_v18  ;;  %v2052_v18 = vld [vmem:[#allocation6 + $0x1b0] sm:$0xff] }
 0x3b7   :  { %v8767_v39 = vpack.c.bf16 %v1981_v62, %v1977_v11  ;;  %2885 = vmatpush1.bf16.msra.mxu1 %v2202_v27  ;;  %v1829_v21 = vpop.f32.mrb[104].mxu0  ;;  %3111 = vmatpush1.bf16.msra.mxu0 %v2204_v28  ;;  %v2050_v27 = vld [vmem:[#allocation6 + $0x1a0] sm:$0xff]  ;;  %v2229_v28 = vunpack.c.l.s8.bf16 %v2053_v3  ;;  %v2228_v61 = vunpack.c.l.s8.bf16 %v2052_v18 }
 0x3b8   :  { %v1920_v43 = vadd.f32 %v8695_v22, %v1829_v21  ;;  %v1831_v17 = vpop.f32.mrb[105].mxu0  ;;  %2886 = vmatprep.subr.bf16.mxu1 %v2211_v2  ;;  %3112 = vmatprep.subr.bf16.mxu0 %v2213_v44  ;;  %v2226_v21 = vunpack.c.l.s8.bf16 %v2050_v27 }
 0x3b9   :  { %v1921_v48 = vadd.f32 %v8699_v5, %v1831_v17  ;;  %v1833_v35 = vpop.f32.mrb[106].mxu0  ;;  %2609 = vmatprep.mubr.bf16.mxu1 %v8767_v39  ;;  %2835 = vmatprep.mubr.bf16.mxu0 %v8767_v39 }
 0x3ba   :  { %v1924_v57 = vadd.f32 %v8695_v22, %v1833_v35  ;;  %v1835_v47 = vpop.f32.mrb[107].mxu0  ;;  %2610 = vmatmul.mubr.bf16.gmra.mrb[68].mxu1 %v8765_v63  ;;  %2836 = vmatmul.mubr.bf16.gmra.mrb[132].mxu0 %v8765_v63  ;;  %v1984_v51 = vmax.f32 %v1920_v43, 0.0  ;;  %v2237_v43 = vunpack.c.h.s8.bf16 %v2053_v3  ;;  %v2236_v3 = vunpack.c.h.s8.bf16 %v2052_v18 }
 0x3bb   :  { %v1925_v19 = vadd.f32 %v8699_v5, %v1835_v47  ;;  %2887 = vmatpush1.bf16.msra.mxu1 %v2210_v46  ;;  %3113 = vmatpush1.bf16.msra.mxu0 %v2212_v41  ;;  %v1985_v53 = vmax.f32 %v1921_v48, 0.0  ;;  %v2235_v41 = vunpack.c.h.s8.bf16 %v2051_v0  ;;  %v2061_v48 = vld [vmem:[#allocation6 + $0x1f8] sm:$0xff]  ;;  %v2234_v0 = vunpack.c.h.s8.bf16 %v2050_v27 }
 0x3bc   :  { %v1988_v12 = vmax.f32 %v1924_v57, 0.0  ;;  %2888 = vmatprep.subr.bf16.mxu1 %v2219_v1  ;;  %3114 = vmatprep.subr.bf16.mxu0 %v2221_v59  ;;  %v2059_v59 = vld [vmem:[#allocation6 + $0x1e8] sm:$0xff] }
 0x3bd   :  { %v1989_v2 = vmax.f32 %v1925_v19, 0.0  ;;  %v2251_v18 = vunpack.c.h.s8.bf16 %v2059_v59 }
 0x3be   :  { %v8777_v44 = vpack.c.bf16 %v1988_v12, %v1984_v51  ;;  %v2058_v51 = vld [vmem:[#allocation6 + $0x1e0] sm:$0xff]  ;;  %v2245_v12 = vunpack.c.l.s8.bf16 %v2061_v48 }
 0x3bf   :  { %v8779_v11 = vpack.c.bf16 %v1989_v2, %v1985_v53  ;;  %2889 = vmatpush1.bf16.msra.mxu1 %v2218_v14  ;;  %v1839_v62 = vpop.f32.mrb[108].mxu0  ;;  %3115 = vmatpush1.bf16.msra.mxu0 %v2220_v20  ;;  %v2243_v20 = vunpack.c.l.s8.bf16 %v2059_v59 }
 0x3c0   :  { %v1928_v36 = vadd.f32 %v8695_v22, %v1839_v62  ;;  %v1841_v46 = vpop.f32.mrb[109].mxu0  ;;  %2890 = vmatprep.subr.bf16.mxu1 %v2227_v23  ;;  %3116 = vmatprep.subr.bf16.mxu0 %v2229_v28  ;;  %v2060_v28 = vld [vmem:[#allocation6 + $0x1f0] sm:$0xff]  ;;  %v2253_v62 = vunpack.c.h.s8.bf16 %v2061_v48 }
 0x3c1   :  { %v1929_v17 = vadd.f32 %v8699_v5, %v1841_v46  ;;  %v1843_v1 = vpop.f32.mrb[110].mxu0  ;;  %2619 = vmatprep.mubr.bf16.mxu1 %v8779_v11  ;;  %2845 = vmatprep.mubr.bf16.mxu0 %v8779_v11  ;;  %v2244_v27 = vunpack.c.l.s8.bf16 %v2060_v28  ;;  %v2252_v46 = vunpack.c.h.s8.bf16 %v2060_v28 }
 0x3c2   :  { %v1932_v35 = vadd.f32 %v8695_v22, %v1843_v1  ;;  %v1845_v57 = vpop.f32.mrb[111].mxu0  ;;  %2620 = vmatmul.mubr.bf16.gmra.mrb[72].mxu1 %v8777_v44  ;;  %2846 = vmatmul.mubr.bf16.gmra.mrb[136].mxu0 %v8777_v44  ;;  %v1992_v19 = vmax.f32 %v1928_v36, 0.0  ;;  %v2250_v36 = vunpack.c.h.s8.bf16 %v2058_v51  ;;  %v2068_v1 = vld [vmem:[#allocation6 + $0x230] sm:$0xff] }
 0x3c3   :  { %v1933_v47 = vadd.f32 %v8699_v5, %v1845_v57  ;;  %2891 = vmatpush1.bf16.msra.mxu1 %v2226_v21  ;;  %3117 = vmatpush1.bf16.msra.mxu0 %v2228_v61  ;;  %v1993_v23 = vmax.f32 %v1929_v17, 0.0  ;;  %v2242_v5 = vunpack.c.l.s8.bf16 %v2058_v51  ;;  %v2067_v21 = vld [vmem:[#allocation6 + $0x228] sm:$0xff]  ;;  %v2069_v61 = vld [vmem:[#allocation6 + $0x238] sm:$0xff]  ;;  %v2260_v48 = vunpack.c.l.s8.bf16 %v2068_v1  ;;  %v2076_v51 = vld [vmem:[#allocation6 + $0x270] sm:$0xff] }
 0x3c4   :  { %v1996_v14 = vmax.f32 %v1932_v35, 0.0  ;;  %2892 = vmatprep.subr.bf16.mxu1 %v2235_v41  ;;  %3118 = vmatprep.subr.bf16.mxu0 %v2237_v43  ;;  %v2259_v41 = vunpack.c.l.s8.bf16 %v2067_v21  ;;  %v2066_v43 = vld [vmem:[#allocation6 + $0x220] sm:$0xff]  ;;  %v2261_v17 = vunpack.c.l.s8.bf16 %v2069_v61  ;;  %v2267_v35 = vunpack.c.h.s8.bf16 %v2067_v21  ;;  %v2075_v57 = vld [vmem:[#allocation6 + $0x268] sm:$0xff] }
 0x3c5   :  { %v1997_v22 = vmax.f32 %v1933_v47, 0.0  ;;  %v2258_v59 = vunpack.c.l.s8.bf16 %v2066_v43  ;;  %v2269_v47 = vunpack.c.h.s8.bf16 %v2069_v61  ;;  %v2084_v61 = vld [vmem:[#allocation6 + $0x2b0] sm:$0xff] }
 0x3c6   :  { %v8789_v53 = vpack.c.bf16 %v1996_v14, %v1992_v19  ;;  %v2074_v19 = vld [vmem:[#allocation6 + $0x260] sm:$0xff]  ;;  %v2268_v14 = vunpack.c.h.s8.bf16 %v2068_v1 }
 0x3c7   :  { %v8791_v2 = vpack.c.bf16 %v1997_v22, %v1993_v23  ;;  %2893 = vmatpush1.bf16.msra.mxu1 %v2234_v0  ;;  %3119 = vmatpush1.bf16.msra.mxu0 %v2236_v3  ;;  %v2077_v0 = vld [vmem:[#allocation6 + $0x278] sm:$0xff]  ;;  %v2275_v3 = vunpack.c.l.s8.bf16 %v2075_v57  ;;  %v2276_v23 = vunpack.c.l.s8.bf16 %v2076_v51  ;;  %v2083_v22 = vld [vmem:[#allocation6 + $0x2a8] sm:$0xff] }
 0x3c8   :  { %2894 = vmatprep.subr.bf16.mxu1 %v2243_v20  ;;  %3120 = vmatprep.subr.bf16.mxu0 %v2245_v12  ;;  %v2277_v20 = vunpack.c.l.s8.bf16 %v2077_v0  ;;  %v2274_v12 = vunpack.c.l.s8.bf16 %v2074_v19  ;;  %v2285_v28 = vunpack.c.h.s8.bf16 %v2077_v0  ;;  %v2099_v0 = vld [vmem:[#allocation6 + $0x328] sm:$0xff] }
 0x3c9   :  { %2629 = vmatprep.mubr.bf16.mxu1 %v8791_v2  ;;  %2855 = vmatprep.mubr.bf16.mxu0 %v8791_v2 }
 0x3ca   :  { %2630 = vmatmul.mubr.bf16.gmra.mrb[76].mxu1 %v8789_v53  ;;  %2856 = vmatmul.mubr.bf16.gmra.mrb[140].mxu0 %v8789_v53 }
 0x3cb   :  { %2895 = vmatpush1.bf16.msra.mxu1 %v2242_v5  ;;  %2898 = vmatprep.mubr.bf16.mxu1 %v8569_v16  ;;  %v2085_v5 = vld [vmem:[#allocation6 + $0x2b8] sm:$0xff] }
 0x3cc   :  { %3121 = vmatpush1.bf16.msra.mxu0 %v2244_v27  ;;  %3124 = vmatprep.mubr.bf16.mxu0 %v8569_v16  ;;  %v2266_v16 = vunpack.c.h.s8.bf16 %v2066_v43  ;;  %v2291_v27 = vunpack.c.l.s8.bf16 %v2083_v22  ;;  %v2293_v21 = vunpack.c.l.s8.bf16 %v2085_v5  ;;  %v2301_v43 = vunpack.c.h.s8.bf16 %v2085_v5  ;;  %v2109_v5 = vld [vmem:[#allocation6 + $0x378] sm:$0xff] }
 0x3cd   :  { %2896 = vmatprep.subr.bf16.mxu1 %v2251_v18  ;;  %3122 = vmatprep.subr.bf16.mxu0 %v2253_v62  ;;  %v2082_v18 = vld [vmem:[#allocation6 + $0x2a0] sm:$0xff]  ;;  %v2284_v62 = vunpack.c.h.s8.bf16 %v2076_v51 }
 0x3cf   :  { %2897 = vmatpush1.bf16.msra.mxu1 %v2250_v36  ;;  %v2290_v36 = vunpack.c.l.s8.bf16 %v2082_v18 }
 0x3d0   :  { %3123 = vmatpush1.bf16.msra.mxu0 %v2252_v46  ;;  %2979 = vmatprep.subr.bf16.mxu1 %v2259_v41  ;;  %v2292_v46 = vunpack.c.l.s8.bf16 %v2084_v61  ;;  %v2091_v41 = vld [vmem:[#allocation6 + $0x2e8] sm:$0xff] }
 0x3d1   :  { %3205 = vmatprep.subr.bf16.mxu0 %v2261_v17  ;;  %v2093_v17 = vld [vmem:[#allocation6 + $0x2f8] sm:$0xff]  ;;  %v2307_v1 = vunpack.c.l.s8.bf16 %v2091_v41 }
 0x3d2   :  { %2899 = vmatmul.mubr.bf16.vlgmr.msra.gmra.mrb[80].mxu1 %v8566_v45 }
 0x3d3   :  { %2980 = vmatpush1.bf16.msra.mxu1 %v2258_v59  ;;  %3125 = vmatmul.mubr.bf16.vlgmr.msra.gmra.mrb[144].mxu0 %v8566_v45  ;;  %v2283_v45 = vunpack.c.h.s8.bf16 %v2075_v57  ;;  %v2090_v59 = vld [vmem:[#allocation6 + $0x2e0] sm:$0xff]  ;;  %v2092_v57 = vld [vmem:[#allocation6 + $0x2f0] sm:$0xff] }
 0x3d4   :  { %2908 = vmatprep.mubr.bf16.mxu1 %v8586_v38  ;;  %3134 = vmatprep.mubr.bf16.mxu0 %v8586_v38  ;;  %v2282_v38 = vunpack.c.h.s8.bf16 %v2074_v19  ;;  %v2101_v19 = vld [vmem:[#allocation6 + $0x338] sm:$0xff]  ;;  %v2316_v51 = vunpack.c.h.s8.bf16 %v2092_v57 }
 0x3d5   :  { %3206 = vmatpush1.bf16.msra.mxu0 %v2260_v48  ;;  %2981 = vmatprep.subr.bf16.mxu1 %v2267_v35  ;;  %v2300_v48 = vunpack.c.h.s8.bf16 %v2084_v61  ;;  %v2309_v35 = vunpack.c.l.s8.bf16 %v2093_v17  ;;  %v2108_v61 = vld [vmem:[#allocation6 + $0x370] sm:$0xff] }
 0x3d6   :  { %3207 = vmatprep.subr.bf16.mxu0 %v2269_v47  ;;  %v2306_v47 = vunpack.c.l.s8.bf16 %v2090_v59 }
 0x3d7   :  { %2982 = vmatpush1.bf16.msra.mxu1 %v2266_v16  ;;  %v2308_v16 = vunpack.c.l.s8.bf16 %v2092_v57 }
 0x3d8   :  { %2983 = vmatprep.subr.bf16.mxu1 %v2275_v3  ;;  %v2317_v3 = vunpack.c.h.s8.bf16 %v2093_v17  ;;  %v2114_v17 = vld [vmem:[#allocation6 + $0x3a0] sm:$0xff] }
 0x3d9   :  { %3208 = vmatpush1.bf16.msra.mxu0 %v2268_v14  ;;  %v2323_v14 = vunpack.c.l.s8.bf16 %v2099_v0 }
 0x3da   :  { %2909 = vmatmul.mubr.bf16.gmra.mrb[84].mxu1 %v8583_v26  ;;  %3209 = vmatprep.subr.bf16.mxu0 %v2277_v20  ;;  %v2098_v20 = vld [vmem:[#allocation6 + $0x320] sm:$0xff] }
 0x3db   :  { %2984 = vmatpush1.bf16.msra.mxu1 %v2274_v12  ;;  %3135 = vmatmul.mubr.bf16.gmra.mrb[148].mxu0 %v8583_v26  ;;  %v2299_v26 = vunpack.c.h.s8.bf16 %v2083_v22  ;;  %v2325_v12 = vunpack.c.l.s8.bf16 %v2101_v19 }
 0x3dc   :  { %2918 = vmatprep.mubr.bf16.mxu1 %v8602_v13  ;;  %3144 = vmatprep.mubr.bf16.mxu0 %v8602_v13  ;;  %v2298_v13 = vunpack.c.h.s8.bf16 %v2082_v18  ;;  %v2106_v18 = vld [vmem:[#allocation6 + $0x360] sm:$0xff] }
 0x3dd   :  { %3210 = vmatpush1.bf16.msra.mxu0 %v2276_v23  ;;  %2985 = vmatprep.subr.bf16.mxu1 %v2283_v45  ;;  %v2100_v23 = vld [vmem:[#allocation6 + $0x330] sm:$0xff]  ;;  %v2322_v45 = vunpack.c.l.s8.bf16 %v2098_v20 }
 0x3de   :  { %3211 = vmatprep.subr.bf16.mxu0 %v2285_v28  ;;  %v2324_v22 = vunpack.c.l.s8.bf16 %v2100_v23  ;;  %v2107_v28 = vld [vmem:[#allocation6 + $0x368] sm:$0xff] }
 0x3df   :  { %2986 = vmatpush1.bf16.msra.mxu1 %v2282_v38  ;;  %v2333_v38 = vunpack.c.h.s8.bf16 %v2101_v19 }
 0x3e0   :  { %2987 = vmatprep.subr.bf16.mxu1 %v2291_v27  ;;  %v2339_v27 = vunpack.c.l.s8.bf16 %v2107_v28 }
 0x3e1   :  { %3212 = vmatpush1.bf16.msra.mxu0 %v2284_v62  ;;  %v2332_v62 = vunpack.c.h.s8.bf16 %v2100_v23 }
 0x3e2   :  { %2919 = vmatmul.mubr.bf16.gmra.mrb[88].mxu1 %v8599_v34  ;;  %3213 = vmatprep.subr.bf16.mxu0 %v2293_v21  ;;  %v2341_v21 = vunpack.c.l.s8.bf16 %v2109_v5 }
 0x3e3   :  { %2988 = vmatpush1.bf16.msra.mxu1 %v2290_v36  ;;  %3145 = vmatmul.mubr.bf16.gmra.mrb[152].mxu0 %v8599_v34  ;;  %v2315_v34 = vunpack.c.h.s8.bf16 %v2091_v41  ;;  %v2338_v36 = vunpack.c.l.s8.bf16 %v2106_v18  ;;  %v2349_v41 = vunpack.c.h.s8.bf16 %v2109_v5 }
 0x3e4   :  { %2928 = vmatprep.mubr.bf16.mxu1 %v8618_v37  ;;  %3154 = vmatprep.mubr.bf16.mxu0 %v8618_v37  ;;  %v2314_v37 = vunpack.c.h.s8.bf16 %v2090_v59 }
 0x3e5   :  { %3214 = vmatpush1.bf16.msra.mxu0 %v2292_v46  ;;  %2989 = vmatprep.subr.bf16.mxu1 %v2299_v26  ;;  %v2340_v46 = vunpack.c.l.s8.bf16 %v2108_v61  ;;  %v2115_v26 = vld [vmem:[#allocation6 + $0x3a8] sm:$0xff] }
 0x3e6   :  { %3215 = vmatprep.subr.bf16.mxu0 %v2301_v43  ;;  %v2117_v43 = vld [vmem:[#allocation6 + $0x3b8] sm:$0xff] }
 0x3e7   :  { %2990 = vmatpush1.bf16.msra.mxu1 %v2298_v13  ;;  %v2355_v13 = vunpack.c.l.s8.bf16 %v2115_v26  ;;  %v2357_v59 = vunpack.c.l.s8.bf16 %v2117_v43 }
 0x3e8   :  { %2991 = vmatprep.subr.bf16.mxu1 %v2307_v1  ;;  %v2348_v1 = vunpack.c.h.s8.bf16 %v2108_v61 }
 0x3e9   :  { %3216 = vmatpush1.bf16.msra.mxu0 %v2300_v48  ;;  %v2116_v48 = vld [vmem:[#allocation6 + $0x3b0] sm:$0xff] }
 0x3ea   :  { %2929 = vmatmul.mubr.bf16.gmra.mrb[92].mxu1 %v8615_v9  ;;  %3217 = vmatprep.subr.bf16.mxu0 %v2309_v35  ;;  %v2354_v35 = vunpack.c.l.s8.bf16 %v2114_v17  ;;  %v2356_v57 = vunpack.c.l.s8.bf16 %v2116_v48 }
 0x3eb   :  { %2992 = vmatpush1.bf16.msra.mxu1 %v2306_v47  ;;  %3155 = vmatmul.mubr.bf16.gmra.mrb[156].mxu0 %v8615_v9  ;;  %v2331_v9 = vunpack.c.h.s8.bf16 %v2099_v0  ;;  %v2123_v47 = vld [vmem:[#allocation6 + $0x3e8] sm:$0xff] }
 0x3ec   :  { %2938 = vmatprep.mubr.bf16.mxu1 %v8634_v42  ;;  %3164 = vmatprep.mubr.bf16.mxu0 %v8634_v42  ;;  %v2330_v42 = vunpack.c.h.s8.bf16 %v2098_v20  ;;  %v2371_v0 = vunpack.c.l.s8.bf16 %v2123_v47 }
 0x3ed   :  { %3218 = vmatpush1.bf16.msra.mxu0 %v2308_v16  ;;  %2993 = vmatprep.subr.bf16.mxu1 %v2315_v34  ;;  %v2365_v16 = vunpack.c.h.s8.bf16 %v2117_v43  ;;  %v2125_v34 = vld [vmem:[#allocation6 + $0x3f8] sm:$0xff] }
 0x3ee   :  { %3219 = vmatprep.subr.bf16.mxu0 %v2317_v3  ;;  %v2122_v3 = vld [vmem:[#allocation6 + $0x3e0] sm:$0xff]  ;;  %v2373_v19 = vunpack.c.l.s8.bf16 %v2125_v34  ;;  %v2381_v23 = vunpack.c.h.s8.bf16 %v2125_v34  ;;  %v4037_v34 = vld [vmem:[#allocation7 + $0xd8] sm:$0xff] }
 0x3ef   :  { %2994 = vmatpush1.bf16.msra.mxu1 %v2314_v37  ;;  %v2364_v37 = vunpack.c.h.s8.bf16 %v2116_v48  ;;  %v2370_v20 = vunpack.c.l.s8.bf16 %v2122_v3 }
 0x3f0   :  { %2995 = vmatprep.subr.bf16.mxu1 %v2323_v14  ;;  %v2124_v14 = vld [vmem:[#allocation6 + $0x3f0] sm:$0xff] }
 0x3f1   :  { %3220 = vmatpush1.bf16.msra.mxu0 %v2316_v51  ;;  %v2372_v51 = vunpack.c.l.s8.bf16 %v2124_v14 }
 0x3f2   :  { %2939 = vmatmul.mubr.bf16.gmra.mrb[96].mxu1 %v8631_v31  ;;  %3221 = vmatprep.subr.bf16.mxu0 %v2325_v12  ;;  %v4011_v12 = vld [vmem:[#allocation7 + $0x8] sm:$0xff] }
 0x3f3   :  { %2996 = vmatpush1.bf16.msra.mxu1 %v2322_v45  ;;  %3165 = vmatmul.mubr.bf16.gmra.mrb[160].mxu0 %v8631_v31  ;;  %v2347_v31 = vunpack.c.h.s8.bf16 %v2107_v28  ;;  %v4013_v45 = vld [vmem:[#allocation7 + $0x18] sm:$0xff]  ;;  %v2380_v28 = vunpack.c.h.s8.bf16 %v2124_v14  ;;  %v4036_v14 = vld [vmem:[#allocation7 + $0xd0] sm:$0xff] }
 0x3f4   :  { %2948 = vmatprep.mubr.bf16.mxu1 %v8650_v56  ;;  %3174 = vmatprep.mubr.bf16.mxu0 %v8650_v56  ;;  %v2346_v56 = vunpack.c.h.s8.bf16 %v2106_v18  ;;  %v4019_v18 = vld [vmem:[#allocation7 + $0x48] sm:$0xff] }
 0x3f5   :  { %3222 = vmatpush1.bf16.msra.mxu0 %v2324_v22  ;;  %2997 = vmatprep.subr.bf16.mxu1 %v2331_v9  ;;  %v4267_v22 = vunpack.c.l.s8.bf16 %v4011_v12  ;;  %v4010_v9 = vld [vmem:[#allocation7] sm:$0xff]  ;;  %v4283_v61 = vunpack.c.l.s8.bf16 %v4019_v18 }
 0x3f6   :  { %3223 = vmatprep.subr.bf16.mxu0 %v2333_v38  ;;  %v4269_v38 = vunpack.c.l.s8.bf16 %v4013_v45  ;;  %v4266_v5 = vunpack.c.l.s8.bf16 %v4010_v9 }
 0x3f7   :  { %2998 = vmatpush1.bf16.msra.mxu1 %v2330_v42  ;;  %v4012_v42 = vld [vmem:[#allocation7 + $0x10] sm:$0xff] }
 0x3f8   :  { %2999 = vmatprep.subr.bf16.mxu1 %v2339_v27  ;;  %v4275_v27 = vunpack.c.h.s8.bf16 %v4011_v12  ;;  %v4043_v12 = vld [vmem:[#allocation7 + $0x108] sm:$0xff] }
 0x3f9   :  { %3224 = vmatpush1.bf16.msra.mxu0 %v2332_v62  ;;  %v4277_v62 = vunpack.c.h.s8.bf16 %v4013_v45  ;;  %v4042_v45 = vld [vmem:[#allocation7 + $0x100] sm:$0xff] }
 0x3fa   :  { %2949 = vmatmul.mubr.bf16.gmra.mrb[100].mxu1 %v8647_v4  ;;  %3225 = vmatprep.subr.bf16.mxu0 %v2341_v21  ;;  %v4021_v21 = vld [vmem:[#allocation7 + $0x58] sm:$0xff] }
 0x3fb   :  { %3000 = vmatpush1.bf16.msra.mxu1 %v2338_v36  ;;  %3175 = vmatmul.mubr.bf16.gmra.mrb[164].mxu0 %v8647_v4  ;;  %v2363_v4 = vunpack.c.h.s8.bf16 %v2115_v26  ;;  %v4018_v36 = vld [vmem:[#allocation7 + $0x40] sm:$0xff]  ;;  %v4020_v26 = vld [vmem:[#allocation7 + $0x50] sm:$0xff] }
 0x3fc   :  { %2958 = vmatprep.mubr.bf16.mxu1 %v8666_v55  ;;  %3184 = vmatprep.mubr.bf16.mxu0 %v8666_v55  ;;  %v2362_v55 = vunpack.c.h.s8.bf16 %v2114_v17  ;;  %v4284_v43 = vunpack.c.l.s8.bf16 %v4020_v26  ;;  %v4029_v17 = vld [vmem:[#allocation7 + $0x98] sm:$0xff]  ;;  %v4292_v48 = vunpack.c.h.s8.bf16 %v4020_v26  ;;  %v4059_v26 = vld [vmem:[#allocation7 + $0x188] sm:$0xff] }
 0x3fd   :  { %3226 = vmatpush1.bf16.msra.mxu0 %v2340_v46  ;;  %3001 = vmatprep.subr.bf16.mxu1 %v2347_v31  ;;  %v4276_v46 = vunpack.c.h.s8.bf16 %v4012_v42  ;;  %v4285_v31 = vunpack.c.l.s8.bf16 %v4021_v21 }
 0x3fe   :  { %3227 = vmatprep.subr.bf16.mxu0 %v2349_v41  ;;  %v4282_v41 = vunpack.c.l.s8.bf16 %v4018_v36 }
 0x3ff   :  { %3002 = vmatpush1.bf16.msra.mxu1 %v2346_v56  ;;  %v4291_v56 = vunpack.c.h.s8.bf16 %v4019_v18 }
 0x400   :  { %3003 = vmatprep.subr.bf16.mxu1 %v2355_v13  ;;  %v4027_v13 = vld [vmem:[#allocation7 + $0x88] sm:$0xff] }
 0x401   :  { %3228 = vmatpush1.bf16.msra.mxu0 %v2348_v1  ;;  %v4299_v1 = vunpack.c.l.s8.bf16 %v4027_v13 }
 0x402   :  { %2959 = vmatmul.mubr.bf16.gmra.mrb[104].mxu1 %v8663_v50  ;;  %3229 = vmatprep.subr.bf16.mxu0 %v2357_v59  ;;  %v4026_v59 = vld [vmem:[#allocation7 + $0x80] sm:$0xff] }
 0x403   :  { %3004 = vmatpush1.bf16.msra.mxu1 %v2354_v35  ;;  %3185 = vmatmul.mubr.bf16.gmra.mrb[168].mxu0 %v8663_v50  ;;  %v2379_v50 = vunpack.c.h.s8.bf16 %v2123_v47  ;;  %v4301_v35 = vunpack.c.l.s8.bf16 %v4029_v17  ;;  %v4307_v47 = vunpack.c.h.s8.bf16 %v4027_v13 }
 0x404   :  { %2968 = vmatprep.mubr.bf16.mxu1 %v8681_v29  ;;  %3194 = vmatprep.mubr.bf16.mxu0 %v8681_v29  ;;  %v2378_v29 = vunpack.c.h.s8.bf16 %v2122_v3  ;;  %v4034_v3 = vld [vmem:[#allocation7 + $0xc0] sm:$0xff] }
 0x405   :  { %3230 = vmatpush1.bf16.msra.mxu0 %v2356_v57  ;;  %3005 = vmatprep.subr.bf16.mxu1 %v2363_v4  ;;  %v4028_v57 = vld [vmem:[#allocation7 + $0x90] sm:$0xff]  ;;  %v4298_v4 = vunpack.c.l.s8.bf16 %v4026_v59 }
 0x406   :  { %3231 = vmatprep.subr.bf16.mxu0 %v2365_v16  ;;  %v4300_v16 = vunpack.c.l.s8.bf16 %v4028_v57 }
 0x407   :  { %3006 = vmatpush1.bf16.msra.mxu1 %v2362_v55  ;;  %v4035_v55 = vld [vmem:[#allocation7 + $0xc8] sm:$0xff] }
 0x408   :  { %3007 = vmatprep.subr.bf16.mxu1 %v2371_v0  ;;  %v4315_v0 = vunpack.c.l.s8.bf16 %v4035_v55 }
 0x409   :  { %3232 = vmatpush1.bf16.msra.mxu0 %v2364_v37  ;;  %v4308_v37 = vunpack.c.h.s8.bf16 %v4028_v57 }
 0x40a   :  { %2969 = vmatmul.mubr.bf16.gmra.mrb[108].mxu1 %v8679_v24  ;;  %3233 = vmatprep.subr.bf16.mxu0 %v2373_v19  ;;  %v4317_v19 = vunpack.c.l.s8.bf16 %v4037_v34 }
 0x40b   :  { %3008 = vmatpush1.bf16.msra.mxu1 %v2370_v20  ;;  %3195 = vmatmul.mubr.bf16.gmra.mrb[172].mxu0 %v8679_v24  ;;  %v4268_v24 = vunpack.c.l.s8.bf16 %v4012_v42  ;;  %v4314_v20 = vunpack.c.l.s8.bf16 %v4034_v3  ;;  %v4339_v42 = vunpack.c.h.s8.bf16 %v4043_v12 }
 0x40c   :  { %3011 = vmatprep.mubr.bf16.mxu1 %v8707_v7  ;;  %3237 = vmatprep.mubr.bf16.mxu0 %v8707_v7  ;;  %v4274_v7 = vunpack.c.h.s8.bf16 %v4010_v9 }
 0x40d   :  { %3234 = vmatpush1.bf16.msra.mxu0 %v2372_v51  ;;  %3009 = vmatprep.subr.bf16.mxu1 %v2379_v50  ;;  %v4323_v51 = vunpack.c.h.s8.bf16 %v4035_v55  ;;  %v4316_v50 = vunpack.c.l.s8.bf16 %v4036_v14  ;;  %v4068_v55 = vld [vmem:[#allocation7 + $0x1d0] sm:$0xff] }
 0x40e   :  { %3235 = vmatprep.subr.bf16.mxu0 %v2381_v23  ;;  %v4045_v23 = vld [vmem:[#allocation7 + $0x118] sm:$0xff] }
 0x40f   :  { %3010 = vmatpush1.bf16.msra.mxu1 %v2378_v29  ;;  %v4331_v29 = vunpack.c.l.s8.bf16 %v4043_v12  ;;  %v4333_v9 = vunpack.c.l.s8.bf16 %v4045_v23 }
 0x410   :  { %4851 = vmatprep.subr.bf16.mxu1 %v4267_v22  ;;  %v4324_v22 = vunpack.c.h.s8.bf16 %v4036_v14 }
 0x411   :  { %3236 = vmatpush1.bf16.msra.mxu0 %v2380_v28  ;;  %v4044_v28 = vld [vmem:[#allocation7 + $0x110] sm:$0xff] }
 0x412   :  { %3012 = vmatmul.mubr.bf16.vlgmr.msra.gmra.mrb[80].mxu1 %v8705_v33  ;;  %5015 = vmatprep.subr.bf16.mxu0 %v4269_v38  ;;  %v4330_v38 = vunpack.c.l.s8.bf16 %v4042_v45 }
 0x413   :  { %3021 = vmatprep.mubr.bf16.mxu1 %v8719_v25  ;;  %4852 = vmatpush1.bf16.msra.mxu1 %v4266_v5  ;;  %v4332_v5 = vunpack.c.l.s8.bf16 %v4044_v28 }
 0x414   :  { %3238 = vmatmul.mubr.bf16.vlgmr.msra.gmra.mrb[144].mxu0 %v8705_v33  ;;  %4853 = vmatprep.subr.bf16.mxu1 %v4275_v27  ;;  %v4293_v33 = vunpack.c.h.s8.bf16 %v4021_v21  ;;  %v4051_v27 = vld [vmem:[#allocation7 + $0x148] sm:$0xff] }
 0x415   :  { %3247 = vmatprep.mubr.bf16.mxu0 %v8719_v25  ;;  %5016 = vmatpush1.bf16.msra.mxu0 %v4268_v24  ;;  %v4290_v25 = vunpack.c.h.s8.bf16 %v4018_v36  ;;  %v4053_v24 = vld [vmem:[#allocation7 + $0x158] sm:$0xff]  ;;  %v4347_v18 = vunpack.c.l.s8.bf16 %v4051_v27 }
 0x416   :  { %5017 = vmatprep.subr.bf16.mxu0 %v4277_v62  ;;  %v4050_v62 = vld [vmem:[#allocation7 + $0x140] sm:$0xff]  ;;  %v4349_v21 = vunpack.c.l.s8.bf16 %v4053_v24 }
 0x417   :  { %4854 = vmatpush1.bf16.msra.mxu1 %v4274_v7  ;;  %v4340_v7 = vunpack.c.h.s8.bf16 %v4044_v28  ;;  %v4346_v36 = vunpack.c.l.s8.bf16 %v4050_v62 }
 0x418   :  { %4855 = vmatprep.subr.bf16.mxu1 %v4283_v61  ;;  %v4052_v61 = vld [vmem:[#allocation7 + $0x150] sm:$0xff] }
 0x419   :  { %5018 = vmatpush1.bf16.msra.mxu0 %v4276_v46  ;;  %v4355_v46 = vunpack.c.h.s8.bf16 %v4051_v27  ;;  %v4356_v13 = vunpack.c.h.s8.bf16 %v4052_v61 }
 0x41a   :  { %3022 = vmatmul.mubr.bf16.gmra.mrb[84].mxu1 %v8717_v15  ;;  %5019 = vmatprep.subr.bf16.mxu0 %v4285_v31  ;;  %v4348_v31 = vunpack.c.l.s8.bf16 %v4052_v61 }
 0x41b   :  { %3031 = vmatprep.mubr.bf16.mxu1 %v8731_v30  ;;  %4856 = vmatpush1.bf16.msra.mxu1 %v4282_v41  ;;  %v4061_v41 = vld [vmem:[#allocation7 + $0x198] sm:$0xff] }
 0x41c   :  { %3248 = vmatmul.mubr.bf16.gmra.mrb[148].mxu0 %v8717_v15  ;;  %4857 = vmatprep.subr.bf16.mxu1 %v4291_v56  ;;  %v4309_v15 = vunpack.c.h.s8.bf16 %v4029_v17  ;;  %v4363_v56 = vunpack.c.l.s8.bf16 %v4059_v26 }
 0x41d   :  { %3257 = vmatprep.mubr.bf16.mxu0 %v8731_v30  ;;  %5020 = vmatpush1.bf16.msra.mxu0 %v4284_v43  ;;  %v4306_v30 = vunpack.c.h.s8.bf16 %v4026_v59  ;;  %v4058_v43 = vld [vmem:[#allocation7 + $0x180] sm:$0xff] }
 0x41e   :  { %5021 = vmatprep.subr.bf16.mxu0 %v4293_v33  ;;  %v4365_v33 = vunpack.c.l.s8.bf16 %v4061_v41  ;;  %v4362_v17 = vunpack.c.l.s8.bf16 %v4058_v43 }
 0x41f   :  { %4858 = vmatpush1.bf16.msra.mxu1 %v4290_v25  ;;  %v4060_v25 = vld [vmem:[#allocation7 + $0x190] sm:$0xff] }
 0x420   :  { %4859 = vmatprep.subr.bf16.mxu1 %v4299_v1  ;;  %v4371_v1 = vunpack.c.h.s8.bf16 %v4059_v26  ;;  %v4364_v59 = vunpack.c.l.s8.bf16 %v4060_v25 }
 0x421   :  { %5022 = vmatpush1.bf16.msra.mxu0 %v4292_v48  ;;  %v4067_v48 = vld [vmem:[#allocation7 + $0x1c8] sm:$0xff] }
 0x422   :  { %3032 = vmatmul.mubr.bf16.gmra.mrb[88].mxu1 %v8729_v6  ;;  %5023 = vmatprep.subr.bf16.mxu0 %v4301_v35  ;;  %v4069_v35 = vld [vmem:[#allocation7 + $0x1d8] sm:$0xff]  ;;  %v4379_v57 = vunpack.c.l.s8.bf16 %v4067_v48 }
 0x423   :  { %3041 = vmatprep.mubr.bf16.mxu1 %v8743_v54  ;;  %4860 = vmatpush1.bf16.msra.mxu1 %v4298_v4  ;;  %v4066_v4 = vld [vmem:[#allocation7 + $0x1c0] sm:$0xff] }
 0x424   :  { %3258 = vmatmul.mubr.bf16.gmra.mrb[152].mxu0 %v8729_v6  ;;  %4861 = vmatprep.subr.bf16.mxu1 %v4307_v47  ;;  %v4325_v6 = vunpack.c.h.s8.bf16 %v4037_v34  ;;  %v4372_v47 = vunpack.c.h.s8.bf16 %v4060_v25  ;;  %v4380_v34 = vunpack.c.l.s8.bf16 %v4068_v55 }
 0x425   :  { %3267 = vmatprep.mubr.bf16.mxu0 %v8743_v54  ;;  %5024 = vmatpush1.bf16.msra.mxu0 %v4300_v16  ;;  %v4322_v54 = vunpack.c.h.s8.bf16 %v4034_v3  ;;  %v4381_v16 = vunpack.c.l.s8.bf16 %v4069_v35  ;;  %v4386_v3 = vunpack.c.h.s8.bf16 %v4066_v4 }
 0x426   :  { %5025 = vmatprep.subr.bf16.mxu0 %v4309_v15  ;;  %v4378_v15 = vunpack.c.l.s8.bf16 %v4066_v4 }
 0x427   :  { %4862 = vmatpush1.bf16.msra.mxu1 %v4306_v30  ;;  %v4387_v30 = vunpack.c.h.s8.bf16 %v4067_v48 }
 0x428   :  { %4863 = vmatprep.subr.bf16.mxu1 %v4315_v0  ;;  %v8859_v0 = vld [vmem:[#allocation7 + $0x208] sm:$0xff] }
 0x429   :  { %5026 = vmatpush1.bf16.msra.mxu0 %v4308_v37  ;;  %v4395_v37 = vunpack.c.l.s8.bf16 %v8859_v0 }
 0x42a   :  { %3042 = vmatmul.mubr.bf16.gmra.mrb[92].mxu1 %v8741_v10  ;;  %5027 = vmatprep.subr.bf16.mxu0 %v4317_v19  ;;  %v4388_v19 = vunpack.c.h.s8.bf16 %v4068_v55 }
 0x42b   :  { %3051 = vmatprep.mubr.bf16.mxu1 %v8755_v40  ;;  %4864 = vmatpush1.bf16.msra.mxu1 %v4314_v20  ;;  %v8870_v20 = vld [vmem:[%s9787_s11 + $0xf] sm:$0xff] }
 0x42c   :  { %3268 = vmatmul.mubr.bf16.gmra.mrb[156].mxu0 %v8741_v10  ;;  %4865 = vmatprep.subr.bf16.mxu1 %v4323_v51  ;;  %v4341_v10 = vunpack.c.h.s8.bf16 %v4045_v23  ;;  %v8879_v51 = vrot.slane %v8870_v20, %v8304_v58  ;;  %v8887_v12 = vrot.slane %v8870_v20, %v8310_v60 }
 0x42d   :  { %3277 = vmatprep.mubr.bf16.mxu0 %v8755_v40  ;;  %5028 = vmatpush1.bf16.msra.mxu0 %v4316_v50  ;;  %v4338_v40 = vunpack.c.h.s8.bf16 %v4042_v45  ;;  %v8883_v50 = vrot.slane %v8870_v20, %v8688_v8 }
 0x42e   :  { %5029 = vmatprep.subr.bf16.mxu0 %v4325_v6  ;;  %v8891_v6 = vrot.slane %v8870_v20, %v8691_v32 }
 0x42f   :  { %4866 = vmatpush1.bf16.msra.mxu1 %v4322_v54 }
 0x430   :  { %4867 = vmatprep.subr.bf16.mxu1 %v4331_v29 }
 0x431   :  { %5030 = vmatpush1.bf16.msra.mxu0 %v4324_v22 }
 0x432   :  { %3052 = vmatmul.mubr.bf16.gmra.mrb[96].mxu1 %v8753_v52  ;;  %5031 = vmatprep.subr.bf16.mxu0 %v4333_v9 }
 0x433   :  { %3061 = vmatprep.mubr.bf16.mxu1 %v8767_v39  ;;  %4868 = vmatpush1.bf16.msra.mxu1 %v4330_v38 }
 0x434   :  { %3278 = vmatmul.mubr.bf16.gmra.mrb[160].mxu0 %v8753_v52  ;;  %4869 = vmatprep.subr.bf16.mxu1 %v4339_v42  ;;  %v4357_v52 = vunpack.c.h.s8.bf16 %v4053_v24 }
 0x435   :  { %3287 = vmatprep.mubr.bf16.mxu0 %v8767_v39  ;;  %5032 = vmatpush1.bf16.msra.mxu0 %v4332_v5  ;;  %v4354_v39 = vunpack.c.h.s8.bf16 %v4050_v62 }
 0x436   :  { %5033 = vmatprep.subr.bf16.mxu0 %v4341_v10 }
 0x437   :  { %4870 = vmatpush1.bf16.msra.mxu1 %v4338_v40 }
 0x438   :  { %4871 = vmatprep.subr.bf16.mxu1 %v4347_v18 }
 0x439   :  { %5034 = vmatpush1.bf16.msra.mxu0 %v4340_v7 }
 0x43a   :  { %3062 = vmatmul.mubr.bf16.gmra.mrb[100].mxu1 %v8765_v63  ;;  %5035 = vmatprep.subr.bf16.mxu0 %v4349_v21 }
 0x43b   :  { %3071 = vmatprep.mubr.bf16.mxu1 %v8779_v11  ;;  %4872 = vmatpush1.bf16.msra.mxu1 %v4346_v36 }
 0x43c   :  { %3288 = vmatmul.mubr.bf16.gmra.mrb[164].mxu0 %v8765_v63  ;;  %4873 = vmatprep.subr.bf16.mxu1 %v4355_v46  ;;  %v4373_v63 = vunpack.c.h.s8.bf16 %v4061_v41 }
 0x43d   :  { %3297 = vmatprep.mubr.bf16.mxu0 %v8779_v11  ;;  %5036 = vmatpush1.bf16.msra.mxu0 %v4348_v31  ;;  %v4370_v11 = vunpack.c.h.s8.bf16 %v4058_v43 }
 0x43e   :  { %5037 = vmatprep.subr.bf16.mxu0 %v4357_v52 }
 0x43f   :  { %4874 = vmatpush1.bf16.msra.mxu1 %v4354_v39 }
 0x440   :  { %4875 = vmatprep.subr.bf16.mxu1 %v4363_v56 }
 0x441   :  { %5038 = vmatpush1.bf16.msra.mxu0 %v4356_v13 }
 0x442   :  { %3072 = vmatmul.mubr.bf16.gmra.mrb[104].mxu1 %v8777_v44  ;;  %5039 = vmatprep.subr.bf16.mxu0 %v4365_v33 }
 0x443   :  { %3081 = vmatprep.mubr.bf16.mxu1 %v8791_v2  ;;  %4876 = vmatpush1.bf16.msra.mxu1 %v4362_v17 }
 0x444   :  { %3298 = vmatmul.mubr.bf16.gmra.mrb[168].mxu0 %v8777_v44  ;;  %4877 = vmatprep.subr.bf16.mxu1 %v4371_v1  ;;  %v4389_v44 = vunpack.c.h.s8.bf16 %v4069_v35 }
 0x445   :  { %3307 = vmatprep.mubr.bf16.mxu0 %v8791_v2  ;;  %5040 = vmatpush1.bf16.msra.mxu0 %v4364_v59  ;;  %v8862_v2 = vld [vmem:[#allocation7 + $0x218] sm:$0xff] }
 0x446   :  { %5041 = vmatprep.subr.bf16.mxu0 %v4373_v63  ;;  %v4397_v14 = vunpack.c.l.s8.bf16 %v8862_v2 }
 0x447   :  { %4878 = vmatpush1.bf16.msra.mxu1 %v4370_v11 }
 0x448   :  { %4879 = vmatprep.subr.bf16.mxu1 %v4379_v57 }
 0x449   :  { %5042 = vmatpush1.bf16.msra.mxu0 %v4372_v47 }
 0x44a   :  { %3082 = vmatmul.mubr.bf16.gmra.mrb[108].mxu1 %v8789_v53  ;;  %5043 = vmatprep.subr.bf16.mxu0 %v4381_v16 }
 0x44b   :  { %4880 = vmatpush1.bf16.msra.mxu1 %v4378_v15 }
 0x44c   :  { %3308 = vmatmul.mubr.bf16.gmra.mrb[172].mxu0 %v8789_v53  ;;  %4881 = vmatprep.subr.bf16.mxu1 %v4387_v30  ;;  %v8875_v53 = vld [vmem:[%s9787_s11 + $0x7] sm:$0xff] }
 0x44d   :  { %5044 = vmatpush1.bf16.msra.mxu0 %v4380_v34  ;;  %v8895_v54 = vrot.slane %v8875_v53, %v8304_v58  ;;  %v8899_v23 = vrot.slane %v8875_v53, %v8688_v8  ;;  %v8903_v22 = vrot.slane %v8875_v53, %v8310_v60  ;;  %v8907_v9 = vrot.slane %v8875_v53, %v8691_v32 }
 0x44e   :  { %5045 = vmatprep.subr.bf16.mxu0 %v4389_v44 }
 0x44f   :  { %4882 = vmatpush1.bf16.msra.mxu1 %v4386_v3 }
 0x450   :  { %4892 = vmatprep.subr.bf16.mxu1 %v4395_v37 }
 0x451   :  { %5046 = vmatpush1.bf16.msra.mxu0 %v4388_v19 }
 0x452   :  { %5056 = vmatprep.subr.bf16.mxu0 %v4397_v14 }
 0x465   :  { %v2561_v29 = vpop.f32.mrb[48].mxu1  ;;  %v2787_v45 = vpop.f32.mrb[112].mxu0 }
 0x466   :  { %v3360_v28 = vmul.f32 %v8879_v51, %v2561_v29  ;;  %v3362_v38 = vmul.f32 %v8883_v50, %v2787_v45  ;;  %v2563_v42 = vpop.f32.mrb[49].mxu1  ;;  %v2789_v5 = vpop.f32.mrb[113].mxu0 }
 0x467   :  { %v3361_v27 = vmul.f32 %v8887_v12, %v2563_v42  ;;  %v3363_v10 = vmul.f32 %v8891_v6, %v2789_v5  ;;  %v2565_v40 = vpop.f32.mrb[50].mxu1  ;;  %v2791_v24 = vpop.f32.mrb[114].mxu0 }
 0x468   :  { %v3530_v18 = vadd.f32 %v8895_v54, %v3360_v28  ;;  %v3532_v62 = vadd.f32 %v8899_v23, %v3362_v38  ;;  %v3368_v7 = vmul.f32 %v8879_v51, %v2565_v40  ;;  %v3370_v21 = vmul.f32 %v8883_v50, %v2791_v24  ;;  %v2567_v61 = vpop.f32.mrb[51].mxu1  ;;  %v2793_v36 = vpop.f32.mrb[115].mxu0 }
 0x469   :  { %v3531_v46 = vadd.f32 %v8903_v22, %v3361_v27  ;;  %v3533_v31 = vadd.f32 %v8907_v9, %v3363_v10  ;;  %v3369_v26 = vmul.f32 %v8887_v12, %v2567_v61  ;;  %v3371_v52 = vmul.f32 %v8891_v6, %v2793_v36 }
 0x46a   :  { %v3538_v39 = vadd.f32 %v8895_v54, %v3368_v7  ;;  %v3540_v41 = vadd.f32 %v8899_v23, %v3370_v21  ;;  %v3658_v13 = vmax.f32 %v3530_v18, 0.0  ;;  %v3660_v33 = vmax.f32 %v3532_v62, 0.0 }
 0x46b   :  { %v3539_v56 = vadd.f32 %v8903_v22, %v3369_v26  ;;  %v3541_v43 = vadd.f32 %v8907_v9, %v3371_v52  ;;  %v3659_v1 = vmax.f32 %v3531_v46, 0.0  ;;  %v3661_v59 = vmax.f32 %v3533_v31, 0.0 }
 0x46c   :  { %v3666_v25 = vmax.f32 %v3538_v39, 0.0  ;;  %v3668_v17 = vmax.f32 %v3540_v41, 0.0 }
 0x46d   :  { %v3667_v48 = vmax.f32 %v3539_v56, 0.0  ;;  %v3669_v63 = vmax.f32 %v3541_v43, 0.0  ;;  %v2571_v11 = vpop.f32.mrb[52].mxu1  ;;  %v2797_v35 = vpop.f32.mrb[116].mxu0 }
 0x46e   :  { %v3786_v57 = vadd.f32 %v3666_v25, %v3658_v13  ;;  %v3812_v4 = vadd.f32 %v3668_v17, %v3660_v33  ;;  %v3376_v47 = vmul.f32 %v8879_v51, %v2571_v11  ;;  %v3378_v16 = vmul.f32 %v8883_v50, %v2797_v35  ;;  %v2573_v55 = vpop.f32.mrb[53].mxu1  ;;  %v2799_v15 = vpop.f32.mrb[117].mxu0 }
 0x46f   :  { %v3799_v30 = vadd.f32 %v3667_v48, %v3659_v1  ;;  %v3825_v34 = vadd.f32 %v3669_v63, %v3661_v59  ;;  %v3377_v44 = vmul.f32 %v8887_v12, %v2573_v55  ;;  %v3379_v3 = vmul.f32 %v8891_v6, %v2799_v15  ;;  %v2575_v37 = vpop.f32.mrb[54].mxu1  ;;  %v2801_v19 = vpop.f32.mrb[118].mxu0 }
 0x470   :  { %v3546_v14 = vadd.f32 %v8895_v54, %v3376_v47  ;;  %v3548_v29 = vadd.f32 %v8899_v23, %v3378_v16  ;;  %v3384_v45 = vmul.f32 %v8879_v51, %v2575_v37  ;;  %v3386_v28 = vmul.f32 %v8883_v50, %v2801_v19  ;;  %v2577_v38 = vpop.f32.mrb[55].mxu1  ;;  %v2803_v42 = vpop.f32.mrb[119].mxu0 }
 0x471   :  { %v3547_v5 = vadd.f32 %v8903_v22, %v3377_v44  ;;  %v3549_v27 = vadd.f32 %v8907_v9, %v3379_v3  ;;  %v3385_v10 = vmul.f32 %v8887_v12, %v2577_v38  ;;  %v3387_v40 = vmul.f32 %v8891_v6, %v2803_v42 }
 0x472   :  { %v3674_v24 = vmax.f32 %v3546_v14, 0.0  ;;  %v3676_v18 = vmax.f32 %v3548_v29, 0.0  ;;  %v3554_v62 = vadd.f32 %v8895_v54, %v3384_v45  ;;  %v3556_v7 = vadd.f32 %v8899_v23, %v3386_v28 }
 0x473   :  { %v3675_v21 = vmax.f32 %v3547_v5, 0.0  ;;  %v3677_v61 = vmax.f32 %v3549_v27, 0.0  ;;  %v3555_v36 = vadd.f32 %v8903_v22, %v3385_v10  ;;  %v3557_v46 = vadd.f32 %v8907_v9, %v3387_v40 }
 0x474   :  { %v3787_v31 = vadd.f32 %v3786_v57, %v3674_v24  ;;  %v3813_v26 = vadd.f32 %v3812_v4, %v3676_v18  ;;  %v3682_v52 = vmax.f32 %v3554_v62, 0.0  ;;  %v3684_v39 = vmax.f32 %v3556_v7, 0.0 }
 0x475   :  { %v3800_v41 = vadd.f32 %v3799_v30, %v3675_v21  ;;  %v3826_v56 = vadd.f32 %v3825_v34, %v3677_v61  ;;  %v3683_v43 = vmax.f32 %v3555_v36, 0.0  ;;  %v3685_v13 = vmax.f32 %v3557_v46, 0.0  ;;  %v2581_v33 = vpop.f32.mrb[56].mxu1  ;;  %v2807_v25 = vpop.f32.mrb[120].mxu0 }
 0x476   :  { %v3788_v17 = vadd.f32 %v3787_v31, %v3682_v52  ;;  %v3814_v1 = vadd.f32 %v3813_v26, %v3684_v39  ;;  %v3392_v59 = vmul.f32 %v8879_v51, %v2581_v33  ;;  %v3394_v48 = vmul.f32 %v8883_v50, %v2807_v25  ;;  %v2583_v63 = vpop.f32.mrb[57].mxu1  ;;  %v2809_v11 = vpop.f32.mrb[121].mxu0 }
 0x477   :  { %v3801_v35 = vadd.f32 %v3800_v41, %v3683_v43  ;;  %v3827_v47 = vadd.f32 %v3826_v56, %v3685_v13  ;;  %v3393_v57 = vmul.f32 %v8887_v12, %v2583_v63  ;;  %v3395_v4 = vmul.f32 %v8891_v6, %v2809_v11  ;;  %v2585_v16 = vpop.f32.mrb[58].mxu1  ;;  %v2811_v55 = vpop.f32.mrb[122].mxu0 }
 0x478   :  { %v3562_v15 = vadd.f32 %v8895_v54, %v3392_v59  ;;  %v3564_v30 = vadd.f32 %v8899_v23, %v3394_v48  ;;  %v3400_v34 = vmul.f32 %v8879_v51, %v2585_v16  ;;  %v3402_v44 = vmul.f32 %v8883_v50, %v2811_v55  ;;  %v2587_v3 = vpop.f32.mrb[59].mxu1  ;;  %v2813_v37 = vpop.f32.mrb[123].mxu0 }
 0x479   :  { %v3563_v19 = vadd.f32 %v8903_v22, %v3393_v57  ;;  %v3565_v14 = vadd.f32 %v8907_v9, %v3395_v4  ;;  %v3401_v29 = vmul.f32 %v8887_v12, %v2587_v3  ;;  %v3403_v45 = vmul.f32 %v8891_v6, %v2813_v37 }
 0x47a   :  { %v3690_v28 = vmax.f32 %v3562_v15, 0.0  ;;  %v3692_v38 = vmax.f32 %v3564_v30, 0.0  ;;  %v3570_v42 = vadd.f32 %v8895_v54, %v3400_v34  ;;  %v3572_v5 = vadd.f32 %v8899_v23, %v3402_v44 }
 0x47b   :  { %v3691_v27 = vmax.f32 %v3563_v19, 0.0  ;;  %v3693_v10 = vmax.f32 %v3565_v14, 0.0  ;;  %v3571_v40 = vadd.f32 %v8903_v22, %v3401_v29  ;;  %v3573_v24 = vadd.f32 %v8907_v9, %v3403_v45 }
 0x47c   :  { %v3789_v18 = vadd.f32 %v3788_v17, %v3690_v28  ;;  %v3815_v62 = vadd.f32 %v3814_v1, %v3692_v38  ;;  %v3698_v7 = vmax.f32 %v3570_v42, 0.0  ;;  %v3700_v21 = vmax.f32 %v3572_v5, 0.0 }
 0x47d   :  { %v3802_v61 = vadd.f32 %v3801_v35, %v3691_v27  ;;  %v3828_v36 = vadd.f32 %v3827_v47, %v3693_v10  ;;  %v3699_v46 = vmax.f32 %v3571_v40, 0.0  ;;  %v3701_v31 = vmax.f32 %v3573_v24, 0.0  ;;  %v2591_v26 = vpop.f32.mrb[60].mxu1  ;;  %v2817_v52 = vpop.f32.mrb[124].mxu0 }
 0x47e   :  { %v3790_v39 = vadd.f32 %v3789_v18, %v3698_v7  ;;  %v3816_v41 = vadd.f32 %v3815_v62, %v3700_v21  ;;  %v3408_v56 = vmul.f32 %v8879_v51, %v2591_v26  ;;  %v3410_v43 = vmul.f32 %v8883_v50, %v2817_v52  ;;  %v2593_v13 = vpop.f32.mrb[61].mxu1  ;;  %v2819_v33 = vpop.f32.mrb[125].mxu0 }
 0x47f   :  { %v3803_v25 = vadd.f32 %v3802_v61, %v3699_v46  ;;  %v3829_v59 = vadd.f32 %v3828_v36, %v3701_v31  ;;  %v3409_v17 = vmul.f32 %v8887_v12, %v2593_v13  ;;  %v3411_v1 = vmul.f32 %v8891_v6, %v2819_v33  ;;  %v2595_v48 = vpop.f32.mrb[62].mxu1  ;;  %v2821_v63 = vpop.f32.mrb[126].mxu0 }
 0x480   :  { %v3578_v11 = vadd.f32 %v8895_v54, %v3408_v56  ;;  %v3580_v35 = vadd.f32 %v8899_v23, %v3410_v43  ;;  %v3416_v47 = vmul.f32 %v8879_v51, %v2595_v48  ;;  %v3418_v57 = vmul.f32 %v8883_v50, %v2821_v63  ;;  %v2597_v4 = vpop.f32.mrb[63].mxu1  ;;  %v2823_v16 = vpop.f32.mrb[127].mxu0 }
 0x481   :  { %v3579_v55 = vadd.f32 %v8903_v22, %v3409_v17  ;;  %v3581_v15 = vadd.f32 %v8907_v9, %v3411_v1  ;;  %v3417_v30 = vmul.f32 %v8887_v12, %v2597_v4  ;;  %v3419_v34 = vmul.f32 %v8891_v6, %v2823_v16 }
 0x482   :  { %v3706_v44 = vmax.f32 %v3578_v11, 0.0  ;;  %v3708_v3 = vmax.f32 %v3580_v35, 0.0  ;;  %v3586_v37 = vadd.f32 %v8895_v54, %v3416_v47  ;;  %v3588_v19 = vadd.f32 %v8899_v23, %v3418_v57 }
 0x483   :  { %v3707_v14 = vmax.f32 %v3579_v55, 0.0  ;;  %v3709_v29 = vmax.f32 %v3581_v15, 0.0  ;;  %v3587_v45 = vadd.f32 %v8903_v22, %v3417_v30  ;;  %v3589_v28 = vadd.f32 %v8907_v9, %v3419_v34 }
 0x484   :  { %v3791_v38 = vadd.f32 %v3790_v39, %v3706_v44  ;;  %v3817_v42 = vadd.f32 %v3816_v41, %v3708_v3  ;;  %v3714_v5 = vmax.f32 %v3586_v37, 0.0  ;;  %v3716_v27 = vmax.f32 %v3588_v19, 0.0 }
 0x485   :  { %v3804_v10 = vadd.f32 %v3803_v25, %v3707_v14  ;;  %v3830_v40 = vadd.f32 %v3829_v59, %v3709_v29  ;;  %v3715_v24 = vmax.f32 %v3587_v45, 0.0  ;;  %v3717_v18 = vmax.f32 %v3589_v28, 0.0  ;;  %v2601_v62 = vpop.f32.mrb[64].mxu1  ;;  %v2827_v7 = vpop.f32.mrb[128].mxu0 }
 0x486   :  { %v3792_v21 = vadd.f32 %v3791_v38, %v3714_v5  ;;  %v3818_v61 = vadd.f32 %v3817_v42, %v3716_v27  ;;  %v2603_v36 = vpop.f32.mrb[65].mxu1  ;;  %v2829_v46 = vpop.f32.mrb[129].mxu0  ;;  %v3424_v43 = vmul.f32 %v8879_v51, %v2601_v62  ;;  %v3426_v39 = vmul.f32 %v8883_v50, %v2827_v7 }
 0x487   :  { %v3805_v31 = vadd.f32 %v3804_v10, %v3715_v24  ;;  %v3831_v26 = vadd.f32 %v3830_v40, %v3717_v18  ;;  %v2605_v52 = vpop.f32.mrb[66].mxu1  ;;  %v2831_v56 = vpop.f32.mrb[130].mxu0  ;;  %v3425_v33 = vmul.f32 %v8887_v12, %v2603_v36  ;;  %v3427_v25 = vmul.f32 %v8891_v6, %v2829_v46 }
 0x488   :  { %v2607_v41 = vpop.f32.mrb[67].mxu1  ;;  %v2833_v13 = vpop.f32.mrb[131].mxu0  ;;  %v3594_v59 = vadd.f32 %v8895_v54, %v3424_v43  ;;  %v3596_v17 = vadd.f32 %v8899_v23, %v3426_v39  ;;  %v3432_v1 = vmul.f32 %v8879_v51, %v2605_v52  ;;  %v3434_v48 = vmul.f32 %v8883_v50, %v2831_v56 }
 0x489   :  { %v3595_v63 = vadd.f32 %v8903_v22, %v3425_v33  ;;  %v3597_v11 = vadd.f32 %v8907_v9, %v3427_v25  ;;  %v3433_v35 = vmul.f32 %v8887_v12, %v2607_v41  ;;  %v3435_v47 = vmul.f32 %v8891_v6, %v2833_v13 }
 0x48a   :  { %v3793_v16 = vrot.slane %v3792_v21, 4  ;;  %v3819_v55 = vrot.slane %v3818_v61, 4  ;;  %v3602_v15 = vadd.f32 %v8895_v54, %v3432_v1  ;;  %v3604_v30 = vadd.f32 %v8899_v23, %v3434_v48 }
 0x48b   :  { %v3806_v3 = vrot.slane %v3805_v31, 4  ;;  %v3832_v37 = vrot.slane %v3831_v26, 4  ;;  %v3603_v19 = vadd.f32 %v8903_v22, %v3433_v35  ;;  %v3605_v14 = vadd.f32 %v8907_v9, %v3435_v47 }
 0x48c   :  { %v3722_v28 = vmax.f32 %v3594_v59, 0.0  ;;  %v3724_v38 = vmax.f32 %v3596_v17, 0.0  ;;  %v3730_v42 = vmax.f32 %v3602_v15, 0.0  ;;  %v3732_v5 = vmax.f32 %v3604_v30, 0.0 }
 0x48d   :  { %v2611_v57 = vpop.f32.mrb[68].mxu1  ;;  %v2837_v4 = vpop.f32.mrb[132].mxu0  ;;  %v3723_v40 = vmax.f32 %v3595_v63, 0.0  ;;  %v3725_v24 = vmax.f32 %v3597_v11, 0.0  ;;  %v3731_v18 = vmax.f32 %v3603_v19, 0.0  ;;  %v3733_v62 = vmax.f32 %v3605_v14, 0.0 }
 0x48e   :  { %v2613_v34 = vpop.f32.mrb[69].mxu1  ;;  %v2839_v44 = vpop.f32.mrb[133].mxu0  ;;  %v8989_v7 = vadd.f32 %v3793_v16, %v3792_v21  ;;  %v3890_v36 = vadd.f32 %v3730_v42, %v3722_v28  ;;  %v3916_v46 = vadd.f32 %v3732_v5, %v3724_v38  ;;  %v8991_v52 = vadd.f32 %v3819_v55, %v3818_v61 }
 0x48f   :  { %v2615_v29 = vpop.f32.mrb[70].mxu1  ;;  %v2841_v45 = vpop.f32.mrb[134].mxu0  ;;  %v8993_v56 = vadd.f32 %v3806_v3, %v3805_v31  ;;  %v3903_v43 = vadd.f32 %v3731_v18, %v3723_v40  ;;  %v3929_v39 = vadd.f32 %v3733_v62, %v3725_v24  ;;  %v8995_v41 = vadd.f32 %v3832_v37, %v3831_v26 }
 0x490   :  { %v2617_v27 = vpop.f32.mrb[71].mxu1  ;;  %v2843_v10 = vpop.f32.mrb[135].mxu0  ;;  %v3440_v13 = vmul.f32 %v8879_v51, %v2611_v57  ;;  %v3442_v33 = vmul.f32 %v8883_v50, %v2837_v4  ;;  %v3441_v25 = vmul.f32 %v8887_v12, %v2613_v34  ;;  %v3443_v59 = vmul.f32 %v8891_v6, %v2839_v44 }
 0x491   :  { %v3795_v1 = vrot.slane %v8989_v7, 2  ;;  %v3821_v26 = vrot.slane %v8991_v52, 2  ;;  %v3808_v11 = vrot.slane %v8993_v56, 2  ;;  %v3834_v16 = vrot.slane %v8995_v41, 2 }
 0x492   :  { %v3610_v61 = vadd.f32 %v8895_v54, %v3440_v13  ;;  %v3612_v31 = vadd.f32 %v8899_v23, %v3442_v33  ;;  %v3611_v35 = vadd.f32 %v8903_v22, %v3441_v25  ;;  %v3613_v47 = vadd.f32 %v8907_v9, %v3443_v59 }
 0x493   :  { %v3448_v30 = vmul.f32 %v8879_v51, %v2615_v29  ;;  %v3450_v19 = vmul.f32 %v8883_v50, %v2841_v45  ;;  %v3449_v14 = vmul.f32 %v8887_v12, %v2617_v27  ;;  %v3451_v5 = vmul.f32 %v8891_v6, %v2843_v10 }
 0x494   :  { %v3738_v55 = vmax.f32 %v3610_v61, 0.0  ;;  %v3740_v15 = vmax.f32 %v3612_v31, 0.0  ;;  %v3739_v3 = vmax.f32 %v3611_v35, 0.0  ;;  %v3741_v37 = vmax.f32 %v3613_v47, 0.0 }
 0x495   :  { %v2621_v21 = vpop.f32.mrb[72].mxu1  ;;  %v2847_v17 = vpop.f32.mrb[136].mxu0  ;;  %v3618_v42 = vadd.f32 %v8895_v54, %v3448_v30  ;;  %v3620_v18 = vadd.f32 %v8899_v23, %v3450_v19  ;;  %v3619_v29 = vadd.f32 %v8903_v22, %v3449_v14  ;;  %v3621_v13 = vadd.f32 %v8907_v9, %v3451_v5 }
 0x496   :  { %v2623_v48 = vpop.f32.mrb[73].mxu1  ;;  %v2849_v63 = vpop.f32.mrb[137].mxu0  ;;  %v3891_v28 = vadd.f32 %v3890_v36, %v3738_v55  ;;  %v3917_v38 = vadd.f32 %v3916_v46, %v3740_v15  ;;  %v3904_v40 = vadd.f32 %v3903_v43, %v3739_v3  ;;  %v3930_v24 = vadd.f32 %v3929_v39, %v3741_v37 }
 0x497   :  { %v2625_v57 = vpop.f32.mrb[74].mxu1  ;;  %v2851_v4 = vpop.f32.mrb[138].mxu0  ;;  %v3746_v62 = vmax.f32 %v3618_v42, 0.0  ;;  %v3456_v33 = vmul.f32 %v8879_v51, %v2621_v21  ;;  %v3458_v45 = vmul.f32 %v8883_v50, %v2847_v17  ;;  %v3748_v27 = vmax.f32 %v3620_v18, 0.0 }
 0x498   :  { %v2627_v34 = vpop.f32.mrb[75].mxu1  ;;  %v2853_v44 = vpop.f32.mrb[139].mxu0  ;;  %v3747_v36 = vmax.f32 %v3619_v29, 0.0  ;;  %v3457_v46 = vmul.f32 %v8887_v12, %v2623_v48  ;;  %v3459_v25 = vmul.f32 %v8891_v6, %v2849_v63  ;;  %v3749_v59 = vmax.f32 %v3621_v13, 0.0 }
 0x499   :  { %v3892_v39 = vadd.f32 %v3891_v28, %v3746_v62  ;;  %v3626_v61 = vadd.f32 %v8895_v54, %v3456_v33  ;;  %v3628_v31 = vadd.f32 %v8899_v23, %v3458_v45  ;;  %v3918_v55 = vadd.f32 %v3917_v38, %v3748_v27 }
 0x49a   :  { %v3905_v21 = vadd.f32 %v3904_v40, %v3747_v36  ;;  %v3627_v17 = vadd.f32 %v8903_v22, %v3457_v46  ;;  %v3629_v15 = vadd.f32 %v8907_v9, %v3459_v25  ;;  %v3931_v3 = vadd.f32 %v3930_v24, %v3749_v59 }
 0x49b   :  { %v3754_v63 = vmax.f32 %v3626_v61, 0.0  ;;  %v3756_v37 = vmax.f32 %v3628_v31, 0.0  ;;  %v3464_v19 = vmul.f32 %v8879_v51, %v2625_v57  ;;  %v3466_v18 = vmul.f32 %v8883_v50, %v2851_v4 }
 0x49c   :  { %v3755_v42 = vmax.f32 %v3627_v17, 0.0  ;;  %v3757_v5 = vmax.f32 %v3629_v15, 0.0  ;;  %v3465_v38 = vmul.f32 %v8887_v12, %v2627_v34  ;;  %v3467_v13 = vmul.f32 %v8891_v6, %v2853_v44 }
 0x49d   :  { %v2631_v10 = vpop.f32.mrb[76].mxu1  ;;  %v2857_v43 = vpop.f32.mrb[140].mxu0  ;;  %v3893_v40 = vadd.f32 %v3892_v39, %v3754_v63  ;;  %v3919_v29 = vadd.f32 %v3918_v55, %v3756_v37  ;;  %v3634_v62 = vadd.f32 %v8895_v54, %v3464_v19  ;;  %v3636_v45 = vadd.f32 %v8899_v23, %v3466_v18 }
 0x49e   :  { %v2633_v35 = vpop.f32.mrb[77].mxu1  ;;  %v2859_v47 = vpop.f32.mrb[141].mxu0  ;;  %v3906_v33 = vadd.f32 %v3905_v21, %v3755_v42  ;;  %v3932_v24 = vadd.f32 %v3931_v3, %v3757_v5  ;;  %v3635_v57 = vadd.f32 %v8903_v22, %v3465_v38  ;;  %v3637_v36 = vadd.f32 %v8907_v9, %v3467_v13 }
 0x49f   :  { %v2635_v30 = vpop.f32.mrb[78].mxu1  ;;  %v2861_v48 = vpop.f32.mrb[142].mxu0  ;;  %v3762_v27 = vmax.f32 %v3634_v62, 0.0  ;;  %v3472_v46 = vmul.f32 %v8879_v51, %v2631_v10  ;;  %v3474_v4 = vmul.f32 %v8883_v50, %v2857_v43  ;;  %v3764_v34 = vmax.f32 %v3636_v45, 0.0 }
 0x4a0   :  { %v2637_v14 = vpop.f32.mrb[79].mxu1  ;;  %v2863_v28 = vpop.f32.mrb[143].mxu0  ;;  %v3763_v25 = vmax.f32 %v3635_v57, 0.0  ;;  %v3473_v39 = vmul.f32 %v8887_v12, %v2633_v35  ;;  %v3475_v59 = vmul.f32 %v8891_v6, %v2859_v47  ;;  %v3765_v61 = vmax.f32 %v3637_v36, 0.0 }
 0x4a1   :  { %v3894_v44 = vadd.f32 %v3893_v40, %v3762_v27  ;;  %v3642_v31 = vadd.f32 %v8895_v54, %v3472_v46  ;;  %v3644_v55 = vadd.f32 %v8899_v23, %v3474_v4  ;;  %v3920_v21 = vadd.f32 %v3919_v29, %v3764_v34 }
 0x4a2   :  { %v3907_v17 = vadd.f32 %v3906_v33, %v3763_v25  ;;  %v3643_v15 = vadd.f32 %v8903_v22, %v3473_v39  ;;  %v3645_v10 = vadd.f32 %v8907_v9, %v3475_v59  ;;  %v3933_v3 = vadd.f32 %v3932_v24, %v3765_v61 }
 0x4a3   :  { %v3770_v43 = vmax.f32 %v3642_v31, 0.0  ;;  %v3772_v63 = vmax.f32 %v3644_v55, 0.0  ;;  %v3480_v37 = vmul.f32 %v8879_v51, %v2635_v30  ;;  %v3482_v47 = vmul.f32 %v8883_v50, %v2861_v48 }
 0x4a4   :  { %v3771_v35 = vmax.f32 %v3643_v15, 0.0  ;;  %v3773_v19 = vmax.f32 %v3645_v10, 0.0  ;;  %v3481_v42 = vmul.f32 %v8887_v12, %v2637_v14  ;;  %v3483_v40 = vmul.f32 %v8891_v6, %v2863_v28 }
 0x4a5   :  { %v3895_v5 = vadd.f32 %v3894_v44, %v3770_v43  ;;  %v3921_v18 = vadd.f32 %v3920_v21, %v3772_v63  ;;  %v3650_v38 = vadd.f32 %v8895_v54, %v3480_v37  ;;  %v3652_v13 = vadd.f32 %v8899_v23, %v3482_v47 }
 0x4a6   :  { %v3908_v29 = vadd.f32 %v3907_v17, %v3771_v35  ;;  %v3934_v62 = vadd.f32 %v3933_v3, %v3773_v19  ;;  %v3651_v33 = vadd.f32 %v8903_v22, %v3481_v42  ;;  %v3796_v51 = vadd.f32 %v3795_v1, %v8989_v7 }
 0x4a7   :  { %v3778_v30 = vmax.f32 %v3650_v38, 0.0  ;;  %v3653_v50 = vadd.f32 %v8907_v9, %v3483_v40  ;;  %v3822_v12 = vadd.f32 %v3821_v26, %v8991_v52  ;;  %v3809_v6 = vadd.f32 %v3808_v11, %v8993_v56 }
 0x4a8   :  { %v3780_v54 = vmax.f32 %v3652_v13, 0.0  ;;  %v3779_v48 = vmax.f32 %v3651_v33, 0.0  ;;  %v3835_v23 = vadd.f32 %v3834_v16, %v8995_v41  ;;  %v3797_v28 = vrot.slane %v3796_v51, 1 }
 0x4a9   :  { %v3896_v22 = vadd.f32 %v3895_v5, %v3778_v30  ;;  %v3781_v14 = vmax.f32 %v3653_v50, 0.0  ;;  %v3823_v45 = vrot.slane %v3822_v12, 1  ;;  %v3810_v57 = vrot.slane %v3809_v6, 1 }
 0x4aa   :  { %v3922_v7 = vadd.f32 %v3921_v18, %v3780_v54  ;;  %v3909_v1 = vadd.f32 %v3908_v29, %v3779_v48  ;;  %v3836_v27 = vrot.slane %v3835_v23, 1  ;;  %v3798_v4 = vadd.f32 %v3797_v28, %v3796_v51 }
 0x4ab   :  { %v3897_v9 = vrot.slane %v3896_v22, 4  ;;  %v3935_v24 = vadd.f32 %v3934_v62, %v3781_v14  ;;  %v3824_v41 = vadd.f32 %v3823_v45, %v3822_v12  ;;  %v3811_v16 = vadd.f32 %v3810_v57, %v3809_v6 }
 0x4ac   :  { %v3923_v52 = vrot.slane %v3922_v7, 4  ;;  %v3910_v26 = vrot.slane %v3909_v1, 4  ;;  %v3837_v44 = vadd.f32 %v3836_v27, %v3835_v23  ;;  %v3994_v17 = vmul.f32 0.015625, %v3798_v4 }
 0x4ad   :  { %v3898_v36 = vadd.f32 %v3897_v9, %v3896_v22  ;;  %v3936_v56 = vrot.slane %v3935_v24, 4  ;;  %v3996_v3 = vmul.f32 0.015625, %v3824_v41  ;;  %v3995_v43 = vmul.f32 0.015625, %v3811_v16  ;;  %v4085_v41 = vld [vmem:[#allocation7 + $0x258] sm:$0xff] }
 0x4ae   :  { %v3924_v11 = vadd.f32 %v3923_v52, %v3922_v7  ;;  %v3911_v46 = vadd.f32 %v3910_v26, %v3909_v1  ;;  %v3997_v35 = vmul.f32 0.015625, %v3837_v44  ;;  %v4778_v18 = vpack.c.bf16 %v3994_v17, %v3994_v17  ;;  %v4074_v7 = vld [vmem:[#allocation7 + $0x200] sm:$0xff]  ;;  %v4076_v1 = vld [vmem:[#allocation7 + $0x210] sm:$0xff] }
 0x4af   :  { %v3899_v34 = vrot.slane %v3898_v36, 2  ;;  %v3937_v25 = vadd.f32 %v3936_v56, %v3935_v24  ;;  %v4780_v29 = vpack.c.bf16 %v3996_v3, %v3996_v3  ;;  %v4779_v62 = vpack.c.bf16 %v3995_v43, %v3995_v43 }
 0x4b0   :  { %v3925_v39 = vrot.slane %v3924_v11, 2  ;;  %v3912_v59 = vrot.slane %v3911_v46, 2  ;;  %v4781_v51 = vpack.c.bf16 %v3997_v35, %v3997_v35  ;;  %v4810_v54 = vunpack.c.l.b16 %v4778_v18  ;;  %v4090_v35 = vld [vmem:[#allocation7 + $0x280] sm:$0xff]  ;;  %v9083_v18 = vld [vmem:[#allocation7 + $0x2d8] sm:$0xff] }
 0x4b1   :  { %v3900_v61 = vadd.f32 %v3899_v34, %v3898_v36  ;;  %v3938_v31 = vrot.slane %v3937_v25, 2  ;;  %v4811_v22 = vunpack.c.l.b16 %v4779_v62  ;;  %v4812_v28 = vunpack.c.l.b16 %v4780_v29  ;;  %v9087_v62 = vld [vmem:[#allocation7 + $0x2d0] sm:$0xff] }
 0x4b2   :  { %v3926_v55 = vadd.f32 %v3925_v39, %v3924_v11  ;;  %v3913_v21 = vadd.f32 %v3912_v59, %v3911_v46  ;;  %v4813_v45 = vunpack.c.l.b16 %v4781_v51  ;;  %v4394_v36 = vunpack.c.l.s8.bf16 %v4074_v7 }
 0x4b3   :  { %v3901_v15 = vrot.slane %v3900_v61, 1  ;;  %v3939_v10 = vadd.f32 %v3938_v31, %v3937_v25  ;;  %v4396_v56 = vunpack.c.l.s8.bf16 %v4076_v1  ;;  %v4403_v4 = vunpack.c.h.s8.bf16 %v8859_v0  ;;  %v4083_v25 = vld [vmem:[#allocation7 + $0x248] sm:$0xff] }
 0x4b4   :  { %v3927_v63 = vrot.slane %v3926_v55, 1  ;;  %v3914_v37 = vrot.slane %v3913_v21, 1  ;;  %v4405_v34 = vunpack.c.h.s8.bf16 %v8862_v2  ;;  %v4402_v39 = vunpack.c.h.s8.bf16 %v4074_v7  ;;  %v4084_v2 = vld [vmem:[#allocation7 + $0x250] sm:$0xff] }
 0x4b5   :  { %v3902_v19 = vadd.f32 %v3901_v15, %v3900_v61  ;;  %v3940_v47 = vrot.slane %v3939_v10, 1  ;;  %v4404_v59 = vunpack.c.h.s8.bf16 %v4076_v1  ;;  %v4411_v44 = vunpack.c.l.s8.bf16 %v4083_v25  ;;  %v4082_v61 = vld [vmem:[#allocation7 + $0x240] sm:$0xff]  ;;  %v4091_v15 = vld [vmem:[#allocation7 + $0x288] sm:$0xff] }
 0x4b6   :  { %v3928_v42 = vadd.f32 %v3927_v63, %v3926_v55  ;;  %v3915_v5 = vadd.f32 %v3914_v37, %v3913_v21  ;;  %v4413_v0 = vunpack.c.l.s8.bf16 %v4085_v41  ;;  %v4410_v31 = vunpack.c.l.s8.bf16 %v4082_v61 }
 0x4b7   :  { %v4002_v38 = vmul.f32 0.015625, %v3902_v19  ;;  %v3941_v40 = vadd.f32 %v3940_v47, %v3939_v10  ;;  %v4412_v55 = vunpack.c.l.s8.bf16 %v4084_v2  ;;  %v4419_v21 = vunpack.c.h.s8.bf16 %v4083_v25  ;;  %v4093_v10 = vld [vmem:[#allocation7 + $0x298] sm:$0xff]  ;;  %v4092_v19 = vld [vmem:[#allocation7 + $0x290] sm:$0xff] }
 0x4b8   :  { %v4004_v13 = vmul.f32 0.015625, %v3928_v42  ;;  %v4003_v33 = vmul.f32 0.015625, %v3915_v5  ;;  %v4421_v17 = vunpack.c.h.s8.bf16 %v4085_v41  ;;  %v4418_v3 = vunpack.c.h.s8.bf16 %v4082_v61  ;;  %v9081_v5 = vld [vmem:[#allocation7 + $0x2c8] sm:$0xff]  ;;  %v9126_v41 = vld [vmem:[#allocation7 + $0x358] sm:$0xff]  ;;  %v9143_v61 = vld [vmem:[#allocation7 + $0x350] sm:$0xff] }
 0x4b9   :  { %v4786_v30 = vpack.c.bf16 %v4002_v38, %v4002_v38  ;;  %v4005_v50 = vmul.f32 0.015625, %v3941_v40  ;;  %v4420_v43 = vunpack.c.h.s8.bf16 %v4084_v2  ;;  %v4427_v63 = vunpack.c.l.s8.bf16 %v4091_v15  ;;  %v9085_v38 = vld [vmem:[#allocation7 + $0x2c0] sm:$0xff] }
 0x4ba   :  { %v4788_v12 = vpack.c.bf16 %v4004_v13, %v4004_v13  ;;  %v4787_v6 = vpack.c.bf16 %v4003_v33, %v4003_v33  ;;  %v4429_v37 = vunpack.c.l.s8.bf16 %v4093_v10  ;;  %v4426_v47 = vunpack.c.l.s8.bf16 %v4090_v35 }
 0x4bb   :  { %v4818_v48 = vunpack.c.l.b16 %v4786_v30  ;;  %v4789_v23 = vpack.c.bf16 %v4005_v50, %v4005_v50  ;;  %v4428_v42 = vunpack.c.l.s8.bf16 %v4092_v19  ;;  %v4435_v40 = vunpack.c.h.s8.bf16 %v4091_v15  ;;  %v9160_v15 = vld [vmem:[#allocation7 + $0x398] sm:$0xff] }
 0x4bc   :  { %v4819_v14 = vunpack.c.l.b16 %v4787_v6  ;;  %v4820_v9 = vunpack.c.l.b16 %v4788_v12  ;;  %v4437_v29 = vunpack.c.h.s8.bf16 %v4093_v10  ;;  %v4434_v13 = vunpack.c.h.s8.bf16 %v4090_v35  ;;  %v9092_v12 = vld [vmem:[#allocation7 + $0x308] sm:$0xff]  ;;  %v9094_v6 = vld [vmem:[#allocation7 + $0x318] sm:$0xff]  ;;  %v9162_v10 = vld [vmem:[#allocation7 + $0x380] sm:$0xff] }
 0x4bd   :  { %v4827_v24 = vsel %vm4826_vm4, %v4818_v48, %v4810_v54  ;;  %v4821_v57 = vunpack.c.l.b16 %v4789_v23  ;;  %v4436_v33 = vunpack.c.h.s8.bf16 %v4092_v19  ;;  %v4443_v51 = vunpack.c.l.s8.bf16 %v9081_v5  ;;  %v9096_v54 = vld [vmem:[#allocation7 + $0x300] sm:$0xff]  ;;  %v9174_v35 = vld [vmem:[#allocation7 + $0x390] sm:$0xff]  ;;  %v9212_v19 = vld [vmem:[#allocation7 + $0x448] sm:$0xff] }
 0x4be   :  { %v4828_v52 = vsel %vm4826_vm4, %v4819_v14, %v4811_v22  ;;  %v9064_v26 = vsel %vm4826_vm4, %v4820_v9, %v4812_v28  ;;  %v9069_v46 = vpack.c.b16 %v4827_v24, %v4827_v24  ;;  %v4445_v30 = vunpack.c.l.s8.bf16 %v9083_v18  ;;  %v9100_v22 = vld [vmem:[#allocation7 + $0x310] sm:$0xff] }
 0x4bf   :  { %v9066_v27 = vpack.c.b16 %v4828_v52, %v4828_v52  ;;  %v4830_v11 = vsel %vm4826_vm4, %v4821_v57, %v4813_v45  ;;  %v4442_v50 = vunpack.c.l.s8.bf16 %v9085_v38  ;;  %v4444_v48 = vunpack.c.l.s8.bf16 %v9087_v62 }
 0x4c0   :  { %v9077_v16 = vpack.c.b16 %v4830_v11, %v4830_v11  ;;  %v4451_v23 = vunpack.c.h.s8.bf16 %v9081_v5  ;;  %v9103_v14 = vsub.s32 4, %v9843_v49  ;;  %v9106_v7 = vsub.s32 6, %v9843_v49  ;;  %v9224_v5 = vld [vmem:[#allocation7 + $0x440] sm:$0xff] }
 0x4c1   :  { %4883 = vmatprep.mubr.bf16.mxu1 %v9066_v27  ;;  %5047 = vmatprep.mubr.bf16.mxu0 %v9066_v27  ;;  %v4453_v1 = vunpack.c.h.s8.bf16 %v9083_v18  ;;  %v4450_v28 = vunpack.c.h.s8.bf16 %v9085_v38  ;;  %v4452_v9 = vunpack.c.h.s8.bf16 %v9087_v62  ;;  %v9112_v24 = vsub.s32 5, %v9843_v49  ;;  %v9182_v18 = vld [vmem:[#allocation7 + $0x3d8] sm:$0xff] }
 0x4c2   :  { %4884 = vmatmul.mubr.bf16.vlgmr.msra.gmra.mrb[112].mxu1 %v9069_v46  ;;  %5048 = vmatmul.mubr.bf16.vlgmr.msra.gmra.mrb[176].mxu0 %v9069_v46  ;;  %9846 = vst [vmem:[#allocation21_spill] sm:$0xff] %v9103_v14  ;;  %9847 = vst [vmem:[#allocation22_spill] sm:$0xff] %v9106_v7  ;;  %v4459_v45 = vunpack.c.l.s8.bf16 %v9092_v12  ;;  %v4461_v57 = vunpack.c.l.s8.bf16 %v9094_v6  ;;  %v4458_v52 = vunpack.c.l.s8.bf16 %v9096_v54  ;;  %v4460_v11 = vunpack.c.l.s8.bf16 %v9100_v22 }
 0x4c3   :  { %4893 = vmatpush1.bf16.msra.mxu1 %v4394_v36  ;;  %5057 = vmatpush1.bf16.msra.mxu0 %v4396_v56  ;;  %9848 = vst [vmem:[#allocation23_spill] sm:$0xff] %v9112_v24  ;;  %v9118_v36 = vsub.s32 7, %v9843_v49  ;;  %v9120_v56 = vld [vmem:[#allocation7 + $0x348] sm:$0xff]  ;;  %v4466_v25 = vunpack.c.h.s8.bf16 %v9096_v54  ;;  %v9133_v49 = vrot.slane %v8870_v20, %v9103_v14  ;;  %v9147_v2 = vrot.slane %v8875_v53, %v9106_v7 }
 0x4c4   :  { %4924 = vmatprep.mubr.bf16.mxu1 %v9077_v16  ;;  %5088 = vmatprep.mubr.bf16.mxu0 %v9077_v16  ;;  %v9887_v60 = vunpack.c.h.s8.bf16 %v9224_v5 }
 0x4c5   :  { %4894 = vmatprep.subr.bf16.mxu1 %v4403_v4  ;;  %5058 = vmatprep.subr.bf16.mxu0 %v4405_v34  ;;  %9849 = vst [vmem:[#allocation24_spill] sm:$0xff] %v9118_v36  ;;  %v4467_v4 = vunpack.c.h.s8.bf16 %v9092_v12  ;;  %v4469_v34 = vunpack.c.h.s8.bf16 %v9094_v6  ;;  %v9290_v6 = vld [vmem:[#allocation7 + $0x490] sm:$0xff] }
 0x4c7   :  { %4895 = vmatpush1.bf16.msra.mxu1 %v4402_v39  ;;  %5059 = vmatpush1.bf16.msra.mxu0 %v4404_v59  ;;  %v9128_v39 = vld [vmem:[#allocation7 + $0x340] sm:$0xff]  ;;  %v4468_v59 = vunpack.c.h.s8.bf16 %v9100_v22 }
 0x4c8   :  { %4896 = vmatprep.subr.bf16.mxu1 %v4411_v44  ;;  %5060 = vmatprep.subr.bf16.mxu0 %v4413_v0  ;;  %v9137_v44 = vrot.slane %v8875_v53, %v9103_v14  ;;  %v9141_v0 = vrot.slane %v8870_v20, %v9106_v7  ;;  %v9851_v22 = vunpack.c.l.s8.bf16 %v9128_v39 }
 0x4cb   :  { %4897 = vmatpush1.bf16.msra.mxu1 %v4410_v31  ;;  %5061 = vmatpush1.bf16.msra.mxu0 %v4412_v55  ;;  %v9151_v31 = vrot.slane %v8870_v20, %v9112_v24  ;;  %v9155_v55 = vrot.slane %v8875_v53, %v9112_v24 }
 0x4cc   :  { %4898 = vmatprep.subr.bf16.mxu1 %v4419_v21  ;;  %5062 = vmatprep.subr.bf16.mxu0 %v4421_v17  ;;  %v4475_v21 = vunpack.c.l.s8.bf16 %v9120_v56  ;;  %v9158_v17 = vld [vmem:[#allocation7 + $0x388] sm:$0xff] }
 0x4cf   :  { %4899 = vmatpush1.bf16.msra.mxu1 %v4418_v3  ;;  %5063 = vmatpush1.bf16.msra.mxu0 %v4420_v43  ;;  %v9166_v3 = vrot.slane %v8870_v20, %v9118_v36  ;;  %v9170_v43 = vrot.slane %v8875_v53, %v9118_v36  ;;  %v9180_v20 = vld [vmem:[#allocation7 + $0x3c8] sm:$0xff]  ;;  %v9184_v53 = vld [vmem:[#allocation7 + $0x3c0] sm:$0xff] }
 0x4d0   :  { %4900 = vmatprep.subr.bf16.mxu1 %v4427_v63  ;;  %5064 = vmatprep.subr.bf16.mxu0 %v4429_v37 }
 0x4d3   :  { %4901 = vmatpush1.bf16.msra.mxu1 %v4426_v47  ;;  %5065 = vmatpush1.bf16.msra.mxu0 %v4428_v42  ;;  %v9226_v47 = vld [vmem:[#allocation7 + $0x450] sm:$0xff] }
 0x4d4   :  { %4902 = vmatprep.subr.bf16.mxu1 %v4435_v40  ;;  %5066 = vmatprep.subr.bf16.mxu0 %v4437_v29  ;;  %v9198_v40 = vld [vmem:[#allocation7 + $0x418] sm:$0xff]  ;;  %v9200_v29 = vld [vmem:[#allocation7 + $0x400] sm:$0xff] }
 0x4d7   :  { %4903 = vmatpush1.bf16.msra.mxu1 %v4434_v13  ;;  %5067 = vmatpush1.bf16.msra.mxu0 %v4436_v33  ;;  %v9222_v13 = vld [vmem:[#allocation7 + $0x458] sm:$0xff] }
 0x4d8   :  { %4904 = vmatprep.subr.bf16.mxu1 %v4443_v51  ;;  %5068 = vmatprep.subr.bf16.mxu0 %v4445_v30  ;;  %v9190_v51 = vld [vmem:[#allocation7 + $0x3d0] sm:$0xff] }
 0x4d9   :  { %v9206_v30 = vld [vmem:[#allocation7 + $0x410] sm:$0xff] }
 0x4db   :  { %4905 = vmatpush1.bf16.msra.mxu1 %v4442_v50  ;;  %5069 = vmatpush1.bf16.msra.mxu0 %v4444_v48  ;;  %v9196_v48 = vld [vmem:[#allocation7 + $0x408] sm:$0xff] }
 0x4dc   :  { %4906 = vmatprep.subr.bf16.mxu1 %v4451_v23  ;;  %5070 = vmatprep.subr.bf16.mxu0 %v4453_v1  ;;  %v9239_v1 = vpack.c.b16 %v9064_v26, %v9064_v26 }
 0x4df   :  { %4907 = vmatpush1.bf16.msra.mxu1 %v4450_v28  ;;  %5071 = vmatpush1.bf16.msra.mxu0 %v4452_v9  ;;  %v9263_v9 = vld [vmem:[#allocation7 + $0x488] sm:$0xff] }
 0x4e0   :  { %4908 = vmatprep.subr.bf16.mxu1 %v4459_v45  ;;  %5072 = vmatprep.subr.bf16.mxu0 %v4461_v57 }
 0x4e3   :  { %4909 = vmatpush1.bf16.msra.mxu1 %v4458_v52  ;;  %5073 = vmatpush1.bf16.msra.mxu0 %v4460_v11 }
 0x4e4   :  { %4910 = vmatprep.subr.bf16.mxu1 %v4467_v4  ;;  %5074 = vmatprep.subr.bf16.mxu0 %v4469_v34  ;;  %v9269_v34 = vld [vmem:[#allocation7 + $0x498] sm:$0xff] }
 0x4e5   :  { %v3013_v38 = vpop.f32.mrb[80].mxu1 }
 0x4e6   :  { %v3364_v42 = vmul.f32 %v9133_v49, %v3013_v38  ;;  %v3015_v23 = vpop.f32.mrb[81].mxu1 }
 0x4e7   :  { %v3239_v33 = vpop.f32.mrb[144].mxu0  ;;  %v3365_v62 = vmul.f32 %v9151_v31, %v3015_v23  ;;  %v3017_v37 = vpop.f32.mrb[82].mxu1  ;;  %4911 = vmatpush1.bf16.msra.mxu1 %v4466_v25  ;;  %5075 = vmatpush1.bf16.msra.mxu0 %v4468_v59  ;;  %v9287_v59 = vld [vmem:[#allocation7 + $0x480] sm:$0xff] }
 0x4e8   :  { %v3534_v26 = vadd.f32 %v9137_v44, %v3364_v42  ;;  %v3366_v38 = vmul.f32 %v9141_v0, %v3239_v33  ;;  %v3241_v57 = vpop.f32.mrb[145].mxu0  ;;  %v3372_v23 = vmul.f32 %v9133_v49, %v3017_v37  ;;  %v3019_v45 = vpop.f32.mrb[83].mxu1  ;;  %4912 = vmatprep.subr.bf16.mxu1 %v4475_v21 }
 0x4e9   :  { %v3535_v52 = vadd.f32 %v9155_v55, %v3365_v62  ;;  %v3367_v11 = vmul.f32 %v9166_v3, %v3241_v57  ;;  %v3243_v50 = vpop.f32.mrb[146].mxu0  ;;  %v3373_v42 = vmul.f32 %v9151_v31, %v3019_v45 }
 0x4ea   :  { %v3536_v37 = vadd.f32 %v9147_v2, %v3366_v38  ;;  %v3542_v28 = vadd.f32 %v9137_v44, %v3372_v23  ;;  %v3374_v12 = vmul.f32 %v9141_v0, %v3243_v50  ;;  %v3245_v4 = vpop.f32.mrb[147].mxu0  ;;  %v3662_v50 = vmax.f32 %v3534_v26, 0.0 }
 0x4eb   :  { %v3537_v62 = vadd.f32 %v9170_v43, %v3367_v11  ;;  %v3543_v57 = vadd.f32 %v9155_v55, %v3373_v42  ;;  %v3375_v45 = vmul.f32 %v9166_v3, %v3245_v4  ;;  %v3663_v63 = vmax.f32 %v3535_v52, 0.0  ;;  %4913 = vmatpush1.bf16.msra.mxu1 %v9851_v22 }
 0x4ec   :  { %v3670_v38 = vmax.f32 %v3542_v28, 0.0  ;;  %v3544_v23 = vadd.f32 %v9147_v2, %v3374_v12  ;;  %v9850_v11 = vunpack.c.l.s8.bf16 %v9126_v41  ;;  %v3664_v28 = vmax.f32 %v3536_v37, 0.0 }
 0x4ed   :  { %v3671_v42 = vmax.f32 %v3543_v57, 0.0  ;;  %v3545_v54 = vadd.f32 %v9170_v43, %v3375_v45  ;;  %v3023_v25 = vpop.f32.mrb[84].mxu1  ;;  %v3665_v21 = vmax.f32 %v3537_v62, 0.0  ;;  %v9852_v37 = vunpack.c.l.s8.bf16 %v9143_v61 }
 0x4ee   :  { %5076 = vmatprep.subr.bf16.mxu0 %v9850_v11  ;;  %v3838_v26 = vadd.f32 %v3670_v38, %v3662_v50  ;;  %v3672_v12 = vmax.f32 %v3544_v23, 0.0  ;;  %v3380_v4 = vmul.f32 %v9133_v49, %v3023_v25  ;;  %v3025_v52 = vpop.f32.mrb[85].mxu1 }
 0x4ef   :  { %v3851_v33 = vadd.f32 %v3671_v42, %v3663_v63  ;;  %v3673_v7 = vmax.f32 %v3545_v54, 0.0  ;;  %v3249_v11 = vpop.f32.mrb[148].mxu0  ;;  %v3381_v57 = vmul.f32 %v9151_v31, %v3025_v52  ;;  %v3027_v45 = vpop.f32.mrb[86].mxu1  ;;  %5077 = vmatpush1.bf16.msra.mxu0 %v9852_v37  ;;  %v9853_v42 = vunpack.c.h.s8.bf16 %v9120_v56 }
 0x4f0   :  { %v3864_v36 = vadd.f32 %v3672_v12, %v3664_v28  ;;  %v3550_v50 = vadd.f32 %v9137_v44, %v3380_v4  ;;  %v3382_v38 = vmul.f32 %v9141_v0, %v3249_v11  ;;  %v3251_v23 = vpop.f32.mrb[149].mxu0  ;;  %v3029_v25 = vpop.f32.mrb[87].mxu1  ;;  %v9854_v54 = vunpack.c.h.s8.bf16 %v9126_v41 }
 0x4f1   :  { %v3877_v62 = vadd.f32 %v3673_v7, %v3665_v21  ;;  %4914 = vmatprep.subr.bf16.mxu1 %v9853_v42  ;;  %v3551_v22 = vadd.f32 %v9155_v55, %v3381_v57  ;;  %v3383_v28 = vmul.f32 %v9166_v3, %v3251_v23  ;;  %v3253_v12 = vpop.f32.mrb[150].mxu0  ;;  %v3388_v37 = vmul.f32 %v9133_v49, %v3027_v45 }
 0x4f2   :  { %5078 = vmatprep.subr.bf16.mxu0 %v9854_v54  ;;  %v3678_v52 = vmax.f32 %v3550_v50, 0.0  ;;  %v3552_v11 = vadd.f32 %v9147_v2, %v3382_v38  ;;  %v3390_v7 = vmul.f32 %v9141_v0, %v3253_v12  ;;  %v3255_v21 = vpop.f32.mrb[151].mxu0  ;;  %v3389_v41 = vmul.f32 %v9151_v31, %v3029_v25 }
 0x4f3   :  { %v3679_v56 = vmax.f32 %v3551_v22, 0.0  ;;  %v3553_v42 = vadd.f32 %v9170_v43, %v3383_v28  ;;  %v3391_v57 = vmul.f32 %v9166_v3, %v3255_v21  ;;  %v9855_v23 = vunpack.c.h.s8.bf16 %v9128_v39 }
 0x4f4   :  { %v9856_v54 = vunpack.c.h.s8.bf16 %v9143_v61  ;;  %v3839_v50 = vadd.f32 %v3838_v26, %v3678_v52  ;;  %v3680_v38 = vmax.f32 %v3552_v11, 0.0  ;;  %v3558_v45 = vadd.f32 %v9137_v44, %v3388_v37 }
 0x4f5   :  { %4915 = vmatpush1.bf16.msra.mxu1 %v9855_v23  ;;  %v3560_v12 = vadd.f32 %v9147_v2, %v3390_v7  ;;  %v3852_v4 = vadd.f32 %v3851_v33, %v3679_v56  ;;  %v3681_v22 = vmax.f32 %v3553_v42, 0.0  ;;  %v9857_v28 = vunpack.c.l.s8.bf16 %v9158_v17  ;;  %v3033_v61 = vpop.f32.mrb[88].mxu1 }
 0x4f6   :  { %5079 = vmatpush1.bf16.msra.mxu0 %v9856_v54  ;;  %v9858_v25 = vunpack.c.l.s8.bf16 %v9160_v15  ;;  %v3559_v39 = vadd.f32 %v9155_v55, %v3389_v41  ;;  %v3561_v21 = vadd.f32 %v9170_v43, %v3391_v57  ;;  %v3865_v23 = vadd.f32 %v3864_v36, %v3680_v38  ;;  %v3035_v37 = vpop.f32.mrb[89].mxu1 }
 0x4f7   :  { %4916 = vmatprep.subr.bf16.mxu1 %v9857_v28  ;;  %v3686_v26 = vmax.f32 %v3558_v45, 0.0  ;;  %v3688_v52 = vmax.f32 %v3560_v12, 0.0  ;;  %v3396_v11 = vmul.f32 %v9133_v49, %v3033_v61  ;;  %v3878_v7 = vadd.f32 %v3877_v62, %v3681_v22  ;;  %v3259_v42 = vpop.f32.mrb[152].mxu0  ;;  %v3037_v28 = vpop.f32.mrb[90].mxu1 }
 0x4f8   :  { %5080 = vmatprep.subr.bf16.mxu0 %v9858_v25  ;;  %v3687_v33 = vmax.f32 %v3559_v39, 0.0  ;;  %v3689_v56 = vmax.f32 %v3561_v21, 0.0  ;;  %v3397_v54 = vmul.f32 %v9151_v31, %v3035_v37  ;;  %v9859_v41 = vunpack.c.l.s8.bf16 %v9162_v10  ;;  %v3261_v38 = vpop.f32.mrb[153].mxu0  ;;  %v3039_v45 = vpop.f32.mrb[91].mxu1 }
 0x4f9   :  { %v3840_v63 = vadd.f32 %v3839_v50, %v3686_v26  ;;  %v3866_v25 = vadd.f32 %v3865_v23, %v3688_v52  ;;  %v9860_v57 = vunpack.c.l.s8.bf16 %v9174_v35  ;;  %v3566_v36 = vadd.f32 %v9137_v44, %v3396_v11  ;;  %v3263_v61 = vpop.f32.mrb[154].mxu0 }
 0x4fa   :  { %4917 = vmatpush1.bf16.msra.mxu1 %v9859_v41  ;;  %v3853_v12 = vadd.f32 %v3852_v4, %v3687_v33  ;;  %v3879_v22 = vadd.f32 %v3878_v7, %v3689_v56  ;;  %v9861_v39 = vunpack.c.h.s8.bf16 %v9158_v17  ;;  %v9862_v50 = vunpack.c.h.s8.bf16 %v9160_v15  ;;  %v3265_v4 = vpop.f32.mrb[155].mxu0 }
 0x4fb   :  { %5081 = vmatpush1.bf16.msra.mxu0 %v9860_v57  ;;  %v3398_v21 = vmul.f32 %v9141_v0, %v3259_v42  ;;  %v3694_v26 = vmax.f32 %v3566_v36, 0.0  ;;  %v3567_v52 = vadd.f32 %v9155_v55, %v3397_v54  ;;  %v3399_v11 = vmul.f32 %v9166_v3, %v3261_v38 }
 0x4fc   :  { %4918 = vmatprep.subr.bf16.mxu1 %v9861_v39  ;;  %5082 = vmatprep.subr.bf16.mxu0 %v9862_v50  ;;  %v3404_v37 = vmul.f32 %v9133_v49, %v3037_v28  ;;  %v3406_v17 = vmul.f32 %v9141_v0, %v3263_v61  ;;  %v3405_v15 = vmul.f32 %v9151_v31, %v3039_v45  ;;  %v9863_v56 = vunpack.c.h.s8.bf16 %v9162_v10 }
 0x4fd   :  { %v3568_v7 = vadd.f32 %v9147_v2, %v3398_v21  ;;  %v3407_v33 = vmul.f32 %v9166_v3, %v3265_v4  ;;  %v9864_v42 = vunpack.c.h.s8.bf16 %v9174_v35  ;;  %v3841_v54 = vadd.f32 %v3840_v63, %v3694_v26  ;;  %v3043_v50 = vpop.f32.mrb[92].mxu1 }
 0x4fe   :  { %4919 = vmatpush1.bf16.msra.mxu1 %v9863_v56  ;;  %v3695_v41 = vmax.f32 %v3567_v52, 0.0  ;;  %v3569_v57 = vadd.f32 %v9170_v43, %v3399_v11  ;;  %v3574_v28 = vadd.f32 %v9137_v44, %v3404_v37  ;;  %v9865_v38 = vunpack.c.l.s8.bf16 %v9180_v20  ;;  %v3045_v52 = vpop.f32.mrb[93].mxu1 }
 0x4ff   :  { %5083 = vmatpush1.bf16.msra.mxu0 %v9864_v42  ;;  %v3696_v36 = vmax.f32 %v3568_v7, 0.0  ;;  %v9866_v45 = vunpack.c.l.s8.bf16 %v9182_v18  ;;  %v3576_v39 = vadd.f32 %v9147_v2, %v3406_v17  ;;  %v3575_v10 = vadd.f32 %v9155_v55, %v3405_v15  ;;  %v3269_v56 = vpop.f32.mrb[156].mxu0  ;;  %v3047_v42 = vpop.f32.mrb[94].mxu1 }
 0x500   :  { %4920 = vmatprep.subr.bf16.mxu1 %v9865_v38  ;;  %v3577_v35 = vadd.f32 %v9170_v43, %v3407_v33  ;;  %v3854_v63 = vadd.f32 %v3853_v12, %v3695_v41  ;;  %v3697_v21 = vmax.f32 %v3569_v57, 0.0  ;;  %v3702_v61 = vmax.f32 %v3574_v28, 0.0  ;;  %v3271_v33 = vpop.f32.mrb[157].mxu0  ;;  %v3049_v41 = vpop.f32.mrb[95].mxu1 }
 0x501   :  { %5084 = vmatprep.subr.bf16.mxu0 %v9866_v45  ;;  %v3412_v26 = vmul.f32 %v9133_v49, %v3043_v50  ;;  %v3867_v11 = vadd.f32 %v3866_v25, %v3696_v36  ;;  %v3704_v37 = vmax.f32 %v3576_v39, 0.0  ;;  %v3703_v4 = vmax.f32 %v3575_v10, 0.0  ;;  %v3273_v39 = vpop.f32.mrb[158].mxu0 }
 0x502   :  { %v3705_v7 = vmax.f32 %v3577_v35, 0.0  ;;  %v3880_v38 = vadd.f32 %v3879_v22, %v3697_v21  ;;  %v3842_v45 = vadd.f32 %v3841_v54, %v3702_v61  ;;  %v9867_v17 = vunpack.c.l.s8.bf16 %v9184_v53  ;;  %v9372_v35 = vld [vmem:[#allocation7 + $0x4c8] sm:$0xff] }
 0x503   :  { %v9868_v15 = vunpack.c.l.s8.bf16 %v9190_v51  ;;  %v3582_v12 = vadd.f32 %v9137_v44, %v3412_v26  ;;  %v3868_v25 = vadd.f32 %v3867_v11, %v3704_v37  ;;  %v3855_v28 = vadd.f32 %v3854_v63, %v3703_v4  ;;  %v3275_v63 = vpop.f32.mrb[159].mxu0  ;;  %v9380_v4 = vld [vmem:[#allocation7 + $0x4d8] sm:$0xff] }
 0x504   :  { %4921 = vmatpush1.bf16.msra.mxu1 %v9867_v17  ;;  %v9869_v36 = vunpack.c.h.s8.bf16 %v9180_v20  ;;  %v9870_v22 = vunpack.c.h.s8.bf16 %v9182_v18  ;;  %v3414_v54 = vmul.f32 %v9141_v0, %v3269_v56  ;;  %v3881_v50 = vadd.f32 %v3880_v38, %v3705_v7 }
 0x505   :  { %5085 = vmatpush1.bf16.msra.mxu0 %v9868_v15  ;;  %v3710_v21 = vmax.f32 %v3582_v12, 0.0  ;;  %v3413_v61 = vmul.f32 %v9151_v31, %v3045_v52  ;;  %v3415_v26 = vmul.f32 %v9166_v3, %v3271_v33  ;;  %v3420_v11 = vmul.f32 %v9133_v49, %v3047_v42  ;;  %v9410_v15 = vld [vmem:[#allocation7 + $0x508] sm:$0xff] }
 0x506   :  { %4922 = vmatprep.subr.bf16.mxu1 %v9869_v36  ;;  %5086 = vmatprep.subr.bf16.mxu0 %v9870_v22  ;;  %v3584_v20 = vadd.f32 %v9147_v2, %v3414_v54  ;;  %v3422_v18 = vmul.f32 %v9141_v0, %v3273_v39  ;;  %v3421_v37 = vmul.f32 %v9151_v31, %v3049_v41  ;;  %v9871_v56 = vunpack.c.h.s8.bf16 %v9184_v53  ;;  %v9396_v36 = vld [vmem:[#allocation7 + $0x4c0] sm:$0xff] }
 0x507   :  { %v9872_v7 = vunpack.c.h.s8.bf16 %v9190_v51  ;;  %v3843_v52 = vadd.f32 %v3842_v45, %v3710_v21  ;;  %v3583_v38 = vadd.f32 %v9155_v55, %v3413_v61  ;;  %v3585_v17 = vadd.f32 %v9170_v43, %v3415_v26  ;;  %v3053_v45 = vpop.f32.mrb[96].mxu1  ;;  %v9400_v26 = vld [vmem:[#allocation7 + $0x4d0] sm:$0xff] }
 0x508   :  { %4923 = vmatpush1.bf16.msra.mxu1 %v9871_v56  ;;  %v3712_v42 = vmax.f32 %v3584_v20, 0.0  ;;  %v9873_v12 = vunpack.c.l.s8.bf16 %v9196_v48  ;;  %v9874_v33 = vunpack.c.l.s8.bf16 %v9198_v40  ;;  %v3590_v53 = vadd.f32 %v9137_v44, %v3420_v11  ;;  %v3055_v21 = vpop.f32.mrb[97].mxu1  ;;  %v3279_v56 = vpop.f32.mrb[160].mxu0 }
 0x509   :  { %5087 = vmatpush1.bf16.msra.mxu0 %v9872_v7  ;;  %v3592_v41 = vadd.f32 %v9147_v2, %v3422_v18  ;;  %v3591_v51 = vadd.f32 %v9155_v55, %v3421_v37  ;;  %v3711_v22 = vmax.f32 %v3583_v38, 0.0  ;;  %v3713_v54 = vmax.f32 %v3585_v17, 0.0  ;;  %v3057_v7 = vpop.f32.mrb[98].mxu1 }
 0x50a   :  { %4933 = vmatprep.subr.bf16.mxu1 %v9873_v12  ;;  %5097 = vmatprep.subr.bf16.mxu0 %v9874_v33  ;;  %v3423_v39 = vmul.f32 %v9166_v3, %v3275_v63  ;;  %v3869_v20 = vadd.f32 %v3868_v25, %v3712_v42  ;;  %v3718_v11 = vmax.f32 %v3590_v53, 0.0  ;;  %v9875_v17 = vunpack.c.l.s8.bf16 %v9200_v29  ;;  %v3281_v25 = vpop.f32.mrb[161].mxu0  ;;  %v3059_v42 = vpop.f32.mrb[99].mxu1 }
 0x50b   :  { %4925 = vmatmul.mubr.bf16.vlgmr.msra.gmra.mrb[112].mxu1 %v9239_v1  ;;  %v3720_v18 = vmax.f32 %v3592_v41, 0.0  ;;  %v3719_v37 = vmax.f32 %v3591_v51, 0.0  ;;  %v3856_v12 = vadd.f32 %v3855_v28, %v3711_v22  ;;  %v3882_v38 = vadd.f32 %v3881_v50, %v3713_v54  ;;  %v3283_v51 = vpop.f32.mrb[162].mxu0  ;;  %v9434_v22 = vld [vmem:[#allocation7 + $0x548] sm:$0xff] }
 0x50c   :  { %5089 = vmatmul.mubr.bf16.vlgmr.msra.gmra.mrb[176].mxu0 %v9239_v1  ;;  %4934 = vmatpush1.bf16.msra.mxu1 %v9875_v17  ;;  %v9876_v63 = vunpack.c.l.s8.bf16 %v9206_v30  ;;  %v3593_v33 = vadd.f32 %v9170_v43, %v3423_v39  ;;  %v3844_v53 = vadd.f32 %v3843_v52, %v3718_v11  ;;  %v9877_v28 = vunpack.c.h.s8.bf16 %v9196_v48  ;;  %v9420_v39 = vld [vmem:[#allocation7 + $0x518] sm:$0xff]  ;;  %v9422_v17 = vld [vmem:[#allocation7 + $0x500] sm:$0xff] }
 0x50d   :  { %v9412_v41 = vadd.f32 %v3869_v20, %v3720_v18  ;;  %v9878_v50 = vunpack.c.h.s8.bf16 %v9198_v40  ;;  %v3285_v20 = vpop.f32.mrb[163].mxu0  ;;  %v9428_v18 = vld [vmem:[#allocation7 + $0x510] sm:$0xff]  ;;  %v3428_v40 = vmul.f32 %v9133_v49, %v3053_v45  ;;  %v3429_v48 = vmul.f32 %v9151_v31, %v3055_v21  ;;  %v9445_v11 = vld [vmem:[#allocation7 + $0x558] sm:$0xff] }
 0x50e   :  { %5098 = vmatpush1.bf16.msra.mxu0 %v9876_v63  ;;  %4935 = vmatprep.subr.bf16.mxu1 %v9877_v28  ;;  %v9424_v63 = vadd.f32 %v3856_v12, %v3719_v37  ;;  %v3721_v52 = vmax.f32 %v3593_v33, 0.0  ;;  %v3430_v28 = vmul.f32 %v9141_v0, %v3279_v56  ;;  %v9879_v12 = vunpack.c.h.s8.bf16 %v9200_v29  ;;  %v3063_v29 = vpop.f32.mrb[100].mxu1 }
 0x50f   :  { %5099 = vmatprep.subr.bf16.mxu0 %v9878_v50  ;;  %v9880_v33 = vunpack.c.h.s8.bf16 %v9206_v30  ;;  %v3431_v54 = vmul.f32 %v9166_v3, %v3281_v25  ;;  %v9881_v50 = vunpack.c.l.s8.bf16 %v9212_v19  ;;  %v3065_v56 = vpop.f32.mrb[101].mxu1  ;;  %v3598_v61 = vadd.f32 %v9137_v44, %v3428_v40  ;;  %v3289_v10 = vpop.f32.mrb[164].mxu0 }
 0x510   :  { %v9436_v37 = vadd.f32 %v3882_v38, %v3721_v52  ;;  %4936 = vmatpush1.bf16.msra.mxu1 %v9879_v12  ;;  %v9882_v38 = vunpack.c.l.s8.bf16 %v9222_v13  ;;  %v9455_v12 = vld [vmem:[#allocation7 + $0x540] sm:$0xff]  ;;  %v3436_v30 = vmul.f32 %v9133_v49, %v3057_v7  ;;  %v9463_v52 = vpop.f32.mrb[102].mxu1  ;;  %v3599_v57 = vadd.f32 %v9155_v55, %v3429_v48 }
 0x511   :  { %4937 = vmatprep.subr.bf16.mxu1 %v9881_v50  ;;  %v3438_v23 = vmul.f32 %v9141_v0, %v3283_v51  ;;  %v9883_v45 = vunpack.c.l.s8.bf16 %v9224_v5  ;;  %v9884_v50 = vunpack.c.l.s8.bf16 %v9226_v47  ;;  %v3437_v40 = vmul.f32 %v9151_v31, %v3059_v42  ;;  %v9473_v25 = vpop.f32.mrb[103].mxu1 }
 0x512   :  { %5100 = vmatpush1.bf16.msra.mxu0 %v9880_v33  ;;  %v3845_v33 = vrot.slane %v3844_v53, 4  ;;  %v3871_v62 = vrot.slane %v9412_v41, 4  ;;  %v3601_v21 = vadd.f32 %v9170_v43, %v3431_v54  ;;  %v3606_v48 = vadd.f32 %v9137_v44, %v3436_v30 }
 0x513   :  { %5101 = vmatprep.subr.bf16.mxu0 %v9882_v38  ;;  %v3600_v38 = vadd.f32 %v9147_v2, %v3430_v28  ;;  %v3291_v28 = vpop.f32.mrb[165].mxu0  ;;  %v3439_v51 = vmul.f32 %v9166_v3, %v3285_v20  ;;  %v3858_v42 = vrot.slane %v9424_v63, 4  ;;  %v3608_v14 = vadd.f32 %v9147_v2, %v3438_v23 }
 0x514   :  { %4938 = vmatpush1.bf16.msra.mxu1 %v9883_v45  ;;  %v9885_v45 = vunpack.c.h.s8.bf16 %v9212_v19  ;;  %v3293_v24 = vpop.f32.mrb[166].mxu0  ;;  %v3607_v8 = vadd.f32 %v9155_v55, %v3437_v40  ;;  %v9886_v7 = vunpack.c.h.s8.bf16 %v9222_v13  ;;  %v3884_v54 = vrot.slane %v9436_v37, 4  ;;  %v9495_v13 = vld [vmem:[#allocation7 + $0x550] sm:$0xff] }
 0x515   :  { %v9487_v32 = vpop.f32.mrb[167].mxu0  ;;  %v3726_v30 = vmax.f32 %v3598_v61, 0.0  ;;  %v3734_v20 = vmax.f32 %v3606_v48, 0.0  ;;  %v3609_v19 = vadd.f32 %v9170_v43, %v3439_v51  ;;  %v3727_v58 = vmax.f32 %v3599_v57, 0.0 }
 0x516   :  { %5102 = vmatpush1.bf16.msra.mxu0 %v9884_v50  ;;  %4939 = vmatprep.subr.bf16.mxu1 %v9885_v45  ;;  %v3846_v50 = vadd.f32 %v3845_v33, %v3844_v53  ;;  %v3728_v45 = vmax.f32 %v3600_v38, 0.0  ;;  %v3736_v53 = vmax.f32 %v3608_v14, 0.0  ;;  %v3735_v33 = vmax.f32 %v3607_v8, 0.0  ;;  %v3073_v8 = vpop.f32.mrb[104].mxu1 }
 0x517   :  { %5103 = vmatprep.subr.bf16.mxu0 %v9886_v7  ;;  %v9888_v23 = vunpack.c.h.s8.bf16 %v9226_v47  ;;  %v9498_v40 = vadd.f32 %v3871_v62, %v9412_v41  ;;  %v3729_v7 = vmax.f32 %v3601_v21, 0.0  ;;  %v3942_v61 = vadd.f32 %v3734_v20, %v3726_v30  ;;  %v3075_v38 = vpop.f32.mrb[105].mxu1  ;;  %v3299_v41 = vpop.f32.mrb[168].mxu0 }
 0x518   :  { %4940 = vmatpush1.bf16.msra.mxu1 %v9887_v60  ;;  %v3737_v48 = vmax.f32 %v3609_v19, 0.0  ;;  %v9889_v51 = vunpack.c.l.s8.bf16 %v9263_v9  ;;  %v9890_v14 = vunpack.c.l.s8.bf16 %v9269_v34  ;;  %v3847_v5 = vrot.slane %v3846_v50, 2  ;;  %v9508_v21 = vpop.f32.mrb[106].mxu1 }
 0x519   :  { %v9505_v60 = vadd.f32 %v3858_v42, %v9424_v63  ;;  %v3968_v47 = vadd.f32 %v3736_v53, %v3728_v45  ;;  %v3955_v57 = vadd.f32 %v3735_v33, %v3727_v58  ;;  %v3444_v62 = vmul.f32 %v9133_v49, %v3063_v29  ;;  %v3301_v29 = vpop.f32.mrb[169].mxu0  ;;  %v9521_v45 = vpop.f32.mrb[107].mxu1 }
 0x51a   :  { %5104 = vmatpush1.bf16.msra.mxu0 %v9888_v23  ;;  %4941 = vmatprep.subr.bf16.mxu1 %v9889_v51  ;;  %v3981_v23 = vadd.f32 %v3737_v48, %v3729_v7  ;;  %v9513_v19 = vadd.f32 %v3884_v54, %v9436_v37  ;;  %v3446_v51 = vmul.f32 %v9141_v0, %v3289_v10  ;;  %v9891_v58 = vunpack.c.l.s8.bf16 %v9287_v59 }
 0x51b   :  { %5105 = vmatprep.subr.bf16.mxu0 %v9890_v14  ;;  %v3445_v63 = vmul.f32 %v9151_v31, %v3065_v56  ;;  %v9892_v42 = vunpack.c.l.s8.bf16 %v9290_v6  ;;  %v3873_v33 = vrot.slane %v9498_v40, 2  ;;  %v3614_v37 = vadd.f32 %v9137_v44, %v3444_v62  ;;  %v3303_v56 = vpop.f32.mrb[170].mxu0 }
 0x51c   :  { %4942 = vmatpush1.bf16.msra.mxu1 %v9891_v58  ;;  %v3447_v54 = vmul.f32 %v9166_v3, %v3291_v28  ;;  %v9893_v10 = vunpack.c.h.s8.bf16 %v9263_v9  ;;  %v9530_v48 = vadd.f32 %v3847_v5, %v3846_v50  ;;  %v3860_v14 = vrot.slane %v9505_v60, 2  ;;  %v9537_v62 = vpop.f32.mrb[171].mxu0 }
 0x51d   :  { %v3616_v58 = vadd.f32 %v9147_v2, %v3446_v51  ;;  %v9894_v53 = vunpack.c.h.s8.bf16 %v9269_v34  ;;  %v3742_v28 = vmax.f32 %v3614_v37, 0.0  ;;  %v3454_v50 = vmul.f32 %v9141_v0, %v3293_v24 }
 0x51e   :  { %5106 = vmatpush1.bf16.msra.mxu0 %v9892_v42  ;;  %4943 = vmatprep.subr.bf16.mxu1 %v9893_v10  ;;  %v3615_v42 = vadd.f32 %v9155_v55, %v3445_v63  ;;  %v3617_v9 = vadd.f32 %v9170_v43, %v3447_v54  ;;  %v3452_v10 = vmul.f32 %v9133_v49, %v9463_v52  ;;  %v9895_v34 = vunpack.c.h.s8.bf16 %v9287_v59 }
 0x51f   :  { %5107 = vmatprep.subr.bf16.mxu0 %v9894_v53  ;;  %v3744_v7 = vmax.f32 %v3616_v58, 0.0  ;;  %v3453_v51 = vmul.f32 %v9151_v31, %v9473_v25  ;;  %v9896_v63 = vunpack.c.h.s8.bf16 %v9290_v6  ;;  %v3943_v53 = vadd.f32 %v3942_v61, %v3742_v28 }
 0x520   :  { %v3743_v20 = vmax.f32 %v3615_v42, 0.0  ;;  %4944 = vmatpush1.bf16.msra.mxu1 %v9895_v34  ;;  %v3745_v37 = vmax.f32 %v3617_v9, 0.0  ;;  %v3622_v54 = vadd.f32 %v9137_v44, %v3452_v10  ;;  %v3624_v52 = vadd.f32 %v9147_v2, %v3454_v50  ;;  %v3083_v42 = vpop.f32.mrb[108].mxu1  ;;  %v3309_v34 = vpop.f32.mrb[172].mxu0 }
 0x521   :  { %v9897_v24 = vunpack.c.l.s8.bf16 %v9372_v35  ;;  %v9898_v58 = vunpack.c.l.s8.bf16 %v9380_v4  ;;  %v3969_v25 = vadd.f32 %v3968_v47, %v3744_v7  ;;  %v3623_v59 = vadd.f32 %v9155_v55, %v3453_v51  ;;  %v3085_v61 = vpop.f32.mrb[109].mxu1 }
 0x522   :  { %5108 = vmatpush1.bf16.msra.mxu0 %v9896_v63  ;;  %v3956_v5 = vadd.f32 %v3955_v57, %v3743_v20  ;;  %v3455_v6 = vmul.f32 %v9166_v3, %v9487_v32  ;;  %v3982_v28 = vadd.f32 %v3981_v23, %v3745_v37  ;;  %v3750_v9 = vmax.f32 %v3622_v54, 0.0  ;;  %v9560_v63 = vpop.f32.mrb[110].mxu1  ;;  %v3311_v23 = vpop.f32.mrb[173].mxu0 }
 0x523   :  { %4945 = vmatprep.subr.bf16.mxu1 %v9897_v24  ;;  %5109 = vmatprep.subr.bf16.mxu0 %v9898_v58  ;;  %v3752_v10 = vmax.f32 %v3624_v52, 0.0  ;;  %v3460_v50 = vmul.f32 %v9133_v49, %v3073_v8  ;;  %v3751_v24 = vmax.f32 %v3623_v59, 0.0  ;;  %v3462_v47 = vmul.f32 %v9141_v0, %v3299_v41  ;;  %v3089_v7 = vpop.f32.mrb[111].mxu1  ;;  %v3313_v41 = vpop.f32.mrb[174].mxu0 }
 0x524   :  { %v3625_v58 = vadd.f32 %v9170_v43, %v3455_v6  ;;  %v3461_v57 = vmul.f32 %v9151_v31, %v3075_v38  ;;  %v9899_v20 = vunpack.c.l.s8.bf16 %v9396_v36  ;;  %v9900_v32 = vunpack.c.l.s8.bf16 %v9400_v26  ;;  %v3315_v30 = vpop.f32.mrb[175].mxu0 }
 0x525   :  { %v3944_v51 = vadd.f32 %v3943_v53, %v3750_v9  ;;  %v3970_v8 = vadd.f32 %v3969_v25, %v3752_v10  ;;  %v3630_v37 = vadd.f32 %v9137_v44, %v3460_v50  ;;  %v3463_v54 = vmul.f32 %v9166_v3, %v3301_v29 }
 0x526   :  { %4946 = vmatpush1.bf16.msra.mxu1 %v9899_v20  ;;  %5110 = vmatpush1.bf16.msra.mxu0 %v9900_v32  ;;  %v9901_v52 = vunpack.c.h.s8.bf16 %v9372_v35  ;;  %v3957_v59 = vadd.f32 %v3956_v5, %v3751_v24  ;;  %v3753_v38 = vmax.f32 %v3625_v58, 0.0  ;;  %v3632_v6 = vadd.f32 %v9147_v2, %v3462_v47 }
 0x527   :  { %v3631_v20 = vadd.f32 %v9155_v55, %v3461_v57  ;;  %v9902_v32 = vunpack.c.h.s8.bf16 %v9380_v4  ;;  %v3758_v53 = vmax.f32 %v3630_v37, 0.0  ;;  %v3633_v25 = vadd.f32 %v9170_v43, %v3463_v54 }
 0x528   :  { %4947 = vmatprep.subr.bf16.mxu1 %v9901_v52  ;;  %v3468_v29 = vmul.f32 %v9133_v49, %v9508_v21  ;;  %v3470_v35 = vmul.f32 %v9141_v0, %v3303_v56  ;;  %v3983_v9 = vadd.f32 %v3982_v28, %v3753_v38  ;;  %v3760_v10 = vmax.f32 %v3632_v6, 0.0 }
 0x529   :  { %5111 = vmatprep.subr.bf16.mxu0 %v9902_v32  ;;  %v3759_v5 = vmax.f32 %v3631_v20, 0.0  ;;  %v3469_v50 = vmul.f32 %v9151_v31, %v9521_v45  ;;  %v9903_v24 = vunpack.c.h.s8.bf16 %v9396_v36  ;;  %v9904_v4 = vunpack.c.h.s8.bf16 %v9400_v26 }
 0x52a   :  { %v3945_v58 = vadd.f32 %v3944_v51, %v3758_v53  ;;  %v3761_v47 = vmax.f32 %v3633_v25, 0.0  ;;  %v3638_v57 = vadd.f32 %v9137_v44, %v3468_v29  ;;  %v3640_v21 = vadd.f32 %v9147_v2, %v3470_v35 }
 0x52b   :  { %4948 = vmatpush1.bf16.msra.mxu1 %v9903_v24  ;;  %5112 = vmatpush1.bf16.msra.mxu0 %v9904_v4  ;;  %v9905_v56 = vunpack.c.l.s8.bf16 %v9410_v15  ;;  %v9906_v28 = vunpack.c.l.s8.bf16 %v9420_v39  ;;  %v3971_v37 = vadd.f32 %v3970_v8, %v3760_v10  ;;  %v3958_v45 = vadd.f32 %v3957_v59, %v3759_v5 }
 0x52c   :  { %v3639_v36 = vadd.f32 %v9155_v55, %v3469_v50  ;;  %v3471_v26 = vmul.f32 %v9166_v3, %v9537_v62  ;;  %v3984_v54 = vadd.f32 %v3983_v9, %v3761_v47  ;;  %v3766_v51 = vmax.f32 %v3638_v57, 0.0 }
 0x52d   :  { %4949 = vmatprep.subr.bf16.mxu1 %v9905_v56  ;;  %5113 = vmatprep.subr.bf16.mxu0 %v9906_v28  ;;  %v3768_v52 = vmax.f32 %v3640_v21, 0.0  ;;  %v3476_v38 = vmul.f32 %v9133_v49, %v3083_v42  ;;  %v3478_v32 = vmul.f32 %v9141_v0, %v3309_v34  ;;  %v3477_v53 = vmul.f32 %v9151_v31, %v3085_v61 }
 0x52e   :  { %v3767_v6 = vmax.f32 %v3639_v36, 0.0  ;;  %v3641_v20 = vadd.f32 %v9170_v43, %v3471_v26  ;;  %v9907_v8 = vunpack.c.l.s8.bf16 %v9422_v17  ;;  %v9908_v59 = vunpack.c.l.s8.bf16 %v9428_v18 }
 0x52f   :  { %v3946_v25 = vadd.f32 %v3945_v58, %v3766_v51  ;;  %v3972_v62 = vadd.f32 %v3971_v37, %v3768_v52  ;;  %v3646_v29 = vadd.f32 %v9137_v44, %v3476_v38  ;;  %v3479_v35 = vmul.f32 %v9166_v3, %v3311_v23 }
 0x530   :  { %4950 = vmatpush1.bf16.msra.mxu1 %v9907_v8  ;;  %5114 = vmatpush1.bf16.msra.mxu0 %v9908_v59  ;;  %v9909_v42 = vunpack.c.h.s8.bf16 %v9410_v15  ;;  %v3959_v9 = vadd.f32 %v3958_v45, %v3767_v6  ;;  %v3769_v10 = vmax.f32 %v3641_v20, 0.0  ;;  %v3648_v34 = vadd.f32 %v9147_v2, %v3478_v32  ;;  %v4188_v32 = vld [vmem:[#allocation7 + $0x590] sm:$0xff] }
 0x531   :  { %v3647_v61 = vadd.f32 %v9155_v55, %v3477_v53  ;;  %v9910_v5 = vunpack.c.h.s8.bf16 %v9420_v39  ;;  %v3774_v50 = vmax.f32 %v3646_v29, 0.0  ;;  %v3649_v24 = vadd.f32 %v9170_v43, %v3479_v35 }
 0x532   :  { %4951 = vmatprep.subr.bf16.mxu1 %v9909_v42  ;;  %v3484_v4 = vmul.f32 %v9133_v49, %v9560_v63  ;;  %v3486_v23 = vmul.f32 %v9141_v0, %v3313_v41  ;;  %v3985_v58 = vadd.f32 %v3984_v54, %v3769_v10  ;;  %v3776_v15 = vmax.f32 %v3648_v34, 0.0  ;;  %v4189_v41 = vld [vmem:[#allocation7 + $0x598] sm:$0xff]  ;;  %v9632_v54 = vld [vmem:[#allocation7 + $0x580] sm:$0xff] }
 0x533   :  { %5115 = vmatprep.subr.bf16.mxu0 %v9910_v5  ;;  %v3775_v47 = vmax.f32 %v3647_v61, 0.0  ;;  %v3485_v57 = vmul.f32 %v9151_v31, %v3089_v7  ;;  %v9911_v21 = vunpack.c.h.s8.bf16 %v9422_v17  ;;  %v9912_v56 = vunpack.c.h.s8.bf16 %v9428_v18  ;;  %v4187_v18 = vld [vmem:[#allocation7 + $0x588] sm:$0xff] }
 0x534   :  { %v3947_v39 = vadd.f32 %v3946_v25, %v3774_v50  ;;  %v3777_v28 = vmax.f32 %v3649_v24, 0.0  ;;  %v3654_v37 = vadd.f32 %v9137_v44, %v3484_v4  ;;  %v3656_v45 = vadd.f32 %v9147_v2, %v3486_v23 }
 0x535   :  { %4952 = vmatpush1.bf16.msra.mxu1 %v9911_v21  ;;  %5116 = vmatpush1.bf16.msra.mxu0 %v9912_v56  ;;  %v9913_v49 = vunpack.c.l.s8.bf16 %v9434_v22  ;;  %v9914_v0 = vunpack.c.l.s8.bf16 %v9445_v11  ;;  %v3973_v63 = vadd.f32 %v3972_v62, %v3776_v15  ;;  %v3960_v31 = vadd.f32 %v3959_v9, %v3775_v47  ;;  %v4197_v15 = vld [vmem:[#allocation7 + $0x5d8] sm:$0xff]  ;;  %v9656_v56 = vld [vmem:[#allocation7 + $0x5c0] sm:$0xff] }
 0x536   :  { %v3655_v17 = vadd.f32 %v9155_v55, %v3485_v57  ;;  %v3487_v7 = vmul.f32 %v9166_v3, %v3315_v30  ;;  %v3874_v44 = vadd.f32 %v3873_v33, %v9498_v40  ;;  %v3986_v36 = vadd.f32 %v3985_v58, %v3777_v28  ;;  %v4195_v58 = vld [vmem:[#allocation7 + $0x5c8] sm:$0xff] }
 0x537   :  { %4953 = vmatprep.subr.bf16.mxu1 %v9913_v49  ;;  %5117 = vmatprep.subr.bf16.mxu0 %v9914_v0  ;;  %v3782_v2 = vmax.f32 %v3654_v37, 0.0  ;;  %v3784_v26 = vmax.f32 %v3656_v45, 0.0  ;;  %v3861_v51 = vadd.f32 %v3860_v14, %v9505_v60  ;;  %v9915_v3 = vunpack.c.l.s8.bf16 %v9455_v12 }
 0x538   :  { %v3783_v52 = vmax.f32 %v3655_v17, 0.0  ;;  %v3657_v55 = vadd.f32 %v9170_v43, %v3487_v7  ;;  %v9916_v30 = vunpack.c.l.s8.bf16 %v9495_v13  ;;  %v4612_v40 = vunpack.c.h.s8.bf16 %v9495_v13  ;;  %v4196_v17 = vld [vmem:[#allocation7 + $0x5d0] sm:$0xff] }
 0x539   :  { %4954 = vmatpush1.bf16.msra.mxu1 %v9915_v3  ;;  %v3948_v33 = vadd.f32 %v3947_v39, %v3782_v2  ;;  %v3974_v38 = vadd.f32 %v3973_v63, %v3784_v26  ;;  %v9917_v6 = vunpack.c.h.s8.bf16 %v9434_v22  ;;  %v9918_v20 = vunpack.c.h.s8.bf16 %v9445_v11 }
 0x53a   :  { %5118 = vmatpush1.bf16.msra.mxu0 %v9916_v30  ;;  %v4619_v60 = vunpack.c.l.s8.bf16 %v4187_v18  ;;  %v4621_v14 = vunpack.c.l.s8.bf16 %v4189_v41  ;;  %v9919_v43 = vrot.slane %v9513_v19, 2  ;;  %v3961_v8 = vadd.f32 %v3960_v31, %v3783_v52 }
 0x53b   :  { %4955 = vmatprep.subr.bf16.mxu1 %v9917_v6  ;;  %5119 = vmatprep.subr.bf16.mxu0 %v9918_v20  ;;  %v3785_v59 = vmax.f32 %v3657_v55, 0.0  ;;  %v4618_v25 = vunpack.c.l.s8.bf16 %v9632_v54  ;;  %v3849_v13 = vrot.slane %v9530_v48, 1  ;;  %v3875_v62 = vrot.slane %v3874_v44, 1 }
 0x53c   :  { %v3887_v53 = vadd.f32 %v9919_v43, %v9513_v19  ;;  %v3949_v29 = vrot.slane %v3948_v33, 4  ;;  %v3975_v22 = vrot.slane %v3974_v38, 4  ;;  %v3862_v35 = vrot.slane %v3861_v51, 1 }
 0x53d   :  { %v3962_v42 = vrot.slane %v3961_v8, 4  ;;  %v3987_v11 = vadd.f32 %v3986_v36, %v3785_v59  ;;  %v9920_v9 = vunpack.c.h.s8.bf16 %v9455_v12  ;;  %v4620_v10 = vunpack.c.l.s8.bf16 %v4188_v32 }
 0x53e   :  { %5120 = vmatpush1.bf16.msra.mxu0 %v4612_v40  ;;  %v3950_v34 = vadd.f32 %v3949_v29, %v3948_v33  ;;  %v3976_v61 = vadd.f32 %v3975_v22, %v3974_v38  ;;  %v4627_v19 = vunpack.c.h.s8.bf16 %v4187_v18  ;;  %v4629_v5 = vunpack.c.h.s8.bf16 %v4189_v41 }
 0x53f   :  { %4956 = vmatpush1.bf16.msra.mxu1 %v9920_v9  ;;  %5121 = vmatprep.subr.bf16.mxu0 %v4621_v14  ;;  %v3888_v50 = vrot.slane %v3887_v53, 1  ;;  %v3963_v24 = vadd.f32 %v3962_v42, %v3961_v8  ;;  %v3988_v4 = vrot.slane %v3987_v11, 4  ;;  %v4626_v23 = vunpack.c.h.s8.bf16 %v9632_v54  ;;  %v9660_v14 = vld [vmem:[#allocation7 + $0x608] sm:$0xff] }
 0x540   :  { %4957 = vmatprep.subr.bf16.mxu1 %v4619_v60  ;;  %v3850_v47 = vadd.f32 %v3849_v13, %v9530_v48  ;;  %v3876_v57 = vadd.f32 %v3875_v62, %v3874_v44  ;;  %v3951_v12 = vrot.slane %v3950_v34, 2  ;;  %v3977_v21 = vrot.slane %v3976_v61, 2 }
 0x541   :  { %v3863_v39 = vadd.f32 %v3862_v35, %v3861_v51  ;;  %v3964_v28 = vrot.slane %v3963_v24, 2  ;;  %v3989_v37 = vadd.f32 %v3988_v4, %v3987_v11  ;;  %v4628_v45 = vunpack.c.h.s8.bf16 %v4188_v32  ;;  %v9662_v32 = vld [vmem:[#allocation7 + $0x618] sm:$0xff] }
 0x542   :  { %5122 = vmatpush1.bf16.msra.mxu0 %v4620_v10  ;;  %v3952_v49 = vadd.f32 %v3951_v12, %v3950_v34  ;;  %v3978_v0 = vadd.f32 %v3977_v21, %v3976_v61  ;;  %v4635_v63 = vunpack.c.l.s8.bf16 %v4195_v58  ;;  %v4637_v31 = vunpack.c.l.s8.bf16 %v4197_v15 }
 0x543   :  { %4958 = vmatpush1.bf16.msra.mxu1 %v4618_v25  ;;  %5123 = vmatprep.subr.bf16.mxu0 %v4629_v5  ;;  %v3889_v7 = vadd.f32 %v3888_v50, %v3887_v53  ;;  %v3965_v48 = vadd.f32 %v3964_v28, %v3963_v24  ;;  %v3990_v18 = vrot.slane %v3989_v37, 2  ;;  %v4634_v41 = vunpack.c.l.s8.bf16 %v9656_v56 }
 0x544   :  { %4959 = vmatprep.subr.bf16.mxu1 %v4627_v19  ;;  %v3998_v44 = vmul.f32 0.015625, %v3850_v47  ;;  %v4000_v36 = vmul.f32 0.015625, %v3876_v57  ;;  %v3953_v2 = vrot.slane %v3952_v49, 1  ;;  %v3979_v26 = vrot.slane %v3978_v0, 1 }
 0x545   :  { %v3999_v54 = vmul.f32 0.015625, %v3863_v39  ;;  %v3966_v51 = vrot.slane %v3965_v48, 1  ;;  %v3991_v52 = vadd.f32 %v3990_v18, %v3989_v37  ;;  %v4636_v55 = vunpack.c.l.s8.bf16 %v4196_v17 }
 0x546   :  { %5124 = vmatpush1.bf16.msra.mxu0 %v4628_v45  ;;  %v3954_v3 = vadd.f32 %v3953_v2, %v3952_v49  ;;  %v3980_v30 = vadd.f32 %v3979_v26, %v3978_v0  ;;  %v4643_v40 = vunpack.c.h.s8.bf16 %v4195_v58  ;;  %v4645_v33 = vunpack.c.h.s8.bf16 %v4197_v15  ;;  %v4202_v58 = vld [vmem:[#allocation7 + $0x600] sm:$0xff]  ;;  %v4204_v15 = vld [vmem:[#allocation7 + $0x610] sm:$0xff] }
 0x547   :  { %4960 = vmatpush1.bf16.msra.mxu1 %v4626_v23  ;;  %5125 = vmatprep.subr.bf16.mxu0 %v4637_v31  ;;  %v4001_v38 = vmul.f32 0.015625, %v3889_v7  ;;  %v3967_v6 = vadd.f32 %v3966_v51, %v3965_v48  ;;  %v3992_v20 = vrot.slane %v3991_v52, 1  ;;  %v4642_v60 = vunpack.c.h.s8.bf16 %v9656_v56  ;;  %v4211_v31 = vld [vmem:[#allocation7 + $0x648] sm:$0xff]  ;;  %v4212_v2 = vld [vmem:[#allocation7 + $0x650] sm:$0xff] }
 0x548   :  { %4961 = vmatprep.subr.bf16.mxu1 %v4635_v63  ;;  %v4782_v43 = vpack.c.bf16 %v3998_v44, %v3998_v44  ;;  %v4784_v53 = vpack.c.bf16 %v4000_v36, %v4000_v36  ;;  %v4006_v8 = vmul.f32 0.015625, %v3954_v3  ;;  %v4008_v59 = vmul.f32 0.015625, %v3980_v30  ;;  %v4210_v36 = vld [vmem:[#allocation7 + $0x640] sm:$0xff]  ;;  %v4221_v3 = vld [vmem:[#allocation7 + $0x698] sm:$0xff] }
 0x549   :  { %v4783_v25 = vpack.c.bf16 %v3999_v54, %v3999_v54  ;;  %v4007_v13 = vmul.f32 0.015625, %v3967_v6  ;;  %v3993_v62 = vadd.f32 %v3992_v20, %v3991_v52  ;;  %v4644_v29 = vunpack.c.h.s8.bf16 %v4196_v17  ;;  %v4213_v17 = vld [vmem:[#allocation7 + $0x658] sm:$0xff]  ;;  %v4218_v6 = vld [vmem:[#allocation7 + $0x680] sm:$0xff]  ;;  %v4220_v20 = vld [vmem:[#allocation7 + $0x690] sm:$0xff] }
 0x54a   :  { %5126 = vmatpush1.bf16.msra.mxu0 %v4636_v55  ;;  %v4790_v22 = vpack.c.bf16 %v4006_v8, %v4006_v8  ;;  %v4792_v35 = vpack.c.bf16 %v4008_v59, %v4008_v59  ;;  %v4651_v42 = vunpack.c.l.s8.bf16 %v9660_v14  ;;  %v4653_v11 = vunpack.c.l.s8.bf16 %v9662_v32  ;;  %v4219_v55 = vld [vmem:[#allocation7 + $0x688] sm:$0xff]  ;;  %v4229_v8 = vld [vmem:[#allocation7 + $0x6d8] sm:$0xff] }
 0x54b   :  { %4962 = vmatpush1.bf16.msra.mxu1 %v4634_v41  ;;  %5127 = vmatprep.subr.bf16.mxu0 %v4645_v33  ;;  %v4785_v9 = vpack.c.bf16 %v4001_v38, %v4001_v38  ;;  %v4791_v10 = vpack.c.bf16 %v4007_v13, %v4007_v13  ;;  %v4009_v34 = vmul.f32 0.015625, %v3993_v62  ;;  %v4814_v61 = vunpack.c.l.b16 %v4782_v43 }
 0x54c   :  { %4963 = vmatprep.subr.bf16.mxu1 %v4643_v40  ;;  %v4822_v19 = vunpack.c.l.b16 %v4790_v22  ;;  %v4816_v5 = vunpack.c.l.b16 %v4784_v53  ;;  %v4824_v50 = vunpack.c.l.b16 %v4792_v35  ;;  %v4815_v4 = vunpack.c.l.b16 %v4783_v25  ;;  %v4227_v53 = vld [vmem:[#allocation7 + $0x6c8] sm:$0xff]  ;;  %v4228_v22 = vld [vmem:[#allocation7 + $0x6d0] sm:$0xff] }
 0x54d   :  { %v4793_v24 = vpack.c.bf16 %v4009_v34, %v4009_v34  ;;  %v4823_v23 = vunpack.c.l.b16 %v4791_v10  ;;  %v4817_v21 = vunpack.c.l.b16 %v4785_v9  ;;  %v4650_v28 = vunpack.c.l.s8.bf16 %v4202_v58  ;;  %v4235_v10 = vld [vmem:[#allocation7 + $0x708] sm:$0xff]  ;;  %v4237_v34 = vld [vmem:[#allocation7 + $0x718] sm:$0xff] }
 0x54e   :  { %5128 = vmatpush1.bf16.msra.mxu0 %v4644_v29  ;;  %v4831_v47 = vsel %vm4826_vm4, %v4822_v19, %v4814_v61  ;;  %v9668_v57 = vsel %vm4826_vm4, %v4824_v50, %v4816_v5  ;;  %v4652_v37 = vunpack.c.l.s8.bf16 %v4204_v15  ;;  %v4659_v0 = vunpack.c.h.s8.bf16 %v9660_v14  ;;  %v4226_v29 = vld [vmem:[#allocation7 + $0x6c0] sm:$0xff] }
 0x54f   :  { %4964 = vmatpush1.bf16.msra.mxu1 %v4642_v60  ;;  %5138 = vmatprep.subr.bf16.mxu0 %v4653_v11  ;;  %v4832_v12 = vsel %vm4826_vm4, %v4823_v23, %v4815_v4  ;;  %v4825_v56 = vunpack.c.l.b16 %v4793_v24  ;;  %v9673_v45 = vpack.c.b16 %v4831_v47, %v4831_v47  ;;  %v4661_v63 = vunpack.c.h.s8.bf16 %v9662_v32  ;;  %v4234_v24 = vld [vmem:[#allocation7 + $0x700] sm:$0xff]  ;;  %v4236_v4 = vld [vmem:[#allocation7 + $0x710] sm:$0xff] }
 0x550   :  { %4974 = vmatprep.subr.bf16.mxu1 %v4651_v42  ;;  %v9671_v39 = vpack.c.b16 %v4832_v12, %v4832_v12  ;;  %v4658_v48 = vunpack.c.h.s8.bf16 %v4202_v58  ;;  %v4660_v18 = vunpack.c.h.s8.bf16 %v4204_v15  ;;  %v4667_v41 = vunpack.c.l.s8.bf16 %v4211_v31  ;;  %v4243_v12 = vld [vmem:[#allocation7 + $0x748] sm:$0xff] }
 0x551   :  { %v4834_v49 = vsel %vm4826_vm4, %v4825_v56, %v4817_v21  ;;  %v4669_v44 = vunpack.c.l.s8.bf16 %v4213_v17  ;;  %v4666_v26 = vunpack.c.l.s8.bf16 %v4210_v36  ;;  %v4668_v54 = vunpack.c.l.s8.bf16 %v4212_v2  ;;  %v4245_v21 = vld [vmem:[#allocation7 + $0x758] sm:$0xff] }
 0x552   :  { %4965 = vmatprep.mubr.bf16.mxu1 %v9671_v39  ;;  %5129 = vmatprep.mubr.bf16.mxu0 %v9671_v39  ;;  %v9682_v7 = vpack.c.b16 %v4834_v49, %v4834_v49  ;;  %v4675_v51 = vunpack.c.h.s8.bf16 %v4211_v31  ;;  %v4677_v52 = vunpack.c.h.s8.bf16 %v4213_v17  ;;  %v4674_v30 = vunpack.c.h.s8.bf16 %v4210_v36 }
 0x553   :  { %4966 = vmatmul.mubr.bf16.vlgmr.msra.gmra.mrb[112].mxu1 %v9673_v45  ;;  %5130 = vmatmul.mubr.bf16.vlgmr.msra.gmra.mrb[176].mxu0 %v9673_v45  ;;  %v4676_v40 = vunpack.c.h.s8.bf16 %v4212_v2  ;;  %v4683_v33 = vunpack.c.l.s8.bf16 %v4219_v55  ;;  %v4685_v38 = vunpack.c.l.s8.bf16 %v4221_v3  ;;  %v4682_v60 = vunpack.c.l.s8.bf16 %v4218_v6 }
 0x554   :  { %4975 = vmatpush1.bf16.msra.mxu1 %v4650_v28  ;;  %5139 = vmatpush1.bf16.msra.mxu0 %v4652_v37  ;;  %v4684_v14 = vunpack.c.l.s8.bf16 %v4220_v20  ;;  %v4691_v32 = vunpack.c.h.s8.bf16 %v4219_v55  ;;  %v4693_v43 = vunpack.c.h.s8.bf16 %v4221_v3  ;;  %v4690_v59 = vunpack.c.h.s8.bf16 %v4218_v6 }
 0x555   :  { %5006 = vmatprep.mubr.bf16.mxu1 %v9682_v7  ;;  %5170 = vmatprep.mubr.bf16.mxu0 %v9682_v7  ;;  %v4692_v25 = vunpack.c.h.s8.bf16 %v4220_v20  ;;  %v4699_v13 = vunpack.c.l.s8.bf16 %v4227_v53  ;;  %v4701_v62 = vunpack.c.l.s8.bf16 %v4229_v8  ;;  %v4698_v35 = vunpack.c.l.s8.bf16 %v4226_v29 }
 0x556   :  { %4976 = vmatprep.subr.bf16.mxu1 %v4659_v0  ;;  %5140 = vmatprep.subr.bf16.mxu0 %v4661_v63  ;;  %v4700_v42 = vunpack.c.l.s8.bf16 %v4228_v22  ;;  %v4707_v11 = vunpack.c.h.s8.bf16 %v4227_v53  ;;  %v4709_v9 = vunpack.c.h.s8.bf16 %v4229_v8  ;;  %v4706_v61 = vunpack.c.h.s8.bf16 %v4226_v29  ;;  %v4242_v0 = vld [vmem:[#allocation7 + $0x740] sm:$0xff]  ;;  %v4244_v63 = vld [vmem:[#allocation7 + $0x750] sm:$0xff] }
 0x557   :  { %v4708_v19 = vunpack.c.h.s8.bf16 %v4228_v22  ;;  %v4715_v5 = vunpack.c.l.s8.bf16 %v4235_v10  ;;  %v4717_v50 = vunpack.c.l.s8.bf16 %v4237_v34  ;;  %v4714_v23 = vunpack.c.l.s8.bf16 %v4234_v24 }
 0x558   :  { %4977 = vmatpush1.bf16.msra.mxu1 %v4658_v48  ;;  %5141 = vmatpush1.bf16.msra.mxu0 %v4660_v18  ;;  %v4716_v58 = vunpack.c.l.s8.bf16 %v4236_v4  ;;  %v4723_v15 = vunpack.c.h.s8.bf16 %v4235_v10  ;;  %v4725_v47 = vunpack.c.h.s8.bf16 %v4237_v34  ;;  %v4722_v56 = vunpack.c.h.s8.bf16 %v4234_v24  ;;  %v4025_v24 = vld [vmem:[#allocation7 + $0x78] sm:$0xff] }
 0x559   :  { %4978 = vmatprep.subr.bf16.mxu1 %v4667_v41  ;;  %5142 = vmatprep.subr.bf16.mxu0 %v4669_v44  ;;  %v4724_v28 = vunpack.c.h.s8.bf16 %v4236_v4  ;;  %v4731_v37 = vunpack.c.l.s8.bf16 %v4243_v12  ;;  %v4733_v49 = vunpack.c.l.s8.bf16 %v4245_v21  ;;  %v4730_v31 = vunpack.c.l.s8.bf16 %v4242_v0  ;;  %v4251_v41 = vld [vmem:[#allocation7 + $0x788] sm:$0xff]  ;;  %v4253_v44 = vld [vmem:[#allocation7 + $0x798] sm:$0xff] }
 0x55a   :  { %v4732_v17 = vunpack.c.l.s8.bf16 %v4244_v63  ;;  %v4739_v48 = vunpack.c.h.s8.bf16 %v4243_v12  ;;  %v4741_v18 = vunpack.c.h.s8.bf16 %v4245_v21  ;;  %v4738_v36 = vunpack.c.h.s8.bf16 %v4242_v0 }
 0x55b   :  { %v4740_v2 = vunpack.c.h.s8.bf16 %v4244_v63  ;;  %v9688_v34 = vpack.c.b16 %v9668_v57, %v9668_v57 }
 0x55c   :  { %4979 = vmatpush1.bf16.msra.mxu1 %v4666_v26  ;;  %5143 = vmatpush1.bf16.msra.mxu0 %v4668_v54  ;;  %v4747_v26 = vunpack.c.l.s8.bf16 %v4251_v41  ;;  %v4749_v54 = vunpack.c.l.s8.bf16 %v4253_v44 }
 0x55d   :  { %4980 = vmatprep.subr.bf16.mxu1 %v4675_v51  ;;  %5144 = vmatprep.subr.bf16.mxu0 %v4677_v52  ;;  %v4250_v51 = vld [vmem:[#allocation7 + $0x780] sm:$0xff]  ;;  %v4252_v52 = vld [vmem:[#allocation7 + $0x790] sm:$0xff] }
 0x55e   :  { %v4746_v55 = vunpack.c.l.s8.bf16 %v4250_v51  ;;  %v4748_v3 = vunpack.c.l.s8.bf16 %v4252_v52  ;;  %v4754_v6 = vunpack.c.h.s8.bf16 %v4250_v51  ;;  %v4756_v20 = vunpack.c.h.s8.bf16 %v4252_v52 }
 0x560   :  { %4981 = vmatpush1.bf16.msra.mxu1 %v4674_v30  ;;  %5145 = vmatpush1.bf16.msra.mxu0 %v4676_v40  ;;  %v4755_v30 = vunpack.c.h.s8.bf16 %v4251_v41  ;;  %v4757_v40 = vunpack.c.h.s8.bf16 %v4253_v44 }
 0x561   :  { %4982 = vmatprep.subr.bf16.mxu1 %v4683_v33  ;;  %5146 = vmatprep.subr.bf16.mxu0 %v4685_v38  ;;  %v4259_v33 = vld [vmem:[#allocation7 + $0x7c8] sm:$0xff]  ;;  %v4261_v38 = vld [vmem:[#allocation7 + $0x7d8] sm:$0xff] }
 0x564   :  { %4983 = vmatpush1.bf16.msra.mxu1 %v4682_v60  ;;  %5147 = vmatpush1.bf16.msra.mxu0 %v4684_v14  ;;  %v4763_v60 = vunpack.c.l.s8.bf16 %v4259_v33  ;;  %v4765_v14 = vunpack.c.l.s8.bf16 %v4261_v38 }
 0x565   :  { %4984 = vmatprep.subr.bf16.mxu1 %v4691_v32  ;;  %5148 = vmatprep.subr.bf16.mxu0 %v4693_v43  ;;  %v4258_v32 = vld [vmem:[#allocation7 + $0x7c0] sm:$0xff]  ;;  %v4260_v43 = vld [vmem:[#allocation7 + $0x7d0] sm:$0xff] }
 0x566   :  { %v4762_v53 = vunpack.c.l.s8.bf16 %v4258_v32  ;;  %v4764_v8 = vunpack.c.l.s8.bf16 %v4260_v43  ;;  %v4770_v29 = vunpack.c.h.s8.bf16 %v4258_v32  ;;  %v4772_v22 = vunpack.c.h.s8.bf16 %v4260_v43 }
 0x568   :  { %4985 = vmatpush1.bf16.msra.mxu1 %v4690_v59  ;;  %5149 = vmatpush1.bf16.msra.mxu0 %v4692_v25  ;;  %v4771_v59 = vunpack.c.h.s8.bf16 %v4259_v33  ;;  %v4773_v25 = vunpack.c.h.s8.bf16 %v4261_v38 }
 0x569   :  { %4986 = vmatprep.subr.bf16.mxu1 %v4699_v13  ;;  %5150 = vmatprep.subr.bf16.mxu0 %v4701_v62  ;;  %v4015_v13 = vld [vmem:[#allocation7 + $0x28] sm:$0xff]  ;;  %v4017_v62 = vld [vmem:[#allocation7 + $0x38] sm:$0xff] }
 0x56c   :  { %4987 = vmatpush1.bf16.msra.mxu1 %v4698_v35  ;;  %5151 = vmatpush1.bf16.msra.mxu0 %v4700_v42  ;;  %v4271_v35 = vunpack.c.l.s8.bf16 %v4015_v13  ;;  %v4273_v42 = vunpack.c.l.s8.bf16 %v4017_v62 }
 0x56d   :  { %4988 = vmatprep.subr.bf16.mxu1 %v4707_v11  ;;  %5152 = vmatprep.subr.bf16.mxu0 %v4709_v9  ;;  %v4014_v11 = vld [vmem:[#allocation7 + $0x20] sm:$0xff]  ;;  %v4016_v9 = vld [vmem:[#allocation7 + $0x30] sm:$0xff] }
 0x56e   :  { %v4270_v10 = vunpack.c.l.s8.bf16 %v4014_v11  ;;  %v4278_v4 = vunpack.c.h.s8.bf16 %v4014_v11  ;;  %v4280_v57 = vunpack.c.h.s8.bf16 %v4016_v9 }
 0x570   :  { %4989 = vmatpush1.bf16.msra.mxu1 %v4706_v61  ;;  %5153 = vmatpush1.bf16.msra.mxu0 %v4708_v19  ;;  %v4272_v61 = vunpack.c.l.s8.bf16 %v4016_v9  ;;  %v4279_v19 = vunpack.c.h.s8.bf16 %v4015_v13 }
 0x571   :  { %4990 = vmatprep.subr.bf16.mxu1 %v4715_v5  ;;  %5154 = vmatprep.subr.bf16.mxu0 %v4717_v50  ;;  %v4281_v5 = vunpack.c.h.s8.bf16 %v4017_v62  ;;  %v4023_v50 = vld [vmem:[#allocation7 + $0x68] sm:$0xff] }
 0x574   :  { %4991 = vmatpush1.bf16.msra.mxu1 %v4714_v23  ;;  %5155 = vmatpush1.bf16.msra.mxu0 %v4716_v58  ;;  %v4287_v23 = vunpack.c.l.s8.bf16 %v4023_v50  ;;  %v4022_v58 = vld [vmem:[#allocation7 + $0x60] sm:$0xff] }
 0x575   :  { %4992 = vmatprep.subr.bf16.mxu1 %v4723_v15  ;;  %5156 = vmatprep.subr.bf16.mxu0 %v4725_v47  ;;  %v4289_v15 = vunpack.c.l.s8.bf16 %v4025_v24  ;;  %v4024_v47 = vld [vmem:[#allocation7 + $0x70] sm:$0xff]  ;;  %v4286_v12 = vunpack.c.l.s8.bf16 %v4022_v58  ;;  %v4294_v0 = vunpack.c.h.s8.bf16 %v4022_v58 }
 0x576   :  { %v4288_v21 = vunpack.c.l.s8.bf16 %v4024_v47 }
 0x578   :  { %4993 = vmatpush1.bf16.msra.mxu1 %v4722_v56  ;;  %5157 = vmatpush1.bf16.msra.mxu0 %v4724_v28  ;;  %v4295_v56 = vunpack.c.h.s8.bf16 %v4023_v50  ;;  %v4297_v28 = vunpack.c.h.s8.bf16 %v4025_v24 }
 0x579   :  { %4994 = vmatprep.subr.bf16.mxu1 %v4731_v37  ;;  %5158 = vmatprep.subr.bf16.mxu0 %v4733_v49  ;;  %v4031_v37 = vld [vmem:[#allocation7 + $0xa8] sm:$0xff]  ;;  %v4033_v49 = vld [vmem:[#allocation7 + $0xb8] sm:$0xff] }
 0x57a   :  { %v4303_v63 = vunpack.c.l.s8.bf16 %v4031_v37  ;;  %v4311_v44 = vunpack.c.h.s8.bf16 %v4031_v37 }
 0x57c   :  { %4995 = vmatpush1.bf16.msra.mxu1 %v4730_v31  ;;  %5159 = vmatpush1.bf16.msra.mxu0 %v4732_v17  ;;  %v4030_v31 = vld [vmem:[#allocation7 + $0xa0] sm:$0xff]  ;;  %v4305_v17 = vunpack.c.l.s8.bf16 %v4033_v49 }
 0x57d   :  { %4996 = vmatprep.subr.bf16.mxu1 %v4739_v48  ;;  %5160 = vmatprep.subr.bf16.mxu0 %v4741_v18  ;;  %v4032_v48 = vld [vmem:[#allocation7 + $0xb0] sm:$0xff]  ;;  %v4302_v18 = vunpack.c.l.s8.bf16 %v4030_v31 }
 0x57e   :  { %v4304_v41 = vunpack.c.l.s8.bf16 %v4032_v48  ;;  %v4312_v51 = vunpack.c.h.s8.bf16 %v4032_v48 }
 0x580   :  { %4997 = vmatpush1.bf16.msra.mxu1 %v4738_v36  ;;  %5161 = vmatpush1.bf16.msra.mxu0 %v4740_v2  ;;  %v4313_v36 = vunpack.c.h.s8.bf16 %v4033_v49  ;;  %v4039_v2 = vld [vmem:[#allocation7 + $0xe8] sm:$0xff] }
 0x581   :  { %4998 = vmatprep.subr.bf16.mxu1 %v4747_v26  ;;  %5162 = vmatprep.subr.bf16.mxu0 %v4749_v54  ;;  %v4041_v26 = vld [vmem:[#allocation7 + $0xf8] sm:$0xff]  ;;  %v4310_v54 = vunpack.c.h.s8.bf16 %v4030_v31  ;;  %v4319_v52 = vunpack.c.l.s8.bf16 %v4039_v2  ;;  %v4327_v38 = vunpack.c.h.s8.bf16 %v4039_v2 }
 0x584   :  { %4999 = vmatpush1.bf16.msra.mxu1 %v4746_v55  ;;  %5163 = vmatpush1.bf16.msra.mxu0 %v4748_v3  ;;  %v4038_v55 = vld [vmem:[#allocation7 + $0xe0] sm:$0xff]  ;;  %v4321_v3 = vunpack.c.l.s8.bf16 %v4041_v26 }
 0x585   :  { %5000 = vmatprep.subr.bf16.mxu1 %v4755_v30  ;;  %5164 = vmatprep.subr.bf16.mxu0 %v4757_v40  ;;  %v4040_v30 = vld [vmem:[#allocation7 + $0xf0] sm:$0xff]  ;;  %v4318_v40 = vunpack.c.l.s8.bf16 %v4038_v55 }
 0x586   :  { %v4320_v33 = vunpack.c.l.s8.bf16 %v4040_v30  ;;  %v4328_v32 = vunpack.c.h.s8.bf16 %v4040_v30 }
 0x588   :  { %5001 = vmatpush1.bf16.msra.mxu1 %v4754_v6  ;;  %5165 = vmatpush1.bf16.msra.mxu0 %v4756_v20  ;;  %v4329_v6 = vunpack.c.h.s8.bf16 %v4041_v26  ;;  %v4047_v20 = vld [vmem:[#allocation7 + $0x128] sm:$0xff] }
 0x589   :  { %5002 = vmatprep.subr.bf16.mxu1 %v4763_v60  ;;  %5166 = vmatprep.subr.bf16.mxu0 %v4765_v14  ;;  %v4049_v60 = vld [vmem:[#allocation7 + $0x138] sm:$0xff]  ;;  %v4326_v14 = vunpack.c.h.s8.bf16 %v4038_v55  ;;  %v4335_v43 = vunpack.c.l.s8.bf16 %v4047_v20  ;;  %v4343_v62 = vunpack.c.h.s8.bf16 %v4047_v20 }
 0x58c   :  { %5003 = vmatpush1.bf16.msra.mxu1 %v4762_v53  ;;  %5167 = vmatpush1.bf16.msra.mxu0 %v4764_v8  ;;  %v4046_v53 = vld [vmem:[#allocation7 + $0x120] sm:$0xff]  ;;  %v4337_v8 = vunpack.c.l.s8.bf16 %v4049_v60 }
 0x58d   :  { %5004 = vmatprep.subr.bf16.mxu1 %v4771_v59  ;;  %5168 = vmatprep.subr.bf16.mxu0 %v4773_v25  ;;  %v4048_v59 = vld [vmem:[#allocation7 + $0x130] sm:$0xff]  ;;  %v4334_v25 = vunpack.c.l.s8.bf16 %v4046_v53 }
 0x58e   :  { %v4336_v13 = vunpack.c.l.s8.bf16 %v4048_v59  ;;  %v4344_v11 = vunpack.c.h.s8.bf16 %v4048_v59 }
 0x590   :  { %5005 = vmatpush1.bf16.msra.mxu1 %v4770_v29  ;;  %5169 = vmatpush1.bf16.msra.mxu0 %v4772_v22  ;;  %v4345_v29 = vunpack.c.h.s8.bf16 %v4049_v60  ;;  %v4055_v22 = vld [vmem:[#allocation7 + $0x168] sm:$0xff] }
 0x591   :  { %5179 = vmatprep.subr.bf16.mxu1 %v4271_v35  ;;  %5343 = vmatprep.subr.bf16.mxu0 %v4273_v42  ;;  %v4057_v35 = vld [vmem:[#allocation7 + $0x178] sm:$0xff]  ;;  %v4342_v42 = vunpack.c.h.s8.bf16 %v4046_v53  ;;  %v4351_v9 = vunpack.c.l.s8.bf16 %v4055_v22  ;;  %v4359_v24 = vunpack.c.h.s8.bf16 %v4055_v22 }
 0x593   :  { %5007 = vmatmul.mubr.bf16.vlgmr.msra.gmra.mrb[112].mxu1 %v9688_v34  ;;  %5171 = vmatmul.mubr.bf16.vlgmr.msra.gmra.mrb[176].mxu0 %v9688_v34 }
 0x594   :  { %5180 = vmatpush1.bf16.msra.mxu1 %v4270_v10  ;;  %5211 = vmatprep.mubr.bf16.mxu1 %v9066_v27  ;;  %v4054_v10 = vld [vmem:[#allocation7 + $0x160] sm:$0xff] }
 0x595   :  { %5344 = vmatpush1.bf16.msra.mxu0 %v4272_v61  ;;  %5375 = vmatprep.mubr.bf16.mxu0 %v9066_v27  ;;  %v4296_v27 = vunpack.c.h.s8.bf16 %v4024_v47  ;;  %v4353_v61 = vunpack.c.l.s8.bf16 %v4057_v35  ;;  %v4358_v58 = vunpack.c.h.s8.bf16 %v4054_v10 }
 0x596   :  { %5181 = vmatprep.subr.bf16.mxu1 %v4279_v19  ;;  %5345 = vmatprep.subr.bf16.mxu0 %v4281_v5  ;;  %v4056_v19 = vld [vmem:[#allocation7 + $0x170] sm:$0xff]  ;;  %v4350_v5 = vunpack.c.l.s8.bf16 %v4054_v10 }
 0x597   :  { %v4352_v50 = vunpack.c.l.s8.bf16 %v4056_v19 }
 0x598   :  { %5182 = vmatpush1.bf16.msra.mxu1 %v4278_v4  ;;  %v4361_v4 = vunpack.c.h.s8.bf16 %v4057_v35 }
 0x599   :  { %5346 = vmatpush1.bf16.msra.mxu0 %v4280_v57  ;;  %5183 = vmatprep.subr.bf16.mxu1 %v4287_v23  ;;  %v4063_v57 = vld [vmem:[#allocation7 + $0x1a8] sm:$0xff]  ;;  %v4065_v23 = vld [vmem:[#allocation7 + $0x1b8] sm:$0xff] }
 0x59a   :  { %5347 = vmatprep.subr.bf16.mxu0 %v4289_v15  ;;  %v4360_v15 = vunpack.c.h.s8.bf16 %v4056_v19  ;;  %v4367_v47 = vunpack.c.l.s8.bf16 %v4063_v57  ;;  %v4375_v49 = vunpack.c.h.s8.bf16 %v4063_v57 }
 0x59c   :  { %5184 = vmatpush1.bf16.msra.mxu1 %v4286_v12  ;;  %v4062_v12 = vld [vmem:[#allocation7 + $0x1a0] sm:$0xff] }
 0x59d   :  { %5348 = vmatpush1.bf16.msra.mxu0 %v4288_v21  ;;  %5185 = vmatprep.subr.bf16.mxu1 %v4295_v56  ;;  %v4369_v21 = vunpack.c.l.s8.bf16 %v4065_v23  ;;  %v4064_v56 = vld [vmem:[#allocation7 + $0x1b0] sm:$0xff]  ;;  %v4374_v31 = vunpack.c.h.s8.bf16 %v4062_v12 }
 0x59e   :  { %5349 = vmatprep.subr.bf16.mxu0 %v4297_v28  ;;  %v4366_v28 = vunpack.c.l.s8.bf16 %v4062_v12  ;;  %v4368_v37 = vunpack.c.l.s8.bf16 %v4064_v56 }
 0x5a0   :  { %5186 = vmatpush1.bf16.msra.mxu1 %v4294_v0  ;;  %v4377_v0 = vunpack.c.h.s8.bf16 %v4065_v23  ;;  %v4103_v23 = vld [vmem:[#allocation7 + $0x2e8] sm:$0xff] }
 0x5a1   :  { %5350 = vmatpush1.bf16.msra.mxu0 %v4296_v27  ;;  %5187 = vmatprep.subr.bf16.mxu1 %v4303_v63  ;;  %v4071_v27 = vld [vmem:[#allocation7 + $0x1e8] sm:$0xff]  ;;  %v4073_v63 = vld [vmem:[#allocation7 + $0x1f8] sm:$0xff]  ;;  %v4447_v12 = vunpack.c.l.s8.bf16 %v4103_v23 }
 0x5a2   :  { %5351 = vmatprep.subr.bf16.mxu0 %v4305_v17  ;;  %v4376_v17 = vunpack.c.h.s8.bf16 %v4064_v56  ;;  %v4383_v48 = vunpack.c.l.s8.bf16 %v4071_v27  ;;  %v4391_v26 = vunpack.c.h.s8.bf16 %v4071_v27 }
 0x5a4   :  { %5188 = vmatpush1.bf16.msra.mxu1 %v4302_v18  ;;  %v4070_v18 = vld [vmem:[#allocation7 + $0x1e0] sm:$0xff] }
 0x5a5   :  { %5352 = vmatpush1.bf16.msra.mxu0 %v4304_v41  ;;  %5189 = vmatprep.subr.bf16.mxu1 %v4311_v44  ;;  %v4385_v41 = vunpack.c.l.s8.bf16 %v4073_v63  ;;  %v4072_v44 = vld [vmem:[#allocation7 + $0x1f0] sm:$0xff]  ;;  %v4390_v55 = vunpack.c.h.s8.bf16 %v4070_v18 }
 0x5a6   :  { %5353 = vmatprep.subr.bf16.mxu0 %v4313_v36  ;;  %v4382_v36 = vunpack.c.l.s8.bf16 %v4070_v18  ;;  %v4384_v2 = vunpack.c.l.s8.bf16 %v4072_v44 }
 0x5a8   :  { %5190 = vmatpush1.bf16.msra.mxu1 %v4310_v54  ;;  %v4393_v54 = vunpack.c.h.s8.bf16 %v4073_v63  ;;  %v4111_v63 = vld [vmem:[#allocation7 + $0x328] sm:$0xff] }
 0x5a9   :  { %5354 = vmatpush1.bf16.msra.mxu0 %v4312_v51  ;;  %5191 = vmatprep.subr.bf16.mxu1 %v4319_v52  ;;  %v4079_v51 = vld [vmem:[#allocation7 + $0x228] sm:$0xff]  ;;  %v4081_v52 = vld [vmem:[#allocation7 + $0x238] sm:$0xff]  ;;  %v4463_v18 = vunpack.c.l.s8.bf16 %v4111_v63 }
 0x5aa   :  { %5355 = vmatprep.subr.bf16.mxu0 %v4321_v3  ;;  %v4392_v3 = vunpack.c.h.s8.bf16 %v4072_v44  ;;  %v4399_v30 = vunpack.c.l.s8.bf16 %v4079_v51  ;;  %v4407_v60 = vunpack.c.h.s8.bf16 %v4079_v51 }
 0x5ac   :  { %5192 = vmatpush1.bf16.msra.mxu1 %v4318_v40  ;;  %v4078_v40 = vld [vmem:[#allocation7 + $0x220] sm:$0xff] }
 0x5ad   :  { %5356 = vmatpush1.bf16.msra.mxu0 %v4320_v33  ;;  %5193 = vmatprep.subr.bf16.mxu1 %v4327_v38  ;;  %v4401_v33 = vunpack.c.l.s8.bf16 %v4081_v52  ;;  %v4080_v38 = vld [vmem:[#allocation7 + $0x230] sm:$0xff]  ;;  %v4406_v53 = vunpack.c.h.s8.bf16 %v4078_v40 }
 0x5ae   :  { %5357 = vmatprep.subr.bf16.mxu0 %v4329_v6  ;;  %v4398_v6 = vunpack.c.l.s8.bf16 %v4078_v40  ;;  %v4400_v20 = vunpack.c.l.s8.bf16 %v4080_v38 }
 0x5b0   :  { %5194 = vmatpush1.bf16.msra.mxu1 %v4326_v14  ;;  %v4087_v14 = vld [vmem:[#allocation7 + $0x268] sm:$0xff] }
 0x5b1   :  { %5358 = vmatpush1.bf16.msra.mxu0 %v4328_v32  ;;  %5195 = vmatprep.subr.bf16.mxu1 %v4335_v43  ;;  %v4409_v32 = vunpack.c.h.s8.bf16 %v4081_v52  ;;  %v4089_v43 = vld [vmem:[#allocation7 + $0x278] sm:$0xff]  ;;  %v4415_v59 = vunpack.c.l.s8.bf16 %v4087_v14  ;;  %v4119_v52 = vld [vmem:[#allocation7 + $0x368] sm:$0xff] }
 0x5b2   :  { %5359 = vmatprep.subr.bf16.mxu0 %v4337_v8  ;;  %v4408_v8 = vunpack.c.h.s8.bf16 %v4080_v38  ;;  %v4425_v35 = vunpack.c.h.s8.bf16 %v4089_v43  ;;  %v4479_v40 = vunpack.c.l.s8.bf16 %v4119_v52 }
 0x5b4   :  { %5196 = vmatpush1.bf16.msra.mxu1 %v4334_v25  ;;  %v4086_v25 = vld [vmem:[#allocation7 + $0x260] sm:$0xff] }
 0x5b5   :  { %5360 = vmatpush1.bf16.msra.mxu0 %v4336_v13  ;;  %5197 = vmatprep.subr.bf16.mxu1 %v4343_v62  ;;  %v4417_v13 = vunpack.c.l.s8.bf16 %v4089_v43  ;;  %v4088_v62 = vld [vmem:[#allocation7 + $0x270] sm:$0xff]  ;;  %v4127_v43 = vld [vmem:[#allocation7 + $0x3a8] sm:$0xff] }
 0x5b6   :  { %5361 = vmatprep.subr.bf16.mxu0 %v4345_v29  ;;  %v4414_v29 = vunpack.c.l.s8.bf16 %v4086_v25  ;;  %v4416_v22 = vunpack.c.l.s8.bf16 %v4088_v62  ;;  %v4424_v10 = vunpack.c.h.s8.bf16 %v4088_v62 }
 0x5b8   :  { %5198 = vmatpush1.bf16.msra.mxu1 %v4342_v42  ;;  %v4095_v42 = vld [vmem:[#allocation7 + $0x2a8] sm:$0xff] }
 0x5b9   :  { %5362 = vmatpush1.bf16.msra.mxu0 %v4344_v11  ;;  %5199 = vmatprep.subr.bf16.mxu1 %v4351_v9  ;;  %v4097_v11 = vld [vmem:[#allocation7 + $0x2b8] sm:$0xff]  ;;  %v4422_v9 = vunpack.c.h.s8.bf16 %v4086_v25  ;;  %v4495_v25 = vunpack.c.l.s8.bf16 %v4127_v43 }
 0x5ba   :  { %5363 = vmatprep.subr.bf16.mxu0 %v4353_v61  ;;  %v4094_v61 = vld [vmem:[#allocation7 + $0x2a0] sm:$0xff]  ;;  %v4433_v19 = vunpack.c.l.s8.bf16 %v4097_v11  ;;  %v4441_v57 = vunpack.c.h.s8.bf16 %v4097_v11  ;;  %v4135_v11 = vld [vmem:[#allocation7 + $0x3e8] sm:$0xff] }
 0x5bc   :  { %5200 = vmatpush1.bf16.msra.mxu1 %v4350_v5  ;;  %v4096_v5 = vld [vmem:[#allocation7 + $0x2b0] sm:$0xff] }
 0x5bd   :  { %5364 = vmatpush1.bf16.msra.mxu0 %v4352_v50  ;;  %5201 = vmatprep.subr.bf16.mxu1 %v4359_v24  ;;  %v4430_v50 = vunpack.c.l.s8.bf16 %v4094_v61  ;;  %v4432_v24 = vunpack.c.l.s8.bf16 %v4096_v5 }
 0x5be   :  { %5365 = vmatprep.subr.bf16.mxu0 %v4361_v4  ;;  %v4439_v4 = vunpack.c.h.s8.bf16 %v4095_v42 }
 0x5c0   :  { %5202 = vmatpush1.bf16.msra.mxu1 %v4358_v58  ;;  %v4105_v58 = vld [vmem:[#allocation7 + $0x2f8] sm:$0xff] }
 0x5c1   :  { %5366 = vmatpush1.bf16.msra.mxu0 %v4360_v15  ;;  %5203 = vmatprep.subr.bf16.mxu1 %v4367_v47  ;;  %v4438_v15 = vunpack.c.h.s8.bf16 %v4094_v61  ;;  %v4440_v47 = vunpack.c.h.s8.bf16 %v4096_v5  ;;  %v4449_v56 = vunpack.c.l.s8.bf16 %v4105_v58  ;;  %v4457_v27 = vunpack.c.h.s8.bf16 %v4105_v58  ;;  %v4143_v58 = vld [vmem:[#allocation7 + $0x428] sm:$0xff] }
 0x5c2   :  { %5367 = vmatprep.subr.bf16.mxu0 %v4369_v21  ;;  %v4102_v21 = vld [vmem:[#allocation7 + $0x2e0] sm:$0xff]  ;;  %v4511_v61 = vunpack.c.l.s8.bf16 %v4135_v11 }
 0x5c4   :  { %5204 = vmatpush1.bf16.msra.mxu1 %v4366_v28  ;;  %v4104_v28 = vld [vmem:[#allocation7 + $0x2f0] sm:$0xff] }
 0x5c5   :  { %5368 = vmatpush1.bf16.msra.mxu0 %v4368_v37  ;;  %5205 = vmatprep.subr.bf16.mxu1 %v4375_v49  ;;  %v4446_v37 = vunpack.c.l.s8.bf16 %v4102_v21  ;;  %v4448_v49 = vunpack.c.l.s8.bf16 %v4104_v28 }
 0x5c6   :  { %5369 = vmatprep.subr.bf16.mxu0 %v4377_v0  ;;  %v4455_v0 = vunpack.c.h.s8.bf16 %v4103_v23 }
 0x5c8   :  { %5206 = vmatpush1.bf16.msra.mxu1 %v4374_v31  ;;  %v4113_v31 = vld [vmem:[#allocation7 + $0x338] sm:$0xff] }
 0x5c9   :  { %5370 = vmatpush1.bf16.msra.mxu0 %v4376_v17  ;;  %5207 = vmatprep.subr.bf16.mxu1 %v4383_v48  ;;  %v4454_v17 = vunpack.c.h.s8.bf16 %v4102_v21  ;;  %v4456_v48 = vunpack.c.h.s8.bf16 %v4104_v28  ;;  %v4465_v44 = vunpack.c.l.s8.bf16 %v4113_v31  ;;  %v4473_v51 = vunpack.c.h.s8.bf16 %v4113_v31 }
 0x5ca   :  { %5371 = vmatprep.subr.bf16.mxu0 %v4385_v41  ;;  %v4110_v41 = vld [vmem:[#allocation7 + $0x320] sm:$0xff]  ;;  %v4527_v21 = vunpack.c.l.s8.bf16 %v4143_v58 }
 0x5cc   :  { %5208 = vmatpush1.bf16.msra.mxu1 %v4382_v36  ;;  %v4112_v36 = vld [vmem:[#allocation7 + $0x330] sm:$0xff] }
 0x5cd   :  { %5372 = vmatpush1.bf16.msra.mxu0 %v4384_v2  ;;  %5209 = vmatprep.subr.bf16.mxu1 %v4391_v26  ;;  %v4462_v2 = vunpack.c.l.s8.bf16 %v4110_v41  ;;  %v4464_v26 = vunpack.c.l.s8.bf16 %v4112_v36 }
 0x5ce   :  { %5373 = vmatprep.subr.bf16.mxu0 %v4393_v54  ;;  %v4471_v54 = vunpack.c.h.s8.bf16 %v4111_v63  ;;  %v4151_v63 = vld [vmem:[#allocation7 + $0x468] sm:$0xff] }
 0x5d0   :  { %5210 = vmatpush1.bf16.msra.mxu1 %v4390_v55  ;;  %v4121_v55 = vld [vmem:[#allocation7 + $0x378] sm:$0xff] }
 0x5d1   :  { %5374 = vmatpush1.bf16.msra.mxu0 %v4392_v3  ;;  %5220 = vmatprep.subr.bf16.mxu1 %v4399_v30  ;;  %v4470_v3 = vunpack.c.h.s8.bf16 %v4110_v41  ;;  %v4472_v30 = vunpack.c.h.s8.bf16 %v4112_v36  ;;  %v4481_v38 = vunpack.c.l.s8.bf16 %v4121_v55  ;;  %v4543_v41 = vunpack.c.l.s8.bf16 %v4151_v63 }
 0x5d2   :  { %5384 = vmatprep.subr.bf16.mxu0 %v4401_v33  ;;  %v4118_v33 = vld [vmem:[#allocation7 + $0x360] sm:$0xff] }
 0x5d3   :  { %5212 = vmatmul.mubr.bf16.vlgmr.msra.gmra.mrb[116].mxu1 %v9069_v46 }
 0x5d4   :  { %5376 = vmatmul.mubr.bf16.vlgmr.msra.gmra.mrb[180].mxu0 %v9069_v46  ;;  %5221 = vmatpush1.bf16.msra.mxu1 %v4398_v6  ;;  %v4423_v46 = vunpack.c.h.s8.bf16 %v4087_v14  ;;  %v4120_v6 = vld [vmem:[#allocation7 + $0x370] sm:$0xff]  ;;  %v4487_v14 = vunpack.c.h.s8.bf16 %v4119_v52  ;;  %v4159_v52 = vld [vmem:[#allocation7 + $0x4a8] sm:$0xff] }
 0x5d5   :  { %5252 = vmatprep.mubr.bf16.mxu1 %v9077_v16  ;;  %5385 = vmatpush1.bf16.msra.mxu0 %v4400_v20  ;;  %v4478_v20 = vunpack.c.l.s8.bf16 %v4118_v33 }
 0x5d6   :  { %5416 = vmatprep.mubr.bf16.mxu0 %v9077_v16  ;;  %5222 = vmatprep.subr.bf16.mxu1 %v4407_v60  ;;  %v4431_v16 = vunpack.c.l.s8.bf16 %v4095_v42  ;;  %v4480_v60 = vunpack.c.l.s8.bf16 %v4120_v6 }
 0x5d7   :  { %5386 = vmatprep.subr.bf16.mxu0 %v4409_v32  ;;  %v4489_v32 = vunpack.c.h.s8.bf16 %v4121_v55  ;;  %v4161_v55 = vld [vmem:[#allocation7 + $0x4b8] sm:$0xff] }
 0x5d8   :  { %5223 = vmatpush1.bf16.msra.mxu1 %v4406_v53  ;;  %v4129_v53 = vld [vmem:[#allocation7 + $0x3b8] sm:$0xff] }
 0x5d9   :  { %5387 = vmatpush1.bf16.msra.mxu0 %v4408_v8  ;;  %5224 = vmatprep.subr.bf16.mxu1 %v4415_v59  ;;  %v4486_v8 = vunpack.c.h.s8.bf16 %v4118_v33  ;;  %v4488_v59 = vunpack.c.h.s8.bf16 %v4120_v6  ;;  %v4497_v62 = vunpack.c.l.s8.bf16 %v4129_v53  ;;  %v4505_v42 = vunpack.c.h.s8.bf16 %v4129_v53 }
 0x5da   :  { %5388 = vmatprep.subr.bf16.mxu0 %v4417_v13  ;;  %v4126_v13 = vld [vmem:[#allocation7 + $0x3a0] sm:$0xff]  ;;  %v4561_v33 = vunpack.c.l.s8.bf16 %v4161_v55 }
 0x5dc   :  { %5225 = vmatpush1.bf16.msra.mxu1 %v4414_v29  ;;  %v4128_v29 = vld [vmem:[#allocation7 + $0x3b0] sm:$0xff] }
 0x5dd   :  { %5389 = vmatpush1.bf16.msra.mxu0 %v4416_v22  ;;  %5226 = vmatprep.subr.bf16.mxu1 %v4423_v46  ;;  %v4494_v22 = vunpack.c.l.s8.bf16 %v4126_v13  ;;  %v4496_v46 = vunpack.c.l.s8.bf16 %v4128_v29 }
 0x5de   :  { %5390 = vmatprep.subr.bf16.mxu0 %v4425_v35  ;;  %v4503_v35 = vunpack.c.h.s8.bf16 %v4127_v43  ;;  %v4169_v43 = vld [vmem:[#allocation7 + $0x4f8] sm:$0xff] }
 0x5e0   :  { %5227 = vmatpush1.bf16.msra.mxu1 %v4422_v9  ;;  %v4137_v9 = vld [vmem:[#allocation7 + $0x3f8] sm:$0xff] }
 0x5e1   :  { %5391 = vmatpush1.bf16.msra.mxu0 %v4424_v10  ;;  %5228 = vmatprep.subr.bf16.mxu1 %v4431_v16  ;;  %v4502_v10 = vunpack.c.h.s8.bf16 %v4126_v13  ;;  %v4504_v16 = vunpack.c.h.s8.bf16 %v4128_v29  ;;  %v4513_v5 = vunpack.c.l.s8.bf16 %v4137_v9  ;;  %v4521_v23 = vunpack.c.h.s8.bf16 %v4137_v9 }
 0x5e2   :  { %5392 = vmatprep.subr.bf16.mxu0 %v4433_v19  ;;  %v4134_v19 = vld [vmem:[#allocation7 + $0x3e0] sm:$0xff]  ;;  %v4577_v13 = vunpack.c.l.s8.bf16 %v4169_v43 }
 0x5e4   :  { %5229 = vmatpush1.bf16.msra.mxu1 %v4430_v50  ;;  %v4136_v50 = vld [vmem:[#allocation7 + $0x3f0] sm:$0xff] }
 0x5e5   :  { %5393 = vmatpush1.bf16.msra.mxu0 %v4432_v24  ;;  %5230 = vmatprep.subr.bf16.mxu1 %v4439_v4  ;;  %v4510_v24 = vunpack.c.l.s8.bf16 %v4134_v19  ;;  %v4512_v4 = vunpack.c.l.s8.bf16 %v4136_v50 }
 0x5e6   :  { %5394 = vmatprep.subr.bf16.mxu0 %v4441_v57  ;;  %v4519_v57 = vunpack.c.h.s8.bf16 %v4135_v11  ;;  %v4177_v11 = vld [vmem:[#allocation7 + $0x538] sm:$0xff] }
 0x5e8   :  { %5231 = vmatpush1.bf16.msra.mxu1 %v4438_v15  ;;  %v4145_v15 = vld [vmem:[#allocation7 + $0x438] sm:$0xff] }
 0x5e9   :  { %5395 = vmatpush1.bf16.msra.mxu0 %v4440_v47  ;;  %5232 = vmatprep.subr.bf16.mxu1 %v4447_v12  ;;  %v4518_v47 = vunpack.c.h.s8.bf16 %v4134_v19  ;;  %v4520_v12 = vunpack.c.h.s8.bf16 %v4136_v50  ;;  %v4529_v28 = vunpack.c.l.s8.bf16 %v4145_v15  ;;  %v4537_v31 = vunpack.c.h.s8.bf16 %v4145_v15 }
 0x5ea   :  { %5396 = vmatprep.subr.bf16.mxu0 %v4449_v56  ;;  %v4142_v56 = vld [vmem:[#allocation7 + $0x420] sm:$0xff]  ;;  %v4593_v19 = vunpack.c.l.s8.bf16 %v4177_v11 }
 0x5ec   :  { %5233 = vmatpush1.bf16.msra.mxu1 %v4446_v37  ;;  %v4144_v37 = vld [vmem:[#allocation7 + $0x430] sm:$0xff] }
 0x5ed   :  { %5397 = vmatpush1.bf16.msra.mxu0 %v4448_v49  ;;  %5234 = vmatprep.subr.bf16.mxu1 %v4455_v0  ;;  %v4526_v49 = vunpack.c.l.s8.bf16 %v4142_v56  ;;  %v4528_v0 = vunpack.c.l.s8.bf16 %v4144_v37 }
 0x5ee   :  { %5398 = vmatprep.subr.bf16.mxu0 %v4457_v27  ;;  %v4535_v27 = vunpack.c.h.s8.bf16 %v4143_v58  ;;  %v4185_v58 = vld [vmem:[#allocation7 + $0x578] sm:$0xff] }
 0x5f0   :  { %5235 = vmatpush1.bf16.msra.mxu1 %v4454_v17  ;;  %v4153_v17 = vld [vmem:[#allocation7 + $0x478] sm:$0xff] }
 0x5f1   :  { %5399 = vmatpush1.bf16.msra.mxu0 %v4456_v48  ;;  %5236 = vmatprep.subr.bf16.mxu1 %v4463_v18  ;;  %v4534_v48 = vunpack.c.h.s8.bf16 %v4142_v56  ;;  %v4536_v18 = vunpack.c.h.s8.bf16 %v4144_v37  ;;  %v4545_v36 = vunpack.c.l.s8.bf16 %v4153_v17  ;;  %v4609_v56 = vunpack.c.l.s8.bf16 %v4185_v58 }
 0x5f2   :  { %5400 = vmatprep.subr.bf16.mxu0 %v4465_v44  ;;  %v4150_v44 = vld [vmem:[#allocation7 + $0x460] sm:$0xff] }
 0x5f4   :  { %5237 = vmatpush1.bf16.msra.mxu1 %v4462_v2  ;;  %v4152_v2 = vld [vmem:[#allocation7 + $0x470] sm:$0xff] }
 0x5f5   :  { %5401 = vmatpush1.bf16.msra.mxu0 %v4464_v26  ;;  %5238 = vmatprep.subr.bf16.mxu1 %v4471_v54  ;;  %v4542_v26 = vunpack.c.l.s8.bf16 %v4150_v44  ;;  %v4544_v54 = vunpack.c.l.s8.bf16 %v4152_v2 }
 0x5f6   :  { %5402 = vmatprep.subr.bf16.mxu0 %v4473_v51  ;;  %v4553_v51 = vunpack.c.h.s8.bf16 %v4153_v17 }
 0x5f8   :  { %5239 = vmatpush1.bf16.msra.mxu1 %v4470_v3  ;;  %v4550_v3 = vunpack.c.h.s8.bf16 %v4150_v44 }
 0x5f9   :  { %5403 = vmatpush1.bf16.msra.mxu0 %v4472_v30  ;;  %5240 = vmatprep.subr.bf16.mxu1 %v4479_v40  ;;  %v4552_v30 = vunpack.c.h.s8.bf16 %v4152_v2  ;;  %v4158_v40 = vld [vmem:[#allocation7 + $0x4a0] sm:$0xff] }
 0x5fa   :  { %5404 = vmatprep.subr.bf16.mxu0 %v4481_v38  ;;  %v4160_v38 = vld [vmem:[#allocation7 + $0x4b0] sm:$0xff]  ;;  %v4558_v6 = vunpack.c.l.s8.bf16 %v4158_v40  ;;  %v4566_v53 = vunpack.c.h.s8.bf16 %v4158_v40 }
 0x5fc   :  { %5241 = vmatpush1.bf16.msra.mxu1 %v4478_v20  ;;  %v4560_v20 = vunpack.c.l.s8.bf16 %v4160_v38 }
 0x5fd   :  { %5405 = vmatpush1.bf16.msra.mxu0 %v4480_v60  ;;  %5242 = vmatprep.subr.bf16.mxu1 %v4487_v14  ;;  %v4567_v60 = vunpack.c.h.s8.bf16 %v4159_v52  ;;  %v4569_v14 = vunpack.c.h.s8.bf16 %v4161_v55 }
 0x5fe   :  { %5406 = vmatprep.subr.bf16.mxu0 %v4489_v32  ;;  %v4167_v32 = vld [vmem:[#allocation7 + $0x4e8] sm:$0xff] }
 0x600   :  { %5243 = vmatpush1.bf16.msra.mxu1 %v4486_v8  ;;  %v4568_v8 = vunpack.c.h.s8.bf16 %v4160_v38 }
 0x601   :  { %5407 = vmatpush1.bf16.msra.mxu0 %v4488_v59  ;;  %5244 = vmatprep.subr.bf16.mxu1 %v4495_v25  ;;  %v4575_v59 = vunpack.c.l.s8.bf16 %v4167_v32  ;;  %v4166_v25 = vld [vmem:[#allocation7 + $0x4e0] sm:$0xff] }
 0x602   :  { %5408 = vmatprep.subr.bf16.mxu0 %v4497_v62  ;;  %v4168_v62 = vld [vmem:[#allocation7 + $0x4f0] sm:$0xff]  ;;  %v4574_v29 = vunpack.c.l.s8.bf16 %v4166_v25  ;;  %v4582_v9 = vunpack.c.h.s8.bf16 %v4166_v25 }
 0x604   :  { %5245 = vmatpush1.bf16.msra.mxu1 %v4494_v22  ;;  %v4576_v22 = vunpack.c.l.s8.bf16 %v4168_v62 }
 0x605   :  { %5409 = vmatpush1.bf16.msra.mxu0 %v4496_v46  ;;  %5246 = vmatprep.subr.bf16.mxu1 %v4503_v35  ;;  %v4583_v46 = vunpack.c.h.s8.bf16 %v4167_v32  ;;  %v4585_v35 = vunpack.c.h.s8.bf16 %v4169_v43  ;;  %v4209_v32 = vld [vmem:[#allocation7 + $0x638] sm:$0xff] }
 0x606   :  { %5410 = vmatprep.subr.bf16.mxu0 %v4505_v42  ;;  %v4175_v42 = vld [vmem:[#allocation7 + $0x528] sm:$0xff]  ;;  %v4657_v25 = vunpack.c.l.s8.bf16 %v4209_v32 }
 0x608   :  { %5247 = vmatpush1.bf16.msra.mxu1 %v4502_v10  ;;  %v4584_v10 = vunpack.c.h.s8.bf16 %v4168_v62 }
 0x609   :  { %5411 = vmatpush1.bf16.msra.mxu0 %v4504_v16  ;;  %5248 = vmatprep.subr.bf16.mxu1 %v4511_v61  ;;  %v4591_v16 = vunpack.c.l.s8.bf16 %v4175_v42  ;;  %v4174_v61 = vld [vmem:[#allocation7 + $0x520] sm:$0xff] }
 0x60a   :  { %5412 = vmatprep.subr.bf16.mxu0 %v4513_v5  ;;  %v4176_v5 = vld [vmem:[#allocation7 + $0x530] sm:$0xff]  ;;  %v4590_v50 = vunpack.c.l.s8.bf16 %v4174_v61  ;;  %v4598_v15 = vunpack.c.h.s8.bf16 %v4174_v61 }
 0x60c   :  { %5249 = vmatpush1.bf16.msra.mxu1 %v4510_v24  ;;  %v4592_v24 = vunpack.c.l.s8.bf16 %v4176_v5 }
 0x60d   :  { %5413 = vmatpush1.bf16.msra.mxu0 %v4512_v4  ;;  %5250 = vmatprep.subr.bf16.mxu1 %v4519_v57  ;;  %v4599_v4 = vunpack.c.h.s8.bf16 %v4175_v42  ;;  %v4601_v57 = vunpack.c.h.s8.bf16 %v4177_v11  ;;  %v4217_v42 = vld [vmem:[#allocation7 + $0x678] sm:$0xff] }
 0x60e   :  { %5414 = vmatprep.subr.bf16.mxu0 %v4521_v23  ;;  %v4183_v23 = vld [vmem:[#allocation7 + $0x568] sm:$0xff]  ;;  %v4673_v61 = vunpack.c.l.s8.bf16 %v4217_v42 }
 0x610   :  { %5251 = vmatpush1.bf16.msra.mxu1 %v4518_v47  ;;  %v4600_v47 = vunpack.c.h.s8.bf16 %v4176_v5 }
 0x611   :  { %5415 = vmatpush1.bf16.msra.mxu0 %v4520_v12  ;;  %5261 = vmatprep.subr.bf16.mxu1 %v4527_v21  ;;  %v4607_v12 = vunpack.c.l.s8.bf16 %v4183_v23  ;;  %v4182_v21 = vld [vmem:[#allocation7 + $0x560] sm:$0xff] }
 0x612   :  { %5425 = vmatprep.subr.bf16.mxu0 %v4529_v28  ;;  %v4184_v28 = vld [vmem:[#allocation7 + $0x570] sm:$0xff]  ;;  %v4606_v37 = vunpack.c.l.s8.bf16 %v4182_v21  ;;  %v4614_v17 = vunpack.c.h.s8.bf16 %v4182_v21 }
 0x613   :  { %5253 = vmatmul.mubr.bf16.vlgmr.msra.gmra.mrb[116].mxu1 %v9239_v1 }
 0x614   :  { %5417 = vmatmul.mubr.bf16.vlgmr.msra.gmra.mrb[180].mxu0 %v9239_v1  ;;  %5262 = vmatpush1.bf16.msra.mxu1 %v4526_v49  ;;  %v4551_v1 = vunpack.c.h.s8.bf16 %v4151_v63  ;;  %v4608_v49 = vunpack.c.l.s8.bf16 %v4184_v28  ;;  %v4191_v63 = vld [vmem:[#allocation7 + $0x5a8] sm:$0xff] }
 0x615   :  { %5293 = vmatprep.mubr.bf16.mxu1 %v9671_v39  ;;  %5426 = vmatpush1.bf16.msra.mxu0 %v4528_v0  ;;  %v4615_v0 = vunpack.c.h.s8.bf16 %v4183_v23 }
 0x616   :  { %5457 = vmatprep.mubr.bf16.mxu0 %v9671_v39  ;;  %5263 = vmatprep.subr.bf16.mxu1 %v4535_v27  ;;  %v4559_v39 = vunpack.c.l.s8.bf16 %v4159_v52  ;;  %v4617_v27 = vunpack.c.h.s8.bf16 %v4185_v58  ;;  %v4201_v52 = vld [vmem:[#allocation7 + $0x5f8] sm:$0xff] }
 0x617   :  { %5427 = vmatprep.subr.bf16.mxu0 %v4537_v31  ;;  %v4193_v31 = vld [vmem:[#allocation7 + $0x5b8] sm:$0xff]  ;;  %v4641_v40 = vunpack.c.l.s8.bf16 %v4201_v52 }
 0x618   :  { %5264 = vmatpush1.bf16.msra.mxu1 %v4534_v48  ;;  %v4616_v48 = vunpack.c.h.s8.bf16 %v4184_v28  ;;  %v4625_v44 = vunpack.c.l.s8.bf16 %v4193_v31 }
 0x619   :  { %5428 = vmatpush1.bf16.msra.mxu0 %v4536_v18  ;;  %5265 = vmatprep.subr.bf16.mxu1 %v4543_v41  ;;  %v4623_v18 = vunpack.c.l.s8.bf16 %v4191_v63  ;;  %v4190_v41 = vld [vmem:[#allocation7 + $0x5a0] sm:$0xff] }
 0x61a   :  { %5429 = vmatprep.subr.bf16.mxu0 %v4545_v36  ;;  %v4192_v36 = vld [vmem:[#allocation7 + $0x5b0] sm:$0xff]  ;;  %v4622_v2 = vunpack.c.l.s8.bf16 %v4190_v41  ;;  %v4630_v55 = vunpack.c.h.s8.bf16 %v4190_v41 }
 0x61c   :  { %5266 = vmatpush1.bf16.msra.mxu1 %v4542_v26  ;;  %v4624_v26 = vunpack.c.l.s8.bf16 %v4192_v36 }
 0x61d   :  { %5430 = vmatpush1.bf16.msra.mxu0 %v4544_v54  ;;  %5267 = vmatprep.subr.bf16.mxu1 %v4551_v1  ;;  %v4631_v54 = vunpack.c.h.s8.bf16 %v4191_v63  ;;  %v4633_v1 = vunpack.c.h.s8.bf16 %v4193_v31 }
 0x61e   :  { %5431 = vmatprep.subr.bf16.mxu0 %v4553_v51  ;;  %v4199_v51 = vld [vmem:[#allocation7 + $0x5e8] sm:$0xff] }
 0x620   :  { %5268 = vmatpush1.bf16.msra.mxu1 %v4550_v3  ;;  %v4632_v3 = vunpack.c.h.s8.bf16 %v4192_v36 }
 0x621   :  { %5432 = vmatpush1.bf16.msra.mxu0 %v4552_v30  ;;  %5269 = vmatprep.subr.bf16.mxu1 %v4559_v39  ;;  %v4639_v30 = vunpack.c.l.s8.bf16 %v4199_v51  ;;  %v4198_v39 = vld [vmem:[#allocation7 + $0x5e0] sm:$0xff] }
 0x622   :  { %5433 = vmatprep.subr.bf16.mxu0 %v4561_v33  ;;  %v4200_v33 = vld [vmem:[#allocation7 + $0x5f0] sm:$0xff]  ;;  %v4638_v38 = vunpack.c.l.s8.bf16 %v4198_v39  ;;  %v4646_v43 = vunpack.c.h.s8.bf16 %v4198_v39  ;;  %v4239_v39 = vld [vmem:[#allocation7 + $0x728] sm:$0xff] }
 0x624   :  { %5270 = vmatpush1.bf16.msra.mxu1 %v4558_v6  ;;  %v4640_v6 = vunpack.c.l.s8.bf16 %v4200_v33 }
 0x625   :  { %5434 = vmatpush1.bf16.msra.mxu0 %v4560_v20  ;;  %5271 = vmatprep.subr.bf16.mxu1 %v4567_v60  ;;  %v4647_v20 = vunpack.c.h.s8.bf16 %v4199_v51  ;;  %v4649_v60 = vunpack.c.h.s8.bf16 %v4201_v52 }
 0x626   :  { %5435 = vmatprep.subr.bf16.mxu0 %v4569_v14  ;;  %v4207_v14 = vld [vmem:[#allocation7 + $0x628] sm:$0xff] }
 0x628   :  { %5272 = vmatpush1.bf16.msra.mxu1 %v4566_v53  ;;  %v4648_v53 = vunpack.c.h.s8.bf16 %v4200_v33 }
 0x629   :  { %5436 = vmatpush1.bf16.msra.mxu0 %v4568_v8  ;;  %5273 = vmatprep.subr.bf16.mxu1 %v4575_v59  ;;  %v4655_v8 = vunpack.c.l.s8.bf16 %v4207_v14  ;;  %v4206_v59 = vld [vmem:[#allocation7 + $0x620] sm:$0xff] }
 0x62a   :  { %5437 = vmatprep.subr.bf16.mxu0 %v4577_v13  ;;  %v4208_v13 = vld [vmem:[#allocation7 + $0x630] sm:$0xff]  ;;  %v4654_v62 = vunpack.c.l.s8.bf16 %v4206_v59  ;;  %v4662_v11 = vunpack.c.h.s8.bf16 %v4206_v59  ;;  %v4247_v59 = vld [vmem:[#allocation7 + $0x768] sm:$0xff] }
 0x62c   :  { %5274 = vmatpush1.bf16.msra.mxu1 %v4574_v29  ;;  %v4656_v29 = vunpack.c.l.s8.bf16 %v4208_v13 }
 0x62d   :  { %5438 = vmatpush1.bf16.msra.mxu0 %v4576_v22  ;;  %5275 = vmatprep.subr.bf16.mxu1 %v4583_v46  ;;  %v4663_v22 = vunpack.c.h.s8.bf16 %v4207_v14  ;;  %v4215_v46 = vld [vmem:[#allocation7 + $0x668] sm:$0xff]  ;;  %v4240_v14 = vld [vmem:[#allocation7 + $0x730] sm:$0xff] }
 0x62e   :  { %5439 = vmatprep.subr.bf16.mxu0 %v4585_v35  ;;  %v4665_v35 = vunpack.c.h.s8.bf16 %v4209_v32 }
 0x630   :  { %5276 = vmatpush1.bf16.msra.mxu1 %v4582_v9  ;;  %v4664_v9 = vunpack.c.h.s8.bf16 %v4208_v13 }
 0x631   :  { %5440 = vmatpush1.bf16.msra.mxu0 %v4584_v10  ;;  %5277 = vmatprep.subr.bf16.mxu1 %v4591_v16  ;;  %v4671_v10 = vunpack.c.l.s8.bf16 %v4215_v46  ;;  %v4214_v16 = vld [vmem:[#allocation7 + $0x660] sm:$0xff] }
 0x632   :  { %5441 = vmatprep.subr.bf16.mxu0 %v4593_v19  ;;  %v4216_v19 = vld [vmem:[#allocation7 + $0x670] sm:$0xff]  ;;  %v4670_v5 = vunpack.c.l.s8.bf16 %v4214_v16  ;;  %v4678_v23 = vunpack.c.h.s8.bf16 %v4214_v16  ;;  %v4255_v16 = vld [vmem:[#allocation7 + $0x7a8] sm:$0xff] }
 0x633   :  { %v4680_v58 = vunpack.c.h.s8.bf16 %v4216_v19 }
 0x634   :  { %5278 = vmatpush1.bf16.msra.mxu1 %v4590_v50  ;;  %v4672_v50 = vunpack.c.l.s8.bf16 %v4216_v19 }
 0x635   :  { %5442 = vmatpush1.bf16.msra.mxu0 %v4592_v24  ;;  %5279 = vmatprep.subr.bf16.mxu1 %v4599_v4  ;;  %v4681_v24 = vunpack.c.h.s8.bf16 %v4217_v42  ;;  %v4223_v4 = vld [vmem:[#allocation7 + $0x6a8] sm:$0xff] }
 0x636   :  { %5443 = vmatprep.subr.bf16.mxu0 %v4601_v57  ;;  %v4225_v57 = vld [vmem:[#allocation7 + $0x6b8] sm:$0xff]  ;;  %v4695_v28 = vunpack.c.h.s8.bf16 %v4223_v4 }
 0x638   :  { %5280 = vmatpush1.bf16.msra.mxu1 %v4598_v15  ;;  %v4222_v15 = vld [vmem:[#allocation7 + $0x6a0] sm:$0xff] }
 0x639   :  { %5444 = vmatpush1.bf16.msra.mxu0 %v4600_v47  ;;  %5281 = vmatprep.subr.bf16.mxu1 %v4607_v12  ;;  %v4689_v47 = vunpack.c.l.s8.bf16 %v4225_v57  ;;  %v4224_v12 = vld [vmem:[#allocation7 + $0x6b0] sm:$0xff]  ;;  %v4686_v21 = vunpack.c.l.s8.bf16 %v4222_v15 }
 0x63a   :  { %5445 = vmatprep.subr.bf16.mxu0 %v4609_v56  ;;  %v4688_v56 = vunpack.c.l.s8.bf16 %v4224_v12  ;;  %v4696_v63 = vunpack.c.h.s8.bf16 %v4224_v12  ;;  %v9921_v12 = vld [vmem:[#allocation18_spill] sm:$0xff] }
 0x63c   :  { %5282 = vmatpush1.bf16.msra.mxu1 %v4606_v37  ;;  %v4697_v37 = vunpack.c.h.s8.bf16 %v4225_v57  ;;  %v9717_v57 = vld [vmem:[%s9787_s11 + $0x1f] sm:$0xff] }
 0x63d   :  { %5446 = vmatpush1.bf16.msra.mxu0 %v4608_v49  ;;  %5283 = vmatprep.subr.bf16.mxu1 %v4615_v0  ;;  %v4231_v49 = vld [vmem:[#allocation7 + $0x6e8] sm:$0xff]  ;;  %v4233_v0 = vld [vmem:[#allocation7 + $0x6f8] sm:$0xff] }
 0x63e   :  { %5447 = vmatprep.subr.bf16.mxu0 %v4617_v27  ;;  %v4694_v27 = vunpack.c.h.s8.bf16 %v4222_v15  ;;  %v4703_v31 = vunpack.c.l.s8.bf16 %v4231_v49  ;;  %v4705_v41 = vunpack.c.l.s8.bf16 %v4233_v0 }
 0x640   :  { %5284 = vmatpush1.bf16.msra.mxu1 %v4614_v17  ;;  %v4230_v17 = vld [vmem:[#allocation7 + $0x6e0] sm:$0xff] }
 0x641   :  { %5448 = vmatpush1.bf16.msra.mxu0 %v4616_v48  ;;  %5285 = vmatprep.subr.bf16.mxu1 %v4623_v18  ;;  %v4710_v33 = vunpack.c.h.s8.bf16 %v4230_v17 }
 0x642   :  { %5449 = vmatprep.subr.bf16.mxu0 %v4625_v44  ;;  %v4232_v44 = vld [vmem:[#allocation7 + $0x6f0] sm:$0xff] }
 0x644   :  { %5286 = vmatpush1.bf16.msra.mxu1 %v4622_v2 }
 0x645   :  { %5450 = vmatpush1.bf16.msra.mxu0 %v4624_v26  ;;  %5287 = vmatprep.subr.bf16.mxu1 %v4631_v54 }
 0x646   :  { %5451 = vmatprep.subr.bf16.mxu0 %v4633_v1  ;;  %v4702_v1 = vunpack.c.l.s8.bf16 %v4230_v17 }
 0x648   :  { %5288 = vmatpush1.bf16.msra.mxu1 %v4630_v55  ;;  %v4704_v55 = vunpack.c.l.s8.bf16 %v4232_v44 }
 0x649   :  { %5452 = vmatpush1.bf16.msra.mxu0 %v4632_v3  ;;  %5289 = vmatprep.subr.bf16.mxu1 %v4639_v30  ;;  %v4711_v3 = vunpack.c.h.s8.bf16 %v4231_v49  ;;  %v4713_v30 = vunpack.c.h.s8.bf16 %v4233_v0 }
 0x64a   :  { %5453 = vmatprep.subr.bf16.mxu0 %v4641_v40  ;;  %v4241_v40 = vld [vmem:[#allocation7 + $0x738] sm:$0xff] }
 0x64c   :  { %5290 = vmatpush1.bf16.msra.mxu1 %v4638_v38  ;;  %v4712_v38 = vunpack.c.h.s8.bf16 %v4232_v44 }
 0x64d   :  { %5454 = vmatpush1.bf16.msra.mxu0 %v4640_v6  ;;  %5291 = vmatprep.subr.bf16.mxu1 %v4647_v20  ;;  %v4719_v6 = vunpack.c.l.s8.bf16 %v4239_v39  ;;  %v4238_v20 = vld [vmem:[#allocation7 + $0x720] sm:$0xff] }
 0x64e   :  { %5455 = vmatprep.subr.bf16.mxu0 %v4649_v60  ;;  %v4721_v60 = vunpack.c.l.s8.bf16 %v4241_v40  ;;  %v4718_v32 = vunpack.c.l.s8.bf16 %v4238_v20  ;;  %v4726_v13 = vunpack.c.h.s8.bf16 %v4238_v20  ;;  %v7608_v20 = vld [vmem:[#allocation9 + $0x34] ss:$8 sps:$4 sm:$0xff]  }
 0x650   :  { %5292 = vmatpush1.bf16.msra.mxu1 %v4646_v43  ;;  %v4720_v43 = vunpack.c.l.s8.bf16 %v4240_v14 }
 0x651   :  { %5456 = vmatpush1.bf16.msra.mxu0 %v4648_v53  ;;  %5302 = vmatprep.subr.bf16.mxu1 %v4655_v8  ;;  %v4727_v53 = vunpack.c.h.s8.bf16 %v4239_v39  ;;  %v4729_v8 = vunpack.c.h.s8.bf16 %v4241_v40  ;;  %v7602_v39 = vld [vmem:[#allocation9 + $0x14] ss:$8 sps:$4 sm:$0xff]  }
 0x652   :  { %5466 = vmatprep.subr.bf16.mxu0 %v4657_v25  ;;  %v4249_v25 = vld [vmem:[#allocation7 + $0x778] sm:$0xff] }
 0x653   :  { %5294 = vmatmul.mubr.bf16.vlgmr.msra.gmra.mrb[116].mxu1 %v9673_v45 }
 0x654   :  { %5458 = vmatmul.mubr.bf16.vlgmr.msra.gmra.mrb[180].mxu0 %v9673_v45  ;;  %5303 = vmatpush1.bf16.msra.mxu1 %v4654_v62  ;;  %v4679_v45 = vunpack.c.h.s8.bf16 %v4215_v46  ;;  %v4728_v62 = vunpack.c.h.s8.bf16 %v4240_v14  ;;  %v4737_v46 = vunpack.c.l.s8.bf16 %v4249_v25  ;;  %v7611_v14 = vld [vmem:[#allocation9 + $0x44] ss:$8 sps:$4 sm:$0xff]  }
 0x655   :  { %5334 = vmatprep.mubr.bf16.mxu1 %v9682_v7  ;;  %5467 = vmatpush1.bf16.msra.mxu0 %v4656_v29  ;;  %v4735_v29 = vunpack.c.l.s8.bf16 %v4247_v59 }
 0x656   :  { %5498 = vmatprep.mubr.bf16.mxu0 %v9682_v7  ;;  %5304 = vmatprep.subr.bf16.mxu1 %v4663_v22  ;;  %v4687_v7 = vunpack.c.l.s8.bf16 %v4223_v4  ;;  %v4246_v22 = vld [vmem:[#allocation7 + $0x760] sm:$0xff]  ;;  %v4256_v4 = vld [vmem:[#allocation7 + $0x7b0] sm:$0xff] }
 0x657   :  { %5468 = vmatprep.subr.bf16.mxu0 %v4665_v35  ;;  %v4248_v35 = vld [vmem:[#allocation7 + $0x770] sm:$0xff]  ;;  %v4734_v42 = vunpack.c.l.s8.bf16 %v4246_v22  ;;  %v4742_v19 = vunpack.c.h.s8.bf16 %v4246_v22  ;;  %v4760_v49 = vunpack.c.h.s8.bf16 %v4256_v4 }
 0x658   :  { %5305 = vmatpush1.bf16.msra.mxu1 %v4662_v11  ;;  %v4736_v11 = vunpack.c.l.s8.bf16 %v4248_v35  ;;  %v7624_v22 = vld [vmem:[#allocation9 + $0x90] ss:$8 sps:$4 sm:$0xff]  }
 0x659   :  { %5469 = vmatpush1.bf16.msra.mxu0 %v4664_v9  ;;  %5306 = vmatprep.subr.bf16.mxu1 %v4671_v10  ;;  %v4743_v9 = vunpack.c.h.s8.bf16 %v4247_v59  ;;  %v4745_v10 = vunpack.c.h.s8.bf16 %v4249_v25  ;;  %v7620_v59 = vld [vmem:[#allocation9 + $0x74] ss:$8 sps:$4 sm:$0xff]   ;;  %v7618_v25 = vld [vmem:[#allocation9 + $0x70] ss:$8 sps:$4 sm:$0xff]  }
 0x65a   :  { %5470 = vmatprep.subr.bf16.mxu0 %v4673_v61  ;;  %v4257_v61 = vld [vmem:[#allocation7 + $0x7b8] sm:$0xff] }
 0x65b   :  { %v4761_v15 = vunpack.c.h.s8.bf16 %v4257_v61 }
 0x65c   :  { %5307 = vmatpush1.bf16.msra.mxu1 %v4670_v5  ;;  %v4744_v5 = vunpack.c.h.s8.bf16 %v4248_v35  ;;  %v7627_v35 = vld [vmem:[#allocation9 + $0xa0] ss:$8 sps:$4 sm:$0xff]  }
 0x65d   :  { %5471 = vmatpush1.bf16.msra.mxu0 %v4672_v50  ;;  %5308 = vmatprep.subr.bf16.mxu1 %v4679_v45  ;;  %v4751_v50 = vunpack.c.l.s8.bf16 %v4255_v16  ;;  %v4254_v45 = vld [vmem:[#allocation7 + $0x7a0] sm:$0xff] }
 0x65e   :  { %5472 = vmatprep.subr.bf16.mxu0 %v4681_v24  ;;  %v4753_v24 = vunpack.c.l.s8.bf16 %v4257_v61 }
 0x660   :  { %5309 = vmatpush1.bf16.msra.mxu1 %v4678_v23  ;;  %v4750_v23 = vunpack.c.l.s8.bf16 %v4254_v45 }
 0x661   :  { %5473 = vmatpush1.bf16.msra.mxu0 %v4680_v58  ;;  %5310 = vmatprep.subr.bf16.mxu1 %v4687_v7  ;;  %v4752_v58 = vunpack.c.l.s8.bf16 %v4256_v4  ;;  %v4759_v7 = vunpack.c.h.s8.bf16 %v4255_v16  ;;  %v9922_v16 = vld [vmem:[#allocation17_spill] sm:$0xff] }
 0x662   :  { %5474 = vmatprep.subr.bf16.mxu0 %v4689_v47  ;;  %v4263_v47 = vld [vmem:[#allocation7 + $0x7e8] sm:$0xff]  ;;  %v5512_v61 = vrot.slane %v9717_v57, %v9922_v16 }
 0x663   :  { %v4767_v0 = vunpack.c.l.s8.bf16 %v4263_v47 }
 0x664   :  { %5311 = vmatpush1.bf16.msra.mxu1 %v4686_v21  ;;  %v5516_v21 = vrot.slane %v9717_v57, %v9921_v12 }
 0x665   :  { %5475 = vmatpush1.bf16.msra.mxu0 %v4688_v56  ;;  %5312 = vmatprep.subr.bf16.mxu1 %v4695_v28  ;;  %v4265_v56 = vld [vmem:[#allocation7 + $0x7f8] sm:$0xff] }
 0x666   :  { %v9706_v48 = vpop.f32.mrb[112].mxu1  ;;  %v9708_v18 = vpop.f32.mrb[176].mxu0  ;;  %5476 = vmatprep.subr.bf16.mxu0 %v4697_v37  ;;  %v9724_v28 = vld [vmem:[%s9787_s11 + $0x17] sm:$0xff]  ;;  %v4758_v37 = vunpack.c.h.s8.bf16 %v4254_v45 }
 0x667   :  { %v9710_v36 = vpop.f32.mrb[113].mxu1  ;;  %v9712_v2 = vpop.f32.mrb[177].mxu0  ;;  %v7636_v45 = vld [vmem:[#allocation9 + $0xd0] ss:$8 sps:$4 sm:$0xff]   ;;  %v5562_v4 = vrot.slane %v9724_v28, %v9922_v16 }
 0x668   :  { %v5012_v26 = vpop.f32.mrb[114].mxu1  ;;  %v5176_v54 = vpop.f32.mrb[178].mxu0  ;;  %5313 = vmatpush1.bf16.msra.mxu1 %v4694_v27  ;;  %v4262_v27 = vld [vmem:[#allocation7 + $0x7e0] sm:$0xff]  ;;  %v5550_v17 = vmul.f32 %v5516_v21, %v9710_v36  ;;  %v7644_v21 = vld [vmem:[#allocation9 + $0xf4] ss:$8 sps:$4 sm:$0xff]  }
 0x669   :  { %5477 = vmatpush1.bf16.msra.mxu0 %v4696_v63  ;;  %v5013_v51 = vpop.f32.mrb[115].mxu1  ;;  %v5177_v52 = vpop.f32.mrb[179].mxu0  ;;  %5314 = vmatprep.subr.bf16.mxu1 %v4703_v31  ;;  %v4769_v63 = vunpack.c.l.s8.bf16 %v4265_v56  ;;  %v4264_v31 = vld [vmem:[#allocation7 + $0x7f0] sm:$0xff]  ;;  %v4766_v44 = vunpack.c.l.s8.bf16 %v4262_v27  ;;  %v4775_v54 = vunpack.c.h.s8.bf16 %v4263_v47 }
 0x66a   :  { %5478 = vmatprep.subr.bf16.mxu0 %v4705_v41  ;;  %v5566_v41 = vrot.slane %v9724_v28, %v9921_v12  ;;  %v4768_v26 = vunpack.c.l.s8.bf16 %v4264_v31  ;;  %v4774_v52 = vunpack.c.h.s8.bf16 %v4262_v27  ;;  %v7645_v27 = vld [vmem:[#allocation9 + $0x100] ss:$8 sps:$4 sm:$0xff]  }
 0x66c   :  { %5315 = vmatpush1.bf16.msra.mxu1 %v4702_v1  ;;  %v4777_v1 = vunpack.c.h.s8.bf16 %v4265_v56  ;;  %v5600_v51 = vadd.f32 %v5566_v41, %v5550_v17  ;;  %v7648_v17 = vld [vmem:[#allocation9 + $0x110] ss:$8 sps:$4 sm:$0xff]   ;;  %v7653_v41 = vld [vmem:[#allocation9 + $0x124] ss:$8 sps:$4 sm:$0xff]  }
 0x66d   :  { %5479 = vmatpush1.bf16.msra.mxu0 %v4704_v55  ;;  %5316 = vmatprep.subr.bf16.mxu1 %v4711_v3  ;;  %v4776_v55 = vunpack.c.h.s8.bf16 %v4264_v31  ;;  %v7599_v3 = vld [vmem:[#allocation9 + $0x4] ss:$8 sps:$4 sm:$0xff]  }
 0x66e   :  { %5480 = vmatprep.subr.bf16.mxu0 %v4713_v30  ;;  %v5608_v36 = vmax.f32 %v5600_v51, 0.0  ;;  %v7597_v30 = vld [vmem:[#allocation9] ss:$8 sps:$4 sm:$0xff]  }
 0x66f   :  { %v7657_v51 = vld [vmem:[#allocation9 + $0x140] ss:$8 sps:$4 sm:$0xff]  }
 0x670   :  { %5317 = vmatpush1.bf16.msra.mxu1 %v4710_v33  ;;  %v5616_v40 = vpack.c.bf16 %v5608_v36, %v5608_v36  ;;  %v7600_v33 = vld [vmem:[#allocation9 + $0x10] ss:$8 sps:$4 sm:$0xff]   ;;  %v7663_v36 = vld [vmem:[#allocation9 + $0x160] ss:$8 sps:$4 sm:$0xff]  }
 0x671   :  { %5481 = vmatpush1.bf16.msra.mxu0 %v4712_v38  ;;  %5318 = vmatprep.subr.bf16.mxu1 %v4719_v6  ;;  %v7605_v38 = vld [vmem:[#allocation9 + $0x24] ss:$8 sps:$4 sm:$0xff]   ;;  %v7603_v6 = vld [vmem:[#allocation9 + $0x20] ss:$8 sps:$4 sm:$0xff]  }
 0x672   :  { %5482 = vmatprep.subr.bf16.mxu0 %v4721_v60  ;;  %v7606_v60 = vld [vmem:[#allocation9 + $0x30] ss:$8 sps:$4 sm:$0xff]  }
 0x674   :  { %5319 = vmatpush1.bf16.msra.mxu1 %v4718_v32  ;;  %v7609_v32 = vld [vmem:[#allocation9 + $0x40] ss:$8 sps:$4 sm:$0xff]  }
 0x675   :  { %5483 = vmatpush1.bf16.msra.mxu0 %v4720_v43  ;;  %5320 = vmatprep.subr.bf16.mxu1 %v4727_v53  ;;  %v7614_v43 = vld [vmem:[#allocation9 + $0x54] ss:$8 sps:$4 sm:$0xff]   ;;  %v7612_v53 = vld [vmem:[#allocation9 + $0x50] ss:$8 sps:$4 sm:$0xff]  }
 0x676   :  { %5484 = vmatprep.subr.bf16.mxu0 %v4729_v8  ;;  %v7615_v8 = vld [vmem:[#allocation9 + $0x60] ss:$8 sps:$4 sm:$0xff]  }
 0x678   :  { %5321 = vmatpush1.bf16.msra.mxu1 %v4726_v13  ;;  %v7623_v13 = vld [vmem:[#allocation9 + $0x84] ss:$8 sps:$4 sm:$0xff]  }
 0x679   :  { %5485 = vmatpush1.bf16.msra.mxu0 %v4728_v62  ;;  %5322 = vmatprep.subr.bf16.mxu1 %v4735_v29  ;;  %v7621_v62 = vld [vmem:[#allocation9 + $0x80] ss:$8 sps:$4 sm:$0xff]   ;;  %v7626_v29 = vld [vmem:[#allocation9 + $0x94] ss:$8 sps:$4 sm:$0xff]  }
 0x67a   :  { %5486 = vmatprep.subr.bf16.mxu0 %v4737_v46  ;;  %v7629_v46 = vld [vmem:[#allocation9 + $0xa4] ss:$8 sps:$4 sm:$0xff]  }
 0x67c   :  { %5323 = vmatpush1.bf16.msra.mxu1 %v4734_v42  ;;  %v7632_v42 = vld [vmem:[#allocation9 + $0xb4] ss:$8 sps:$4 sm:$0xff]  }
 0x67d   :  { %5487 = vmatpush1.bf16.msra.mxu0 %v4736_v11  ;;  %5324 = vmatprep.subr.bf16.mxu1 %v4743_v9  ;;  %v7630_v11 = vld [vmem:[#allocation9 + $0xb0] ss:$8 sps:$4 sm:$0xff]   ;;  %v7635_v9 = vld [vmem:[#allocation9 + $0xc4] ss:$8 sps:$4 sm:$0xff]  }
 0x67e   :  { %5488 = vmatprep.subr.bf16.mxu0 %v4745_v10  ;;  %v7633_v10 = vld [vmem:[#allocation9 + $0xc0] ss:$8 sps:$4 sm:$0xff]  }
 0x680   :  { %5325 = vmatpush1.bf16.msra.mxu1 %v4742_v19  ;;  %v7638_v19 = vld [vmem:[#allocation9 + $0xd4] ss:$8 sps:$4 sm:$0xff]  }
 0x681   :  { %5489 = vmatpush1.bf16.msra.mxu0 %v4744_v5  ;;  %5326 = vmatprep.subr.bf16.mxu1 %v4751_v50  ;;  %v9923_v5 = vld [vmem:[#allocation20_spill] sm:$0xff] }
 0x682   :  { %5490 = vmatprep.subr.bf16.mxu0 %v4753_v24  ;;  %v5524_v50 = vrot.slane %v9717_v57, %v9923_v5  ;;  %v5549_v24 = vmul.f32 %v5512_v61, %v9706_v48  ;;  %v7647_v48 = vld [vmem:[#allocation9 + $0x104] ss:$8 sps:$4 sm:$0xff]  }
 0x684   :  { %5327 = vmatpush1.bf16.msra.mxu1 %v4750_v23  ;;  %v7641_v23 = vld [vmem:[#allocation9 + $0xe4] ss:$8 sps:$4 sm:$0xff]   ;;  %v5599_v47 = vadd.f32 %v5562_v4, %v5549_v24  ;;  %v7702_v24 = vld [vmem:[#allocation9 + $0x230] ss:$8 sps:$4 sm:$0xff]  }
 0x685   :  { %5491 = vmatpush1.bf16.msra.mxu0 %v4752_v58  ;;  %5328 = vmatprep.subr.bf16.mxu1 %v4759_v7  ;;  %v5552_v58 = vmul.f32 %v5524_v50, %v9712_v2  ;;  %v5574_v7 = vrot.slane %v9724_v28, %v9923_v5  ;;  %v7650_v2 = vld [vmem:[#allocation9 + $0x114] ss:$8 sps:$4 sm:$0xff]   ;;  %v7701_v5 = vld [vmem:[#allocation9 + $0x224] ss:$8 sps:$4 sm:$0xff]   ;;  %v7699_v50 = vld [vmem:[#allocation9 + $0x220] ss:$8 sps:$4 sm:$0xff]  }
 0x686   :  { %5492 = vmatprep.subr.bf16.mxu0 %v4761_v15  ;;  %v7639_v15 = vld [vmem:[#allocation9 + $0xe0] ss:$8 sps:$4 sm:$0xff]   ;;  %v7707_v4 = vld [vmem:[#allocation9 + $0x244] ss:$8 sps:$4 sm:$0xff]  }
 0x687   :  { %v5602_v56 = vadd.f32 %v5574_v7, %v5552_v58  ;;  %v7710_v58 = vld [vmem:[#allocation9 + $0x254] ss:$8 sps:$4 sm:$0xff]   ;;  %v7708_v7 = vld [vmem:[#allocation9 + $0x250] ss:$8 sps:$4 sm:$0xff]  }
 0x688   :  { %5329 = vmatpush1.bf16.msra.mxu1 %v4758_v37  ;;  %v7642_v37 = vld [vmem:[#allocation9 + $0xf0] ss:$8 sps:$4 sm:$0xff]  }
 0x689   :  { %5493 = vmatpush1.bf16.msra.mxu0 %v4760_v49  ;;  %5330 = vmatprep.subr.bf16.mxu1 %v4767_v0  ;;  %v5607_v49 = vmax.f32 %v5599_v47, 0.0  ;;  %v5610_v0 = vmax.f32 %v5602_v56, 0.0  ;;  %v7711_v47 = vld [vmem:[#allocation9 + $0x260] ss:$8 sps:$4 sm:$0xff]   ;;  %v7714_v56 = vld [vmem:[#allocation9 + $0x270] ss:$8 sps:$4 sm:$0xff]  }
 0x68a   :  { %5494 = vmatprep.subr.bf16.mxu0 %v4769_v63 }
 0x68b   :  { %v5615_v63 = vpack.c.bf16 %v5607_v49, %v5607_v49  ;;  %v5618_v31 = vpack.c.bf16 %v5610_v0, %v5610_v0  ;;  %v7717_v49 = vld [vmem:[#allocation9 + $0x280] ss:$8 sps:$4 sm:$0xff]  }
 0x68c   :  { %5331 = vmatpush1.bf16.msra.mxu1 %v4766_v44  ;;  %v7651_v44 = vld [vmem:[#allocation9 + $0x120] ss:$8 sps:$4 sm:$0xff]  }
 0x68d   :  { %5495 = vmatpush1.bf16.msra.mxu0 %v4768_v26  ;;  %5332 = vmatprep.subr.bf16.mxu1 %v4775_v54  ;;  %v7656_v26 = vld [vmem:[#allocation9 + $0x134] ss:$8 sps:$4 sm:$0xff]   ;;  %v7654_v54 = vld [vmem:[#allocation9 + $0x130] ss:$8 sps:$4 sm:$0xff]   ;;  %v7789_v0 = vld [vmem:[#allocation10 + $0x40] sm:$0xff]  }
 0x68e   :  { %5496 = vmatprep.subr.bf16.mxu0 %v4777_v1  ;;  %v7659_v1 = vld [vmem:[#allocation9 + $0x144] ss:$8 sps:$4 sm:$0xff]  }
 0x690   :  { %5333 = vmatpush1.bf16.msra.mxu1 %v4774_v52  ;;  %v7662_v52 = vld [vmem:[#allocation9 + $0x154] ss:$8 sps:$4 sm:$0xff]  }
 0x691   :  { %5497 = vmatpush1.bf16.msra.mxu0 %v4776_v55  ;;  %6403 = vmatprep.subr.bf16.mxu1 %v7599_v3  ;;  %v7660_v55 = vld [vmem:[#allocation9 + $0x150] ss:$8 sps:$4 sm:$0xff]   ;;  %v7665_v3 = vld [vmem:[#allocation9 + $0x164] ss:$8 sps:$4 sm:$0xff]  }
 0x692   :  { %7066 = vmatprep.subr.bf16.mxu0 %v7789_v0  ;;  %v7752_v0 = vld [vmem:[#allocation9 + $0x334] ss:$8 sps:$4 sm:$0xff]  }
 0x693   :  { %5335 = vmatmul.mubr.bf16.vlgmr.msra.gmra.mrb[116].mxu1 %v9688_v34 }
 0x694   :  { %5499 = vmatmul.mubr.bf16.vlgmr.msra.gmra.mrb[180].mxu0 %v9688_v34  ;;  %6404 = vmatpush1.bf16.msra.mxu1 %v7597_v30  ;;  %v7617_v34 = vld [vmem:[#allocation9 + $0x64] ss:$8 sps:$4 sm:$0xff]   ;;  %v7668_v30 = vld [vmem:[#allocation9 + $0x174] ss:$8 sps:$4 sm:$0xff]  }
 0x695   :  { %6435 = vmatprep.mubr.bf16.mxu1 %v5616_v40  ;;  %6405 = vmatprep.subr.bf16.mxu1 %v7602_v39  ;;  %v7666_v39 = vld [vmem:[#allocation9 + $0x170] ss:$8 sps:$4 sm:$0xff]   ;;  %v7671_v40 = vld [vmem:[#allocation9 + $0x184] ss:$8 sps:$4 sm:$0xff]  }
 0x698   :  { %6406 = vmatpush1.bf16.msra.mxu1 %v7600_v33  ;;  %v7669_v33 = vld [vmem:[#allocation9 + $0x180] ss:$8 sps:$4 sm:$0xff]  }
 0x699   :  { %6407 = vmatprep.subr.bf16.mxu1 %v7605_v38  ;;  %v7674_v38 = vld [vmem:[#allocation9 + $0x194] ss:$8 sps:$4 sm:$0xff]  }
 0x69c   :  { %6408 = vmatpush1.bf16.msra.mxu1 %v7603_v6  ;;  %v7672_v6 = vld [vmem:[#allocation9 + $0x190] ss:$8 sps:$4 sm:$0xff]  }
 0x69d   :  { %6409 = vmatprep.subr.bf16.mxu1 %v7608_v20  ;;  %v7677_v20 = vld [vmem:[#allocation9 + $0x1a4] ss:$8 sps:$4 sm:$0xff]  }
 0x6a0   :  { %6410 = vmatpush1.bf16.msra.mxu1 %v7606_v60  ;;  %v7675_v60 = vld [vmem:[#allocation9 + $0x1a0] ss:$8 sps:$4 sm:$0xff]  }
 0x6a1   :  { %6411 = vmatprep.subr.bf16.mxu1 %v7611_v14  ;;  %v7680_v14 = vld [vmem:[#allocation9 + $0x1b4] ss:$8 sps:$4 sm:$0xff]  }
 0x6a4   :  { %6412 = vmatpush1.bf16.msra.mxu1 %v7609_v32  ;;  %v7678_v32 = vld [vmem:[#allocation9 + $0x1b0] ss:$8 sps:$4 sm:$0xff]  }
 0x6a5   :  { %6413 = vmatprep.subr.bf16.mxu1 %v7614_v43  ;;  %v7683_v43 = vld [vmem:[#allocation9 + $0x1c4] ss:$8 sps:$4 sm:$0xff]  }
 0x6a8   :  { %6414 = vmatpush1.bf16.msra.mxu1 %v7612_v53  ;;  %v7681_v53 = vld [vmem:[#allocation9 + $0x1c0] ss:$8 sps:$4 sm:$0xff]  }
 0x6a9   :  { %6415 = vmatprep.subr.bf16.mxu1 %v7617_v34  ;;  %v9924_v34 = vld [vmem:[#allocation19_spill] sm:$0xff] }
 0x6ac   :  { %6416 = vmatpush1.bf16.msra.mxu1 %v7615_v8  ;;  %v5520_v8 = vrot.slane %v9717_v57, %v9924_v34 }
 0x6ad   :  { %6417 = vmatprep.subr.bf16.mxu1 %v7620_v59  ;;  %v7686_v59 = vld [vmem:[#allocation9 + $0x1d4] ss:$8 sps:$4 sm:$0xff]  }
 0x6b0   :  { %6418 = vmatpush1.bf16.msra.mxu1 %v7618_v25  ;;  %v7684_v25 = vld [vmem:[#allocation9 + $0x1d0] ss:$8 sps:$4 sm:$0xff]  }
 0x6b1   :  { %6419 = vmatprep.subr.bf16.mxu1 %v7623_v13  ;;  %v5551_v13 = vmul.f32 %v5520_v8, %v9708_v18  ;;  %v7698_v18 = vld [vmem:[#allocation9 + $0x214] ss:$8 sps:$4 sm:$0xff]  }
 0x6b4   :  { %6420 = vmatpush1.bf16.msra.mxu1 %v7621_v62  ;;  %v5570_v62 = vrot.slane %v9724_v28, %v9924_v34  ;;  %v9926_v34 = vld [vmem:[#allocation23_spill] sm:$0xff] }
 0x6b5   :  { %6421 = vmatprep.subr.bf16.mxu1 %v7626_v29  ;;  %v7689_v29 = vld [vmem:[#allocation9 + $0x1e4] ss:$8 sps:$4 sm:$0xff]   ;;  %v5532_v8 = vrot.slane %v9717_v57, %v9926_v34 }
 0x6b8   :  { %6422 = vmatpush1.bf16.msra.mxu1 %v7624_v22  ;;  %v7687_v22 = vld [vmem:[#allocation9 + $0x1e0] ss:$8 sps:$4 sm:$0xff]  }
 0x6b9   :  { %6423 = vmatprep.subr.bf16.mxu1 %v7629_v46  ;;  %v5601_v46 = vadd.f32 %v5570_v62, %v5551_v13 }
 0x6bc   :  { %6424 = vmatpush1.bf16.msra.mxu1 %v7627_v35  ;;  %v7692_v35 = vld [vmem:[#allocation9 + $0x1f4] ss:$8 sps:$4 sm:$0xff]  }
 0x6bd   :  { %6425 = vmatprep.subr.bf16.mxu1 %v7632_v42  ;;  %v7690_v42 = vld [vmem:[#allocation9 + $0x1f0] ss:$8 sps:$4 sm:$0xff]  }
 0x6c0   :  { %6426 = vmatpush1.bf16.msra.mxu1 %v7630_v11  ;;  %v5609_v11 = vmax.f32 %v5601_v46, 0.0 }
 0x6c1   :  { %6427 = vmatprep.subr.bf16.mxu1 %v7635_v9  ;;  %v7695_v9 = vld [vmem:[#allocation9 + $0x204] ss:$8 sps:$4 sm:$0xff]  }
 0x6c2   :  { %v5617_v61 = vpack.c.bf16 %v5609_v11, %v5609_v11 }
 0x6c4   :  { %6428 = vmatpush1.bf16.msra.mxu1 %v7633_v10  ;;  %v7693_v10 = vld [vmem:[#allocation9 + $0x200] ss:$8 sps:$4 sm:$0xff]  }
 0x6c5   :  { %6429 = vmatprep.subr.bf16.mxu1 %v7638_v19  ;;  %v7696_v19 = vld [vmem:[#allocation9 + $0x210] ss:$8 sps:$4 sm:$0xff]  }
 0x6c8   :  { %6430 = vmatpush1.bf16.msra.mxu1 %v7636_v45  ;;  %v7704_v45 = vld [vmem:[#allocation9 + $0x234] ss:$8 sps:$4 sm:$0xff]  }
 0x6c9   :  { %6431 = vmatprep.subr.bf16.mxu1 %v7641_v23  ;;  %v7705_v23 = vld [vmem:[#allocation9 + $0x240] ss:$8 sps:$4 sm:$0xff]  }
 0x6cc   :  { %6432 = vmatpush1.bf16.msra.mxu1 %v7639_v15  ;;  %v7713_v15 = vld [vmem:[#allocation9 + $0x264] ss:$8 sps:$4 sm:$0xff]  }
 0x6cd   :  { %6433 = vmatprep.subr.bf16.mxu1 %v7644_v21  ;;  %v7716_v21 = vld [vmem:[#allocation9 + $0x274] ss:$8 sps:$4 sm:$0xff]  }
 0x6d0   :  { %6434 = vmatpush1.bf16.msra.mxu1 %v7642_v37  ;;  %v7719_v37 = vld [vmem:[#allocation9 + $0x284] ss:$8 sps:$4 sm:$0xff]  }
 0x6d1   :  { %6444 = vmatprep.subr.bf16.mxu1 %v7647_v48  ;;  %v7722_v48 = vld [vmem:[#allocation9 + $0x294] ss:$8 sps:$4 sm:$0xff]  }
 0x6d3   :  { %6436 = vmatmul.mubr.bf16.vlgmr.msra.gmra.mrb[120].mxu1 %v5615_v63  ;;  %v7791_v63 = vld [vmem:[#allocation10 + $0x48] sm:$0xff]  }
 0x6d4   :  { %6445 = vmatpush1.bf16.msra.mxu1 %v7645_v27  ;;  %6476 = vmatprep.mubr.bf16.mxu1 %v5618_v31  ;;  %v7790_v27 = vld [vmem:[#allocation10] sm:$0xff]   ;;  %v7792_v31 = vld [vmem:[#allocation10 + $0x8] sm:$0xff]  }
 0x6d5   :  { %6446 = vmatprep.subr.bf16.mxu1 %v7650_v2  ;;  %v7720_v2 = vld [vmem:[#allocation9 + $0x290] ss:$8 sps:$4 sm:$0xff]   ;;  %7067 = vmatpush3.bf16.msra.mxu0 %v7790_v27 }
 0x6d6   :  { %7068 = vmatprep.subr.bf16.mxu0 %v7791_v63  ;;  %v7750_v27 = vld [vmem:[#allocation9 + $0x330] ss:$8 sps:$4 sm:$0xff]   ;;  %v7755_v63 = vld [vmem:[#allocation9 + $0x344] ss:$8 sps:$4 sm:$0xff]  }
 0x6d8   :  { %6447 = vmatpush1.bf16.msra.mxu1 %v7648_v17  ;;  %v7725_v17 = vld [vmem:[#allocation9 + $0x2a4] ss:$8 sps:$4 sm:$0xff]  }
 0x6d9   :  { %6448 = vmatprep.subr.bf16.mxu1 %v7653_v41  ;;  %v7793_v41 = vld [vmem:[#allocation10 + $0x50] sm:$0xff]   ;;  %7069 = vmatpush3.bf16.msra.mxu0 %v7792_v31 }
 0x6da   :  { %7070 = vmatprep.subr.bf16.mxu0 %v7793_v41  ;;  %v7758_v31 = vld [vmem:[#allocation9 + $0x354] ss:$8 sps:$4 sm:$0xff]   ;;  %v7761_v41 = vld [vmem:[#allocation9 + $0x364] ss:$8 sps:$4 sm:$0xff]  }
 0x6dc   :  { %6449 = vmatpush1.bf16.msra.mxu1 %v7651_v44  ;;  %v7723_v44 = vld [vmem:[#allocation9 + $0x2a0] ss:$8 sps:$4 sm:$0xff]  }
 0x6dd   :  { %6450 = vmatprep.subr.bf16.mxu1 %v7656_v26  ;;  %v7794_v26 = vld [vmem:[#allocation10 + $0x10] sm:$0xff]  }
 0x6de   :  { %7071 = vmatpush3.bf16.msra.mxu0 %v7794_v26  ;;  %v7764_v26 = vld [vmem:[#allocation9 + $0x374] ss:$8 sps:$4 sm:$0xff]  }
 0x6e0   :  { %6451 = vmatpush1.bf16.msra.mxu1 %v7654_v54  ;;  %v7728_v54 = vld [vmem:[#allocation9 + $0x2b4] ss:$8 sps:$4 sm:$0xff]  }
 0x6e1   :  { %6452 = vmatprep.subr.bf16.mxu1 %v7659_v1  ;;  %v7795_v1 = vld [vmem:[#allocation10 + $0x58] sm:$0xff]  }
 0x6e2   :  { %7072 = vmatprep.subr.bf16.mxu0 %v7795_v1  ;;  %v7767_v1 = vld [vmem:[#allocation9 + $0x384] ss:$8 sps:$4 sm:$0xff]  }
 0x6e4   :  { %6453 = vmatpush1.bf16.msra.mxu1 %v7657_v51  ;;  %v7726_v51 = vld [vmem:[#allocation9 + $0x2b0] ss:$8 sps:$4 sm:$0xff]  }
 0x6e5   :  { %6454 = vmatprep.subr.bf16.mxu1 %v7662_v52  ;;  %v7796_v52 = vld [vmem:[#allocation10 + $0x18] sm:$0xff]  }
 0x6e6   :  { %7073 = vmatpush3.bf16.msra.mxu0 %v7796_v52  ;;  %v7770_v52 = vld [vmem:[#allocation9 + $0x394] ss:$8 sps:$4 sm:$0xff]  }
 0x6e8   :  { %6455 = vmatpush1.bf16.msra.mxu1 %v7660_v55  ;;  %v7731_v55 = vld [vmem:[#allocation9 + $0x2c4] ss:$8 sps:$4 sm:$0xff]  }
 0x6e9   :  { %6456 = vmatprep.subr.bf16.mxu1 %v7665_v3  ;;  %v7797_v3 = vld [vmem:[#allocation10 + $0x60] sm:$0xff]  }
 0x6ea   :  { %7074 = vmatprep.subr.bf16.mxu0 %v7797_v3  ;;  %v7773_v3 = vld [vmem:[#allocation9 + $0x3a4] ss:$8 sps:$4 sm:$0xff]  }
 0x6ec   :  { %6457 = vmatpush1.bf16.msra.mxu1 %v7663_v36  ;;  %v7729_v36 = vld [vmem:[#allocation9 + $0x2c0] ss:$8 sps:$4 sm:$0xff]  }
 0x6ed   :  { %6458 = vmatprep.subr.bf16.mxu1 %v7668_v30  ;;  %v7798_v30 = vld [vmem:[#allocation10 + $0x20] sm:$0xff]  }
 0x6ee   :  { %7075 = vmatpush3.bf16.msra.mxu0 %v7798_v30  ;;  %v7776_v30 = vld [vmem:[#allocation9 + $0x3b4] ss:$8 sps:$4 sm:$0xff]  }
 0x6f0   :  { %6459 = vmatpush1.bf16.msra.mxu1 %v7666_v39  ;;  %v7734_v39 = vld [vmem:[#allocation9 + $0x2d4] ss:$8 sps:$4 sm:$0xff]  }
 0x6f1   :  { %6460 = vmatprep.subr.bf16.mxu1 %v7671_v40  ;;  %v7799_v40 = vld [vmem:[#allocation10 + $0x68] sm:$0xff]  }
 0x6f2   :  { %7076 = vmatprep.subr.bf16.mxu0 %v7799_v40  ;;  %v7779_v40 = vld [vmem:[#allocation9 + $0x3c4] ss:$8 sps:$4 sm:$0xff]  }
 0x6f4   :  { %6461 = vmatpush1.bf16.msra.mxu1 %v7669_v33  ;;  %v7732_v33 = vld [vmem:[#allocation9 + $0x2d0] ss:$8 sps:$4 sm:$0xff]  }
 0x6f5   :  { %6462 = vmatprep.subr.bf16.mxu1 %v7674_v38  ;;  %v7800_v38 = vld [vmem:[#allocation10 + $0x28] sm:$0xff]  }
 0x6f6   :  { %7077 = vmatpush3.bf16.msra.mxu0 %v7800_v38  ;;  %v9928_v38 = vld [vmem:[#allocation22_spill] sm:$0xff] }
 0x6f8   :  { %6463 = vmatpush1.bf16.msra.mxu1 %v7672_v6  ;;  %v7737_v6 = vld [vmem:[#allocation9 + $0x2e4] ss:$8 sps:$4 sm:$0xff]  }
 0x6f9   :  { %6464 = vmatprep.subr.bf16.mxu1 %v7677_v20  ;;  %v7735_v20 = vld [vmem:[#allocation9 + $0x2e0] ss:$8 sps:$4 sm:$0xff]  }
 0x6fc   :  { %6465 = vmatpush1.bf16.msra.mxu1 %v7675_v60  ;;  %v7740_v60 = vld [vmem:[#allocation9 + $0x2f4] ss:$8 sps:$4 sm:$0xff]  }
 0x6fd   :  { %6466 = vmatprep.subr.bf16.mxu1 %v7680_v14  ;;  %v7738_v14 = vld [vmem:[#allocation9 + $0x2f0] ss:$8 sps:$4 sm:$0xff]  }
 0x700   :  { %6467 = vmatpush1.bf16.msra.mxu1 %v7678_v32  ;;  %v7743_v32 = vld [vmem:[#allocation9 + $0x304] ss:$8 sps:$4 sm:$0xff]  }
 0x701   :  { %6468 = vmatprep.subr.bf16.mxu1 %v7683_v43  ;;  %v9925_v43 = vld [vmem:[#allocation21_spill] sm:$0xff] }
 0x704   :  { %6469 = vmatpush1.bf16.msra.mxu1 %v7681_v53  ;;  %v5528_v53 = vrot.slane %v9717_v57, %v9925_v43 }
 0x705   :  { %6470 = vmatprep.subr.bf16.mxu1 %v7686_v59  ;;  %v5578_v59 = vrot.slane %v9724_v28, %v9925_v43  ;;  %v7785_v43 = vld [vmem:[#allocation9 + $0x3e4] ss:$8 sps:$4 sm:$0xff]  }
 0x708   :  { %6471 = vmatpush1.bf16.msra.mxu1 %v7684_v25  ;;  %v9927_v25 = vld [vmem:[#allocation24_spill] sm:$0xff] }
 0x709   :  { %6472 = vmatprep.subr.bf16.mxu1 %v7689_v29  ;;  %v5540_v13 = vrot.slane %v9717_v57, %v9927_v25  ;;  %v5582_v29 = vrot.slane %v9724_v28, %v9926_v34 }
 0x70c   :  { %6473 = vmatpush1.bf16.msra.mxu1 %v7687_v22 }
 0x70d   :  { %6474 = vmatprep.subr.bf16.mxu1 %v7692_v35 }
 0x710   :  { %6475 = vmatpush1.bf16.msra.mxu1 %v7690_v42  ;;  %v5590_v42 = vrot.slane %v9724_v28, %v9927_v25 }
 0x711   :  { %6485 = vmatprep.subr.bf16.mxu1 %v7695_v9 }
 0x713   :  { %6477 = vmatmul.mubr.bf16.vlgmr.msra.gmra.mrb[120].mxu1 %v5617_v61 }
 0x714   :  { %6486 = vmatpush1.bf16.msra.mxu1 %v7693_v10 }
 0x715   :  { %6487 = vmatprep.subr.bf16.mxu1 %v7698_v18 }
 0x718   :  { %6488 = vmatpush1.bf16.msra.mxu1 %v7696_v19 }
 0x719   :  { %6489 = vmatprep.subr.bf16.mxu1 %v7701_v5 }
 0x71c   :  { %6490 = vmatpush1.bf16.msra.mxu1 %v7699_v50 }
 0x71d   :  { %6491 = vmatprep.subr.bf16.mxu1 %v7704_v45 }
 0x720   :  { %6492 = vmatpush1.bf16.msra.mxu1 %v7702_v24 }
 0x721   :  { %6493 = vmatprep.subr.bf16.mxu1 %v7707_v4 }
 0x724   :  { %6494 = vmatpush1.bf16.msra.mxu1 %v7705_v23 }
 0x725   :  { %6495 = vmatprep.subr.bf16.mxu1 %v7710_v58 }
 0x728   :  { %6496 = vmatpush1.bf16.msra.mxu1 %v7708_v7 }
 0x729   :  { %6497 = vmatprep.subr.bf16.mxu1 %v7713_v15  ;;  %v7741_v15 = vld [vmem:[#allocation9 + $0x300] ss:$8 sps:$4 sm:$0xff]  }
 0x72c   :  { %6498 = vmatpush1.bf16.msra.mxu1 %v7711_v47 }
 0x72d   :  { %6499 = vmatprep.subr.bf16.mxu1 %v7716_v21  ;;  %v7746_v21 = vld [vmem:[#allocation9 + $0x314] ss:$8 sps:$4 sm:$0xff]  }
 0x730   :  { %6500 = vmatpush1.bf16.msra.mxu1 %v7714_v56 }
 0x731   :  { %6501 = vmatprep.subr.bf16.mxu1 %v7719_v37  ;;  %v7744_v37 = vld [vmem:[#allocation9 + $0x310] ss:$8 sps:$4 sm:$0xff]  }
 0x734   :  { %6502 = vmatpush1.bf16.msra.mxu1 %v7717_v49  ;;  %v7749_v49 = vld [vmem:[#allocation9 + $0x324] ss:$8 sps:$4 sm:$0xff]  }
 0x735   :  { %6503 = vmatprep.subr.bf16.mxu1 %v7722_v48  ;;  %v7747_v48 = vld [vmem:[#allocation9 + $0x320] ss:$8 sps:$4 sm:$0xff]  }
 0x738   :  { %6504 = vmatpush1.bf16.msra.mxu1 %v7720_v2  ;;  %v7753_v2 = vld [vmem:[#allocation9 + $0x340] ss:$8 sps:$4 sm:$0xff]  }
 0x739   :  { %6505 = vmatprep.subr.bf16.mxu1 %v7725_v17  ;;  %v7756_v17 = vld [vmem:[#allocation9 + $0x350] ss:$8 sps:$4 sm:$0xff]  }
 0x73c   :  { %6506 = vmatpush1.bf16.msra.mxu1 %v7723_v44  ;;  %v7759_v44 = vld [vmem:[#allocation9 + $0x360] ss:$8 sps:$4 sm:$0xff]  }
 0x73d   :  { %6507 = vmatprep.subr.bf16.mxu1 %v7728_v54  ;;  %v7762_v54 = vld [vmem:[#allocation9 + $0x370] ss:$8 sps:$4 sm:$0xff]  }
 0x740   :  { %6508 = vmatpush1.bf16.msra.mxu1 %v7726_v51  ;;  %v7765_v51 = vld [vmem:[#allocation9 + $0x380] ss:$8 sps:$4 sm:$0xff]  }
 0x741   :  { %6509 = vmatprep.subr.bf16.mxu1 %v7731_v55  ;;  %v7768_v55 = vld [vmem:[#allocation9 + $0x390] ss:$8 sps:$4 sm:$0xff]  }
 0x744   :  { %6510 = vmatpush1.bf16.msra.mxu1 %v7729_v36  ;;  %v7771_v36 = vld [vmem:[#allocation9 + $0x3a0] ss:$8 sps:$4 sm:$0xff]  }
 0x745   :  { %6511 = vmatprep.subr.bf16.mxu1 %v7734_v39  ;;  %v7774_v39 = vld [vmem:[#allocation9 + $0x3b0] ss:$8 sps:$4 sm:$0xff]  }
 0x748   :  { %6512 = vmatpush1.bf16.msra.mxu1 %v7732_v33  ;;  %v7777_v33 = vld [vmem:[#allocation9 + $0x3c0] ss:$8 sps:$4 sm:$0xff]  }
 0x749   :  { %6513 = vmatprep.subr.bf16.mxu1 %v7737_v6  ;;  %v5536_v6 = vrot.slane %v9717_v57, %v9928_v38 }
 0x74c   :  { %6514 = vmatpush1.bf16.msra.mxu1 %v7735_v20  ;;  %v7782_v20 = vld [vmem:[#allocation9 + $0x3d4] ss:$8 sps:$4 sm:$0xff]  }
 0x74d   :  { %6515 = vmatprep.subr.bf16.mxu1 %v7740_v60  ;;  %v7780_v60 = vld [vmem:[#allocation9 + $0x3d0] ss:$8 sps:$4 sm:$0xff]  }
 0x750   :  { %6516 = vmatpush1.bf16.msra.mxu1 %v7738_v14 }
 0x751   :  { %6526 = vmatprep.subr.bf16.mxu1 %v7743_v32  ;;  %v5586_v32 = vrot.slane %v9724_v28, %v9928_v38  ;;  %v7804_v28 = vld [vmem:[#allocation10 + $0x38] sm:$0xff]  }
 0x766   :  { %v5336_v62 = vpop.f32.mrb[116].mxu1 }
 0x767   :  { %v5553_v22 = vmul.f32 %v5528_v53, %v5336_v62  ;;  %v9756_v46 = vpop.f32.mrb[180].mxu0  ;;  %v5338_v35 = vpop.f32.mrb[117].mxu1  ;;  %v7783_v53 = vld [vmem:[#allocation9 + $0x3e0] ss:$8 sps:$4 sm:$0xff]   ;;  %v7802_v62 = vld [vmem:[#allocation10 + $0x30] sm:$0xff]  }
 0x768   :  { %v5554_v11 = vmul.f32 %v5532_v8, %v5338_v35  ;;  %v5502_v9 = vpop.f32.mrb[181].mxu0  ;;  %v5340_v10 = vpop.f32.mrb[118].mxu1  ;;  %v5555_v14 = vmul.f32 %v5536_v6, %v9756_v46  ;;  %v7788_v8 = vld [vmem:[#allocation9 + $0x3f4] ss:$8 sps:$4 sm:$0xff]  }
 0x769   :  { %v5603_v61 = vadd.f32 %v5578_v59, %v5553_v22  ;;  %v5556_v18 = vmul.f32 %v5540_v13, %v5502_v9  ;;  %v5504_v19 = vpop.f32.mrb[182].mxu0  ;;  %v5341_v5 = vpop.f32.mrb[119].mxu1  ;;  %v7786_v59 = vld [vmem:[#allocation9 + $0x3f0] ss:$8 sps:$4 sm:$0xff]   ;;  %v5751_v22 = vld [vmem:[%s9787_s11 + $0x27] sm:$0x3] }
 0x76a   :  { %v5604_v50 = vadd.f32 %v5582_v29, %v5554_v11  ;;  %v5505_v45 = vpop.f32.mrb[183].mxu0  ;;  %v5605_v34 = vadd.f32 %v5586_v32, %v5555_v14  ;;  %v7801_v13 = vld [vmem:[#allocation10 + $0x70] sm:$0xff]   ;;  %v7803_v29 = vld [vmem:[#allocation10 + $0x78] sm:$0xff]   ;;  %v5756_v46 = vrot.slane %v5751_v22, %v9922_v16  ;;  %v5760_v35 = vrot.slane %v5751_v22, %v9921_v12 }
 0x76b   :  { %v5611_v24 = vmax.f32 %v5603_v61, 0.0  ;;  %v5606_v4 = vadd.f32 %v5590_v42, %v5556_v18  ;;  %7078 = vmatprep.subr.bf16.mxu0 %v7801_v13 }
 0x76c   :  { %v5612_v23 = vmax.f32 %v5604_v50, 0.0  ;;  %v5613_v25 = vmax.f32 %v5605_v34, 0.0  ;;  %7079 = vmatpush3.bf16.msra.mxu0 %v7802_v62 }
 0x76d   :  { %v5614_v58 = vmax.f32 %v5606_v4, 0.0  ;;  %v5619_v47 = vpack.c.bf16 %v5611_v24, %v5611_v24  ;;  %7080 = vmatprep.subr.bf16.mxu0 %v7803_v29  ;;  %v7030_v4 = vld [vmem:[%s9787_s11 + $0x29] ss:$0 sm:$0xff] }
 0x76e   :  { %v5620_v7 = vpack.c.bf16 %v5612_v23, %v5612_v23  ;;  %v5621_v57 = vpack.c.bf16 %v5613_v25, %v5613_v25 }
 0x76f   :  { %v5622_v56 = vpack.c.bf16 %v5614_v58, %v5614_v58 }
 0x770   :  { %6517 = vmatprep.mubr.bf16.mxu1 %v5620_v7  ;;  %7081 = vmatpush3.bf16.msra.mxu0 %v7804_v28 }
 0x771   :  { %6518 = vmatmul.mubr.bf16.vlgmr.msra.gmra.mrb[120].mxu1 %v5619_v47 }
 0x772   :  { %6527 = vmatpush1.bf16.msra.mxu1 %v7741_v15  ;;  %6558 = vmatprep.mubr.bf16.mxu1 %v5622_v56 }
 0x773   :  { %6528 = vmatprep.subr.bf16.mxu1 %v7746_v21 }
 0x776   :  { %6529 = vmatpush1.bf16.msra.mxu1 %v7744_v37 }
 0x777   :  { %6530 = vmatprep.subr.bf16.mxu1 %v7749_v49 }
 0x77a   :  { %6531 = vmatpush1.bf16.msra.mxu1 %v7747_v48 }
 0x77b   :  { %6532 = vmatprep.subr.bf16.mxu1 %v7752_v0 }
 0x77e   :  { %6533 = vmatpush1.bf16.msra.mxu1 %v7750_v27 }
 0x77f   :  { %6534 = vmatprep.subr.bf16.mxu1 %v7755_v63 }
 0x782   :  { %6535 = vmatpush1.bf16.msra.mxu1 %v7753_v2 }
 0x783   :  { %6536 = vmatprep.subr.bf16.mxu1 %v7758_v31 }
 0x786   :  { %6537 = vmatpush1.bf16.msra.mxu1 %v7756_v17 }
 0x787   :  { %6538 = vmatprep.subr.bf16.mxu1 %v7761_v41 }
 0x78a   :  { %6539 = vmatpush1.bf16.msra.mxu1 %v7759_v44 }
 0x78b   :  { %6540 = vmatprep.subr.bf16.mxu1 %v7764_v26 }
 0x78e   :  { %6541 = vmatpush1.bf16.msra.mxu1 %v7762_v54 }
 0x78f   :  { %6542 = vmatprep.subr.bf16.mxu1 %v7767_v1 }
 0x792   :  { %6543 = vmatpush1.bf16.msra.mxu1 %v7765_v51 }
 0x793   :  { %6544 = vmatprep.subr.bf16.mxu1 %v7770_v52 }
 0x796   :  { %6545 = vmatpush1.bf16.msra.mxu1 %v7768_v55 }
 0x797   :  { %6546 = vmatprep.subr.bf16.mxu1 %v7773_v3 }
 0x79a   :  { %6547 = vmatpush1.bf16.msra.mxu1 %v7771_v36 }
 0x79b   :  { %6548 = vmatprep.subr.bf16.mxu1 %v7776_v30 }
 0x79e   :  { %6549 = vmatpush1.bf16.msra.mxu1 %v7774_v39 }
 0x79f   :  { %6550 = vmatprep.subr.bf16.mxu1 %v7779_v40 }
 0x7a2   :  { %6551 = vmatpush1.bf16.msra.mxu1 %v7777_v33 }
 0x7a3   :  { %6552 = vmatprep.subr.bf16.mxu1 %v7782_v20 }
 0x7a6   :  { %6553 = vmatpush1.bf16.msra.mxu1 %v7780_v60 }
 0x7a7   :  { %6554 = vmatprep.subr.bf16.mxu1 %v7785_v43 }
 0x7aa   :  { %6555 = vmatpush1.bf16.msra.mxu1 %v7783_v53 }
 0x7ab   :  { %6556 = vmatprep.subr.bf16.mxu1 %v7788_v8 }
 0x7ae   :  { %6557 = vmatpush1.bf16.msra.mxu1 %v7786_v59 }
 0x7b1   :  { %6559 = vmatmul.mubr.bf16.vlgmr.msra.gmra.mrb[120].mxu1 %v5621_v57 }
 0x884   :  { %v6560_v42 = vpop.f32.mrb[120].mxu1 }
 0x885   :  { %v7174_v11 = vadd.f32 %v6560_v42, %v5756_v46  ;;  %v6562_v9 = vpop.f32.mrb[121].mxu1 }
 0x886   :  { %v7175_v10 = vadd.f32 %v6562_v9, %v5760_v35  ;;  %v6564_v61 = vpop.f32.mrb[122].mxu1 }
 0x887   :  { %v6567_v18 = vmax.f32 %v7174_v11, 0.0  ;;  %v6565_v19 = vpop.f32.mrb[123].mxu1 }
 0x888   :  { %v6568_v5 = vmax.f32 %v7175_v10, 0.0 }
 0x889   :  { %v6569_v45 = vpack.c.bf16 %v6567_v18, %v6567_v18 }
 0x88a   :  { %v6570_v50 = vpack.c.bf16 %v6568_v5, %v6568_v5 }
 0x88c   :  { %6738 = vmatprep.mubr.bf16.mxu0 %v6570_v50 }
 0x88d   :  { %6739 = vmatmul.mubr.bf16.vlgmr.msra.gmra.mrb[184].mxu0 %v6569_v45 }
 0x960   :  { %v7082_v24 = vpop.f32.mrb[184].mxu0 }
 0x961   :  { %v7083_v16 = vpop.f32.mrb[185].mxu0 }
 0x962   :  { %v7084_v23 = vadd.f32 %v7083_v16, %v7082_v24  ;;  %v7085_v12 = vpop.f32.mrb[186].mxu0 }
 0x963   :  { %v7086_v58 = vpop.f32.mrb[187].mxu0 }
 0x964   :  { %v6741_v7 = vadd.f32 %v7084_v23, %v7030_v4 }
 0x966   :  { %6746 = vst [vmem:[%s9788_s12] sm:$0x3] %v6741_v7 }
 0x967   :  { %6751 = vsyncpa [#allocation3], 1 }
 0x968   :  { %6752 = vsyncpa [#allocation5], 1 }
 0x969   :  { %6753 = vsyncpa [#allocation8], 1 }
 0x96a   :  { %6754 = vsyncpa [#allocation11], 1 }

</bundles_post_ra>
